<compile_context>
chip_gen: v7x
topology: tpu7x:2x2x1
jax: 0.10.0
libtpu: 0.0.40
codegen_flags: <defaults>
</compile_context>

<pallas_src>
import functools

import jax
import jax.numpy as jnp
from jax.experimental import pallas as pl
from jax.experimental.pallas import tpu as pltpu

K_SORT = 64                       # SortAggregation k
CAT_DIM = 128 + 64 + 32 + 32      # 256: concat of the 4 GCN outputs
CONV5_LEN = K_SORT                # 64 windows (conv5 kernel 256 == node width)
POOL_LEN = CONV5_LEN // 2         # 32 after MaxPool1d(2, 2)
CONV6_K = 5
CONV6_LEN = POOL_LEN - CONV6_K + 1  # 28
FLAT_DIM = CONV6_LEN * 32           # 896 features into classifier_1


def _round_up(v, m):
    return ((v + m - 1) // m) * m


# ----------------------------------------------------------------------------
# Pallas kernels
# ----------------------------------------------------------------------------
def gcn_stack_kernel(a_ref, x_ref, w1_ref, b1_ref, w2_ref, b2_ref,
                     w3_ref, b3_ref, w4_ref, b4_ref, o_ref):
    """All four GCN layers fused.  Ahat stays resident in VMEM and is read from
    HBM once; the only HBM write is the lane-dense [Np, 256] concat."""

    def layer(h, w_ref, b_ref):
        xw = jnp.dot(h, w_ref[...], preferred_element_type=jnp.float32)
        agg = jnp.dot(a_ref[...], xw, preferred_element_type=jnp.float32)
        return jnp.tanh(agg + b_ref[...])

    h1 = layer(x_ref[...], w1_ref, b1_ref)      # [Np, 128]
    h2 = layer(h1, w2_ref, b2_ref)              # [Np, 64]
    h3 = layer(h2, w3_ref, b3_ref)              # [Np, 32]
    h4 = layer(h3, w4_ref, b4_ref)              # [Np, 32]
    o_ref[...] = jnp.concatenate([h1, h2, h3, h4], axis=-1)   # [Np, 256]


def conv_head_kernel(xp_ref, w5_ref, b5_ref, w6_ref, b6_ref,
                     w1_ref, b1_ref, w2_ref, b2_ref, o_ref, flat_sc):
    """Fused conv5 -> ReLU -> MaxPool(2,2) -> conv6(im2col) -> ReLU -> flatten
    -> classifier_1 -> ReLU -> classifier_2 -> log_softmax.  All intermediates
    live in VMEM (flat_sc scratch for the flatten)."""
    nb = o_ref.shape[0]                                          # num graphs

    # conv5: Conv1d(1, 16, 256, 256) over the per-graph [k*256] sequence is a
    # per-window matmul; batch is folded into the M dimension.
    y5 = jnp.dot(xp_ref[...], w5_ref[...], preferred_element_type=jnp.float32)
    y5 = jnp.maximum(y5 + b5_ref[...], 0.0)                      # [B*64, 16]

    # MaxPool1d(2, 2) along time (pairs stay inside a graph since 64 is even).
    y5p = y5.reshape(nb * POOL_LEN, 2, 16)
    z = jnp.maximum(y5p[:, 0, :], y5p[:, 1, :])                  # [B*32, 16]

    for b in range(nb):                                          # static unroll
        z_b = z[b * POOL_LEN:(b + 1) * POOL_LEN, :]              # [32, 16]
        # conv6 as im2col: one [28, 80] @ [80, 32] matmul instead of 5 small ones.
        patches = jnp.concatenate(
            [z_b[k:k + CONV6_LEN, :] for k in range(CONV6_K)], axis=-1)  # [28,80]
        y6 = jnp.dot(patches, w6_ref[...], preferred_element_type=jnp.float32)
        y6 = jnp.maximum(y6 + b6_ref[...], 0.0)                  # [28, 32]
        # Flatten in (t, c) order into the VMEM scratch.  classifier_1's weight
        # rows were permuted once at prep time to match, so no transpose is
        # needed anywhere on the hot path.
        for t in range(CONV6_LEN):
            flat_sc[b:b + 1, t * 32:(t + 1) * 32] = y6[t:t + 1, :]

    f = flat_sc[...]                                             # [B, 896]
    h = jnp.dot(f, w1_ref[...], preferred_element_type=jnp.float32)
    h = jnp.maximum(h + b1_ref[...], 0.0)                        # [B, 128]
    # TODO(synk): Dropout(0.5) is treated as identity (inference mode).
    logits = jnp.dot(h, w2_ref[...], preferred_element_type=jnp.float32) + b2_ref[...]
    # log_softmax; padded class lanes carry a -1e30 bias so they do not disturb
    # the normalization of the valid classes.
    m = jnp.max(logits, axis=-1, keepdims=True)
    lse = m + jnp.log(jnp.sum(jnp.exp(logits - m), axis=-1, keepdims=True))
    o_ref[...] = logits - lse


# ----------------------------------------------------------------------------
# Pallas wrappers
# ----------------------------------------------------------------------------
def gcn_stack(ahat, x, p):
    npad = ahat.shape[0]
    # TODO(synk): for large N, tile Ahat rows with a grid (+K reduction) and keep
    # h1..h3 in full-N VMEM scratch; at these sizes the whole problem fits VMEM
    # so a single un-gridded block (Ahat read once) is fastest.
    return pl.pallas_call(
        gcn_stack_kernel,
        out_shape=jax.ShapeDtypeStruct((npad, CAT_DIM), jnp.float32),
    )(ahat, x,
      p["w_gcn1_p"], p["b_gcn1"].reshape(1, -1),
      p["w_gcn2"], p["b_gcn2"].reshape(1, -1),
      p["w_gcn3"], p["b_gcn3"].reshape(1, -1),
      p["w_gcn4"], p["b_gcn4"].reshape(1, -1))


def conv_head_fused(xp, p, num_graphs):
    c_pad = p["w_fc2_p"].shape[1]
    return pl.pallas_call(
        conv_head_kernel,
        out_shape=jax.ShapeDtypeStruct((num_graphs, c_pad), jnp.float32),
        scratch_shapes=[pltpu.VMEM((num_graphs, FLAT_DIM), jnp.float32)],
    )(xp,
      p["w5"], p["b5"].reshape(1, -1),
      p["w6_im2col"], p["b6"].reshape(1, -1),
      p["w_fc1_p"], p["b_fc1"].reshape(1, -1),
      p["w_fc2_p"], p["b_fc2_p"].reshape(1, -1))


# ----------------------------------------------------------------------------
# Plain-JAX glue
# ----------------------------------------------------------------------------
def build_ahat(edge_index, num_nodes_padded):
    """Ahat = D^-1/2 (A + I) D^-1/2 as a dense, zero-padded matrix.  Padded
    nodes only connect to themselves, so they never leak into real rows."""
    src, dst = edge_index[0], edge_index[1]
    a = jnp.zeros((num_nodes_padded, num_nodes_padded),
                  jnp.float32).at[dst, src].set(1.0)
    a = a + jnp.eye(num_nodes_padded, dtype=jnp.float32)
    deg = jnp.sum(a, axis=1)
    dinv = jnp.where(deg > 0, 1.0 / jnp.sqrt(deg), 0.0)
    return a * dinv[:, None] * dinv[None, :]


def sort_pool(x_cat, batch, num_graphs, k):
    """Batched SortAggregation: per graph, sort nodes by the last feature
    channel (descending), keep top-k, zero-pad graphs with < k nodes.
    One batched top_k + one gather (no Python loop over graphs)."""
    key = x_cat[:, -1]                                        # [Np]
    gid = jnp.arange(num_graphs, dtype=batch.dtype)
    mask = batch[None, :] == gid[:, None]                     # [B, Np]
    masked = jnp.where(mask, key[None, :], -jnp.inf)
    vals, idx = jax.lax.top_k(masked, k)                      # [B, k]
    valid = vals > -jnp.inf
    feats = x_cat[idx] * valid[..., None].astype(x_cat.dtype)  # [B, k, 256]
    topk_idx = jnp.where(valid, idx, -1).astype(jnp.int32)
    return feats, topk_idx


def init_params(key, num_features, num_classes):
    """Weights stored in matmul-friendly layouts:
       GCN/Linear as [in, out] (torch weight transposed),
       conv5 as [256, 16] (= torch [16,1,256] transposed),
       conv6 as [5, 16, 32] (kernel, c_in, c_out),
       fc1 rows in torch's channel-major (c*28 + t) flatten order."""
    ks = jax.random.split(key, 16)

    def w(k, shape, scale=0.1):
        return scale * jax.random.normal(k, shape, dtype=jnp.float32)

    return {
        "w_gcn1": w(ks[0], (num_features, 128)), "b_gcn1": w(ks[1], (128,)),
        "w_gcn2": w(ks[2], (128, 64)),           "b_gcn2": w(ks[3], (64,)),
        "w_gcn3": w(ks[4], (64, 32)),            "b_gcn3": w(ks[5], (32,)),
        "w_gcn4": w(ks[6], (32, 32)),            "b_gcn4": w(ks[7], (32,)),
        "w5": w(ks[8], (256, 16)),               "b5": w(ks[9], (16,)),
        "w6": w(ks[10], (CONV6_K, 16, 32)),      "b6": w(ks[11], (32,)),
        "w_fc1": w(ks[12], (FLAT_DIM, 128)),     "b_fc1": w(ks[13], (128,)),
        "w_fc2": w(ks[14], (128, num_classes)),  "b_fc2": w(ks[15], (num_classes,)),
    }


def prepare_params(p):
    """One-time layout prep so the hot path has no transposes or tiny MXU dims."""
    q = dict(p)
    num_features = p["w_gcn1"].shape[0]
    num_classes = p["w_fc2"].shape[1]

    # Pad the GCN1 contraction dim (num_features) up to at least 8 sublanes.
    f_pad = _round_up(max(num_features, 8), 8)
    q["w_gcn1_p"] = jnp.zeros((f_pad, 128), jnp.float32).at[:num_features].set(
        p["w_gcn1"])

    # conv6 weight flattened for the im2col matmul: [5,16,32] -> [80,32]; row
    # index k*16 + c matches the patch layout built in the kernel.
    q["w6_im2col"] = p["w6"].reshape(CONV6_K * 16, 32)

    # classifier_1: permute the 896 input rows from torch's (c*28 + t) flatten
    # order to the kernel's (t*32 + c) order -> eliminates the transpose.
    t = jnp.arange(CONV6_LEN)
    c = jnp.arange(32)
    perm = (c[None, :] * CONV6_LEN + t[:, None]).reshape(-1)    # [896]
    q["w_fc1_p"] = p["w_fc1"][perm]

    # classifier_2: pad the class dim up to 8 lanes; padded logits get a huge
    # negative bias so log_softmax over the valid classes is unchanged.
    c_pad = _round_up(max(num_classes, 8), 8)
    q["w_fc2_p"] = jnp.zeros((128, c_pad), jnp.float32).at[:, :num_classes].set(
        p["w_fc2"])
    q["b_fc2_p"] = jnp.full((c_pad,), -1e30, jnp.float32).at[:num_classes].set(
        p["b_fc2"])
    return q


@functools.partial(jax.jit, static_argnames=("num_graphs",))
def dgcnn_forward(params, x, ahat, batch, num_graphs):
    n, f = x.shape
    npad = ahat.shape[0]
    fpad = params["w_gcn1_p"].shape[0]
    num_classes = params["w_fc2"].shape[1]

    # Zero-pad nodes / features so the GCN matmuls are (8,128)-aligned; padded
    # nodes are isolated in Ahat and excluded from sort-pool via batch = -1.
    x_pad = jnp.zeros((npad, fpad), jnp.float32).at[:n, :f].set(x)
    batch_pad = jnp.full((npad,), -1, jnp.int32).at[:n].set(batch.astype(jnp.int32))

    x_cat = gcn_stack(ahat, x_pad, params)                       # [Np, 256]

    feats, topk_idx = sort_pool(x_cat, batch_pad, num_graphs, K_SORT)
    xp = feats.reshape(num_graphs * K_SORT, CAT_DIM)             # [B*64, 256]

    logp_pad = conv_head_fused(xp, params, num_graphs)           # [B, 8]
    classes = logp_pad[:, :num_classes]                          # [B, num_classes]
    return classes, topk_idx


# ----------------------------------------------------------------------------
if __name__ == "__main__":
    key = jax.random.PRNGKey(0)
    k_x, k_p = jax.random.split(key)

    num_features, num_classes = 4, 3
    n_per, num_graphs = 70, 2          # each graph has >= k=64 nodes
    n_nodes = n_per * num_graphs

    x = jax.random.normal(k_x, (n_nodes, num_features), dtype=jnp.float32)

    # Undirected ring edges inside each graph (both directions listed).
    src, dst = [], []
    for g in range(num_graphs):
        off = g * n_per
        for i in range(n_per):
            j = (i + 1) % n_per
            src += [off + i, off + j]
            dst += [off + j, off + i]
    edge_index = jnp.array([src, dst], dtype=jnp.int32)           # [2, 280]
    batch = jnp.repeat(jnp.arange(num_graphs, dtype=jnp.int32), n_per)

    params = prepare_params(init_params(k_p, num_features, num_classes))

    n_pad = _round_up(max(n_nodes, 128), 128)                     # 140 -> 256
    ahat = build_ahat(edge_index, n_pad)

    classes, topk_idx = dgcnn_forward(params, x, ahat, batch, num_graphs)
    classes, topk_idx = jax.block_until_ready((classes, topk_idx))

    assert classes.shape == (num_graphs, num_classes)
    assert topk_idx.shape == (num_graphs, K_SORT)
    assert bool(jnp.all(jnp.isfinite(classes)))
    print("KERNEL_OK")
</pallas_src>

<mosaic_0001>
module attributes {stable_mosaic.version = 11 : i64} {
  func.func @gcn_stack_kernel(%arg0: memref<256x256xf32, #tpu.memory_space<vmem>>, %arg1: memref<256x8xf32, #tpu.memory_space<vmem>>, %arg2: memref<8x128xf32, #tpu.memory_space<vmem>>, %arg3: memref<1x128xf32, #tpu.memory_space<vmem>>, %arg4: memref<128x64xf32, #tpu.memory_space<vmem>>, %arg5: memref<1x64xf32, #tpu.memory_space<vmem>>, %arg6: memref<64x32xf32, #tpu.memory_space<vmem>>, %arg7: memref<1x32xf32, #tpu.memory_space<vmem>>, %arg8: memref<32x32xf32, #tpu.memory_space<vmem>>, %arg9: memref<1x32xf32, #tpu.memory_space<vmem>>, %arg10: memref<256x256xf32, #tpu.memory_space<vmem>>) attributes {dimension_semantics = [], scalar_prefetch = 0 : i64, scratch_operands = 0 : i64, tpu.core_type = #tpu.core_type<tc>} {
    %c0 = arith.constant 0 : index
    %c0_0 = arith.constant 0 : index
    %0 = vector.load %arg1[%c0, %c0_0] : memref<256x8xf32, #tpu.memory_space<vmem>>, vector<256x8xf32>
    %c0_1 = arith.constant 0 : index
    %c0_2 = arith.constant 0 : index
    %1 = vector.load %arg2[%c0_1, %c0_2] : memref<8x128xf32, #tpu.memory_space<vmem>>, vector<8x128xf32>
    %cst = arith.constant dense<0.000000e+00> : vector<256x128xf32>
    %2 = tpu.matmul %0, %1, %cst {dimension_numbers = #tpu.dot_dimension_numbers<[1], [0], [0], [1], [0, 0, 1, 1], [], []>} : vector<256x8xf32>, vector<8x128xf32>, vector<256x128xf32> -> vector<256x128xf32>
    %c0_3 = arith.constant 0 : index
    %c0_4 = arith.constant 0 : index
    %3 = vector.load %arg0[%c0_3, %c0_4] : memref<256x256xf32, #tpu.memory_space<vmem>>, vector<256x256xf32>
    %cst_5 = arith.constant dense<0.000000e+00> : vector<256x128xf32>
    %4 = tpu.matmul %3, %2, %cst_5 {dimension_numbers = #tpu.dot_dimension_numbers<[1], [0], [0], [1], [0, 0, 1, 1], [], []>} : vector<256x256xf32>, vector<256x128xf32>, vector<256x128xf32> -> vector<256x128xf32>
    %c0_6 = arith.constant 0 : index
    %c0_7 = arith.constant 0 : index
    %5 = vector.load %arg3[%c0_6, %c0_7] : memref<1x128xf32, #tpu.memory_space<vmem>>, vector<1x128xf32>
    %6 = vector.broadcast %5 : vector<1x128xf32> to vector<256x128xf32>
    %7 = arith.addf %4, %6 : vector<256x128xf32>
    %8 = math.tanh %7 : vector<256x128xf32>
    %c0_8 = arith.constant 0 : index
    %c0_9 = arith.constant 0 : index
    %9 = vector.load %arg4[%c0_8, %c0_9] : memref<128x64xf32, #tpu.memory_space<vmem>>, vector<128x64xf32>
    %cst_10 = arith.constant dense<0.000000e+00> : vector<256x64xf32>
    %10 = tpu.matmul %8, %9, %cst_10 {dimension_numbers = #tpu.dot_dimension_numbers<[1], [0], [0], [1], [0, 0, 1, 1], [], []>} : vector<256x128xf32>, vector<128x64xf32>, vector<256x64xf32> -> vector<256x64xf32>
    %c0_11 = arith.constant 0 : index
    %c0_12 = arith.constant 0 : index
    %11 = vector.load %arg0[%c0_11, %c0_12] : memref<256x256xf32, #tpu.memory_space<vmem>>, vector<256x256xf32>
    %cst_13 = arith.constant dense<0.000000e+00> : vector<256x64xf32>
    %12 = tpu.matmul %11, %10, %cst_13 {dimension_numbers = #tpu.dot_dimension_numbers<[1], [0], [0], [1], [0, 0, 1, 1], [], []>} : vector<256x256xf32>, vector<256x64xf32>, vector<256x64xf32> -> vector<256x64xf32>
    %c0_14 = arith.constant 0 : index
    %c0_15 = arith.constant 0 : index
    %13 = vector.load %arg5[%c0_14, %c0_15] : memref<1x64xf32, #tpu.memory_space<vmem>>, vector<1x64xf32>
    %14 = vector.broadcast %13 : vector<1x64xf32> to vector<256x64xf32>
    %15 = arith.addf %12, %14 : vector<256x64xf32>
    %16 = math.tanh %15 : vector<256x64xf32>
    %c0_16 = arith.constant 0 : index
    %c0_17 = arith.constant 0 : index
    %17 = vector.load %arg6[%c0_16, %c0_17] : memref<64x32xf32, #tpu.memory_space<vmem>>, vector<64x32xf32>
    %cst_18 = arith.constant dense<0.000000e+00> : vector<256x32xf32>
    %18 = tpu.matmul %16, %17, %cst_18 {dimension_numbers = #tpu.dot_dimension_numbers<[1], [0], [0], [1], [0, 0, 1, 1], [], []>} : vector<256x64xf32>, vector<64x32xf32>, vector<256x32xf32> -> vector<256x32xf32>
    %c0_19 = arith.constant 0 : index
    %c0_20 = arith.constant 0 : index
    %19 = vector.load %arg0[%c0_19, %c0_20] : memref<256x256xf32, #tpu.memory_space<vmem>>, vector<256x256xf32>
    %cst_21 = arith.constant dense<0.000000e+00> : vector<256x32xf32>
    %20 = tpu.matmul %19, %18, %cst_21 {dimension_numbers = #tpu.dot_dimension_numbers<[1], [0], [0], [1], [0, 0, 1, 1], [], []>} : vector<256x256xf32>, vector<256x32xf32>, vector<256x32xf32> -> vector<256x32xf32>
    %c0_22 = arith.constant 0 : index
    %c0_23 = arith.constant 0 : index
    %21 = vector.load %arg7[%c0_22, %c0_23] : memref<1x32xf32, #tpu.memory_space<vmem>>, vector<1x32xf32>
    %22 = vector.broadcast %21 : vector<1x32xf32> to vector<256x32xf32>
    %23 = arith.addf %20, %22 : vector<256x32xf32>
    %24 = math.tanh %23 : vector<256x32xf32>
    %c0_24 = arith.constant 0 : index
    %c0_25 = arith.constant 0 : index
    %25 = vector.load %arg8[%c0_24, %c0_25] : memref<32x32xf32, #tpu.memory_space<vmem>>, vector<32x32xf32>
    %cst_26 = arith.constant dense<0.000000e+00> : vector<256x32xf32>
    %26 = tpu.matmul %24, %25, %cst_26 {dimension_numbers = #tpu.dot_dimension_numbers<[1], [0], [0], [1], [0, 0, 1, 1], [], []>} : vector<256x32xf32>, vector<32x32xf32>, vector<256x32xf32> -> vector<256x32xf32>
    %c0_27 = arith.constant 0 : index
    %c0_28 = arith.constant 0 : index
    %27 = vector.load %arg0[%c0_27, %c0_28] : memref<256x256xf32, #tpu.memory_space<vmem>>, vector<256x256xf32>
    %cst_29 = arith.constant dense<0.000000e+00> : vector<256x32xf32>
    %28 = tpu.matmul %27, %26, %cst_29 {dimension_numbers = #tpu.dot_dimension_numbers<[1], [0], [0], [1], [0, 0, 1, 1], [], []>} : vector<256x256xf32>, vector<256x32xf32>, vector<256x32xf32> -> vector<256x32xf32>
    %c0_30 = arith.constant 0 : index
    %c0_31 = arith.constant 0 : index
    %29 = vector.load %arg9[%c0_30, %c0_31] : memref<1x32xf32, #tpu.memory_space<vmem>>, vector<1x32xf32>
    %30 = vector.broadcast %29 : vector<1x32xf32> to vector<256x32xf32>
    %31 = arith.addf %28, %30 : vector<256x32xf32>
    %32 = math.tanh %31 : vector<256x32xf32>
    %33 = tpu.concatenate %8, %16, %24, %32 in 1 : vector<256x128xf32>, vector<256x64xf32>, vector<256x32xf32>, vector<256x32xf32> -> vector<256x256xf32>
    %c0_32 = arith.constant 0 : index
    %c0_33 = arith.constant 0 : index
    %34 = vector.load %arg10[%c0_32, %c0_33] : memref<256x256xf32, #tpu.memory_space<vmem>>, vector<256x256xf32>
    tpu.vector_store %arg10[%c0_32, %c0_33], %33 {strides = array<i32>} : memref<256x256xf32, #tpu.memory_space<vmem>>, vector<256x256xf32>,
    return
  }
}

module attributes {stable_mosaic.version = 11 : i64} {
  func.func @conv_head_kernel(%arg0: memref<128x256xf32, #tpu.memory_space<vmem>>, %arg1: memref<256x16xf32, #tpu.memory_space<vmem>>, %arg2: memref<1x16xf32, #tpu.memory_space<vmem>>, %arg3: memref<80x32xf32, #tpu.memory_space<vmem>>, %arg4: memref<1x32xf32, #tpu.memory_space<vmem>>, %arg5: memref<896x128xf32, #tpu.memory_space<vmem>>, %arg6: memref<1x128xf32, #tpu.memory_space<vmem>>, %arg7: memref<128x8xf32, #tpu.memory_space<vmem>>, %arg8: memref<1x8xf32, #tpu.memory_space<vmem>>, %arg9: memref<2x8xf32, #tpu.memory_space<vmem>>, %arg10: memref<2x896xf32, #tpu.memory_space<vmem>>) attributes {dimension_semantics = [], scalar_prefetch = 0 : i64, scratch_operands = 1 : i64, tpu.core_type = #tpu.core_type<tc>} {
    %c0 = arith.constant 0 : index
    %c0_0 = arith.constant 0 : index
    %0 = vector.load %arg0[%c0, %c0_0] : memref<128x256xf32, #tpu.memory_space<vmem>>, vector<128x256xf32>
    %c0_1 = arith.constant 0 : index
    %c0_2 = arith.constant 0 : index
    %1 = vector.load %arg1[%c0_1, %c0_2] : memref<256x16xf32, #tpu.memory_space<vmem>>, vector<256x16xf32>
    %cst = arith.constant dense<0.000000e+00> : vector<128x16xf32>
    %2 = tpu.matmul %0, %1, %cst {dimension_numbers = #tpu.dot_dimension_numbers<[1], [0], [0], [1], [0, 0, 1, 1], [], []>} : vector<128x256xf32>, vector<256x16xf32>, vector<128x16xf32> -> vector<128x16xf32>
    %c0_3 = arith.constant 0 : index
    %c0_4 = arith.constant 0 : index
    %3 = vector.load %arg2[%c0_3, %c0_4] : memref<1x16xf32, #tpu.memory_space<vmem>>, vector<1x16xf32>
    %4 = vector.broadcast %3 : vector<1x16xf32> to vector<128x16xf32>
    %5 = arith.addf %2, %4 : vector<128x16xf32>
    %cst_5 = arith.constant 0.000000e+00 : f32
    %6 = vector.broadcast %cst_5 : f32 to vector<128x16xf32>
    %7 = arith.maximumf %5, %6 : vector<128x16xf32>
    %8 = vector.shape_cast %7 : vector<128x16xf32> to vector<64x2x16xf32>
    %9 = vector.extract_strided_slice %8 {offsets = [0, 0, 0], sizes = [64, 1, 16], strides = [1, 1, 1]} : vector<64x2x16xf32> to vector<64x1x16xf32>
    %10 = vector.shape_cast %9 : vector<64x1x16xf32> to vector<64x16xf32>
    %11 = vector.extract_strided_slice %8 {offsets = [0, 1, 0], sizes = [64, 1, 16], strides = [1, 1, 1]} : vector<64x2x16xf32> to vector<64x1x16xf32>
    %12 = vector.shape_cast %11 : vector<64x1x16xf32> to vector<64x16xf32>
    %13 = arith.maximumf %10, %12 : vector<64x16xf32>
    %14 = vector.extract_strided_slice %13 {offsets = [0, 0], sizes = [32, 16], strides = [1, 1]} : vector<64x16xf32> to vector<32x16xf32>
    %15 = vector.extract_strided_slice %14 {offsets = [0, 0], sizes = [28, 16], strides = [1, 1]} : vector<32x16xf32> to vector<28x16xf32>
    %16 = vector.extract_strided_slice %14 {offsets = [1, 0], sizes = [28, 16], strides = [1, 1]} : vector<32x16xf32> to vector<28x16xf32>
    %17 = vector.extract_strided_slice %14 {offsets = [2, 0], sizes = [28, 16], strides = [1, 1]} : vector<32x16xf32> to vector<28x16xf32>
    %18 = vector.extract_strided_slice %14 {offsets = [3, 0], sizes = [28, 16], strides = [1, 1]} : vector<32x16xf32> to vector<28x16xf32>
    %19 = vector.extract_strided_slice %14 {offsets = [4, 0], sizes = [28, 16], strides = [1, 1]} : vector<32x16xf32> to vector<28x16xf32>
    %20 = tpu.concatenate %15, %16, %17, %18, %19 in 1 : vector<28x16xf32>, vector<28x16xf32>, vector<28x16xf32>, vector<28x16xf32>, vector<28x16xf32> -> vector<28x80xf32>
    %c0_6 = arith.constant 0 : index
    %c0_7 = arith.constant 0 : index
    %21 = vector.load %arg3[%c0_6, %c0_7] : memref<80x32xf32, #tpu.memory_space<vmem>>, vector<80x32xf32>
    %cst_8 = arith.constant dense<0.000000e+00> : vector<28x32xf32>
    %22 = tpu.matmul %20, %21, %cst_8 {dimension_numbers = #tpu.dot_dimension_numbers<[1], [0], [0], [1], [0, 0, 1, 1], [], []>} : vector<28x80xf32>, vector<80x32xf32>, vector<28x32xf32> -> vector<28x32xf32>
    %c0_9 = arith.constant 0 : index
    %c0_10 = arith.constant 0 : index
    %23 = vector.load %arg4[%c0_9, %c0_10] : memref<1x32xf32, #tpu.memory_space<vmem>>, vector<1x32xf32>
    %24 = vector.broadcast %23 : vector<1x32xf32> to vector<28x32xf32>
    %25 = arith.addf %22, %24 : vector<28x32xf32>
    %cst_11 = arith.constant 0.000000e+00 : f32
    %26 = vector.broadcast %cst_11 : f32 to vector<28x32xf32>
    %27 = arith.maximumf %25, %26 : vector<28x32xf32>
    %28 = vector.extract_strided_slice %27 {offsets = [0, 0], sizes = [1, 32], strides = [1, 1]} : vector<28x32xf32> to vector<1x32xf32>
    %c0_12 = arith.constant 0 : index
    %c0_13 = arith.constant 0 : index
    %29 = vector.load %arg10[%c0_12, %c0_13] : memref<2x896xf32, #tpu.memory_space<vmem>>, vector<1x32xf32>
    tpu.vector_store %arg10[%c0_12, %c0_13], %28 {strides = array<i32>} : memref<2x896xf32, #tpu.memory_space<vmem>>, vector<1x32xf32>,
    %30 = vector.extract_strided_slice %27 {offsets = [1, 0], sizes = [1, 32], strides = [1, 1]} : vector<28x32xf32> to vector<1x32xf32>
    %c0_14 = arith.constant 0 : index
    %c32 = arith.constant 32 : index
    %31 = vector.load %arg10[%c0_14, %c32] : memref<2x896xf32, #tpu.memory_space<vmem>>, vector<1x32xf32>
    tpu.vector_store %arg10[%c0_14, %c32], %30 {strides = array<i32>} : memref<2x896xf32, #tpu.memory_space<vmem>>, vector<1x32xf32>,
    %32 = vector.extract_strided_slice %27 {offsets = [2, 0], sizes = [1, 32], strides = [1, 1]} : vector<28x32xf32> to vector<1x32xf32>
    %c0_15 = arith.constant 0 : index
    %c64 = arith.constant 64 : index
    %33 = vector.load %arg10[%c0_15, %c64] : memref<2x896xf32, #tpu.memory_space<vmem>>, vector<1x32xf32>
    tpu.vector_store %arg10[%c0_15, %c64], %32 {strides = array<i32>} : memref<2x896xf32, #tpu.memory_space<vmem>>, vector<1x32xf32>,
    %34 = vector.extract_strided_slice %27 {offsets = [3, 0], sizes = [1, 32], strides = [1, 1]} : vector<28x32xf32> to vector<1x32xf32>
    %c0_16 = arith.constant 0 : index
    %c96 = arith.constant 96 : index
    %35 = vector.load %arg10[%c0_16, %c96] : memref<2x896xf32, #tpu.memory_space<vmem>>, vector<1x32xf32>
    tpu.vector_store %arg10[%c0_16, %c96], %34 {strides = array<i32>} : memref<2x896xf32, #tpu.memory_space<vmem>>, vector<1x32xf32>,
    %36 = vector.extract_strided_slice %27 {offsets = [4, 0], sizes = [1, 32], strides = [1, 1]} : vector<28x32xf32> to vector<1x32xf32>
    %c0_17 = arith.constant 0 : index
    %c128 = arith.constant 128 : index
    %37 = vector.load %arg10[%c0_17, %c128] : memref<2x896xf32, #tpu.memory_space<vmem>>, vector<1x32xf32>
    tpu.vector_store %arg10[%c0_17, %c128], %36 {strides = array<i32>} : memref<2x896xf32, #tpu.memory_space<vmem>>, vector<1x32xf32>,
    %38 = vector.extract_strided_slice %27 {offsets = [5, 0], sizes = [1, 32], strides = [1, 1]} : vector<28x32xf32> to vector<1x32xf32>
    %c0_18 = arith.constant 0 : index
    %c160 = arith.constant 160 : index
    %39 = vector.load %arg10[%c0_18, %c160] : memref<2x896xf32, #tpu.memory_space<vmem>>, vector<1x32xf32>
    tpu.vector_store %arg10[%c0_18, %c160], %38 {strides = array<i32>} : memref<2x896xf32, #tpu.memory_space<vmem>>, vector<1x32xf32>,
    %40 = vector.extract_strided_slice %27 {offsets = [6, 0], sizes = [1, 32], strides = [1, 1]} : vector<28x32xf32> to vector<1x32xf32>
    %c0_19 = arith.constant 0 : index
    %c192 = arith.constant 192 : index
    %41 = vector.load %arg10[%c0_19, %c192] : memref<2x896xf32, #tpu.memory_space<vmem>>, vector<1x32xf32>
    tpu.vector_store %arg10[%c0_19, %c192], %40 {strides = array<i32>} : memref<2x896xf32, #tpu.memory_space<vmem>>, vector<1x32xf32>,
    %42 = vector.extract_strided_slice %27 {offsets = [7, 0], sizes = [1, 32], strides = [1, 1]} : vector<28x32xf32> to vector<1x32xf32>
    %c0_20 = arith.constant 0 : index
    %c224 = arith.constant 224 : index
    %43 = vector.load %arg10[%c0_20, %c224] : memref<2x896xf32, #tpu.memory_space<vmem>>, vector<1x32xf32>
    tpu.vector_store %arg10[%c0_20, %c224], %42 {strides = array<i32>} : memref<2x896xf32, #tpu.memory_space<vmem>>, vector<1x32xf32>,
    %44 = vector.extract_strided_slice %27 {offsets = [8, 0], sizes = [1, 32], strides = [1, 1]} : vector<28x32xf32> to vector<1x32xf32>
    %c0_21 = arith.constant 0 : index
    %c256 = arith.constant 256 : index
    %45 = vector.load %arg10[%c0_21, %c256] : memref<2x896xf32, #tpu.memory_space<vmem>>, vector<1x32xf32>
    tpu.vector_store %arg10[%c0_21, %c256], %44 {strides = array<i32>} : memref<2x896xf32, #tpu.memory_space<vmem>>, vector<1x32xf32>,
    %46 = vector.extract_strided_slice %27 {offsets = [9, 0], sizes = [1, 32], strides = [1, 1]} : vector<28x32xf32> to vector<1x32xf32>
    %c0_22 = arith.constant 0 : index
    %c288 = arith.constant 288 : index
    %47 = vector.load %arg10[%c0_22, %c288] : memref<2x896xf32, #tpu.memory_space<vmem>>, vector<1x32xf32>
    tpu.vector_store %arg10[%c0_22, %c288], %46 {strides = array<i32>} : memref<2x896xf32, #tpu.memory_space<vmem>>, vector<1x32xf32>,
    %48 = vector.extract_strided_slice %27 {offsets = [10, 0], sizes = [1, 32], strides = [1, 1]} : vector<28x32xf32> to vector<1x32xf32>
    %c0_23 = arith.constant 0 : index
    %c320 = arith.constant 320 : index
    %49 = vector.load %arg10[%c0_23, %c320] : memref<2x896xf32, #tpu.memory_space<vmem>>, vector<1x32xf32>
    tpu.vector_store %arg10[%c0_23, %c320], %48 {strides = array<i32>} : memref<2x896xf32, #tpu.memory_space<vmem>>, vector<1x32xf32>,
    %50 = vector.extract_strided_slice %27 {offsets = [11, 0], sizes = [1, 32], strides = [1, 1]} : vector<28x32xf32> to vector<1x32xf32>
    %c0_24 = arith.constant 0 : index
    %c352 = arith.constant 352 : index
    %51 = vector.load %arg10[%c0_24, %c352] : memref<2x896xf32, #tpu.memory_space<vmem>>, vector<1x32xf32>
    tpu.vector_store %arg10[%c0_24, %c352], %50 {strides = array<i32>} : memref<2x896xf32, #tpu.memory_space<vmem>>, vector<1x32xf32>,
    %52 = vector.extract_strided_slice %27 {offsets = [12, 0], sizes = [1, 32], strides = [1, 1]} : vector<28x32xf32> to vector<1x32xf32>
    %c0_25 = arith.constant 0 : index
    %c384 = arith.constant 384 : index
    %53 = vector.load %arg10[%c0_25, %c384] : memref<2x896xf32, #tpu.memory_space<vmem>>, vector<1x32xf32>
    tpu.vector_store %arg10[%c0_25, %c384], %52 {strides = array<i32>} : memref<2x896xf32, #tpu.memory_space<vmem>>, vector<1x32xf32>,
    %54 = vector.extract_strided_slice %27 {offsets = [13, 0], sizes = [1, 32], strides = [1, 1]} : vector<28x32xf32> to vector<1x32xf32>
    %c0_26 = arith.constant 0 : index
    %c416 = arith.constant 416 : index
    %55 = vector.load %arg10[%c0_26, %c416] : memref<2x896xf32, #tpu.memory_space<vmem>>, vector<1x32xf32>
    tpu.vector_store %arg10[%c0_26, %c416], %54 {strides = array<i32>} : memref<2x896xf32, #tpu.memory_space<vmem>>, vector<1x32xf32>,
    %56 = vector.extract_strided_slice %27 {offsets = [14, 0], sizes = [1, 32], strides = [1, 1]} : vector<28x32xf32> to vector<1x32xf32>
    %c0_27 = arith.constant 0 : index
    %c448 = arith.constant 448 : index
    %57 = vector.load %arg10[%c0_27, %c448] : memref<2x896xf32, #tpu.memory_space<vmem>>, vector<1x32xf32>
    tpu.vector_store %arg10[%c0_27, %c448], %56 {strides = array<i32>} : memref<2x896xf32, #tpu.memory_space<vmem>>, vector<1x32xf32>,
    %58 = vector.extract_strided_slice %27 {offsets = [15, 0], sizes = [1, 32], strides = [1, 1]} : vector<28x32xf32> to vector<1x32xf32>
    %c0_28 = arith.constant 0 : index
    %c480 = arith.constant 480 : index
    %59 = vector.load %arg10[%c0_28, %c480] : memref<2x896xf32, #tpu.memory_space<vmem>>, vector<1x32xf32>
    tpu.vector_store %arg10[%c0_28, %c480], %58 {strides = array<i32>} : memref<2x896xf32, #tpu.memory_space<vmem>>, vector<1x32xf32>,
    %60 = vector.extract_strided_slice %27 {offsets = [16, 0], sizes = [1, 32], strides = [1, 1]} : vector<28x32xf32> to vector<1x32xf32>
    %c0_29 = arith.constant 0 : index
    %c512 = arith.constant 512 : index
    %61 = vector.load %arg10[%c0_29, %c512] : memref<2x896xf32, #tpu.memory_space<vmem>>, vector<1x32xf32>
    tpu.vector_store %arg10[%c0_29, %c512], %60 {strides = array<i32>} : memref<2x896xf32, #tpu.memory_space<vmem>>, vector<1x32xf32>,
    %62 = vector.extract_strided_slice %27 {offsets = [17, 0], sizes = [1, 32], strides = [1, 1]} : vector<28x32xf32> to vector<1x32xf32>
    %c0_30 = arith.constant 0 : index
    %c544 = arith.constant 544 : index
    %63 = vector.load %arg10[%c0_30, %c544] : memref<2x896xf32, #tpu.memory_space<vmem>>, vector<1x32xf32>
    tpu.vector_store %arg10[%c0_30, %c544], %62 {strides = array<i32>} : memref<2x896xf32, #tpu.memory_space<vmem>>, vector<1x32xf32>,
    %64 = vector.extract_strided_slice %27 {offsets = [18, 0], sizes = [1, 32], strides = [1, 1]} : vector<28x32xf32> to vector<1x32xf32>
    %c0_31 = arith.constant 0 : index
    %c576 = arith.constant 576 : index
    %65 = vector.load %arg10[%c0_31, %c576] : memref<2x896xf32, #tpu.memory_space<vmem>>, vector<1x32xf32>
    tpu.vector_store %arg10[%c0_31, %c576], %64 {strides = array<i32>} : memref<2x896xf32, #tpu.memory_space<vmem>>, vector<1x32xf32>,
    %66 = vector.extract_strided_slice %27 {offsets = [19, 0], sizes = [1, 32], strides = [1, 1]} : vector<28x32xf32> to vector<1x32xf32>
    %c0_32 = arith.constant 0 : index
    %c608 = arith.constant 608 : index
    %67 = vector.load %arg10[%c0_32, %c608] : memref<2x896xf32, #tpu.memory_space<vmem>>, vector<1x32xf32>
    tpu.vector_store %arg10[%c0_32, %c608], %66 {strides = array<i32>} : memref<2x896xf32, #tpu.memory_space<vmem>>, vector<1x32xf32>,
    %68 = vector.extract_strided_slice %27 {offsets = [20, 0], sizes = [1, 32], strides = [1, 1]} : vector<28x32xf32> to vector<1x32xf32>
    %c0_33 = arith.constant 0 : index
    %c640 = arith.constant 640 : index
    %69 = vector.load %arg10[%c0_33, %c640] : memref<2x896xf32, #tpu.memory_space<vmem>>, vector<1x32xf32>
    tpu.vector_store %arg10[%c0_33, %c640], %68 {strides = array<i32>} : memref<2x896xf32, #tpu.memory_space<vmem>>, vector<1x32xf32>,
    %70 = vector.extract_strided_slice %27 {offsets = [21, 0], sizes = [1, 32], strides = [1, 1]} : vector<28x32xf32> to vector<1x32xf32>
    %c0_34 = arith.constant 0 : index
    %c672 = arith.constant 672 : index
    %71 = vector.load %arg10[%c0_34, %c672] : memref<2x896xf32, #tpu.memory_space<vmem>>, vector<1x32xf32>
    tpu.vector_store %arg10[%c0_34, %c672], %70 {strides = array<i32>} : memref<2x896xf32, #tpu.memory_space<vmem>>, vector<1x32xf32>,
    %72 = vector.extract_strided_slice %27 {offsets = [22, 0], sizes = [1, 32], strides = [1, 1]} : vector<28x32xf32> to vector<1x32xf32>
    %c0_35 = arith.constant 0 : index
    %c704 = arith.constant 704 : index
    %73 = vector.load %arg10[%c0_35, %c704] : memref<2x896xf32, #tpu.memory_space<vmem>>, vector<1x32xf32>
    tpu.vector_store %arg10[%c0_35, %c704], %72 {strides = array<i32>} : memref<2x896xf32, #tpu.memory_space<vmem>>, vector<1x32xf32>,
    %74 = vector.extract_strided_slice %27 {offsets = [23, 0], sizes = [1, 32], strides = [1, 1]} : vector<28x32xf32> to vector<1x32xf32>
    %c0_36 = arith.constant 0 : index
    %c736 = arith.constant 736 : index
    %75 = vector.load %arg10[%c0_36, %c736] : memref<2x896xf32, #tpu.memory_space<vmem>>, vector<1x32xf32>
    tpu.vector_store %arg10[%c0_36, %c736], %74 {strides = array<i32>} : memref<2x896xf32, #tpu.memory_space<vmem>>, vector<1x32xf32>,
    %76 = vector.extract_strided_slice %27 {offsets = [24, 0], sizes = [1, 32], strides = [1, 1]} : vector<28x32xf32> to vector<1x32xf32>
    %c0_37 = arith.constant 0 : index
    %c768 = arith.constant 768 : index
    %77 = vector.load %arg10[%c0_37, %c768] : memref<2x896xf32, #tpu.memory_space<vmem>>, vector<1x32xf32>
    tpu.vector_store %arg10[%c0_37, %c768], %76 {strides = array<i32>} : memref<2x896xf32, #tpu.memory_space<vmem>>, vector<1x32xf32>,
    %78 = vector.extract_strided_slice %27 {offsets = [25, 0], sizes = [1, 32], strides = [1, 1]} : vector<28x32xf32> to vector<1x32xf32>
    %c0_38 = arith.constant 0 : index
    %c800 = arith.constant 800 : index
    %79 = vector.load %arg10[%c0_38, %c800] : memref<2x896xf32, #tpu.memory_space<vmem>>, vector<1x32xf32>
    tpu.vector_store %arg10[%c0_38, %c800], %78 {strides = array<i32>} : memref<2x896xf32, #tpu.memory_space<vmem>>, vector<1x32xf32>,
    %80 = vector.extract_strided_slice %27 {offsets = [26, 0], sizes = [1, 32], strides = [1, 1]} : vector<28x32xf32> to vector<1x32xf32>
    %c0_39 = arith.constant 0 : index
    %c832 = arith.constant 832 : index
    %81 = vector.load %arg10[%c0_39, %c832] : memref<2x896xf32, #tpu.memory_space<vmem>>, vector<1x32xf32>
    tpu.vector_store %arg10[%c0_39, %c832], %80 {strides = array<i32>} : memref<2x896xf32, #tpu.memory_space<vmem>>, vector<1x32xf32>,
    %82 = vector.extract_strided_slice %27 {offsets = [27, 0], sizes = [1, 32], strides = [1, 1]} : vector<28x32xf32> to vector<1x32xf32>
    %c0_40 = arith.constant 0 : index
    %c864 = arith.constant 864 : index
    %83 = vector.load %arg10[%c0_40, %c864] : memref<2x896xf32, #tpu.memory_space<vmem>>, vector<1x32xf32>
    tpu.vector_store %arg10[%c0_40, %c864], %82 {strides = array<i32>} : memref<2x896xf32, #tpu.memory_space<vmem>>, vector<1x32xf32>,
    %84 = vector.extract_strided_slice %13 {offsets = [32, 0], sizes = [32, 16], strides = [1, 1]} : vector<64x16xf32> to vector<32x16xf32>
    %85 = vector.extract_strided_slice %84 {offsets = [0, 0], sizes = [28, 16], strides = [1, 1]} : vector<32x16xf32> to vector<28x16xf32>
    %86 = vector.extract_strided_slice %84 {offsets = [1, 0], sizes = [28, 16], strides = [1, 1]} : vector<32x16xf32> to vector<28x16xf32>
    %87 = vector.extract_strided_slice %84 {offsets = [2, 0], sizes = [28, 16], strides = [1, 1]} : vector<32x16xf32> to vector<28x16xf32>
    %88 = vector.extract_strided_slice %84 {offsets = [3, 0], sizes = [28, 16], strides = [1, 1]} : vector<32x16xf32> to vector<28x16xf32>
    %89 = vector.extract_strided_slice %84 {offsets = [4, 0], sizes = [28, 16], strides = [1, 1]} : vector<32x16xf32> to vector<28x16xf32>
    %90 = tpu.concatenate %85, %86, %87, %88, %89 in 1 : vector<28x16xf32>, vector<28x16xf32>, vector<28x16xf32>, vector<28x16xf32>, vector<28x16xf32> -> vector<28x80xf32>
    %c0_41 = arith.constant 0 : index
    %c0_42 = arith.constant 0 : index
    %91 = vector.load %arg3[%c0_41, %c0_42] : memref<80x32xf32, #tpu.memory_space<vmem>>, vector<80x32xf32>
    %cst_43 = arith.constant dense<0.000000e+00> : vector<28x32xf32>
    %92 = tpu.matmul %90, %91, %cst_43 {dimension_numbers = #tpu.dot_dimension_numbers<[1], [0], [0], [1], [0, 0, 1, 1], [], []>} : vector<28x80xf32>, vector<80x32xf32>, vector<28x32xf32> -> vector<28x32xf32>
    %c0_44 = arith.constant 0 : index
    %c0_45 = arith.constant 0 : index
    %93 = vector.load %arg4[%c0_44, %c0_45] : memref<1x32xf32, #tpu.memory_space<vmem>>, vector<1x32xf32>
    %94 = vector.broadcast %93 : vector<1x32xf32> to vector<28x32xf32>
    %95 = arith.addf %92, %94 : vector<28x32xf32>
    %cst_46 = arith.constant 0.000000e+00 : f32
    %96 = vector.broadcast %cst_46 : f32 to vector<28x32xf32>
    %97 = arith.maximumf %95, %96 : vector<28x32xf32>
    %98 = vector.extract_strided_slice %97 {offsets = [0, 0], sizes = [1, 32], strides = [1, 1]} : vector<28x32xf32> to vector<1x32xf32>
    %c1 = arith.constant 1 : index
    %c0_47 = arith.constant 0 : index
    %99 = vector.load %arg10[%c1, %c0_47] : memref<2x896xf32, #tpu.memory_space<vmem>>, vector<1x32xf32>
    tpu.vector_store %arg10[%c1, %c0_47], %98 {strides = array<i32>} : memref<2x896xf32, #tpu.memory_space<vmem>>, vector<1x32xf32>,
    %100 = vector.extract_strided_slice %97 {offsets = [1, 0], sizes = [1, 32], strides = [1, 1]} : vector<28x32xf32> to vector<1x32xf32>
    %c1_48 = arith.constant 1 : index
    %c32_49 = arith.constant 32 : index
    %101 = vector.load %arg10[%c1_48, %c32_49] : memref<2x896xf32, #tpu.memory_space<vmem>>, vector<1x32xf32>
    tpu.vector_store %arg10[%c1_48, %c32_49], %100 {strides = array<i32>} : memref<2x896xf32, #tpu.memory_space<vmem>>, vector<1x32xf32>,
    %102 = vector.extract_strided_slice %97 {offsets = [2, 0], sizes = [1, 32], strides = [1, 1]} : vector<28x32xf32> to vector<1x32xf32>
    %c1_50 = arith.constant 1 : index
    %c64_51 = arith.constant 64 : index
    %103 = vector.load %arg10[%c1_50, %c64_51] : memref<2x896xf32, #tpu.memory_space<vmem>>, vector<1x32xf32>
    tpu.vector_store %arg10[%c1_50, %c64_51], %102 {strides = array<i32>} : memref<2x896xf32, #tpu.memory_space<vmem>>, vector<1x32xf32>,
    %104 = vector.extract_strided_slice %97 {offsets = [3, 0], sizes = [1, 32], strides = [1, 1]} : vector<28x32xf32> to vector<1x32xf32>
    %c1_52 = arith.constant 1 : index
    %c96_53 = arith.constant 96 : index
    %105 = vector.load %arg10[%c1_52, %c96_53] : memref<2x896xf32, #tpu.memory_space<vmem>>, vector<1x32xf32>
    tpu.vector_store %arg10[%c1_52, %c96_53], %104 {strides = array<i32>} : memref<2x896xf32, #tpu.memory_space<vmem>>, vector<1x32xf32>,
    %106 = vector.extract_strided_slice %97 {offsets = [4, 0], sizes = [1, 32], strides = [1, 1]} : vector<28x32xf32> to vector<1x32xf32>
    %c1_54 = arith.constant 1 : index
    %c128_55 = arith.constant 128 : index
    %107 = vector.load %arg10[%c1_54, %c128_55] : memref<2x896xf32, #tpu.memory_space<vmem>>, vector<1x32xf32>
    tpu.vector_store %arg10[%c1_54, %c128_55], %106 {strides = array<i32>} : memref<2x896xf32, #tpu.memory_space<vmem>>, vector<1x32xf32>,
    %108 = vector.extract_strided_slice %97 {offsets = [5, 0], sizes = [1, 32], strides = [1, 1]} : vector<28x32xf32> to vector<1x32xf32>
    %c1_56 = arith.constant 1 : index
    %c160_57 = arith.constant 160 : index
    %109 = vector.load %arg10[%c1_56, %c160_57] : memref<2x896xf32, #tpu.memory_space<vmem>>, vector<1x32xf32>
    tpu.vector_store %arg10[%c1_56, %c160_57], %108 {strides = array<i32>} : memref<2x896xf32, #tpu.memory_space<vmem>>, vector<1x32xf32>,
    %110 = vector.extract_strided_slice %97 {offsets = [6, 0], sizes = [1, 32], strides = [1, 1]} : vector<28x32xf32> to vector<1x32xf32>
    %c1_58 = arith.constant 1 : index
    %c192_59 = arith.constant 192 : index
    %111 = vector.load %arg10[%c1_58, %c192_59] : memref<2x896xf32, #tpu.memory_space<vmem>>, vector<1x32xf32>
    tpu.vector_store %arg10[%c1_58, %c192_59], %110 {strides = array<i32>} : memref<2x896xf32, #tpu.memory_space<vmem>>, vector<1x32xf32>,
    %112 = vector.extract_strided_slice %97 {offsets = [7, 0], sizes = [1, 32], strides = [1, 1]} : vector<28x32xf32> to vector<1x32xf32>
    %c1_60 = arith.constant 1 : index
    %c224_61 = arith.constant 224 : index
    %113 = vector.load %arg10[%c1_60, %c224_61] : memref<2x896xf32, #tpu.memory_space<vmem>>, vector<1x32xf32>
    tpu.vector_store %arg10[%c1_60, %c224_61], %112 {strides = array<i32>} : memref<2x896xf32, #tpu.memory_space<vmem>>, vector<1x32xf32>,
    %114 = vector.extract_strided_slice %97 {offsets = [8, 0], sizes = [1, 32], strides = [1, 1]} : vector<28x32xf32> to vector<1x32xf32>
    %c1_62 = arith.constant 1 : index
    %c256_63 = arith.constant 256 : index
    %115 = vector.load %arg10[%c1_62, %c256_63] : memref<2x896xf32, #tpu.memory_space<vmem>>, vector<1x32xf32>
    tpu.vector_store %arg10[%c1_62, %c256_63], %114 {strides = array<i32>} : memref<2x896xf32, #tpu.memory_space<vmem>>, vector<1x32xf32>,
    %116 = vector.extract_strided_slice %97 {offsets = [9, 0], sizes = [1, 32], strides = [1, 1]} : vector<28x32xf32> to vector<1x32xf32>
    %c1_64 = arith.constant 1 : index
    %c288_65 = arith.constant 288 : index
    %117 = vector.load %arg10[%c1_64, %c288_65] : memref<2x896xf32, #tpu.memory_space<vmem>>, vector<1x32xf32>
    tpu.vector_store %arg10[%c1_64, %c288_65], %116 {strides = array<i32>} : memref<2x896xf32, #tpu.memory_space<vmem>>, vector<1x32xf32>,
    %118 = vector.extract_strided_slice %97 {offsets = [10, 0], sizes = [1, 32], strides = [1, 1]} : vector<28x32xf32> to vector<1x32xf32>
    %c1_66 = arith.constant 1 : index
    %c320_67 = arith.constant 320 : index
    %119 = vector.load %arg10[%c1_66, %c320_67] : memref<2x896xf32, #tpu.memory_space<vmem>>, vector<1x32xf32>
    tpu.vector_store %arg10[%c1_66, %c320_67], %118 {strides = array<i32>} : memref<2x896xf32, #tpu.memory_space<vmem>>, vector<1x32xf32>,
    %120 = vector.extract_strided_slice %97 {offsets = [11, 0], sizes = [1, 32], strides = [1, 1]} : vector<28x32xf32> to vector<1x32xf32>
    %c1_68 = arith.constant 1 : index
    %c352_69 = arith.constant 352 : index
    %121 = vector.load %arg10[%c1_68, %c352_69] : memref<2x896xf32, #tpu.memory_space<vmem>>, vector<1x32xf32>
    tpu.vector_store %arg10[%c1_68, %c352_69], %120 {strides = array<i32>} : memref<2x896xf32, #tpu.memory_space<vmem>>, vector<1x32xf32>,
    %122 = vector.extract_strided_slice %97 {offsets = [12, 0], sizes = [1, 32], strides = [1, 1]} : vector<28x32xf32> to vector<1x32xf32>
    %c1_70 = arith.constant 1 : index
    %c384_71 = arith.constant 384 : index
    %123 = vector.load %arg10[%c1_70, %c384_71] : memref<2x896xf32, #tpu.memory_space<vmem>>, vector<1x32xf32>
    tpu.vector_store %arg10[%c1_70, %c384_71], %122 {strides = array<i32>} : memref<2x896xf32, #tpu.memory_space<vmem>>, vector<1x32xf32>,
    %124 = vector.extract_strided_slice %97 {offsets = [13, 0], sizes = [1, 32], strides = [1, 1]} : vector<28x32xf32> to vector<1x32xf32>
    %c1_72 = arith.constant 1 : index
    %c416_73 = arith.constant 416 : index
    %125 = vector.load %arg10[%c1_72, %c416_73] : memref<2x896xf32, #tpu.memory_space<vmem>>, vector<1x32xf32>
    tpu.vector_store %arg10[%c1_72, %c416_73], %124 {strides = array<i32>} : memref<2x896xf32, #tpu.memory_space<vmem>>, vector<1x32xf32>,
    %126 = vector.extract_strided_slice %97 {offsets = [14, 0], sizes = [1, 32], strides = [1, 1]} : vector<28x32xf32> to vector<1x32xf32>
    %c1_74 = arith.constant 1 : index
    %c448_75 = arith.constant 448 : index
    %127 = vector.load %arg10[%c1_74, %c448_75] : memref<2x896xf32, #tpu.memory_space<vmem>>, vector<1x32xf32>
    tpu.vector_store %arg10[%c1_74, %c448_75], %126 {strides = array<i32>} : memref<2x896xf32, #tpu.memory_space<vmem>>, vector<1x32xf32>,
    %128 = vector.extract_strided_slice %97 {offsets = [15, 0], sizes = [1, 32], strides = [1, 1]} : vector<28x32xf32> to vector<1x32xf32>
    %c1_76 = arith.constant 1 : index
    %c480_77 = arith.constant 480 : index
    %129 = vector.load %arg10[%c1_76, %c480_77] : memref<2x896xf32, #tpu.memory_space<vmem>>, vector<1x32xf32>
    tpu.vector_store %arg10[%c1_76, %c480_77], %128 {strides = array<i32>} : memref<2x896xf32, #tpu.memory_space<vmem>>, vector<1x32xf32>,
    %130 = vector.extract_strided_slice %97 {offsets = [16, 0], sizes = [1, 32], strides = [1, 1]} : vector<28x32xf32> to vector<1x32xf32>
    %c1_78 = arith.constant 1 : index
    %c512_79 = arith.constant 512 : index
    %131 = vector.load %arg10[%c1_78, %c512_79] : memref<2x896xf32, #tpu.memory_space<vmem>>, vector<1x32xf32>
    tpu.vector_store %arg10[%c1_78, %c512_79], %130 {strides = array<i32>} : memref<2x896xf32, #tpu.memory_space<vmem>>, vector<1x32xf32>,
    %132 = vector.extract_strided_slice %97 {offsets = [17, 0], sizes = [1, 32], strides = [1, 1]} : vector<28x32xf32> to vector<1x32xf32>
    %c1_80 = arith.constant 1 : index
    %c544_81 = arith.constant 544 : index
    %133 = vector.load %arg10[%c1_80, %c544_81] : memref<2x896xf32, #tpu.memory_space<vmem>>, vector<1x32xf32>
    tpu.vector_store %arg10[%c1_80, %c544_81], %132 {strides = array<i32>} : memref<2x896xf32, #tpu.memory_space<vmem>>, vector<1x32xf32>,
    %134 = vector.extract_strided_slice %97 {offsets = [18, 0], sizes = [1, 32], strides = [1, 1]} : vector<28x32xf32> to vector<1x32xf32>
    %c1_82 = arith.constant 1 : index
    %c576_83 = arith.constant 576 : index
    %135 = vector.load %arg10[%c1_82, %c576_83] : memref<2x896xf32, #tpu.memory_space<vmem>>, vector<1x32xf32>
    tpu.vector_store %arg10[%c1_82, %c576_83], %134 {strides = array<i32>} : memref<2x896xf32, #tpu.memory_space<vmem>>, vector<1x32xf32>,
    %136 = vector.extract_strided_slice %97 {offsets = [19, 0], sizes = [1, 32], strides = [1, 1]} : vector<28x32xf32> to vector<1x32xf32>
    %c1_84 = arith.constant 1 : index
    %c608_85 = arith.constant 608 : index
    %137 = vector.load %arg10[%c1_84, %c608_85] : memref<2x896xf32, #tpu.memory_space<vmem>>, vector<1x32xf32>
    tpu.vector_store %arg10[%c1_84, %c608_85], %136 {strides = array<i32>} : memref<2x896xf32, #tpu.memory_space<vmem>>, vector<1x32xf32>,
    %138 = vector.extract_strided_slice %97 {offsets = [20, 0], sizes = [1, 32], strides = [1, 1]} : vector<28x32xf32> to vector<1x32xf32>
    %c1_86 = arith.constant 1 : index
    %c640_87 = arith.constant 640 : index
    %139 = vector.load %arg10[%c1_86, %c640_87] : memref<2x896xf32, #tpu.memory_space<vmem>>, vector<1x32xf32>
    tpu.vector_store %arg10[%c1_86, %c640_87], %138 {strides = array<i32>} : memref<2x896xf32, #tpu.memory_space<vmem>>, vector<1x32xf32>,
    %140 = vector.extract_strided_slice %97 {offsets = [21, 0], sizes = [1, 32], strides = [1, 1]} : vector<28x32xf32> to vector<1x32xf32>
    %c1_88 = arith.constant 1 : index
    %c672_89 = arith.constant 672 : index
    %141 = vector.load %arg10[%c1_88, %c672_89] : memref<2x896xf32, #tpu.memory_space<vmem>>, vector<1x32xf32>
    tpu.vector_store %arg10[%c1_88, %c672_89], %140 {strides = array<i32>} : memref<2x896xf32, #tpu.memory_space<vmem>>, vector<1x32xf32>,
    %142 = vector.extract_strided_slice %97 {offsets = [22, 0], sizes = [1, 32], strides = [1, 1]} : vector<28x32xf32> to vector<1x32xf32>
    %c1_90 = arith.constant 1 : index
    %c704_91 = arith.constant 704 : index
    %143 = vector.load %arg10[%c1_90, %c704_91] : memref<2x896xf32, #tpu.memory_space<vmem>>, vector<1x32xf32>
    tpu.vector_store %arg10[%c1_90, %c704_91], %142 {strides = array<i32>} : memref<2x896xf32, #tpu.memory_space<vmem>>, vector<1x32xf32>,
    %144 = vector.extract_strided_slice %97 {offsets = [23, 0], sizes = [1, 32], strides = [1, 1]} : vector<28x32xf32> to vector<1x32xf32>
    %c1_92 = arith.constant 1 : index
    %c736_93 = arith.constant 736 : index
    %145 = vector.load %arg10[%c1_92, %c736_93] : memref<2x896xf32, #tpu.memory_space<vmem>>, vector<1x32xf32>
    tpu.vector_store %arg10[%c1_92, %c736_93], %144 {strides = array<i32>} : memref<2x896xf32, #tpu.memory_space<vmem>>, vector<1x32xf32>,
    %146 = vector.extract_strided_slice %97 {offsets = [24, 0], sizes = [1, 32], strides = [1, 1]} : vector<28x32xf32> to vector<1x32xf32>
    %c1_94 = arith.constant 1 : index
    %c768_95 = arith.constant 768 : index
    %147 = vector.load %arg10[%c1_94, %c768_95] : memref<2x896xf32, #tpu.memory_space<vmem>>, vector<1x32xf32>
    tpu.vector_store %arg10[%c1_94, %c768_95], %146 {strides = array<i32>} : memref<2x896xf32, #tpu.memory_space<vmem>>, vector<1x32xf32>,
    %148 = vector.extract_strided_slice %97 {offsets = [25, 0], sizes = [1, 32], strides = [1, 1]} : vector<28x32xf32> to vector<1x32xf32>
    %c1_96 = arith.constant 1 : index
    %c800_97 = arith.constant 800 : index
    %149 = vector.load %arg10[%c1_96, %c800_97] : memref<2x896xf32, #tpu.memory_space<vmem>>, vector<1x32xf32>
    tpu.vector_store %arg10[%c1_96, %c800_97], %148 {strides = array<i32>} : memref<2x896xf32, #tpu.memory_space<vmem>>, vector<1x32xf32>,
    %150 = vector.extract_strided_slice %97 {offsets = [26, 0], sizes = [1, 32], strides = [1, 1]} : vector<28x32xf32> to vector<1x32xf32>
    %c1_98 = arith.constant 1 : index
    %c832_99 = arith.constant 832 : index
    %151 = vector.load %arg10[%c1_98, %c832_99] : memref<2x896xf32, #tpu.memory_space<vmem>>, vector<1x32xf32>
    tpu.vector_store %arg10[%c1_98, %c832_99], %150 {strides = array<i32>} : memref<2x896xf32, #tpu.memory_space<vmem>>, vector<1x32xf32>,
    %152 = vector.extract_strided_slice %97 {offsets = [27, 0], sizes = [1, 32], strides = [1, 1]} : vector<28x32xf32> to vector<1x32xf32>
    %c1_100 = arith.constant 1 : index
    %c864_101 = arith.constant 864 : index
    %153 = vector.load %arg10[%c1_100, %c864_101] : memref<2x896xf32, #tpu.memory_space<vmem>>, vector<1x32xf32>
    tpu.vector_store %arg10[%c1_100, %c864_101], %152 {strides = array<i32>} : memref<2x896xf32, #tpu.memory_space<vmem>>, vector<1x32xf32>,
    %c0_102 = arith.constant 0 : index
    %c0_103 = arith.constant 0 : index
    %154 = vector.load %arg10[%c0_102, %c0_103] : memref<2x896xf32, #tpu.memory_space<vmem>>, vector<2x896xf32>
    %c0_104 = arith.constant 0 : index
    %c0_105 = arith.constant 0 : index
    %155 = vector.load %arg5[%c0_104, %c0_105] : memref<896x128xf32, #tpu.memory_space<vmem>>, vector<896x128xf32>
    %cst_106 = arith.constant dense<0.000000e+00> : vector<2x128xf32>
    %156 = tpu.matmul %154, %155, %cst_106 {dimension_numbers = #tpu.dot_dimension_numbers<[1], [0], [0], [1], [0, 0, 1, 1], [], []>} : vector<2x896xf32>, vector<896x128xf32>, vector<2x128xf32> -> vector<2x128xf32>
    %c0_107 = arith.constant 0 : index
    %c0_108 = arith.constant 0 : index
    %157 = vector.load %arg6[%c0_107, %c0_108] : memref<1x128xf32, #tpu.memory_space<vmem>>, vector<1x128xf32>
    %158 = vector.broadcast %157 : vector<1x128xf32> to vector<2x128xf32>
    %159 = arith.addf %156, %158 : vector<2x128xf32>
    %cst_109 = arith.constant 0.000000e+00 : f32
    %160 = vector.broadcast %cst_109 : f32 to vector<2x128xf32>
    %161 = arith.maximumf %159, %160 : vector<2x128xf32>
    %c0_110 = arith.constant 0 : index
    %c0_111 = arith.constant 0 : index
    %162 = vector.load %arg7[%c0_110, %c0_111] : memref<128x8xf32, #tpu.memory_space<vmem>>, vector<128x8xf32>
    %cst_112 = arith.constant dense<0.000000e+00> : vector<2x8xf32>
    %163 = tpu.matmul %161, %162, %cst_112 {dimension_numbers = #tpu.dot_dimension_numbers<[1], [0], [0], [1], [0, 0, 1, 1], [], []>} : vector<2x128xf32>, vector<128x8xf32>, vector<2x8xf32> -> vector<2x8xf32>
    %c0_113 = arith.constant 0 : index
    %c0_114 = arith.constant 0 : index
    %164 = vector.load %arg8[%c0_113, %c0_114] : memref<1x8xf32, #tpu.memory_space<vmem>>, vector<1x8xf32>
    %165 = vector.broadcast %164 : vector<1x8xf32> to vector<2x8xf32>
    %166 = arith.addf %163, %165 : vector<2x8xf32>
    %cst_115 = arith.constant dense<0xFF800000> : vector<2xf32>
    %167 = vector.multi_reduction <maximumf>, %166, %cst_115 [1] : vector<2x8xf32> to vector<2xf32>
    %168 = vector.shape_cast %167 : vector<2xf32> to vector<2x1xf32>
    %169 = vector.broadcast %168 : vector<2x1xf32> to vector<2x8xf32>
    %170 = arith.subf %166, %169 : vector<2x8xf32>
    %171 = math.exp %170 : vector<2x8xf32>
    %cst_116 = arith.constant dense<0.000000e+00> : vector<2xf32>
    %172 = vector.multi_reduction <add>, %171, %cst_116 [1] : vector<2x8xf32> to vector<2xf32>
    %173 = vector.shape_cast %172 : vector<2xf32> to vector<2x1xf32>
    %174 = math.log %173 : vector<2x1xf32>
    %175 = arith.addf %168, %174 : vector<2x1xf32>
    %176 = vector.broadcast %175 : vector<2x1xf32> to vector<2x8xf32>
    %177 = arith.subf %166, %176 : vector<2x8xf32>
    %c0_117 = arith.constant 0 : index
    %c0_118 = arith.constant 0 : index
    %178 = vector.load %arg9[%c0_117, %c0_118] : memref<2x8xf32, #tpu.memory_space<vmem>>, vector<2x8xf32>
    tpu.vector_store %arg9[%c0_117, %c0_118], %177 {strides = array<i32>} : memref<2x8xf32, #tpu.memory_space<vmem>>, vector<2x8xf32>,
    return
  }
}

</mosaic_0001>

<bundles_post_ra>
// kernel: dgcnn_forward.2
= control target key start
LH: loop header
LB: loop body
LE: loop exit
PB: predicated region body
PF: predicated region fallthrough
CT: control target
= control target key end

     0   :  { %vm68_vm0 = vcmask 64512   ;;  %v5889_v33 = vmov 0.0|0.0   ;;  %vm1231_vm1 = vcmask 523264   ;;  %vm1821_vm2 = vcmask 261120   ;;  %s5878_s2 = inlined_call_operand.vmem [shape: f32[8,128], index: 2, kind: input, shape index: {}]   ;;  %s5879_s1 = inlined_call_operand.vmem [shape: f32[256,8], index: 1, kind: input, shape index: {}]   ;;  %s5880_s0 = inlined_call_operand.vmem [shape: f32[256,256], index: 0, kind: input, shape index: {}]   ;;  %s5881_s4 = inlined_call_operand.vmem [shape: f32[128,64], index: 4, kind: input, shape index: {}]   ;;  %s5882_s3 = inlined_call_operand.vmem [shape: f32[1,128], index: 3, kind: input, shape index: {}]   ;;  %s5883_s10 = inlined_call_operand.vmem [shape: f32[256,256], index: 10, kind: output, shape index: {}]   ;;  %s5884_s6 = inlined_call_operand.vmem [shape: f32[64,32], index: 6, kind: input, shape index: {}]   ;;  %s5885_s5 = inlined_call_operand.vmem [shape: f32[1,64], index: 5, kind: input, shape index: {}]   ;;  %s5886_s8 = inlined_call_operand.vmem [shape: f32[32,32], index: 8, kind: input, shape index: {}]   ;;  %s5887_s7 = inlined_call_operand.vmem [shape: f32[1,32], index: 7, kind: input, shape index: {}]   ;;  %s5888_s9 = inlined_call_operand.vmem [shape: f32[1,32], index: 9, kind: input, shape index: {}]  }
   0x1   :  { %v67_v0 = vld [vmem:[%s5878_s2] sm:$0xff]  ;;  %v36_v2 = vld [vmem:[%s5879_s1 + $0x8] sm:$0xff]  ;;  %v37_v3 = vld [vmem:[%s5879_s1 + $0x10] sm:$0xff]  ;;  %vm2663_vm3 = vcmask 785408  }
   0x2   :  { %v35_v1 = vld [vmem:[%s5879_s1] sm:$0xff]  ;;  %3021 = vmatprep.subr.mxu1 %v67_v0  ;;  %v38_v4 = vld [vmem:[%s5879_s1 + $0x18] sm:$0xff]  ;;  %v40_v6 = vld [vmem:[%s5879_s1 + $0x28] sm:$0xff] }
   0x3   :  { %3023 = vmatprep.mubr.msk.f32.mxu1 %vm68_vm0, %v35_v1  ;;  %3022 = vmatpush3.msra.mxu1 %v67_v0  ;;  %v39_v5 = vld [vmem:[%s5879_s1 + $0x20] sm:$0xff]  ;;  %v41_v7 = vld [vmem:[%s5879_s1 + $0x30] sm:$0xff]  ;;  %v42_v8 = vld [vmem:[%s5879_s1 + $0x38] sm:$0xff] }
   0x4   :  { %3024 = vmatmul.mubr.msk.f32.vlgmr.msra.gmra.mrb[0].mxu1 %vm68_vm0, %v36_v2  ;;  %v43_v9 = vld [vmem:[%s5879_s1 + $0x40] sm:$0xff]  ;;  %v44_v10 = vld [vmem:[%s5879_s1 + $0x48] sm:$0xff]  ;;  %v45_v11 = vld [vmem:[%s5879_s1 + $0x50] sm:$0xff]  ;;  %3271 = vmatprep.subr.bf16.mxu1 %v5889_v33 }
   0x5   :  { %3026 = vmatprep.mubr.msk.f32.mxu1 %vm68_vm0, %v37_v3  ;;  %v46_v12 = vld [vmem:[%s5879_s1 + $0x58] sm:$0xff]  ;;  %v47_v13 = vld [vmem:[%s5879_s1 + $0x60] sm:$0xff]  ;;  %v48_v14 = vld [vmem:[%s5879_s1 + $0x68] sm:$0xff] }
   0x6   :  { %v49_v15 = vld [vmem:[%s5879_s1 + $0x70] sm:$0xff]  ;;  %v50_v16 = vld [vmem:[%s5879_s1 + $0x78] sm:$0xff]  ;;  %v51_v17 = vld [vmem:[%s5879_s1 + $0x80] sm:$0xff] }
   0x7   :  { %v52_v18 = vld [vmem:[%s5879_s1 + $0x88] sm:$0xff]  ;;  %v53_v19 = vld [vmem:[%s5879_s1 + $0x90] sm:$0xff]  ;;  %v54_v20 = vld [vmem:[%s5879_s1 + $0x98] sm:$0xff] }
   0x8   :  { %3027 = vmatmul.mubr.msk.f32.gmra.mrb[2].mxu1 %vm68_vm0, %v38_v4  ;;  %v55_v21 = vld [vmem:[%s5879_s1 + $0xa0] sm:$0xff]  ;;  %v56_v22 = vld [vmem:[%s5879_s1 + $0xa8] sm:$0xff]  ;;  %v57_v23 = vld [vmem:[%s5879_s1 + $0xb0] sm:$0xff] }
   0x9   :  { %3029 = vmatprep.mubr.msk.f32.mxu1 %vm68_vm0, %v39_v5  ;;  %v58_v24 = vld [vmem:[%s5879_s1 + $0xb8] sm:$0xff]  ;;  %v59_v25 = vld [vmem:[%s5879_s1 + $0xc0] sm:$0xff]  ;;  %v60_v26 = vld [vmem:[%s5879_s1 + $0xc8] sm:$0xff] }
   0xa   :  { %v61_v27 = vld [vmem:[%s5879_s1 + $0xd0] sm:$0xff]  ;;  %v62_v28 = vld [vmem:[%s5879_s1 + $0xd8] sm:$0xff]  ;;  %v63_v29 = vld [vmem:[%s5879_s1 + $0xe0] sm:$0xff] }
   0xb   :  { %v64_v30 = vld [vmem:[%s5879_s1 + $0xe8] sm:$0xff]  ;;  %v65_v31 = vld [vmem:[%s5879_s1 + $0xf0] sm:$0xff]  ;;  %v66_v32 = vld [vmem:[%s5879_s1 + $0xf8] sm:$0xff] }
   0xc   :  { %3030 = vmatmul.mubr.msk.f32.gmra.mrb[4].mxu1 %vm68_vm0, %v40_v6  ;;  %v4067_v34 = vld [vmem:[%s5880_s0 + $0x8] sm:$0xff] }
   0xd   :  { %3032 = vmatprep.mubr.msk.f32.mxu1 %vm68_vm0, %v41_v7 }
  0x10   :  { %3033 = vmatmul.mubr.msk.f32.gmra.mrb[6].mxu1 %vm68_vm0, %v42_v8 }
  0x11   :  { %3035 = vmatprep.mubr.msk.f32.mxu1 %vm68_vm0, %v43_v9 }
  0x14   :  { %3036 = vmatmul.mubr.msk.f32.gmra.mrb[8].mxu1 %vm68_vm0, %v44_v10 }
  0x15   :  { %3038 = vmatprep.mubr.msk.f32.mxu1 %vm68_vm0, %v45_v11 }
  0x18   :  { %3039 = vmatmul.mubr.msk.f32.gmra.mrb[10].mxu1 %vm68_vm0, %v46_v12 }
  0x19   :  { %3041 = vmatprep.mubr.msk.f32.mxu1 %vm68_vm0, %v47_v13 }
  0x1c   :  { %3042 = vmatmul.mubr.msk.f32.gmra.mrb[12].mxu1 %vm68_vm0, %v48_v14 }
  0x1d   :  { %3044 = vmatprep.mubr.msk.f32.mxu1 %vm68_vm0, %v49_v15 }
  0x20   :  { %3045 = vmatmul.mubr.msk.f32.gmra.mrb[14].mxu1 %vm68_vm0, %v50_v16 }
  0x21   :  { %3047 = vmatprep.mubr.msk.f32.mxu1 %vm68_vm0, %v51_v17 }
  0x24   :  { %3048 = vmatmul.mubr.msk.f32.gmra.mrb[16].mxu1 %vm68_vm0, %v52_v18 }
  0x25   :  { %3050 = vmatprep.mubr.msk.f32.mxu1 %vm68_vm0, %v53_v19  ;;  %v4088_v19 = vld [vmem:[%s5880_s0] sm:$0xff] }
  0x28   :  { %3051 = vmatmul.mubr.msk.f32.gmra.mrb[18].mxu1 %vm68_vm0, %v54_v20  ;;  %v718_v20 = vld [vmem:[%s5881_s4] sm:$0xff] }
  0x29   :  { %3053 = vmatprep.mubr.msk.f32.mxu1 %vm68_vm0, %v55_v21  ;;  %v719_v21 = vld [vmem:[%s5881_s4 + $0x8] sm:$0xff] }
  0x2c   :  { %3054 = vmatmul.mubr.msk.f32.gmra.mrb[20].mxu1 %vm68_vm0, %v56_v22  ;;  %v720_v22 = vld [vmem:[%s5881_s4 + $0x10] sm:$0xff] }
  0x2d   :  { %3056 = vmatprep.mubr.msk.f32.mxu1 %vm68_vm0, %v57_v23  ;;  %v4102_v23 = vld [vmem:[%s5880_s0 + $0x18] sm:$0xff] }
  0x30   :  { %3057 = vmatmul.mubr.msk.f32.gmra.mrb[22].mxu1 %vm68_vm0, %v58_v24  ;;  %v3319_v24 = vpack.c.bf16 %v719_v21, %v718_v20  ;;  %v729_v20 = vld [vmem:[%s5881_s4 + $0x58] sm:$0xff] }
  0x31   :  { %3059 = vmatprep.mubr.msk.f32.mxu1 %vm68_vm0, %v59_v25  ;;  %v721_v25 = vld [vmem:[%s5881_s4 + $0x18] sm:$0xff] }
  0x32   :  { %3320 = vmatprep.subr.bf16.mxu0 %v3319_v24 }
  0x33   :  { %3322 = vmatpush3.bf16.msra.mxu0 %v3319_v24  ;;  %v4405_v24 = vld [vmem:[%s5880_s0 + $0x188] sm:$0xff] }
  0x34   :  { %3060 = vmatmul.mubr.msk.f32.gmra.mrb[24].mxu1 %vm68_vm0, %v60_v26  ;;  %v3323_v26 = vpack.c.bf16 %v721_v25, %v720_v22  ;;  %v4400_v22 = vld [vmem:[%s5880_s0 + $0x170] sm:$0xff]  ;;  %v730_v25 = vld [vmem:[%s5881_s4 + $0x60] sm:$0xff] }
  0x35   :  { %3062 = vmatprep.mubr.msk.f32.mxu1 %vm68_vm0, %v61_v27  ;;  %v722_v27 = vld [vmem:[%s5881_s4 + $0x20] sm:$0xff] }
  0x36   :  { %3324 = vmatprep.subr.bf16.mxu0 %v3323_v26 }
  0x37   :  { %3326 = vmatpush3.bf16.msra.mxu0 %v3323_v26  ;;  %v731_v26 = vld [vmem:[%s5881_s4 + $0x68] sm:$0xff] }
  0x38   :  { %3063 = vmatmul.mubr.msk.f32.gmra.mrb[26].mxu1 %vm68_vm0, %v62_v28  ;;  %v723_v28 = vld [vmem:[%s5881_s4 + $0x28] sm:$0xff] }
  0x39   :  { %3065 = vmatprep.mubr.msk.f32.mxu1 %vm68_vm0, %v63_v29  ;;  %v4118_v29 = vld [vmem:[%s5880_s0 + $0x10] sm:$0xff] }
  0x3c   :  { %3066 = vmatmul.mubr.msk.f32.gmra.mrb[28].mxu1 %vm68_vm0, %v64_v30  ;;  %v4123_v30 = vld [vmem:[%s5880_s0 + $0x28] sm:$0xff] }
  0x3d   :  { %3068 = vmatprep.mubr.msk.f32.mxu1 %vm68_vm0, %v65_v31  ;;  %v3327_v31 = vpack.c.bf16 %v723_v28, %v722_v27  ;;  %v3343_v27 = vpack.c.bf16 %v731_v26, %v730_v25  ;;  %v4418_v28 = vld [vmem:[%s5880_s0 + $0x180] sm:$0xff]  ;;  %v4478_v26 = vld [vmem:[%s5880_s0 + $0x1d8] sm:$0xff] }
  0x3e   :  { %v4473_v25 = vld [vmem:[%s5880_s0 + $0x1c0] sm:$0xff]  ;;  %5959 = vst [vmem:[#allocation10_spill] sm:$0xff] %v4478_v26 }
  0x3f   :  { %3328 = vmatprep.subr.bf16.mxu0 %v3327_v31  ;;  %5958 = vst [vmem:[#allocation9_spill] sm:$0xff] %v4473_v25 }
  0x40   :  { %3069 = vmatmul.mubr.msk.f32.gmra.mrb[30].mxu1 %vm68_vm0, %v66_v32  ;;  %v724_v32 = vld [vmem:[%s5881_s4 + $0x30] sm:$0xff]  ;;  %3330 = vmatpush3.bf16.msra.mxu0 %v3327_v31  ;;  %v4423_v31 = vld [vmem:[%s5880_s0 + $0x198] sm:$0xff] }
  0x41   :  { %525 = vmatprep.mubr.f32.mxu1 %v4067_v34  ;;  %5951 = vst [vmem:[#allocation2_spill] sm:$0xff] %v4423_v31 }
  0xd7   :  { %v3025_v35 = vpop.f32.mrb[0].mxu1 }
  0xd8   :  { %v231_v36 = vpop.f32.mrb[1].mxu1 }
  0xd9   :  { %v3272_v37 = vpack.c.bf16 %v3025_v35, %v231_v36  ;;  %v725_v35 = vld [vmem:[%s5881_s4 + $0x38] sm:$0xff]  ;;  %v4136_v36 = vld [vmem:[%s5880_s0 + $0x20] sm:$0xff] }
  0xdb   :  { %v3028_v38 = vpop.f32.mrb[2].mxu1  ;;  %3273 = vmatpush1.bf16.msra.mxu1 %v3272_v37  ;;  %v4141_v37 = vld [vmem:[%s5880_s0 + $0x38] sm:$0xff] }
  0xdc   :  { %v241_v39 = vpop.f32.mrb[3].mxu1  ;;  %3274 = vmatprep.subr.bf16.mxu1 %v5889_v33 }
  0xdd   :  { %v3275_v40 = vpack.c.bf16 %v3028_v38, %v241_v39  ;;  %v3331_v38 = vpack.c.bf16 %v725_v35, %v724_v32  ;;  %v4148_v39 = vld [vmem:[%s5880_s0 + $0x30] sm:$0xff]  ;;  %v733_v35 = vld [vmem:[%s5881_s4 + $0x78] sm:$0xff] }
  0xde   :  { %v732_v32 = vld [vmem:[%s5881_s4 + $0x70] sm:$0xff] }
  0xdf   :  { %v3031_v41 = vpop.f32.mrb[4].mxu1  ;;  %3276 = vmatpush1.bf16.msra.mxu1 %v3275_v40  ;;  %v4153_v40 = vld [vmem:[%s5880_s0 + $0x48] sm:$0xff]  ;;  %3332 = vmatprep.subr.bf16.mxu0 %v3331_v38 }
  0xe0   :  { %v251_v42 = vpop.f32.mrb[5].mxu1  ;;  %3277 = vmatprep.subr.bf16.mxu1 %v5889_v33  ;;  %3334 = vmatpush3.bf16.msra.mxu0 %v3331_v38  ;;  %v3347_v38 = vpack.c.bf16 %v733_v35, %v732_v32  ;;  %v4490_v32 = vld [vmem:[%s5880_s0 + $0x1e8] sm:$0xff]  ;;  %v4497_v35 = vld [vmem:[%s5880_s0 + $0x1e0] sm:$0xff] }
  0xe1   :  { %v3278_v43 = vpack.c.bf16 %v3031_v41, %v251_v42  ;;  %v4160_v41 = vld [vmem:[%s5880_s0 + $0x40] sm:$0xff]  ;;  %v4165_v42 = vld [vmem:[%s5880_s0 + $0x58] sm:$0xff]  ;;  %5961 = vst [vmem:[#allocation12_spill] sm:$0xff] %v4490_v32  ;;  %5962 = vst [vmem:[#allocation13_spill] sm:$0xff] %v4497_v35 }
  0xe3   :  { %v3034_v44 = vpop.f32.mrb[6].mxu1  ;;  %3279 = vmatpush1.bf16.msra.mxu1 %v3278_v43  ;;  %v4172_v43 = vld [vmem:[%s5880_s0 + $0x50] sm:$0xff] }
  0xe4   :  { %v261_v45 = vpop.f32.mrb[7].mxu1  ;;  %3280 = vmatprep.subr.bf16.mxu1 %v5889_v33 }
  0xe5   :  { %v3281_v46 = vpack.c.bf16 %v3034_v44, %v261_v45  ;;  %v4177_v44 = vld [vmem:[%s5880_s0 + $0x68] sm:$0xff]  ;;  %v4184_v45 = vld [vmem:[%s5880_s0 + $0x60] sm:$0xff] }
  0xe7   :  { %v3037_v47 = vpop.f32.mrb[8].mxu1  ;;  %3282 = vmatpush1.bf16.msra.mxu1 %v3281_v46  ;;  %v4189_v46 = vld [vmem:[%s5880_s0 + $0x78] sm:$0xff] }
  0xe8   :  { %v271_v48 = vpop.f32.mrb[9].mxu1  ;;  %3283 = vmatprep.subr.bf16.mxu1 %v5889_v33 }
  0xe9   :  { %v3284_v49 = vpack.c.bf16 %v3037_v47, %v271_v48  ;;  %v4196_v47 = vld [vmem:[%s5880_s0 + $0x70] sm:$0xff]  ;;  %v4201_v48 = vld [vmem:[%s5880_s0 + $0x88] sm:$0xff] }
  0xeb   :  { %v3040_v50 = vpop.f32.mrb[10].mxu1  ;;  %3285 = vmatpush1.bf16.msra.mxu1 %v3284_v49  ;;  %v4208_v49 = vld [vmem:[%s5880_s0 + $0x80] sm:$0xff] }
  0xec   :  { %v281_v51 = vpop.f32.mrb[11].mxu1  ;;  %3286 = vmatprep.subr.bf16.mxu1 %v5889_v33 }
  0xed   :  { %v3287_v52 = vpack.c.bf16 %v3040_v50, %v281_v51  ;;  %v4213_v50 = vld [vmem:[%s5880_s0 + $0x98] sm:$0xff]  ;;  %v4220_v51 = vld [vmem:[%s5880_s0 + $0x90] sm:$0xff] }
  0xef   :  { %v3043_v53 = vpop.f32.mrb[12].mxu1  ;;  %3288 = vmatpush1.bf16.msra.mxu1 %v3287_v52  ;;  %v4225_v52 = vld [vmem:[%s5880_s0 + $0xa8] sm:$0xff] }
  0xf0   :  { %v291_v54 = vpop.f32.mrb[13].mxu1  ;;  %3289 = vmatprep.subr.bf16.mxu1 %v5889_v33 }
  0xf1   :  { %v3290_v55 = vpack.c.bf16 %v3043_v53, %v291_v54  ;;  %v4232_v53 = vld [vmem:[%s5880_s0 + $0xa0] sm:$0xff]  ;;  %v4237_v54 = vld [vmem:[%s5880_s0 + $0xb8] sm:$0xff] }
  0xf3   :  { %v3046_v56 = vpop.f32.mrb[14].mxu1  ;;  %3291 = vmatpush1.bf16.msra.mxu1 %v3290_v55  ;;  %v4244_v55 = vld [vmem:[%s5880_s0 + $0xb0] sm:$0xff] }
  0xf4   :  { %v301_v57 = vpop.f32.mrb[15].mxu1  ;;  %3292 = vmatprep.subr.bf16.mxu1 %v5889_v33 }
  0xf5   :  { %v3293_v58 = vpack.c.bf16 %v3046_v56, %v301_v57  ;;  %v4249_v56 = vld [vmem:[%s5880_s0 + $0xc8] sm:$0xff]  ;;  %v4256_v57 = vld [vmem:[%s5880_s0 + $0xc0] sm:$0xff] }
  0xf7   :  { %v3049_v59 = vpop.f32.mrb[16].mxu1  ;;  %3294 = vmatpush1.bf16.msra.mxu1 %v3293_v58  ;;  %v4261_v58 = vld [vmem:[%s5880_s0 + $0xd8] sm:$0xff] }
  0xf8   :  { %v311_v60 = vpop.f32.mrb[17].mxu1  ;;  %3295 = vmatprep.subr.bf16.mxu1 %v5889_v33 }
  0xf9   :  { %v3296_v61 = vpack.c.bf16 %v3049_v59, %v311_v60  ;;  %v4268_v59 = vld [vmem:[%s5880_s0 + $0xd0] sm:$0xff]  ;;  %v4273_v60 = vld [vmem:[%s5880_s0 + $0xe8] sm:$0xff] }
  0xfb   :  { %v3052_v62 = vpop.f32.mrb[18].mxu1  ;;  %3297 = vmatpush1.bf16.msra.mxu1 %v3296_v61  ;;  %v4280_v61 = vld [vmem:[%s5880_s0 + $0xe0] sm:$0xff] }
  0xfc   :  { %v321_v63 = vpop.f32.mrb[19].mxu1  ;;  %3298 = vmatprep.subr.bf16.mxu1 %v5889_v33 }
  0xfd   :  { %v3299_v0 = vpack.c.bf16 %v3052_v62, %v321_v63  ;;  %v4285_v62 = vld [vmem:[%s5880_s0 + $0xf8] sm:$0xff]  ;;  %v4292_v63 = vld [vmem:[%s5880_s0 + $0xf0] sm:$0xff] }
  0xff   :  { %v3055_v1 = vpop.f32.mrb[20].mxu1  ;;  %3300 = vmatpush1.bf16.msra.mxu1 %v3299_v0  ;;  %v4297_v0 = vld [vmem:[%s5880_s0 + $0x108] sm:$0xff] }
 0x100   :  { %v331_v2 = vpop.f32.mrb[21].mxu1  ;;  %3301 = vmatprep.subr.bf16.mxu1 %v5889_v33 }
 0x101   :  { %v3302_v3 = vpack.c.bf16 %v3055_v1, %v331_v2  ;;  %v4304_v1 = vld [vmem:[%s5880_s0 + $0x100] sm:$0xff]  ;;  %v4309_v2 = vld [vmem:[%s5880_s0 + $0x118] sm:$0xff] }
 0x103   :  { %v3058_v4 = vpop.f32.mrb[22].mxu1  ;;  %3303 = vmatpush1.bf16.msra.mxu1 %v3302_v3  ;;  %v4316_v3 = vld [vmem:[%s5880_s0 + $0x110] sm:$0xff] }
 0x104   :  { %v341_v5 = vpop.f32.mrb[23].mxu1  ;;  %3304 = vmatprep.subr.bf16.mxu1 %v5889_v33 }
 0x105   :  { %v3305_v6 = vpack.c.bf16 %v3058_v4, %v341_v5  ;;  %v4321_v4 = vld [vmem:[%s5880_s0 + $0x128] sm:$0xff]  ;;  %v4328_v5 = vld [vmem:[%s5880_s0 + $0x120] sm:$0xff] }
 0x107   :  { %v3061_v7 = vpop.f32.mrb[24].mxu1  ;;  %3306 = vmatpush1.bf16.msra.mxu1 %v3305_v6  ;;  %v4333_v6 = vld [vmem:[%s5880_s0 + $0x138] sm:$0xff] }
 0x108   :  { %v351_v8 = vpop.f32.mrb[25].mxu1  ;;  %3307 = vmatprep.subr.bf16.mxu1 %v5889_v33 }
 0x109   :  { %v3308_v9 = vpack.c.bf16 %v3061_v7, %v351_v8  ;;  %v4340_v7 = vld [vmem:[%s5880_s0 + $0x130] sm:$0xff]  ;;  %v4345_v8 = vld [vmem:[%s5880_s0 + $0x148] sm:$0xff] }
 0x10b   :  { %v3064_v10 = vpop.f32.mrb[26].mxu1  ;;  %3309 = vmatpush1.bf16.msra.mxu1 %v3308_v9  ;;  %v4352_v9 = vld [vmem:[%s5880_s0 + $0x140] sm:$0xff] }
 0x10c   :  { %v361_v11 = vpop.f32.mrb[27].mxu1  ;;  %3310 = vmatprep.subr.bf16.mxu1 %v5889_v33 }
 0x10d   :  { %v3311_v12 = vpack.c.bf16 %v3064_v10, %v361_v11  ;;  %v4357_v10 = vld [vmem:[%s5880_s0 + $0x158] sm:$0xff]  ;;  %v4364_v11 = vld [vmem:[%s5880_s0 + $0x150] sm:$0xff] }
 0x10f   :  { %v3067_v13 = vpop.f32.mrb[28].mxu1  ;;  %3312 = vmatpush1.bf16.msra.mxu1 %v3311_v12  ;;  %v4369_v12 = vld [vmem:[%s5880_s0 + $0x168] sm:$0xff] }
 0x110   :  { %v371_v14 = vpop.f32.mrb[29].mxu1  ;;  %3313 = vmatprep.subr.bf16.mxu1 %v5889_v33 }
 0x111   :  { %v3314_v15 = vpack.c.bf16 %v3067_v13, %v371_v14  ;;  %v726_v13 = vld [vmem:[%s5881_s4 + $0x40] sm:$0xff]  ;;  %v727_v14 = vld [vmem:[%s5881_s4 + $0x48] sm:$0xff] }
 0x113   :  { %v3070_v16 = vpop.f32.mrb[30].mxu1  ;;  %3315 = vmatpush1.bf16.msra.mxu1 %v3314_v15  ;;  %v3335_v15 = vpack.c.bf16 %v727_v14, %v726_v13  ;;  %v4436_v13 = vld [vmem:[%s5880_s0 + $0x190] sm:$0xff]  ;;  %v4441_v14 = vld [vmem:[%s5880_s0 + $0x1a8] sm:$0xff] }
 0x114   :  { %v381_v17 = vpop.f32.mrb[31].mxu1  ;;  %3316 = vmatprep.subr.bf16.mxu1 %v5889_v33  ;;  %5952 = vst [vmem:[#allocation3_spill] sm:$0xff] %v4436_v13  ;;  %5953 = vst [vmem:[#allocation4_spill] sm:$0xff] %v4441_v14 }
 0x115   :  { %v3317_v18 = vpack.c.bf16 %v3070_v16, %v381_v17  ;;  %v4382_v16 = vld [vmem:[%s5880_s0 + $0x160] sm:$0xff]  ;;  %3336 = vmatprep.subr.bf16.mxu0 %v3335_v15  ;;  %v4387_v17 = vld [vmem:[%s5880_s0 + $0x178] sm:$0xff] }
 0x116   :  { %3338 = vmatpush3.bf16.msra.mxu0 %v3335_v15  ;;  %v4449_v15 = vld [vmem:[%s5880_s0 + $0x1a0] sm:$0xff] }
 0x117   :  { %3318 = vmatpush1.bf16.msra.mxu1 %v3317_v18  ;;  %v728_v18 = vld [vmem:[%s5881_s4 + $0x50] sm:$0xff]  ;;  %5954 = vst [vmem:[#allocation5_spill] sm:$0xff] %v4449_v15 }
 0x118   :  { %v3339_v21 = vpack.c.bf16 %v729_v20, %v728_v18  ;;  %v4454_v18 = vld [vmem:[%s5880_s0 + $0x1b8] sm:$0xff]  ;;  %v4461_v20 = vld [vmem:[%s5880_s0 + $0x1b0] sm:$0xff] }
 0x119   :  { %5955 = vst [vmem:[#allocation6_spill] sm:$0xff] %v4454_v18  ;;  %5956 = vst [vmem:[#allocation7_spill] sm:$0xff] %v4461_v20 }
 0x11a   :  { %526 = vmatmul.mubr.f32.vlgmr.msra.gmra.mrb[32].mxu1 %v4088_v19  ;;  %3340 = vmatprep.subr.bf16.mxu0 %v3339_v21 }
 0x11b   :  { %530 = vmatprep.mubr.f32.mxu1 %v4102_v23  ;;  %3342 = vmatpush3.bf16.msra.mxu0 %v3339_v21  ;;  %v4466_v21 = vld [vmem:[%s5880_s0 + $0x1c8] sm:$0xff] }
 0x11c   :  { %3344 = vmatprep.subr.bf16.mxu0 %v3343_v27  ;;  %5957 = vst [vmem:[#allocation8_spill] sm:$0xff] %v4466_v21 }
 0x11e   :  { %531 = vmatmul.mubr.f32.gmra.mrb[34].mxu1 %v4118_v29 }
 0x11f   :  { %535 = vmatprep.mubr.f32.mxu1 %v4123_v30  ;;  %3346 = vmatpush3.bf16.msra.mxu0 %v3343_v27  ;;  %v4485_v27 = vld [vmem:[%s5880_s0 + $0x1d0] sm:$0xff] }
 0x120   :  { %3348 = vmatprep.subr.bf16.mxu0 %v3347_v38  ;;  %5960 = vst [vmem:[#allocation11_spill] sm:$0xff] %v4485_v27 }
 0x122   :  { %536 = vmatmul.mubr.f32.gmra.mrb[36].mxu1 %v4136_v36 }
 0x123   :  { %540 = vmatprep.mubr.f32.mxu1 %v4141_v37  ;;  %3350 = vmatpush3.bf16.msra.mxu0 %v3347_v38  ;;  %v4502_v38 = vld [vmem:[%s5880_s0 + $0x1f8] sm:$0xff] }
 0x124   :  { %3351 = vmatprep.subr.bf16.mxu0 %v5889_v33  ;;  %5963 = vst [vmem:[#allocation14_spill] sm:$0xff] %v4502_v38  ;;  %v4509_v33 = vld [vmem:[%s5880_s0 + $0x1f0] sm:$0xff] }
 0x125   :  { %5964 = vst [vmem:[#allocation15_spill] sm:$0xff] %v4509_v33 }
 0x126   :  { %541 = vmatmul.mubr.f32.gmra.mrb[38].mxu1 %v4148_v39 }
 0x127   :  { %545 = vmatprep.mubr.f32.mxu1 %v4153_v40 }
 0x12a   :  { %546 = vmatmul.mubr.f32.gmra.mrb[40].mxu1 %v4160_v41 }
 0x12b   :  { %550 = vmatprep.mubr.f32.mxu1 %v4165_v42 }
 0x12e   :  { %551 = vmatmul.mubr.f32.gmra.mrb[42].mxu1 %v4172_v43 }
 0x12f   :  { %555 = vmatprep.mubr.f32.mxu1 %v4177_v44 }
 0x132   :  { %556 = vmatmul.mubr.f32.gmra.mrb[44].mxu1 %v4184_v45 }
 0x133   :  { %560 = vmatprep.mubr.f32.mxu1 %v4189_v46 }
 0x136   :  { %561 = vmatmul.mubr.f32.gmra.mrb[46].mxu1 %v4196_v47 }
 0x137   :  { %565 = vmatprep.mubr.f32.mxu1 %v4201_v48 }
 0x13a   :  { %566 = vmatmul.mubr.f32.gmra.mrb[48].mxu1 %v4208_v49 }
 0x13b   :  { %570 = vmatprep.mubr.f32.mxu1 %v4213_v50 }
 0x13e   :  { %571 = vmatmul.mubr.f32.gmra.mrb[50].mxu1 %v4220_v51 }
 0x13f   :  { %575 = vmatprep.mubr.f32.mxu1 %v4225_v52 }
 0x142   :  { %576 = vmatmul.mubr.f32.gmra.mrb[52].mxu1 %v4232_v53 }
 0x143   :  { %580 = vmatprep.mubr.f32.mxu1 %v4237_v54 }
 0x146   :  { %581 = vmatmul.mubr.f32.gmra.mrb[54].mxu1 %v4244_v55 }
 0x147   :  { %585 = vmatprep.mubr.f32.mxu1 %v4249_v56 }
 0x14a   :  { %586 = vmatmul.mubr.f32.gmra.mrb[56].mxu1 %v4256_v57 }
 0x14b   :  { %590 = vmatprep.mubr.f32.mxu1 %v4261_v58 }
 0x14e   :  { %591 = vmatmul.mubr.f32.gmra.mrb[58].mxu1 %v4268_v59 }
 0x14f   :  { %595 = vmatprep.mubr.f32.mxu1 %v4273_v60 }
 0x152   :  { %596 = vmatmul.mubr.f32.gmra.mrb[60].mxu1 %v4280_v61 }
 0x153   :  { %600 = vmatprep.mubr.f32.mxu1 %v4285_v62 }
 0x156   :  { %601 = vmatmul.mubr.f32.gmra.mrb[62].mxu1 %v4292_v63 }
 0x157   :  { %605 = vmatprep.mubr.f32.mxu1 %v4297_v0 }
 0x15a   :  { %606 = vmatmul.mubr.f32.gmra.mrb[64].mxu1 %v4304_v1 }
 0x15b   :  { %610 = vmatprep.mubr.f32.mxu1 %v4309_v2 }
 0x15e   :  { %611 = vmatmul.mubr.f32.gmra.mrb[66].mxu1 %v4316_v3 }
 0x15f   :  { %615 = vmatprep.mubr.f32.mxu1 %v4321_v4 }
 0x162   :  { %616 = vmatmul.mubr.f32.gmra.mrb[68].mxu1 %v4328_v5 }
 0x163   :  { %620 = vmatprep.mubr.f32.mxu1 %v4333_v6 }
 0x166   :  { %621 = vmatmul.mubr.f32.gmra.mrb[70].mxu1 %v4340_v7 }
 0x167   :  { %625 = vmatprep.mubr.f32.mxu1 %v4345_v8 }
 0x16a   :  { %626 = vmatmul.mubr.f32.gmra.mrb[72].mxu1 %v4352_v9 }
 0x16b   :  { %630 = vmatprep.mubr.f32.mxu1 %v4357_v10 }
 0x16e   :  { %631 = vmatmul.mubr.f32.gmra.mrb[74].mxu1 %v4364_v11 }
 0x16f   :  { %635 = vmatprep.mubr.f32.mxu1 %v4369_v12 }
 0x172   :  { %636 = vmatmul.mubr.f32.gmra.mrb[76].mxu1 %v4382_v16 }
 0x173   :  { %640 = vmatprep.mubr.f32.mxu1 %v4387_v17 }
 0x176   :  { %641 = vmatmul.mubr.f32.gmra.mrb[78].mxu1 %v4400_v22 }
 0x177   :  { %645 = vmatprep.mubr.f32.mxu1 %v4405_v24 }
 0x17a   :  { %646 = vmatmul.mubr.f32.gmra.mrb[80].mxu1 %v4418_v28 }
 0x17b   :  { %650 = vmatprep.mubr.f32.mxu1 %v4423_v31 }
 0x17e   :  { %651 = vmatmul.mubr.f32.gmra.mrb[82].mxu1 %v4436_v13 }
 0x17f   :  { %655 = vmatprep.mubr.f32.mxu1 %v4441_v14 }
 0x182   :  { %656 = vmatmul.mubr.f32.gmra.mrb[84].mxu1 %v4449_v15 }
 0x183   :  { %660 = vmatprep.mubr.f32.mxu1 %v4454_v18 }
 0x186   :  { %661 = vmatmul.mubr.f32.gmra.mrb[86].mxu1 %v4461_v20 }
 0x187   :  { %665 = vmatprep.mubr.f32.mxu1 %v4466_v21 }
 0x18a   :  { %666 = vmatmul.mubr.f32.gmra.mrb[88].mxu1 %v4473_v25 }
 0x18b   :  { %670 = vmatprep.mubr.f32.mxu1 %v4478_v26 }
 0x18e   :  { %671 = vmatmul.mubr.f32.gmra.mrb[90].mxu1 %v4485_v27 }
 0x18f   :  { %675 = vmatprep.mubr.f32.mxu1 %v4490_v32  ;;  %v4515_v32 = vld [vmem:[%s5882_s3] ss:$0 sm:$0xff] }
 0x192   :  { %676 = vmatmul.mubr.f32.gmra.mrb[92].mxu1 %v4497_v35 }
 0x193   :  { %680 = vmatprep.mubr.f32.mxu1 %v4502_v38 }
 0x196   :  { %681 = vmatmul.mubr.f32.gmra.mrb[94].mxu1 %v4509_v33 }
 0x1ed   :  { %v527_v27 = vpop.f32.mrb[32].mxu1 }
 0x1ee   :  { %v528_v26 = vadd.f32 %v4515_v32, %v527_v27  ;;  %v529_v25 = vpop.f32.mrb[33].mxu1 }
 0x1f0   :  { %3554 = vtanh.f32 %v528_v26 }
 0x1f1   :  { %v532_v35 = vpop.f32.mrb[34].mxu1 }
 0x1f2   :  { %v533_v38 = vadd.f32 %v4515_v32, %v532_v35  ;;  %v534_v21 = vpop.f32.mrb[35].mxu1 }
 0x1f4   :  { %3556 = vtanh.f32 %v533_v38 }
 0x1f5   :  { %v537_v20 = vpop.f32.mrb[36].mxu1 }
 0x1f6   :  { %v538_v18 = vadd.f32 %v4515_v32, %v537_v20  ;;  %v539_v15 = vpop.f32.mrb[37].mxu1 }
 0x1f8   :  { %3558 = vtanh.f32 %v538_v18 }
 0x1f9   :  { %v542_v33 = vpop.f32.mrb[38].mxu1 }
 0x1fa   :  { %v3555_v14 = vpop.eup %3554  ;;  %v543_v13 = vadd.f32 %v4515_v32, %v542_v33  ;;  %v544_v31 = vpop.f32.mrb[39].mxu1 }
 0x1fb   :  { %2696 = vst [vmem:[%s5883_s10] sm:$0xff] %v3555_v14  ;;  %3103 = vmatprep.mubr.f32.mxu0 %v3555_v14 }
 0x1fc   :  { %3560 = vtanh.f32 %v543_v13 }
 0x1fd   :  { %v547_v25 = vpop.f32.mrb[40].mxu1 }
 0x1fe   :  { %v3557_v26 = vpop.eup %3556  ;;  %v548_v21 = vadd.f32 %v4515_v32, %v547_v25  ;;  %v549_v27 = vpop.f32.mrb[41].mxu1 }
 0x1ff   :  { %2698 = vst [vmem:[%s5883_s10 + $0x10] sm:$0xff] %v3557_v26  ;;  %3104 = vmatmul.mubr.f32.vlgmr.msra.gmra.mrb[0].mxu0 %v3557_v26 }
 0x200   :  { %3562 = vtanh.f32 %v548_v21 }
 0x201   :  { %v552_v15 = vpop.f32.mrb[42].mxu1 }
 0x202   :  { %v3559_v33 = vpop.eup %3558  ;;  %v553_v31 = vadd.f32 %v4515_v32, %v552_v15  ;;  %v554_v18 = vpop.f32.mrb[43].mxu1 }
 0x203   :  { %2700 = vst [vmem:[%s5883_s10 + $0x20] sm:$0xff] %v3559_v33  ;;  %3106 = vmatprep.mubr.f32.mxu0 %v3559_v33 }
 0x204   :  { %3564 = vtanh.f32 %v553_v31 }
 0x205   :  { %v557_v13 = vpop.f32.mrb[44].mxu1 }
 0x206   :  { %v3561_v14 = vpop.eup %3560  ;;  %v558_v20 = vadd.f32 %v4515_v32, %v557_v13  ;;  %v559_v35 = vpop.f32.mrb[45].mxu1 }
 0x207   :  { %2702 = vst [vmem:[%s5883_s10 + $0x30] sm:$0xff] %v3561_v14  ;;  %3107 = vmatmul.mubr.f32.gmra.mrb[2].mxu0 %v3561_v14 }
 0x208   :  { %3566 = vtanh.f32 %v558_v20 }
 0x209   :  { %v562_v38 = vpop.f32.mrb[46].mxu1 }
 0x20a   :  { %v3563_v25 = vpop.eup %3562  ;;  %v563_v26 = vadd.f32 %v4515_v32, %v562_v38  ;;  %v564_v21 = vpop.f32.mrb[47].mxu1 }
 0x20b   :  { %2704 = vst [vmem:[%s5883_s10 + $0x40] sm:$0xff] %v3563_v25  ;;  %3109 = vmatprep.mubr.f32.mxu0 %v3563_v25 }
 0x20c   :  { %3568 = vtanh.f32 %v563_v26 }
 0x20d   :  { %v567_v27 = vpop.f32.mrb[48].mxu1 }
 0x20e   :  { %v3565_v15 = vpop.eup %3564  ;;  %v568_v33 = vadd.f32 %v4515_v32, %v567_v27  ;;  %v569_v31 = vpop.f32.mrb[49].mxu1 }
 0x20f   :  { %2706 = vst [vmem:[%s5883_s10 + $0x50] sm:$0xff] %v3565_v15  ;;  %3110 = vmatmul.mubr.f32.gmra.mrb[4].mxu0 %v3565_v15 }
 0x210   :  { %3570 = vtanh.f32 %v568_v33 }
 0x211   :  { %v572_v18 = vpop.f32.mrb[50].mxu1 }
 0x212   :  { %v3567_v13 = vpop.eup %3566  ;;  %v573_v14 = vadd.f32 %v4515_v32, %v572_v18  ;;  %v574_v20 = vpop.f32.mrb[51].mxu1 }
 0x213   :  { %2708 = vst [vmem:[%s5883_s10 + $0x60] sm:$0xff] %v3567_v13  ;;  %3112 = vmatprep.mubr.f32.mxu0 %v3567_v13 }
 0x214   :  { %3572 = vtanh.f32 %v573_v14 }
 0x215   :  { %v577_v35 = vpop.f32.mrb[52].mxu1 }
 0x216   :  { %v3569_v38 = vpop.eup %3568  ;;  %v578_v25 = vadd.f32 %v4515_v32, %v577_v35  ;;  %v579_v26 = vpop.f32.mrb[53].mxu1 }
 0x217   :  { %2710 = vst [vmem:[%s5883_s10 + $0x70] sm:$0xff] %v3569_v38  ;;  %3113 = vmatmul.mubr.f32.gmra.mrb[6].mxu0 %v3569_v38 }
 0x218   :  { %3574 = vtanh.f32 %v578_v25 }
 0x219   :  { %v582_v21 = vpop.f32.mrb[54].mxu1 }
 0x21a   :  { %v3571_v27 = vpop.eup %3570  ;;  %v583_v15 = vadd.f32 %v4515_v32, %v582_v21  ;;  %v584_v33 = vpop.f32.mrb[55].mxu1 }
 0x21b   :  { %2712 = vst [vmem:[%s5883_s10 + $0x80] sm:$0xff] %v3571_v27  ;;  %3115 = vmatprep.mubr.f32.mxu0 %v3571_v27 }
 0x21c   :  { %3576 = vtanh.f32 %v583_v15 }
 0x21d   :  { %v587_v31 = vpop.f32.mrb[56].mxu1 }
 0x21e   :  { %v3573_v18 = vpop.eup %3572  ;;  %v588_v13 = vadd.f32 %v4515_v32, %v587_v31  ;;  %v589_v14 = vpop.f32.mrb[57].mxu1 }
 0x21f   :  { %2714 = vst [vmem:[%s5883_s10 + $0x90] sm:$0xff] %v3573_v18  ;;  %3116 = vmatmul.mubr.f32.gmra.mrb[8].mxu0 %v3573_v18 }
 0x220   :  { %3578 = vtanh.f32 %v588_v13 }
 0x221   :  { %v592_v20 = vpop.f32.mrb[58].mxu1 }
 0x222   :  { %v3575_v35 = vpop.eup %3574  ;;  %v593_v38 = vadd.f32 %v4515_v32, %v592_v20  ;;  %v594_v25 = vpop.f32.mrb[59].mxu1 }
 0x223   :  { %2716 = vst [vmem:[%s5883_s10 + $0xa0] sm:$0xff] %v3575_v35  ;;  %3118 = vmatprep.mubr.f32.mxu0 %v3575_v35 }
 0x224   :  { %3580 = vtanh.f32 %v593_v38 }
 0x225   :  { %v597_v26 = vpop.f32.mrb[60].mxu1 }
 0x226   :  { %v3577_v21 = vpop.eup %3576  ;;  %v598_v27 = vadd.f32 %v4515_v32, %v597_v26  ;;  %v599_v15 = vpop.f32.mrb[61].mxu1 }
 0x227   :  { %2718 = vst [vmem:[%s5883_s10 + $0xb0] sm:$0xff] %v3577_v21  ;;  %3119 = vmatmul.mubr.f32.gmra.mrb[10].mxu0 %v3577_v21 }
 0x228   :  { %3582 = vtanh.f32 %v598_v27 }
 0x229   :  { %v602_v33 = vpop.f32.mrb[62].mxu1 }
 0x22a   :  { %v3579_v31 = vpop.eup %3578  ;;  %v603_v18 = vadd.f32 %v4515_v32, %v602_v33  ;;  %v604_v13 = vpop.f32.mrb[63].mxu1 }
 0x22b   :  { %2720 = vst [vmem:[%s5883_s10 + $0xc0] sm:$0xff] %v3579_v31  ;;  %3121 = vmatprep.mubr.f32.mxu0 %v3579_v31 }
 0x22c   :  { %3584 = vtanh.f32 %v603_v18 }
 0x22d   :  { %v607_v14 = vpop.f32.mrb[64].mxu1 }
 0x22e   :  { %v3581_v20 = vpop.eup %3580  ;;  %v608_v35 = vadd.f32 %v4515_v32, %v607_v14  ;;  %v609_v38 = vpop.f32.mrb[65].mxu1 }
 0x22f   :  { %2722 = vst [vmem:[%s5883_s10 + $0xd0] sm:$0xff] %v3581_v20  ;;  %3122 = vmatmul.mubr.f32.gmra.mrb[12].mxu0 %v3581_v20 }
 0x230   :  { %3586 = vtanh.f32 %v608_v35 }
 0x231   :  { %v612_v25 = vpop.f32.mrb[66].mxu1 }
 0x232   :  { %v3583_v26 = vpop.eup %3582  ;;  %v613_v21 = vadd.f32 %v4515_v32, %v612_v25  ;;  %v614_v27 = vpop.f32.mrb[67].mxu1 }
 0x233   :  { %2724 = vst [vmem:[%s5883_s10 + $0xe0] sm:$0xff] %v3583_v26  ;;  %3124 = vmatprep.mubr.f32.mxu0 %v3583_v26 }
 0x234   :  { %3588 = vtanh.f32 %v613_v21 }
 0x235   :  { %v617_v15 = vpop.f32.mrb[68].mxu1 }
 0x236   :  { %v3585_v33 = vpop.eup %3584  ;;  %v618_v31 = vadd.f32 %v4515_v32, %v617_v15  ;;  %v619_v18 = vpop.f32.mrb[69].mxu1 }
 0x237   :  { %2726 = vst [vmem:[%s5883_s10 + $0xf0] sm:$0xff] %v3585_v33  ;;  %3125 = vmatmul.mubr.f32.gmra.mrb[14].mxu0 %v3585_v33 }
 0x238   :  { %3590 = vtanh.f32 %v618_v31 }
 0x239   :  { %v622_v13 = vpop.f32.mrb[70].mxu1 }
 0x23a   :  { %v3587_v14 = vpop.eup %3586  ;;  %v623_v20 = vadd.f32 %v4515_v32, %v622_v13  ;;  %v624_v35 = vpop.f32.mrb[71].mxu1 }
 0x23b   :  { %2728 = vst [vmem:[%s5883_s10 + $0x100] sm:$0xff] %v3587_v14  ;;  %3127 = vmatprep.mubr.f32.mxu0 %v3587_v14 }
 0x23c   :  { %3592 = vtanh.f32 %v623_v20 }
 0x23d   :  { %v627_v38 = vpop.f32.mrb[72].mxu1 }
 0x23e   :  { %v3589_v25 = vpop.eup %3588  ;;  %v628_v26 = vadd.f32 %v4515_v32, %v627_v38  ;;  %v629_v21 = vpop.f32.mrb[73].mxu1 }
 0x23f   :  { %2730 = vst [vmem:[%s5883_s10 + $0x110] sm:$0xff] %v3589_v25  ;;  %3128 = vmatmul.mubr.f32.gmra.mrb[16].mxu0 %v3589_v25 }
 0x240   :  { %3594 = vtanh.f32 %v628_v26 }
 0x241   :  { %v632_v27 = vpop.f32.mrb[74].mxu1 }
 0x242   :  { %v3591_v15 = vpop.eup %3590  ;;  %v633_v33 = vadd.f32 %v4515_v32, %v632_v27  ;;  %v634_v31 = vpop.f32.mrb[75].mxu1 }
 0x243   :  { %2732 = vst [vmem:[%s5883_s10 + $0x120] sm:$0xff] %v3591_v15  ;;  %3130 = vmatprep.mubr.f32.mxu0 %v3591_v15 }
 0x244   :  { %3596 = vtanh.f32 %v633_v33 }
 0x245   :  { %v637_v18 = vpop.f32.mrb[76].mxu1 }
 0x246   :  { %v3593_v13 = vpop.eup %3592  ;;  %v638_v14 = vadd.f32 %v4515_v32, %v637_v18  ;;  %v639_v20 = vpop.f32.mrb[77].mxu1 }
 0x247   :  { %2734 = vst [vmem:[%s5883_s10 + $0x130] sm:$0xff] %v3593_v13  ;;  %3131 = vmatmul.mubr.f32.gmra.mrb[18].mxu0 %v3593_v13 }
 0x248   :  { %3598 = vtanh.f32 %v638_v14 }
 0x249   :  { %v642_v35 = vpop.f32.mrb[78].mxu1 }
 0x24a   :  { %v3595_v38 = vpop.eup %3594  ;;  %v643_v25 = vadd.f32 %v4515_v32, %v642_v35  ;;  %v644_v26 = vpop.f32.mrb[79].mxu1 }
 0x24b   :  { %2736 = vst [vmem:[%s5883_s10 + $0x140] sm:$0xff] %v3595_v38  ;;  %3133 = vmatprep.mubr.f32.mxu0 %v3595_v38 }
 0x24c   :  { %3600 = vtanh.f32 %v643_v25 }
 0x24d   :  { %v647_v21 = vpop.f32.mrb[80].mxu1 }
 0x24e   :  { %v3597_v27 = vpop.eup %3596  ;;  %v648_v15 = vadd.f32 %v4515_v32, %v647_v21  ;;  %v649_v33 = vpop.f32.mrb[81].mxu1 }
 0x24f   :  { %2738 = vst [vmem:[%s5883_s10 + $0x150] sm:$0xff] %v3597_v27  ;;  %3134 = vmatmul.mubr.f32.gmra.mrb[20].mxu0 %v3597_v27 }
 0x250   :  { %3602 = vtanh.f32 %v648_v15 }
 0x251   :  { %v652_v31 = vpop.f32.mrb[82].mxu1 }
 0x252   :  { %v3599_v18 = vpop.eup %3598  ;;  %v653_v13 = vadd.f32 %v4515_v32, %v652_v31  ;;  %v654_v14 = vpop.f32.mrb[83].mxu1 }
 0x253   :  { %2740 = vst [vmem:[%s5883_s10 + $0x160] sm:$0xff] %v3599_v18  ;;  %3136 = vmatprep.mubr.f32.mxu0 %v3599_v18 }
 0x254   :  { %3604 = vtanh.f32 %v653_v13 }
 0x255   :  { %v657_v20 = vpop.f32.mrb[84].mxu1 }
 0x256   :  { %v3601_v35 = vpop.eup %3600  ;;  %v658_v38 = vadd.f32 %v4515_v32, %v657_v20  ;;  %v659_v25 = vpop.f32.mrb[85].mxu1 }
 0x257   :  { %2742 = vst [vmem:[%s5883_s10 + $0x170] sm:$0xff] %v3601_v35  ;;  %3137 = vmatmul.mubr.f32.gmra.mrb[22].mxu0 %v3601_v35 }
 0x258   :  { %3606 = vtanh.f32 %v658_v38 }
 0x259   :  { %v662_v26 = vpop.f32.mrb[86].mxu1 }
 0x25a   :  { %v3603_v21 = vpop.eup %3602  ;;  %v663_v27 = vadd.f32 %v4515_v32, %v662_v26  ;;  %v664_v15 = vpop.f32.mrb[87].mxu1 }
 0x25b   :  { %2744 = vst [vmem:[%s5883_s10 + $0x180] sm:$0xff] %v3603_v21  ;;  %3139 = vmatprep.mubr.f32.mxu0 %v3603_v21 }
 0x25c   :  { %3608 = vtanh.f32 %v663_v27 }
 0x25d   :  { %v667_v33 = vpop.f32.mrb[88].mxu1 }
 0x25e   :  { %v3605_v31 = vpop.eup %3604  ;;  %v668_v18 = vadd.f32 %v4515_v32, %v667_v33  ;;  %v669_v13 = vpop.f32.mrb[89].mxu1 }
 0x25f   :  { %2746 = vst [vmem:[%s5883_s10 + $0x190] sm:$0xff] %v3605_v31  ;;  %3140 = vmatmul.mubr.f32.gmra.mrb[24].mxu0 %v3605_v31 }
 0x260   :  { %3610 = vtanh.f32 %v668_v18 }
 0x261   :  { %v672_v14 = vpop.f32.mrb[90].mxu1 }
 0x262   :  { %v3607_v20 = vpop.eup %3606  ;;  %v673_v35 = vadd.f32 %v4515_v32, %v672_v14  ;;  %v674_v38 = vpop.f32.mrb[91].mxu1 }
 0x263   :  { %2748 = vst [vmem:[%s5883_s10 + $0x1a0] sm:$0xff] %v3607_v20  ;;  %3142 = vmatprep.mubr.f32.mxu0 %v3607_v20 }
 0x264   :  { %3612 = vtanh.f32 %v673_v35 }
 0x265   :  { %v677_v25 = vpop.f32.mrb[92].mxu1 }
 0x266   :  { %v3609_v26 = vpop.eup %3608  ;;  %v678_v21 = vadd.f32 %v4515_v32, %v677_v25  ;;  %v679_v27 = vpop.f32.mrb[93].mxu1  ;;  %v5965_v25 = vmov 0.0|0.0  }
 0x267   :  { %2750 = vst [vmem:[%s5883_s10 + $0x1b0] sm:$0xff] %v3609_v26  ;;  %3143 = vmatmul.mubr.f32.gmra.mrb[26].mxu0 %v3609_v26 }
 0x268   :  { %3614 = vtanh.f32 %v678_v21 }
 0x269   :  { %v682_v15 = vpop.f32.mrb[94].mxu1 }
 0x26a   :  { %v3611_v33 = vpop.eup %3610  ;;  %v683_v31 = vadd.f32 %v4515_v32, %v682_v15  ;;  %v684_v18 = vpop.f32.mrb[95].mxu1 }
 0x26b   :  { %2752 = vst [vmem:[%s5883_s10 + $0x1c0] sm:$0xff] %v3611_v33  ;;  %3145 = vmatprep.mubr.f32.mxu0 %v3611_v33 }
 0x26c   :  { %3616 = vtanh.f32 %v683_v31 }
 0x26e   :  { %v3613_v13 = vpop.eup %3612 }
 0x26f   :  { %2754 = vst [vmem:[%s5883_s10 + $0x1d0] sm:$0xff] %v3613_v13  ;;  %3146 = vmatmul.mubr.f32.gmra.mrb[28].mxu0 %v3613_v13 }
 0x272   :  { %v3615_v14 = vpop.eup %3614 }
 0x273   :  { %2756 = vst [vmem:[%s5883_s10 + $0x1e0] sm:$0xff] %v3615_v14  ;;  %3148 = vmatprep.mubr.f32.mxu0 %v3615_v14 }
 0x276   :  { %v3617_v32 = vpop.eup %3616 }
 0x277   :  { %2758 = vst [vmem:[%s5883_s10 + $0x1f0] sm:$0xff] %v3617_v32  ;;  %3149 = vmatmul.mubr.f32.gmra.mrb[30].mxu0 %v3617_v32 }
 0x278   :  { %1030 = vmatprep.mubr.f32.mxu0 %v4067_v34 }
 0x2d2   :  { %v3105_v20 = vpop.f32.mrb[0].mxu0 }
 0x2d3   :  { %v800_v35 = vpop.f32.mrb[1].mxu0 }
 0x2d4   :  { %v3352_v38 = vpack.c.bf16 %v3105_v20, %v800_v35 }
 0x2d6   :  { %3353 = vmatpush1.bf16.msra.mxu0 %v3352_v38 }
 0x2d7   :  { %3354 = vmatprep.subr.bf16.mxu0 %v5965_v25 }
 0x2da   :  { %v3108_v26 = vpop.f32.mrb[2].mxu0 }
 0x2db   :  { %v810_v21 = vpop.f32.mrb[3].mxu0 }
 0x2dc   :  { %v3355_v27 = vpack.c.bf16 %v3108_v26, %v810_v21 }
 0x2de   :  { %3356 = vmatpush1.bf16.msra.mxu0 %v3355_v27 }
 0x2df   :  { %3357 = vmatprep.subr.bf16.mxu0 %v5965_v25 }
 0x2e2   :  { %v3111_v15 = vpop.f32.mrb[4].mxu0 }
 0x2e3   :  { %v820_v33 = vpop.f32.mrb[5].mxu0 }
 0x2e4   :  { %v3358_v31 = vpack.c.bf16 %v3111_v15, %v820_v33 }
 0x2e6   :  { %3359 = vmatpush1.bf16.msra.mxu0 %v3358_v31 }
 0x2e7   :  { %3360 = vmatprep.subr.bf16.mxu0 %v5965_v25 }
 0x2ea   :  { %v3114_v18 = vpop.f32.mrb[6].mxu0 }
 0x2eb   :  { %v830_v34 = vpop.f32.mrb[7].mxu0 }
 0x2ec   :  { %v3361_v13 = vpack.c.bf16 %v3114_v18, %v830_v34 }
 0x2ee   :  { %3362 = vmatpush1.bf16.msra.mxu0 %v3361_v13 }
 0x2ef   :  { %3363 = vmatprep.subr.bf16.mxu0 %v5965_v25 }
 0x2f2   :  { %v3117_v14 = vpop.f32.mrb[8].mxu0 }
 0x2f3   :  { %v840_v32 = vpop.f32.mrb[9].mxu0 }
 0x2f4   :  { %v3364_v20 = vpack.c.bf16 %v3117_v14, %v840_v32 }
 0x2f6   :  { %3365 = vmatpush1.bf16.msra.mxu0 %v3364_v20 }
 0x2f7   :  { %3366 = vmatprep.subr.bf16.mxu0 %v5965_v25 }
 0x2fa   :  { %v3120_v35 = vpop.f32.mrb[10].mxu0 }
 0x2fb   :  { %v850_v38 = vpop.f32.mrb[11].mxu0 }
 0x2fc   :  { %v3367_v26 = vpack.c.bf16 %v3120_v35, %v850_v38 }
 0x2fe   :  { %3368 = vmatpush1.bf16.msra.mxu0 %v3367_v26 }
 0x2ff   :  { %3369 = vmatprep.subr.bf16.mxu0 %v5965_v25 }
 0x302   :  { %v3123_v21 = vpop.f32.mrb[12].mxu0 }
 0x303   :  { %v860_v27 = vpop.f32.mrb[13].mxu0 }
 0x304   :  { %v3370_v15 = vpack.c.bf16 %v3123_v21, %v860_v27 }
 0x306   :  { %3371 = vmatpush1.bf16.msra.mxu0 %v3370_v15 }
 0x307   :  { %3372 = vmatprep.subr.bf16.mxu0 %v5965_v25 }
 0x30a   :  { %v3126_v33 = vpop.f32.mrb[14].mxu0 }
 0x30b   :  { %v870_v31 = vpop.f32.mrb[15].mxu0 }
 0x30c   :  { %v3373_v18 = vpack.c.bf16 %v3126_v33, %v870_v31 }
 0x30e   :  { %3374 = vmatpush1.bf16.msra.mxu0 %v3373_v18 }
 0x30f   :  { %3375 = vmatprep.subr.bf16.mxu0 %v5965_v25 }
 0x312   :  { %v3129_v34 = vpop.f32.mrb[16].mxu0 }
 0x313   :  { %v880_v13 = vpop.f32.mrb[17].mxu0 }
 0x314   :  { %v3376_v14 = vpack.c.bf16 %v3129_v34, %v880_v13 }
 0x316   :  { %3377 = vmatpush1.bf16.msra.mxu0 %v3376_v14 }
 0x317   :  { %3378 = vmatprep.subr.bf16.mxu0 %v5965_v25 }
 0x31a   :  { %v3132_v32 = vpop.f32.mrb[18].mxu0 }
 0x31b   :  { %v890_v20 = vpop.f32.mrb[19].mxu0 }
 0x31c   :  { %v3379_v35 = vpack.c.bf16 %v3132_v32, %v890_v20 }
 0x31e   :  { %3380 = vmatpush1.bf16.msra.mxu0 %v3379_v35 }
 0x31f   :  { %3381 = vmatprep.subr.bf16.mxu0 %v5965_v25 }
 0x322   :  { %v3135_v38 = vpop.f32.mrb[20].mxu0 }
 0x323   :  { %v900_v26 = vpop.f32.mrb[21].mxu0 }
 0x324   :  { %v3382_v21 = vpack.c.bf16 %v3135_v38, %v900_v26 }
 0x326   :  { %3383 = vmatpush1.bf16.msra.mxu0 %v3382_v21 }
 0x327   :  { %3384 = vmatprep.subr.bf16.mxu0 %v5965_v25 }
 0x32a   :  { %v3138_v27 = vpop.f32.mrb[22].mxu0 }
 0x32b   :  { %v910_v15 = vpop.f32.mrb[23].mxu0 }
 0x32c   :  { %v3385_v33 = vpack.c.bf16 %v3138_v27, %v910_v15  ;;  %v1223_v15 = vld [vmem:[%s5884_s6] sm:$0xff] }
 0x32e   :  { %3386 = vmatpush1.bf16.msra.mxu0 %v3385_v33  ;;  %v1224_v33 = vld [vmem:[%s5884_s6 + $0x8] sm:$0xff] }
 0x32f   :  { %3387 = vmatprep.subr.bf16.mxu0 %v5965_v25 }
 0x332   :  { %v3141_v31 = vpop.f32.mrb[24].mxu0 }
 0x333   :  { %v920_v18 = vpop.f32.mrb[25].mxu0 }
 0x334   :  { %v3388_v34 = vpack.c.bf16 %v3141_v31, %v920_v18  ;;  %v1225_v31 = vld [vmem:[%s5884_s6 + $0x10] sm:$0xff]  ;;  %v3399_v18 = vpack.c.bf16 %v1224_v33, %v1223_v15 }
 0x336   :  { %3389 = vmatpush1.bf16.msra.mxu0 %v3388_v34  ;;  %v1226_v34 = vld [vmem:[%s5884_s6 + $0x18] sm:$0xff]  ;;  %3400 = vmatprep.subr.bf16.mxu1 %v3399_v18 }
 0x337   :  { %3390 = vmatprep.subr.bf16.mxu0 %v5965_v25  ;;  %3402 = vmatpush3.bf16.msra.mxu1 %v3399_v18 }
 0x33a   :  { %v3144_v13 = vpop.f32.mrb[26].mxu0 }
 0x33b   :  { %v930_v14 = vpop.f32.mrb[27].mxu0 }
 0x33c   :  { %v3391_v32 = vpack.c.bf16 %v3144_v13, %v930_v14  ;;  %v3403_v13 = vpack.c.bf16 %v1226_v34, %v1225_v31 }
 0x33e   :  { %3392 = vmatpush1.bf16.msra.mxu0 %v3391_v32  ;;  %3404 = vmatprep.subr.bf16.mxu1 %v3403_v13 }
 0x33f   :  { %3393 = vmatprep.subr.bf16.mxu0 %v5965_v25  ;;  %3406 = vmatpush3.bf16.msra.mxu1 %v3403_v13 }
 0x342   :  { %v3147_v20 = vpop.f32.mrb[28].mxu0 }
 0x343   :  { %v940_v35 = vpop.f32.mrb[29].mxu0 }
 0x344   :  { %v3394_v38 = vpack.c.bf16 %v3147_v20, %v940_v35 }
 0x346   :  { %3395 = vmatpush1.bf16.msra.mxu0 %v3394_v38 }
 0x347   :  { %3396 = vmatprep.subr.bf16.mxu0 %v5965_v25 }
 0x34a   :  { %v3150_v26 = vpop.f32.mrb[30].mxu0 }
 0x34b   :  { %v950_v21 = vpop.f32.mrb[31].mxu0 }
 0x34c   :  { %v3397_v27 = vpack.c.bf16 %v3150_v26, %v950_v21 }
 0x34e   :  { %3398 = vmatpush1.bf16.msra.mxu0 %v3397_v27 }
 0x351   :  { %1031 = vmatmul.mubr.f32.vlgmr.msra.gmra.mrb[32].mxu0 %v4088_v19  ;;  %v1227_v19 = vld [vmem:[%s5884_s6 + $0x20] sm:$0xff] }
 0x352   :  { %1035 = vmatprep.mubr.f32.mxu0 %v4102_v23  ;;  %v1228_v23 = vld [vmem:[%s5884_s6 + $0x28] sm:$0xff] }
 0x355   :  { %1036 = vmatmul.mubr.f32.gmra.mrb[34].mxu0 %v4118_v29  ;;  %v3407_v29 = vpack.c.bf16 %v1228_v23, %v1227_v19 }
 0x356   :  { %1040 = vmatprep.mubr.f32.mxu0 %v4123_v30  ;;  %v1229_v30 = vld [vmem:[%s5884_s6 + $0x30] sm:$0xff] }
 0x357   :  { %3408 = vmatprep.subr.bf16.mxu1 %v3407_v29 }
 0x358   :  { %3410 = vmatpush3.bf16.msra.mxu1 %v3407_v29 }
 0x359   :  { %1041 = vmatmul.mubr.f32.gmra.mrb[36].mxu0 %v4136_v36  ;;  %v1230_v36 = vld [vmem:[%s5884_s6 + $0x38] sm:$0xff] }
 0x35a   :  { %1045 = vmatprep.mubr.f32.mxu0 %v4141_v37  ;;  %v3411_v37 = vpack.c.bf16 %v1230_v36, %v1229_v30 }
 0x35c   :  { %3412 = vmatprep.subr.bf16.mxu1 %v3411_v37 }
 0x35d   :  { %1046 = vmatmul.mubr.f32.gmra.mrb[38].mxu0 %v4148_v39  ;;  %v5966_v39 = vld [vmem:[#allocation2_spill] sm:$0xff]  ;;  %3414 = vmatpush3.bf16.msra.mxu1 %v3411_v37 }
 0x35e   :  { %1050 = vmatprep.mubr.f32.mxu0 %v4153_v40  ;;  %3415 = vmatprep.subr.bf16.mxu1 %v5965_v25  ;;  %v5967_v40 = vld [vmem:[#allocation3_spill] sm:$0xff] }
 0x361   :  { %1051 = vmatmul.mubr.f32.gmra.mrb[40].mxu0 %v4160_v41  ;;  %v5968_v41 = vld [vmem:[#allocation4_spill] sm:$0xff] }
 0x362   :  { %1055 = vmatprep.mubr.f32.mxu0 %v4165_v42  ;;  %v5969_v42 = vld [vmem:[#allocation5_spill] sm:$0xff] }
 0x365   :  { %1056 = vmatmul.mubr.f32.gmra.mrb[42].mxu0 %v4172_v43  ;;  %v5970_v43 = vld [vmem:[#allocation6_spill] sm:$0xff] }
 0x366   :  { %1060 = vmatprep.mubr.f32.mxu0 %v4177_v44  ;;  %v5971_v44 = vld [vmem:[#allocation7_spill] sm:$0xff] }
 0x369   :  { %1061 = vmatmul.mubr.f32.gmra.mrb[44].mxu0 %v4184_v45  ;;  %v5972_v45 = vld [vmem:[#allocation8_spill] sm:$0xff] }
 0x36a   :  { %1065 = vmatprep.mubr.f32.mxu0 %v4189_v46  ;;  %v5973_v46 = vld [vmem:[#allocation9_spill] sm:$0xff] }
 0x36d   :  { %1066 = vmatmul.mubr.f32.gmra.mrb[46].mxu0 %v4196_v47  ;;  %v5974_v47 = vld [vmem:[#allocation10_spill] sm:$0xff] }
 0x36e   :  { %1070 = vmatprep.mubr.f32.mxu0 %v4201_v48  ;;  %v5975_v48 = vld [vmem:[#allocation11_spill] sm:$0xff] }
 0x371   :  { %1071 = vmatmul.mubr.f32.gmra.mrb[48].mxu0 %v4208_v49  ;;  %v5976_v49 = vld [vmem:[#allocation12_spill] sm:$0xff] }
 0x372   :  { %1075 = vmatprep.mubr.f32.mxu0 %v4213_v50  ;;  %v5977_v50 = vld [vmem:[#allocation13_spill] sm:$0xff] }
 0x375   :  { %1076 = vmatmul.mubr.f32.gmra.mrb[50].mxu0 %v4220_v51  ;;  %v5978_v51 = vld [vmem:[#allocation14_spill] sm:$0xff] }
 0x376   :  { %1080 = vmatprep.mubr.f32.mxu0 %v4225_v52  ;;  %v5979_v52 = vld [vmem:[#allocation15_spill] sm:$0xff] }
 0x379   :  { %1081 = vmatmul.mubr.f32.gmra.mrb[52].mxu0 %v4232_v53  ;;  %v4752_v53 = vld [vmem:[%s5885_s5] ss:$0 sm:$0xff] }
 0x37a   :  { %1085 = vmatprep.mubr.f32.mxu0 %v4237_v54 }
 0x37d   :  { %1086 = vmatmul.mubr.f32.gmra.mrb[54].mxu0 %v4244_v55 }
 0x37e   :  { %1090 = vmatprep.mubr.f32.mxu0 %v4249_v56 }
 0x381   :  { %1091 = vmatmul.mubr.f32.gmra.mrb[56].mxu0 %v4256_v57 }
 0x382   :  { %1095 = vmatprep.mubr.f32.mxu0 %v4261_v58 }
 0x385   :  { %1096 = vmatmul.mubr.f32.gmra.mrb[58].mxu0 %v4268_v59 }
 0x386   :  { %1100 = vmatprep.mubr.f32.mxu0 %v4273_v60 }
 0x389   :  { %1101 = vmatmul.mubr.f32.gmra.mrb[60].mxu0 %v4280_v61 }
 0x38a   :  { %1105 = vmatprep.mubr.f32.mxu0 %v4285_v62 }
 0x38d   :  { %1106 = vmatmul.mubr.f32.gmra.mrb[62].mxu0 %v4292_v63 }
 0x38e   :  { %1110 = vmatprep.mubr.f32.mxu0 %v4297_v0 }
 0x391   :  { %1111 = vmatmul.mubr.f32.gmra.mrb[64].mxu0 %v4304_v1 }
 0x392   :  { %1115 = vmatprep.mubr.f32.mxu0 %v4309_v2 }
 0x395   :  { %1116 = vmatmul.mubr.f32.gmra.mrb[66].mxu0 %v4316_v3 }
 0x396   :  { %1120 = vmatprep.mubr.f32.mxu0 %v4321_v4 }
 0x399   :  { %1121 = vmatmul.mubr.f32.gmra.mrb[68].mxu0 %v4328_v5 }
 0x39a   :  { %1125 = vmatprep.mubr.f32.mxu0 %v4333_v6 }
 0x39d   :  { %1126 = vmatmul.mubr.f32.gmra.mrb[70].mxu0 %v4340_v7 }
 0x39e   :  { %1130 = vmatprep.mubr.f32.mxu0 %v4345_v8 }
 0x3a1   :  { %1131 = vmatmul.mubr.f32.gmra.mrb[72].mxu0 %v4352_v9 }
 0x3a2   :  { %1135 = vmatprep.mubr.f32.mxu0 %v4357_v10 }
 0x3a5   :  { %1136 = vmatmul.mubr.f32.gmra.mrb[74].mxu0 %v4364_v11 }
 0x3a6   :  { %1140 = vmatprep.mubr.f32.mxu0 %v4369_v12 }
 0x3a9   :  { %1141 = vmatmul.mubr.f32.gmra.mrb[76].mxu0 %v4382_v16 }
 0x3aa   :  { %1145 = vmatprep.mubr.f32.mxu0 %v4387_v17 }
 0x3ad   :  { %1146 = vmatmul.mubr.f32.gmra.mrb[78].mxu0 %v4400_v22 }
 0x3ae   :  { %1150 = vmatprep.mubr.f32.mxu0 %v4405_v24 }
 0x3b1   :  { %1151 = vmatmul.mubr.f32.gmra.mrb[80].mxu0 %v4418_v28 }
 0x3b2   :  { %1155 = vmatprep.mubr.f32.mxu0 %v5966_v39 }
 0x3b5   :  { %1156 = vmatmul.mubr.f32.gmra.mrb[82].mxu0 %v5967_v40 }
 0x3b6   :  { %1160 = vmatprep.mubr.f32.mxu0 %v5968_v41 }
 0x3b9   :  { %1161 = vmatmul.mubr.f32.gmra.mrb[84].mxu0 %v5969_v42 }
 0x3ba   :  { %1165 = vmatprep.mubr.f32.mxu0 %v5970_v43 }
 0x3bd   :  { %1166 = vmatmul.mubr.f32.gmra.mrb[86].mxu0 %v5971_v44 }
 0x3be   :  { %1170 = vmatprep.mubr.f32.mxu0 %v5972_v45 }
 0x3c1   :  { %1171 = vmatmul.mubr.f32.gmra.mrb[88].mxu0 %v5973_v46 }
 0x3c2   :  { %1175 = vmatprep.mubr.f32.mxu0 %v5974_v47 }
 0x3c5   :  { %1176 = vmatmul.mubr.f32.gmra.mrb[90].mxu0 %v5975_v48 }
 0x3c6   :  { %1180 = vmatprep.mubr.f32.mxu0 %v5976_v49 }
 0x3c9   :  { %1181 = vmatmul.mubr.f32.gmra.mrb[92].mxu0 %v5977_v50 }
 0x3ca   :  { %1185 = vmatprep.mubr.f32.mxu0 %v5978_v51 }
 0x3cd   :  { %1186 = vmatmul.mubr.f32.gmra.mrb[94].mxu0 %v5979_v52 }
 0x424   :  { %v1032_v54 = vpop.f32.mrb[32].mxu0 }
 0x425   :  { %v1033_v55 = vadd.f32 %v4752_v53, %v1032_v54  ;;  %v1034_v56 = vpop.f32.mrb[33].mxu0 }
 0x427   :  { %3618 = vtanh.f32 %v1033_v55 }
 0x428   :  { %v1037_v57 = vpop.f32.mrb[34].mxu0 }
 0x429   :  { %v1038_v58 = vadd.f32 %v4752_v53, %v1037_v57  ;;  %v1039_v59 = vpop.f32.mrb[35].mxu0 }
 0x42b   :  { %3620 = vtanh.f32 %v1038_v58 }
 0x42c   :  { %v1042_v60 = vpop.f32.mrb[36].mxu0 }
 0x42d   :  { %v1043_v61 = vadd.f32 %v4752_v53, %v1042_v60  ;;  %v1044_v62 = vpop.f32.mrb[37].mxu0 }
 0x42f   :  { %3622 = vtanh.f32 %v1043_v61 }
 0x430   :  { %v1047_v63 = vpop.f32.mrb[38].mxu0 }
 0x431   :  { %v4757_v0 = vpop.eup %3618  ;;  %v1048_v1 = vadd.f32 %v4752_v53, %v1047_v63  ;;  %v1049_v2 = vpop.f32.mrb[39].mxu0 }
 0x432   :  { %5980 = vst [vmem:[#allocation2_spill] sm:$0xff] %v4757_v0  ;;  %3167 = vmatprep.mubr.msk.f32.mxu1 %vm1231_vm1, %v4757_v0  ;;  %v5315_v0 = vld [vmem:[%s5880_s0 + $0x1f8] sm:$0xff] }
 0x433   :  { %3624 = vtanh.f32 %v1048_v1 }
 0x434   :  { %v1052_v3 = vpop.f32.mrb[40].mxu0 }
 0x435   :  { %v4762_v4 = vpop.eup %3620  ;;  %v1053_v5 = vadd.f32 %v4752_v53, %v1052_v3  ;;  %v1054_v6 = vpop.f32.mrb[41].mxu0 }
 0x436   :  { %5981 = vst [vmem:[#allocation3_spill] sm:$0xff] %v4762_v4  ;;  %3168 = vmatmul.mubr.msk.f32.vlgmr.msra.gmra.mrb[96].mxu1 %vm1231_vm1, %v4762_v4  ;;  %v5303_v4 = vld [vmem:[%s5880_s0 + $0x1e8] sm:$0xff] }
 0x437   :  { %3626 = vtanh.f32 %v1053_v5 }
 0x438   :  { %v1057_v7 = vpop.f32.mrb[42].mxu0 }
 0x439   :  { %v4767_v8 = vpop.eup %3622  ;;  %v1058_v9 = vadd.f32 %v4752_v53, %v1057_v7  ;;  %v1059_v10 = vpop.f32.mrb[43].mxu0 }
 0x43a   :  { %5982 = vst [vmem:[#allocation4_spill] sm:$0xff] %v4767_v8  ;;  %3170 = vmatprep.mubr.msk.f32.mxu1 %vm1231_vm1, %v4767_v8  ;;  %v5297_v8 = vld [vmem:[%s5880_s0 + $0x1d0] sm:$0xff] }
 0x43b   :  { %3628 = vtanh.f32 %v1058_v9 }
 0x43c   :  { %v1062_v11 = vpop.f32.mrb[44].mxu0 }
 0x43d   :  { %v4772_v12 = vpop.eup %3624  ;;  %v1063_v16 = vadd.f32 %v4752_v53, %v1062_v11  ;;  %v1064_v17 = vpop.f32.mrb[45].mxu0 }
 0x43e   :  { %5983 = vst [vmem:[#allocation5_spill] sm:$0xff] %v4772_v12  ;;  %3171 = vmatmul.mubr.msk.f32.gmra.mrb[98].mxu1 %vm1231_vm1, %v4772_v12  ;;  %v3868_v12 = vld [vmem:[%s5880_s0 + $0x1d8] sm:$0xff] }
 0x43f   :  { %3630 = vtanh.f32 %v1063_v16 }
 0x440   :  { %v1067_v22 = vpop.f32.mrb[46].mxu0 }
 0x441   :  { %v4777_v24 = vpop.eup %3626  ;;  %v1068_v28 = vadd.f32 %v4752_v53, %v1067_v22  ;;  %v1069_v14 = vpop.f32.mrb[47].mxu0 }
 0x442   :  { %5984 = vst [vmem:[#allocation6_spill] sm:$0xff] %v4777_v24  ;;  %3173 = vmatprep.mubr.msk.f32.mxu1 %vm1231_vm1, %v4777_v24  ;;  %v5288_v24 = vld [vmem:[%s5880_s0 + $0x1c0] sm:$0xff] }
 0x443   :  { %3632 = vtanh.f32 %v1068_v28  ;;  %6025 = vst [vmem:[#allocation47_spill] sm:$0xff] %v5288_v24 }
 0x444   :  { %v1072_v32 = vpop.f32.mrb[48].mxu0 }
 0x445   :  { %v4782_v20 = vpop.eup %3628  ;;  %v1073_v35 = vadd.f32 %v4752_v53, %v1072_v32  ;;  %v1074_v38 = vpop.f32.mrb[49].mxu0 }
 0x446   :  { %5985 = vst [vmem:[#allocation7_spill] sm:$0xff] %v4782_v20  ;;  %3174 = vmatmul.mubr.msk.f32.gmra.mrb[100].mxu1 %vm1231_vm1, %v4782_v20  ;;  %v5282_v20 = vld [vmem:[%s5880_s0 + $0x1c8] sm:$0xff] }
 0x447   :  { %3634 = vtanh.f32 %v1073_v35  ;;  %6024 = vst [vmem:[#allocation46_spill] sm:$0xff] %v5282_v20 }
 0x448   :  { %v1077_v26 = vpop.f32.mrb[50].mxu0 }
 0x449   :  { %v4787_v21 = vpop.eup %3630  ;;  %v1078_v27 = vadd.f32 %v4752_v53, %v1077_v26  ;;  %v1079_v15 = vpop.f32.mrb[51].mxu0 }
 0x44a   :  { %5986 = vst [vmem:[#allocation8_spill] sm:$0xff] %v4787_v21  ;;  %3176 = vmatprep.mubr.msk.f32.mxu1 %vm1231_vm1, %v4787_v21  ;;  %v5276_v21 = vld [vmem:[%s5880_s0 + $0x1b0] sm:$0xff] }
 0x44b   :  { %3636 = vtanh.f32 %v1078_v27  ;;  %6023 = vst [vmem:[#allocation45_spill] sm:$0xff] %v5276_v21 }
 0x44c   :  { %v1082_v33 = vpop.f32.mrb[52].mxu0 }
 0x44d   :  { %v4792_v31 = vpop.eup %3632  ;;  %v1083_v18 = vadd.f32 %v4752_v53, %v1082_v33  ;;  %v1084_v34 = vpop.f32.mrb[53].mxu0 }
 0x44e   :  { %5987 = vst [vmem:[#allocation9_spill] sm:$0xff] %v4792_v31  ;;  %3177 = vmatmul.mubr.msk.f32.gmra.mrb[102].mxu1 %vm1231_vm1, %v4792_v31  ;;  %v5270_v31 = vld [vmem:[%s5880_s0 + $0x1b8] sm:$0xff] }
 0x44f   :  { %3638 = vtanh.f32 %v1083_v18  ;;  %6022 = vst [vmem:[#allocation44_spill] sm:$0xff] %v5270_v31 }
 0x450   :  { %v1087_v13 = vpop.f32.mrb[54].mxu0 }
 0x451   :  { %v4797_v19 = vpop.eup %3634  ;;  %v1088_v23 = vadd.f32 %v4752_v53, %v1087_v13  ;;  %v1089_v29 = vpop.f32.mrb[55].mxu0 }
 0x452   :  { %5988 = vst [vmem:[#allocation10_spill] sm:$0xff] %v4797_v19  ;;  %3179 = vmatprep.mubr.msk.f32.mxu1 %vm1231_vm1, %v4797_v19  ;;  %v5245_v19 = vld [vmem:[%s5880_s0 + $0x198] sm:$0xff] }
 0x453   :  { %3640 = vtanh.f32 %v1088_v23  ;;  %6018 = vst [vmem:[#allocation40_spill] sm:$0xff] %v5245_v19 }
 0x454   :  { %v1092_v30 = vpop.f32.mrb[56].mxu0 }
 0x455   :  { %v4802_v36 = vpop.eup %3636  ;;  %v1093_v37 = vadd.f32 %v4752_v53, %v1092_v30  ;;  %v1094_v39 = vpop.f32.mrb[57].mxu0 }
 0x456   :  { %5989 = vst [vmem:[#allocation11_spill] sm:$0xff] %v4802_v36  ;;  %3180 = vmatmul.mubr.msk.f32.gmra.mrb[104].mxu1 %vm1231_vm1, %v4802_v36  ;;  %v5239_v36 = vld [vmem:[%s5880_s0 + $0x180] sm:$0xff] }
 0x457   :  { %3642 = vtanh.f32 %v1093_v37  ;;  %6017 = vst [vmem:[#allocation39_spill] sm:$0xff] %v5239_v36 }
 0x458   :  { %v1097_v40 = vpop.f32.mrb[58].mxu0 }
 0x459   :  { %v4807_v41 = vpop.eup %3638  ;;  %v1098_v42 = vadd.f32 %v4752_v53, %v1097_v40  ;;  %v1099_v43 = vpop.f32.mrb[59].mxu0 }
 0x45a   :  { %5990 = vst [vmem:[#allocation12_spill] sm:$0xff] %v4807_v41  ;;  %3182 = vmatprep.mubr.msk.f32.mxu1 %vm1231_vm1, %v4807_v41 }
 0x45b   :  { %3644 = vtanh.f32 %v1098_v42 }
 0x45c   :  { %v1102_v44 = vpop.f32.mrb[60].mxu0 }
 0x45d   :  { %v4812_v45 = vpop.eup %3640  ;;  %v1103_v46 = vadd.f32 %v4752_v53, %v1102_v44  ;;  %v1104_v47 = vpop.f32.mrb[61].mxu0 }
 0x45e   :  { %5991 = vst [vmem:[#allocation13_spill] sm:$0xff] %v4812_v45  ;;  %3183 = vmatmul.mubr.msk.f32.gmra.mrb[106].mxu1 %vm1231_vm1, %v4812_v45  ;;  %v1820_v45 = vld [vmem:[%s5886_s8 + $0x18] sm:$0xff] }
 0x45f   :  { %3646 = vtanh.f32 %v1103_v46 }
 0x460   :  { %v1107_v48 = vpop.f32.mrb[62].mxu0 }
 0x461   :  { %v4817_v49 = vpop.eup %3642  ;;  %v1108_v50 = vadd.f32 %v4752_v53, %v1107_v48  ;;  %v1109_v51 = vpop.f32.mrb[63].mxu0 }
 0x462   :  { %5992 = vst [vmem:[#allocation14_spill] sm:$0xff] %v4817_v49  ;;  %3185 = vmatprep.mubr.msk.f32.mxu1 %vm1231_vm1, %v4817_v49  ;;  %v1819_v49 = vld [vmem:[%s5886_s8 + $0x10] sm:$0xff] }
 0x463   :  { %3648 = vtanh.f32 %v1108_v50  ;;  %v3467_v41 = vpack.c.bf16 %v1820_v45, %v1819_v49  ;;  %v5252_v45 = vld [vmem:[%s5880_s0 + $0x190] sm:$0xff]  ;;  %v5258_v49 = vld [vmem:[%s5880_s0 + $0x1a8] sm:$0xff] }
 0x464   :  { %v1112_v52 = vpop.f32.mrb[64].mxu0  ;;  %6019 = vst [vmem:[#allocation41_spill] sm:$0xff] %v5252_v45  ;;  %6020 = vst [vmem:[#allocation42_spill] sm:$0xff] %v5258_v49 }
 0x465   :  { %v4822_v54 = vpop.eup %3644  ;;  %v1113_v55 = vadd.f32 %v4752_v53, %v1112_v52  ;;  %v1114_v56 = vpop.f32.mrb[65].mxu0 }
 0x466   :  { %5993 = vst [vmem:[#allocation15_spill] sm:$0xff] %v4822_v54  ;;  %3186 = vmatmul.mubr.msk.f32.gmra.mrb[108].mxu1 %vm1231_vm1, %v4822_v54  ;;  %v5227_v54 = vld [vmem:[%s5880_s0 + $0x188] sm:$0xff] }
 0x467   :  { %3650 = vtanh.f32 %v1113_v55  ;;  %6016 = vst [vmem:[#allocation38_spill] sm:$0xff] %v5227_v54 }
 0x468   :  { %v1117_v57 = vpop.f32.mrb[66].mxu0 }
 0x469   :  { %v4827_v58 = vpop.eup %3646  ;;  %v1118_v59 = vadd.f32 %v4752_v53, %v1117_v57  ;;  %v1119_v60 = vpop.f32.mrb[67].mxu0 }
 0x46a   :  { %5994 = vst [vmem:[#allocation16_spill] sm:$0xff] %v4827_v58  ;;  %3188 = vmatprep.mubr.msk.f32.mxu1 %vm1231_vm1, %v4827_v58  ;;  %v5221_v58 = vld [vmem:[%s5880_s0 + $0x170] sm:$0xff] }
 0x46b   :  { %3652 = vtanh.f32 %v1118_v59  ;;  %6015 = vst [vmem:[#allocation37_spill] sm:$0xff] %v5221_v58 }
 0x46c   :  { %v1122_v61 = vpop.f32.mrb[68].mxu0 }
 0x46d   :  { %v4832_v62 = vpop.eup %3648  ;;  %v1123_v63 = vadd.f32 %v4752_v53, %v1122_v61  ;;  %v1124_v1 = vpop.f32.mrb[69].mxu0 }
 0x46e   :  { %5995 = vst [vmem:[#allocation17_spill] sm:$0xff] %v4832_v62  ;;  %3189 = vmatmul.mubr.msk.f32.gmra.mrb[110].mxu1 %vm1231_vm1, %v4832_v62  ;;  %v5215_v62 = vld [vmem:[%s5880_s0 + $0x178] sm:$0xff] }
 0x46f   :  { %3654 = vtanh.f32 %v1123_v63  ;;  %6014 = vst [vmem:[#allocation36_spill] sm:$0xff] %v5215_v62 }
 0x470   :  { %v1127_v2 = vpop.f32.mrb[70].mxu0 }
 0x471   :  { %v4837_v3 = vpop.eup %3650  ;;  %v1128_v5 = vadd.f32 %v4752_v53, %v1127_v2  ;;  %v1129_v6 = vpop.f32.mrb[71].mxu0 }
 0x472   :  { %5996 = vst [vmem:[#allocation18_spill] sm:$0xff] %v4837_v3  ;;  %3191 = vmatprep.mubr.msk.f32.mxu1 %vm1231_vm1, %v4837_v3  ;;  %v5209_v3 = vld [vmem:[%s5880_s0 + $0x160] sm:$0xff] }
 0x473   :  { %3656 = vtanh.f32 %v1128_v5  ;;  %6013 = vst [vmem:[#allocation35_spill] sm:$0xff] %v5209_v3 }
 0x474   :  { %v1132_v7 = vpop.f32.mrb[72].mxu0 }
 0x475   :  { %v4842_v9 = vpop.eup %3652  ;;  %v1133_v10 = vadd.f32 %v4752_v53, %v1132_v7  ;;  %v1134_v11 = vpop.f32.mrb[73].mxu0 }
 0x476   :  { %5997 = vst [vmem:[#allocation19_spill] sm:$0xff] %v4842_v9  ;;  %3192 = vmatmul.mubr.msk.f32.gmra.mrb[112].mxu1 %vm1231_vm1, %v4842_v9  ;;  %v5203_v9 = vld [vmem:[%s5880_s0 + $0x168] sm:$0xff] }
 0x477   :  { %3658 = vtanh.f32 %v1133_v10  ;;  %6012 = vst [vmem:[#allocation34_spill] sm:$0xff] %v5203_v9 }
 0x478   :  { %v1137_v16 = vpop.f32.mrb[74].mxu0 }
 0x479   :  { %v4847_v17 = vpop.eup %3654  ;;  %v1138_v22 = vadd.f32 %v4752_v53, %v1137_v16  ;;  %v1139_v28 = vpop.f32.mrb[75].mxu0 }
 0x47a   :  { %5998 = vst [vmem:[#allocation20_spill] sm:$0xff] %v4847_v17  ;;  %3194 = vmatprep.mubr.msk.f32.mxu1 %vm1231_vm1, %v4847_v17  ;;  %v5197_v17 = vld [vmem:[%s5880_s0 + $0x150] sm:$0xff] }
 0x47b   :  { %3660 = vtanh.f32 %v1138_v22 }
 0x47c   :  { %v1142_v14 = vpop.f32.mrb[76].mxu0 }
 0x47d   :  { %v4852_v32 = vpop.eup %3656  ;;  %v1143_v35 = vadd.f32 %v4752_v53, %v1142_v14  ;;  %v1144_v38 = vpop.f32.mrb[77].mxu0 }
 0x47e   :  { %5999 = vst [vmem:[#allocation21_spill] sm:$0xff] %v4852_v32  ;;  %3195 = vmatmul.mubr.msk.f32.gmra.mrb[114].mxu1 %vm1231_vm1, %v4852_v32  ;;  %v5191_v32 = vld [vmem:[%s5880_s0 + $0x158] sm:$0xff] }
 0x47f   :  { %3662 = vtanh.f32 %v1143_v35 }
 0x480   :  { %v1147_v26 = vpop.f32.mrb[78].mxu0 }
 0x481   :  { %v4857_v27 = vpop.eup %3658  ;;  %v1148_v15 = vadd.f32 %v4752_v53, %v1147_v26  ;;  %v1149_v33 = vpop.f32.mrb[79].mxu0 }
 0x482   :  { %6000 = vst [vmem:[#allocation22_spill] sm:$0xff] %v4857_v27  ;;  %3197 = vmatprep.mubr.msk.f32.mxu1 %vm1231_vm1, %v4857_v27  ;;  %v5185_v27 = vld [vmem:[%s5880_s0 + $0x140] sm:$0xff] }
 0x483   :  { %3664 = vtanh.f32 %v1148_v15 }
 0x484   :  { %v1152_v18 = vpop.f32.mrb[80].mxu0 }
 0x485   :  { %v4862_v34 = vpop.eup %3660  ;;  %v1153_v13 = vadd.f32 %v4752_v53, %v1152_v18  ;;  %v1154_v23 = vpop.f32.mrb[81].mxu0 }
 0x486   :  { %6001 = vst [vmem:[#allocation23_spill] sm:$0xff] %v4862_v34  ;;  %3198 = vmatmul.mubr.msk.f32.gmra.mrb[116].mxu1 %vm1231_vm1, %v4862_v34  ;;  %v5179_v34 = vld [vmem:[%s5880_s0 + $0x148] sm:$0xff] }
 0x487   :  { %3666 = vtanh.f32 %v1153_v13 }
 0x488   :  { %v1157_v29 = vpop.f32.mrb[82].mxu0 }
 0x489   :  { %v4867_v30 = vpop.eup %3662  ;;  %v1158_v37 = vadd.f32 %v4752_v53, %v1157_v29  ;;  %v1159_v39 = vpop.f32.mrb[83].mxu0 }
 0x48a   :  { %6002 = vst [vmem:[#allocation24_spill] sm:$0xff] %v4867_v30  ;;  %3200 = vmatprep.mubr.msk.f32.mxu1 %vm1231_vm1, %v4867_v30  ;;  %v5173_v30 = vld [vmem:[%s5880_s0 + $0x130] sm:$0xff] }
 0x48b   :  { %3668 = vtanh.f32 %v1158_v37 }
 0x48c   :  { %v1162_v40 = vpop.f32.mrb[84].mxu0 }
 0x48d   :  { %v4872_v42 = vpop.eup %3664  ;;  %v1163_v43 = vadd.f32 %v4752_v53, %v1162_v40  ;;  %v1164_v44 = vpop.f32.mrb[85].mxu0 }
 0x48e   :  { %6003 = vst [vmem:[#allocation25_spill] sm:$0xff] %v4872_v42  ;;  %3201 = vmatmul.mubr.msk.f32.gmra.mrb[118].mxu1 %vm1231_vm1, %v4872_v42  ;;  %v5167_v42 = vld [vmem:[%s5880_s0 + $0x138] sm:$0xff] }
 0x48f   :  { %3670 = vtanh.f32 %v1163_v43 }
 0x490   :  { %v1167_v46 = vpop.f32.mrb[86].mxu0 }
 0x491   :  { %v4877_v47 = vpop.eup %3666  ;;  %v1168_v48 = vadd.f32 %v4752_v53, %v1167_v46  ;;  %v1169_v50 = vpop.f32.mrb[87].mxu0 }
 0x492   :  { %6004 = vst [vmem:[#allocation26_spill] sm:$0xff] %v4877_v47  ;;  %3203 = vmatprep.mubr.msk.f32.mxu1 %vm1231_vm1, %v4877_v47  ;;  %v5161_v47 = vld [vmem:[%s5880_s0 + $0x120] sm:$0xff] }
 0x493   :  { %3672 = vtanh.f32 %v1168_v48 }
 0x494   :  { %v1172_v51 = vpop.f32.mrb[88].mxu0 }
 0x495   :  { %v4882_v52 = vpop.eup %3668  ;;  %v1173_v55 = vadd.f32 %v4752_v53, %v1172_v51  ;;  %v1174_v56 = vpop.f32.mrb[89].mxu0 }
 0x496   :  { %6005 = vst [vmem:[#allocation27_spill] sm:$0xff] %v4882_v52  ;;  %3204 = vmatmul.mubr.msk.f32.gmra.mrb[120].mxu1 %vm1231_vm1, %v4882_v52  ;;  %v5155_v52 = vld [vmem:[%s5880_s0 + $0x128] sm:$0xff] }
 0x497   :  { %3674 = vtanh.f32 %v1173_v55 }
 0x498   :  { %v1177_v57 = vpop.f32.mrb[90].mxu0 }
 0x499   :  { %v4887_v59 = vpop.eup %3670  ;;  %v1178_v60 = vadd.f32 %v4752_v53, %v1177_v57  ;;  %v1179_v61 = vpop.f32.mrb[91].mxu0 }
 0x49a   :  { %6006 = vst [vmem:[#allocation28_spill] sm:$0xff] %v4887_v59  ;;  %3206 = vmatprep.mubr.msk.f32.mxu1 %vm1231_vm1, %v4887_v59  ;;  %v5149_v59 = vld [vmem:[%s5880_s0 + $0x110] sm:$0xff] }
 0x49b   :  { %3676 = vtanh.f32 %v1178_v60 }
 0x49c   :  { %v1182_v63 = vpop.f32.mrb[92].mxu0 }
 0x49d   :  { %v4892_v1 = vpop.eup %3672  ;;  %v1183_v2 = vadd.f32 %v4752_v53, %v1182_v63  ;;  %v1184_v5 = vpop.f32.mrb[93].mxu0 }
 0x49e   :  { %6007 = vst [vmem:[#allocation29_spill] sm:$0xff] %v4892_v1  ;;  %3207 = vmatmul.mubr.msk.f32.gmra.mrb[122].mxu1 %vm1231_vm1, %v4892_v1  ;;  %v5143_v1 = vld [vmem:[%s5880_s0 + $0x118] sm:$0xff] }
 0x49f   :  { %3678 = vtanh.f32 %v1183_v2 }
 0x4a0   :  { %v1187_v6 = vpop.f32.mrb[94].mxu0 }
 0x4a1   :  { %v4897_v7 = vpop.eup %3674  ;;  %v1188_v10 = vadd.f32 %v4752_v53, %v1187_v6  ;;  %v1189_v11 = vpop.f32.mrb[95].mxu0  ;;  %v4917_v53 = vld [vmem:[%s5880_s0 + $0x8] sm:$0xff] }
 0x4a2   :  { %6008 = vst [vmem:[#allocation30_spill] sm:$0xff] %v4897_v7  ;;  %3209 = vmatprep.mubr.msk.f32.mxu1 %vm1231_vm1, %v4897_v7  ;;  %v5137_v7 = vld [vmem:[%s5880_s0 + $0x100] sm:$0xff] }
 0x4a3   :  { %3680 = vtanh.f32 %v1188_v10 }
 0x4a5   :  { %v4902_v16 = vpop.eup %3676 }
 0x4a6   :  { %6009 = vst [vmem:[#allocation31_spill] sm:$0xff] %v4902_v16  ;;  %3210 = vmatmul.mubr.msk.f32.gmra.mrb[124].mxu1 %vm1231_vm1, %v4902_v16  ;;  %v5309_v16 = vld [vmem:[%s5880_s0 + $0x1e0] sm:$0xff] }
 0x4a9   :  { %v4906_v22 = vpop.eup %3678 }
 0x4aa   :  { %6010 = vst [vmem:[#allocation32_spill] sm:$0xff] %v4906_v22  ;;  %3212 = vmatprep.mubr.msk.f32.mxu1 %vm1231_vm1, %v4906_v22  ;;  %v5125_v22 = vld [vmem:[%s5880_s0 + $0xf0] sm:$0xff] }
 0x4ad   :  { %v4910_v28 = vpop.eup %3680 }
 0x4ae   :  { %6011 = vst [vmem:[#allocation33_spill] sm:$0xff] %v4910_v28  ;;  %3213 = vmatmul.mubr.msk.f32.gmra.mrb[126].mxu1 %vm1231_vm1, %v4910_v28  ;;  %v5131_v28 = vld [vmem:[%s5880_s0 + $0x108] sm:$0xff] }
 0x4af   :  { %1624 = vmatprep.mubr.f32.mxu1 %v4917_v53 }
 0x509   :  { %v3169_v14 = vpop.f32.mrb[96].mxu1 }
 0x50a   :  { %v1394_v35 = vpop.f32.mrb[97].mxu1 }
 0x50b   :  { %v3416_v38 = vpack.c.bf16 %v3169_v14, %v1394_v35 }
 0x50d   :  { %3417 = vmatpush1.bf16.msra.mxu1 %v3416_v38 }
 0x50e   :  { %3418 = vmatprep.subr.bf16.mxu1 %v5965_v25 }
 0x511   :  { %v3172_v26 = vpop.f32.mrb[98].mxu1 }
 0x512   :  { %v1404_v15 = vpop.f32.mrb[99].mxu1 }
 0x513   :  { %v3419_v33 = vpack.c.bf16 %v3172_v26, %v1404_v15 }
 0x515   :  { %3420 = vmatpush1.bf16.msra.mxu1 %v3419_v33 }
 0x516   :  { %3421 = vmatprep.subr.bf16.mxu1 %v5965_v25 }
 0x519   :  { %v3175_v18 = vpop.f32.mrb[100].mxu1 }
 0x51a   :  { %v1414_v13 = vpop.f32.mrb[101].mxu1 }
 0x51b   :  { %v3422_v23 = vpack.c.bf16 %v3175_v18, %v1414_v13 }
 0x51d   :  { %3423 = vmatpush1.bf16.msra.mxu1 %v3422_v23 }
 0x51e   :  { %3424 = vmatprep.subr.bf16.mxu1 %v5965_v25 }
 0x521   :  { %v3178_v29 = vpop.f32.mrb[102].mxu1 }
 0x522   :  { %v1424_v37 = vpop.f32.mrb[103].mxu1 }
 0x523   :  { %v3425_v39 = vpack.c.bf16 %v3178_v29, %v1424_v37 }
 0x525   :  { %3426 = vmatpush1.bf16.msra.mxu1 %v3425_v39 }
 0x526   :  { %3427 = vmatprep.subr.bf16.mxu1 %v5965_v25 }
 0x529   :  { %v3181_v40 = vpop.f32.mrb[104].mxu1 }
 0x52a   :  { %v1434_v43 = vpop.f32.mrb[105].mxu1 }
 0x52b   :  { %v3428_v44 = vpack.c.bf16 %v3181_v40, %v1434_v43 }
 0x52d   :  { %3429 = vmatpush1.bf16.msra.mxu1 %v3428_v44 }
 0x52e   :  { %3430 = vmatprep.subr.bf16.mxu1 %v5965_v25 }
 0x531   :  { %v3184_v46 = vpop.f32.mrb[106].mxu1 }
 0x532   :  { %v1444_v48 = vpop.f32.mrb[107].mxu1 }
 0x533   :  { %v3431_v50 = vpack.c.bf16 %v3184_v46, %v1444_v48 }
 0x535   :  { %3432 = vmatpush1.bf16.msra.mxu1 %v3431_v50 }
 0x536   :  { %3433 = vmatprep.subr.bf16.mxu1 %v5965_v25 }
 0x539   :  { %v3187_v51 = vpop.f32.mrb[108].mxu1 }
 0x53a   :  { %v1454_v55 = vpop.f32.mrb[109].mxu1 }
 0x53b   :  { %v3434_v56 = vpack.c.bf16 %v3187_v51, %v1454_v55  ;;  %v1817_v51 = vld [vmem:[%s5886_s8] sm:$0xff]  ;;  %v1818_v55 = vld [vmem:[%s5886_s8 + $0x8] sm:$0xff] }
 0x53d   :  { %3435 = vmatpush1.bf16.msra.mxu1 %v3434_v56  ;;  %v3463_v56 = vpack.c.bf16 %v1818_v55, %v1817_v51  ;;  %v5107_v51 = vld [vmem:[%s5880_s0 + $0xe8] sm:$0xff]  ;;  %v5113_v55 = vld [vmem:[%s5880_s0 + $0xe0] sm:$0xff] }
 0x53e   :  { %3436 = vmatprep.subr.bf16.mxu1 %v5965_v25 }
 0x53f   :  { %3464 = vmatprep.subr.bf16.mxu0 %v3463_v56 }
 0x540   :  { %3466 = vmatpush3.bf16.msra.mxu0 %v3463_v56  ;;  %v5119_v56 = vld [vmem:[%s5880_s0 + $0xf8] sm:$0xff] }
 0x541   :  { %v3190_v57 = vpop.f32.mrb[110].mxu1  ;;  %3468 = vmatprep.subr.bf16.mxu0 %v3467_v41 }
 0x542   :  { %v1464_v60 = vpop.f32.mrb[111].mxu1 }
 0x543   :  { %v3437_v61 = vpack.c.bf16 %v3190_v57, %v1464_v60  ;;  %v4945_v57 = vld [vmem:[%s5880_s0] sm:$0xff]  ;;  %v4951_v60 = vld [vmem:[%s5880_s0 + $0x18] sm:$0xff] }
 0x544   :  { %3470 = vmatpush3.bf16.msra.mxu0 %v3467_v41  ;;  %v5264_v41 = vld [vmem:[%s5880_s0 + $0x1a0] sm:$0xff] }
 0x545   :  { %3438 = vmatpush1.bf16.msra.mxu1 %v3437_v61  ;;  %v4957_v61 = vld [vmem:[%s5880_s0 + $0x10] sm:$0xff]  ;;  %3471 = vmatprep.subr.bf16.mxu0 %v5965_v25  ;;  %6021 = vst [vmem:[#allocation43_spill] sm:$0xff] %v5264_v41 }
 0x546   :  { %3439 = vmatprep.subr.bf16.mxu1 %v5965_v25 }
 0x549   :  { %v3193_v63 = vpop.f32.mrb[112].mxu1 }
 0x54a   :  { %v1474_v2 = vpop.f32.mrb[113].mxu1 }
 0x54b   :  { %v3440_v5 = vpack.c.bf16 %v3193_v63, %v1474_v2  ;;  %v4963_v63 = vld [vmem:[%s5880_s0 + $0x28] sm:$0xff]  ;;  %v4969_v2 = vld [vmem:[%s5880_s0 + $0x20] sm:$0xff] }
 0x54d   :  { %3441 = vmatpush1.bf16.msra.mxu1 %v3440_v5  ;;  %v4975_v5 = vld [vmem:[%s5880_s0 + $0x38] sm:$0xff] }
 0x54e   :  { %3442 = vmatprep.subr.bf16.mxu1 %v5965_v25 }
 0x551   :  { %v3196_v6 = vpop.f32.mrb[114].mxu1 }
 0x552   :  { %v1484_v10 = vpop.f32.mrb[115].mxu1 }
 0x553   :  { %v3443_v11 = vpack.c.bf16 %v3196_v6, %v1484_v10  ;;  %v4981_v6 = vld [vmem:[%s5880_s0 + $0x30] sm:$0xff]  ;;  %v4987_v10 = vld [vmem:[%s5880_s0 + $0x48] sm:$0xff] }
 0x555   :  { %3444 = vmatpush1.bf16.msra.mxu1 %v3443_v11  ;;  %v4993_v11 = vld [vmem:[%s5880_s0 + $0x40] sm:$0xff] }
 0x556   :  { %3445 = vmatprep.subr.bf16.mxu1 %v5965_v25 }
 0x559   :  { %v3199_v14 = vpop.f32.mrb[116].mxu1 }
 0x55a   :  { %v1494_v35 = vpop.f32.mrb[117].mxu1 }
 0x55b   :  { %v3446_v38 = vpack.c.bf16 %v3199_v14, %v1494_v35  ;;  %v4999_v14 = vld [vmem:[%s5880_s0 + $0x58] sm:$0xff]  ;;  %v5005_v35 = vld [vmem:[%s5880_s0 + $0x50] sm:$0xff] }
 0x55d   :  { %3447 = vmatpush1.bf16.msra.mxu1 %v3446_v38  ;;  %v5011_v38 = vld [vmem:[%s5880_s0 + $0x68] sm:$0xff] }
 0x55e   :  { %3448 = vmatprep.subr.bf16.mxu1 %v5965_v25 }
 0x561   :  { %v3202_v26 = vpop.f32.mrb[118].mxu1 }
 0x562   :  { %v1504_v15 = vpop.f32.mrb[119].mxu1 }
 0x563   :  { %v3449_v33 = vpack.c.bf16 %v3202_v26, %v1504_v15  ;;  %v5017_v26 = vld [vmem:[%s5880_s0 + $0x60] sm:$0xff]  ;;  %v5023_v15 = vld [vmem:[%s5880_s0 + $0x78] sm:$0xff] }
 0x565   :  { %3450 = vmatpush1.bf16.msra.mxu1 %v3449_v33  ;;  %v5029_v33 = vld [vmem:[%s5880_s0 + $0x70] sm:$0xff] }
 0x566   :  { %3451 = vmatprep.subr.bf16.mxu1 %v5965_v25 }
 0x569   :  { %v3205_v18 = vpop.f32.mrb[120].mxu1 }
 0x56a   :  { %v1514_v13 = vpop.f32.mrb[121].mxu1 }
 0x56b   :  { %v3452_v23 = vpack.c.bf16 %v3205_v18, %v1514_v13  ;;  %v5035_v18 = vld [vmem:[%s5880_s0 + $0x88] sm:$0xff]  ;;  %v5041_v13 = vld [vmem:[%s5880_s0 + $0x80] sm:$0xff] }
 0x56d   :  { %3453 = vmatpush1.bf16.msra.mxu1 %v3452_v23  ;;  %v5047_v23 = vld [vmem:[%s5880_s0 + $0x98] sm:$0xff] }
 0x56e   :  { %3454 = vmatprep.subr.bf16.mxu1 %v5965_v25 }
 0x571   :  { %v3208_v29 = vpop.f32.mrb[122].mxu1 }
 0x572   :  { %v1524_v37 = vpop.f32.mrb[123].mxu1 }
 0x573   :  { %v3455_v39 = vpack.c.bf16 %v3208_v29, %v1524_v37  ;;  %v5053_v29 = vld [vmem:[%s5880_s0 + $0x90] sm:$0xff]  ;;  %v5059_v37 = vld [vmem:[%s5880_s0 + $0xa8] sm:$0xff] }
 0x575   :  { %3456 = vmatpush1.bf16.msra.mxu1 %v3455_v39  ;;  %v5065_v39 = vld [vmem:[%s5880_s0 + $0xa0] sm:$0xff] }
 0x576   :  { %3457 = vmatprep.subr.bf16.mxu1 %v5965_v25 }
 0x579   :  { %v3211_v40 = vpop.f32.mrb[124].mxu1 }
 0x57a   :  { %v1534_v43 = vpop.f32.mrb[125].mxu1 }
 0x57b   :  { %v3458_v44 = vpack.c.bf16 %v3211_v40, %v1534_v43  ;;  %v5071_v40 = vld [vmem:[%s5880_s0 + $0xb8] sm:$0xff]  ;;  %v5077_v43 = vld [vmem:[%s5880_s0 + $0xb0] sm:$0xff] }
 0x57d   :  { %3459 = vmatpush1.bf16.msra.mxu1 %v3458_v44  ;;  %v5083_v44 = vld [vmem:[%s5880_s0 + $0xc8] sm:$0xff] }
 0x57e   :  { %3460 = vmatprep.subr.bf16.mxu1 %v5965_v25 }
 0x581   :  { %v3214_v46 = vpop.f32.mrb[126].mxu1 }
 0x582   :  { %v1544_v48 = vpop.f32.mrb[127].mxu1 }
 0x583   :  { %v3461_v50 = vpack.c.bf16 %v3214_v46, %v1544_v48  ;;  %v5089_v46 = vld [vmem:[%s5880_s0 + $0xc0] sm:$0xff]  ;;  %v5095_v48 = vld [vmem:[%s5880_s0 + $0xd8] sm:$0xff] }
 0x585   :  { %3462 = vmatpush1.bf16.msra.mxu1 %v3461_v50  ;;  %v5101_v50 = vld [vmem:[%s5880_s0 + $0xd0] sm:$0xff] }
 0x586   :  { %3519 = vmatprep.subr.bf16.mxu1 %v5965_v25 }
 0x588   :  { %1625 = vmatmul.mubr.f32.vlgmr.msra.gmra.mrb[128].mxu1 %v4945_v57 }
 0x589   :  { %1629 = vmatprep.mubr.f32.mxu1 %v4951_v60 }
 0x58c   :  { %1630 = vmatmul.mubr.f32.gmra.mrb[130].mxu1 %v4957_v61 }
 0x58d   :  { %1634 = vmatprep.mubr.f32.mxu1 %v4963_v63 }
 0x590   :  { %1635 = vmatmul.mubr.f32.gmra.mrb[132].mxu1 %v4969_v2 }
 0x591   :  { %1639 = vmatprep.mubr.f32.mxu1 %v4975_v5 }
 0x594   :  { %1640 = vmatmul.mubr.f32.gmra.mrb[134].mxu1 %v4981_v6 }
 0x595   :  { %1644 = vmatprep.mubr.f32.mxu1 %v4987_v10 }
 0x598   :  { %1645 = vmatmul.mubr.f32.gmra.mrb[136].mxu1 %v4993_v11 }
 0x599   :  { %1649 = vmatprep.mubr.f32.mxu1 %v4999_v14 }
 0x59c   :  { %1650 = vmatmul.mubr.f32.gmra.mrb[138].mxu1 %v5005_v35 }
 0x59d   :  { %1654 = vmatprep.mubr.f32.mxu1 %v5011_v38 }
 0x5a0   :  { %1655 = vmatmul.mubr.f32.gmra.mrb[140].mxu1 %v5017_v26 }
 0x5a1   :  { %1659 = vmatprep.mubr.f32.mxu1 %v5023_v15 }
 0x5a4   :  { %1660 = vmatmul.mubr.f32.gmra.mrb[142].mxu1 %v5029_v33 }
 0x5a5   :  { %1664 = vmatprep.mubr.f32.mxu1 %v5035_v18 }
 0x5a8   :  { %1665 = vmatmul.mubr.f32.gmra.mrb[144].mxu1 %v5041_v13 }
 0x5a9   :  { %1669 = vmatprep.mubr.f32.mxu1 %v5047_v23 }
 0x5ac   :  { %1670 = vmatmul.mubr.f32.gmra.mrb[146].mxu1 %v5053_v29 }
 0x5ad   :  { %1674 = vmatprep.mubr.f32.mxu1 %v5059_v37 }
 0x5b0   :  { %1675 = vmatmul.mubr.f32.gmra.mrb[148].mxu1 %v5065_v39 }
 0x5b1   :  { %1679 = vmatprep.mubr.f32.mxu1 %v5071_v40 }
 0x5b4   :  { %1680 = vmatmul.mubr.f32.gmra.mrb[150].mxu1 %v5077_v43 }
 0x5b5   :  { %1684 = vmatprep.mubr.f32.mxu1 %v5083_v44 }
 0x5b8   :  { %1685 = vmatmul.mubr.f32.gmra.mrb[152].mxu1 %v5089_v46 }
 0x5b9   :  { %1689 = vmatprep.mubr.f32.mxu1 %v5095_v48 }
 0x5bc   :  { %1690 = vmatmul.mubr.f32.gmra.mrb[154].mxu1 %v5101_v50 }
 0x5bd   :  { %1694 = vmatprep.mubr.f32.mxu1 %v5107_v51 }
 0x5c0   :  { %1695 = vmatmul.mubr.f32.gmra.mrb[156].mxu1 %v5113_v55 }
 0x5c1   :  { %1699 = vmatprep.mubr.f32.mxu1 %v5119_v56 }
 0x5c4   :  { %1700 = vmatmul.mubr.f32.gmra.mrb[158].mxu1 %v5125_v22 }
 0x5c5   :  { %1704 = vmatprep.mubr.f32.mxu1 %v5131_v28 }
 0x5c8   :  { %1705 = vmatmul.mubr.f32.gmra.mrb[160].mxu1 %v5137_v7 }
 0x5c9   :  { %1709 = vmatprep.mubr.f32.mxu1 %v5143_v1 }
 0x5cc   :  { %1710 = vmatmul.mubr.f32.gmra.mrb[162].mxu1 %v5149_v59 }
 0x5cd   :  { %1714 = vmatprep.mubr.f32.mxu1 %v5155_v52 }
 0x5d0   :  { %1715 = vmatmul.mubr.f32.gmra.mrb[164].mxu1 %v5161_v47 }
 0x5d1   :  { %1719 = vmatprep.mubr.f32.mxu1 %v5167_v42 }
 0x5d4   :  { %1720 = vmatmul.mubr.f32.gmra.mrb[166].mxu1 %v5173_v30 }
 0x5d5   :  { %1724 = vmatprep.mubr.f32.mxu1 %v5179_v34 }
 0x5d8   :  { %1725 = vmatmul.mubr.f32.gmra.mrb[168].mxu1 %v5185_v27 }
 0x5d9   :  { %1729 = vmatprep.mubr.f32.mxu1 %v5191_v32 }
 0x5dc   :  { %1730 = vmatmul.mubr.f32.gmra.mrb[170].mxu1 %v5197_v17 }
 0x5dd   :  { %1734 = vmatprep.mubr.f32.mxu1 %v5203_v9 }
 0x5e0   :  { %1735 = vmatmul.mubr.f32.gmra.mrb[172].mxu1 %v5209_v3 }
 0x5e1   :  { %1739 = vmatprep.mubr.f32.mxu1 %v5215_v62 }
 0x5e4   :  { %1740 = vmatmul.mubr.f32.gmra.mrb[174].mxu1 %v5221_v58 }
 0x5e5   :  { %1744 = vmatprep.mubr.f32.mxu1 %v5227_v54 }
 0x5e8   :  { %1745 = vmatmul.mubr.f32.gmra.mrb[176].mxu1 %v5239_v36 }
 0x5e9   :  { %1749 = vmatprep.mubr.f32.mxu1 %v5245_v19 }
 0x5ec   :  { %1750 = vmatmul.mubr.f32.gmra.mrb[178].mxu1 %v5252_v45 }
 0x5ed   :  { %1754 = vmatprep.mubr.f32.mxu1 %v5258_v49 }
 0x5f0   :  { %1755 = vmatmul.mubr.f32.gmra.mrb[180].mxu1 %v5264_v41 }
 0x5f1   :  { %1759 = vmatprep.mubr.f32.mxu1 %v5270_v31 }
 0x5f4   :  { %1760 = vmatmul.mubr.f32.gmra.mrb[182].mxu1 %v5276_v21 }
 0x5f5   :  { %1764 = vmatprep.mubr.f32.mxu1 %v5282_v20  ;;  %v5327_v20 = vld [vmem:[%s5887_s7] ss:$0 sm:$0xff] }
 0x5f8   :  { %1765 = vmatmul.mubr.f32.gmra.mrb[184].mxu1 %v5288_v24  ;;  %v5321_v24 = vld [vmem:[%s5880_s0 + $0x1f0] sm:$0xff]  ;;  %s3875_s0 = smov 64  }
 0x5f9   :  { %1769 = vmatprep.mubr.f32.mxu1 %v3868_v12 }
 0x5fc   :  { %1770 = vmatmul.mubr.f32.gmra.mrb[186].mxu1 %v5297_v8 }
 0x5fd   :  { %1774 = vmatprep.mubr.f32.mxu1 %v5303_v4 }
 0x600   :  { %1775 = vmatmul.mubr.f32.gmra.mrb[188].mxu1 %v5309_v16 }
 0x601   :  { %1779 = vmatprep.mubr.f32.mxu1 %v5315_v0 }
 0x604   :  { %1780 = vmatmul.mubr.f32.gmra.mrb[190].mxu1 %v5321_v24 }
 0x605   :  { %2359 = vmatprep.mubr.f32.mxu1 %v3868_v12 }
 0x65b   :  { %v1626_v21 = vpop.f32.mrb[128].mxu1 }
 0x65c   :  { %v1627_v31 = vadd.f32 %v5327_v20, %v1626_v21  ;;  %v1628_v41 = vpop.f32.mrb[129].mxu1 }
 0x65e   :  { %3682 = vtanh.f32 %v1627_v31 }
 0x65f   :  { %v1631_v49 = vpop.f32.mrb[130].mxu1 }
 0x660   :  { %v1632_v45 = vadd.f32 %v5327_v20, %v1631_v49  ;;  %v1633_v19 = vpop.f32.mrb[131].mxu1 }
 0x662   :  { %3684 = vtanh.f32 %v1632_v45 }
 0x663   :  { %v1636_v36 = vpop.f32.mrb[132].mxu1 }
 0x664   :  { %v1637_v54 = vadd.f32 %v5327_v20, %v1636_v36  ;;  %v1638_v58 = vpop.f32.mrb[133].mxu1 }
 0x666   :  { %3686 = vtanh.f32 %v1637_v54 }
 0x667   :  { %v1641_v12 = vpop.f32.mrb[134].mxu1 }
 0x668   :  { %v3683_v62 = vpop.eup %3682  ;;  %v1642_v3 = vadd.f32 %v5327_v20, %v1641_v12  ;;  %v1643_v9 = vpop.f32.mrb[135].mxu1 }
 0x669   :  { %2407 = vrot.lane.b32.xlu0 %v3683_v62, %s3875_s0  ;;  %3223 = vmatprep.mubr.msk.f32.mxu0 %vm1821_vm2, %v3683_v62 }
 0x66a   :  { %3688 = vtanh.f32 %v1642_v3 }
 0x66b   :  { %v1646_v21 = vpop.f32.mrb[136].mxu1 }
 0x66c   :  { %v3685_v31 = vpop.eup %3684  ;;  %v1647_v19 = vadd.f32 %v5327_v20, %v1646_v21  ;;  %v1648_v45 = vpop.f32.mrb[137].mxu1 }
 0x66d   :  { %2409 = vrot.lane.b32.xlu0 %v3685_v31, %s3875_s0  ;;  %3224 = vmatmul.mubr.msk.f32.vlgmr.msra.gmra.mrb[96].mxu0 %vm1821_vm2, %v3685_v31 }
 0x66e   :  { %3690 = vtanh.f32 %v1647_v19 }
 0x66f   :  { %v1651_v36 = vpop.f32.mrb[138].mxu1 }
 0x670   :  { %v3687_v54 = vpop.eup %3686  ;;  %v1652_v58 = vadd.f32 %v5327_v20, %v1651_v36  ;;  %v1653_v9 = vpop.f32.mrb[139].mxu1 }
 0x671   :  { %2411 = vrot.lane.b32.xlu1 %v3687_v54, %s3875_s0  ;;  %3226 = vmatprep.mubr.msk.f32.mxu0 %vm1821_vm2, %v3687_v54 }
 0x672   :  { %3692 = vtanh.f32 %v1652_v58 }
 0x673   :  { %v1656_v62 = vpop.f32.mrb[140].mxu1 }
 0x674   :  { %v3689_v3 = vpop.eup %3688  ;;  %v1657_v49 = vadd.f32 %v5327_v20, %v1656_v62  ;;  %v1658_v41 = vpop.f32.mrb[141].mxu1 }
 0x675   :  { %2413 = vrot.lane.b32.xlu1 %v3689_v3, %s3875_s0  ;;  %3227 = vmatmul.mubr.msk.f32.gmra.mrb[98].mxu0 %vm1821_vm2, %v3689_v3 }
 0x676   :  { %3694 = vtanh.f32 %v1657_v49 }
 0x677   :  { %v1661_v12 = vpop.f32.mrb[142].mxu1 }
 0x678   :  { %v3691_v21 = vpop.eup %3690  ;;  %v1662_v31 = vadd.f32 %v5327_v20, %v1661_v12  ;;  %v1663_v19 = vpop.f32.mrb[143].mxu1 }
 0x679   :  { %2415 = vrot.lane.b32.xlu0 %v3691_v21, %s3875_s0  ;;  %3229 = vmatprep.mubr.msk.f32.mxu0 %vm1821_vm2, %v3691_v21 }
 0x67a   :  { %3696 = vtanh.f32 %v1662_v31 }
 0x67b   :  { %v1666_v45 = vpop.f32.mrb[144].mxu1 }
 0x67c   :  { %v3693_v36 = vpop.eup %3692  ;;  %v1667_v54 = vadd.f32 %v5327_v20, %v1666_v45  ;;  %v1668_v58 = vpop.f32.mrb[145].mxu1 }
 0x67d   :  { %2417 = vrot.lane.b32.xlu1 %v3693_v36, %s3875_s0  ;;  %3230 = vmatmul.mubr.msk.f32.gmra.mrb[100].mxu0 %vm1821_vm2, %v3693_v36 }
 0x67e   :  { %3698 = vtanh.f32 %v1667_v54 }
 0x67f   :  { %v1671_v9 = vpop.f32.mrb[146].mxu1 }
 0x680   :  { %v3695_v62 = vpop.eup %3694  ;;  %v1672_v3 = vadd.f32 %v5327_v20, %v1671_v9  ;;  %v1673_v49 = vpop.f32.mrb[147].mxu1 }
 0x681   :  { %2419 = vrot.lane.b32.xlu0 %v3695_v62, %s3875_s0  ;;  %3232 = vmatprep.mubr.msk.f32.mxu0 %vm1821_vm2, %v3695_v62 }
 0x682   :  { %3700 = vtanh.f32 %v1672_v3 }
 0x683   :  { %v1676_v41 = vpop.f32.mrb[148].mxu1 }
 0x684   :  { %v3697_v12 = vpop.eup %3696  ;;  %v1677_v21 = vadd.f32 %v5327_v20, %v1676_v41  ;;  %v1678_v31 = vpop.f32.mrb[149].mxu1 }
 0x685   :  { %2421 = vrot.lane.b32.xlu1 %v3697_v12, %s3875_s0  ;;  %3233 = vmatmul.mubr.msk.f32.gmra.mrb[102].mxu0 %vm1821_vm2, %v3697_v12 }
 0x686   :  { %3702 = vtanh.f32 %v1677_v21 }
 0x687   :  { %v1681_v19 = vpop.f32.mrb[150].mxu1 }
 0x688   :  { %v3699_v45 = vpop.eup %3698  ;;  %v1682_v36 = vadd.f32 %v5327_v20, %v1681_v19  ;;  %v1683_v54 = vpop.f32.mrb[151].mxu1 }
 0x689   :  { %2423 = vrot.lane.b32.xlu0 %v3699_v45, %s3875_s0  ;;  %3235 = vmatprep.mubr.msk.f32.mxu0 %vm1821_vm2, %v3699_v45 }
 0x68a   :  { %3704 = vtanh.f32 %v1682_v36 }
 0x68b   :  { %v1686_v58 = vpop.f32.mrb[152].mxu1 }
 0x68c   :  { %v3701_v9 = vpop.eup %3700  ;;  %v1687_v62 = vadd.f32 %v5327_v20, %v1686_v58  ;;  %v1688_v3 = vpop.f32.mrb[153].mxu1 }
 0x68d   :  { %2425 = vrot.lane.b32.xlu1 %v3701_v9, %s3875_s0  ;;  %3236 = vmatmul.mubr.msk.f32.gmra.mrb[104].mxu0 %vm1821_vm2, %v3701_v9 }
 0x68e   :  { %3706 = vtanh.f32 %v1687_v62 }
 0x68f   :  { %v1691_v49 = vpop.f32.mrb[154].mxu1 }
 0x690   :  { %v3703_v41 = vpop.eup %3702  ;;  %v1692_v12 = vadd.f32 %v5327_v20, %v1691_v49  ;;  %v1693_v21 = vpop.f32.mrb[155].mxu1 }
 0x691   :  { %2427 = vrot.lane.b32.xlu0 %v3703_v41, %s3875_s0  ;;  %3238 = vmatprep.mubr.msk.f32.mxu0 %vm1821_vm2, %v3703_v41 }
 0x692   :  { %3708 = vtanh.f32 %v1692_v12 }
 0x693   :  { %v1696_v31 = vpop.f32.mrb[156].mxu1 }
 0x694   :  { %v3705_v19 = vpop.eup %3704  ;;  %v1697_v45 = vadd.f32 %v5327_v20, %v1696_v31  ;;  %v1698_v36 = vpop.f32.mrb[157].mxu1 }
 0x695   :  { %2429 = vrot.lane.b32.xlu1 %v3705_v19, %s3875_s0  ;;  %3239 = vmatmul.mubr.msk.f32.gmra.mrb[106].mxu0 %vm1821_vm2, %v3705_v19 }
 0x696   :  { %3710 = vtanh.f32 %v1697_v45 }
 0x697   :  { %v1701_v54 = vpop.f32.mrb[158].mxu1 }
 0x698   :  { %v3707_v58 = vpop.eup %3706  ;;  %v1702_v9 = vadd.f32 %v5327_v20, %v1701_v54  ;;  %v1703_v62 = vpop.f32.mrb[159].mxu1 }
 0x699   :  { %2431 = vrot.lane.b32.xlu0 %v3707_v58, %s3875_s0  ;;  %3241 = vmatprep.mubr.msk.f32.mxu0 %vm1821_vm2, %v3707_v58 }
 0x69a   :  { %3712 = vtanh.f32 %v1702_v9 }
 0x69b   :  { %v1706_v3 = vpop.f32.mrb[160].mxu1 }
 0x69c   :  { %v3709_v49 = vpop.eup %3708  ;;  %v1707_v41 = vadd.f32 %v5327_v20, %v1706_v3  ;;  %v1708_v12 = vpop.f32.mrb[161].mxu1 }
 0x69d   :  { %2433 = vrot.lane.b32.xlu1 %v3709_v49, %s3875_s0  ;;  %3242 = vmatmul.mubr.msk.f32.gmra.mrb[108].mxu0 %vm1821_vm2, %v3709_v49 }
 0x69e   :  { %3714 = vtanh.f32 %v1707_v41 }
 0x69f   :  { %v1711_v21 = vpop.f32.mrb[162].mxu1 }
 0x6a0   :  { %v3711_v31 = vpop.eup %3710  ;;  %v1712_v19 = vadd.f32 %v5327_v20, %v1711_v21  ;;  %v1713_v45 = vpop.f32.mrb[163].mxu1 }
 0x6a1   :  { %2435 = vrot.lane.b32.xlu0 %v3711_v31, %s3875_s0  ;;  %3244 = vmatprep.mubr.msk.f32.mxu0 %vm1821_vm2, %v3711_v31 }
 0x6a2   :  { %3716 = vtanh.f32 %v1712_v19 }
 0x6a3   :  { %v1716_v36 = vpop.f32.mrb[164].mxu1 }
 0x6a4   :  { %v3713_v54 = vpop.eup %3712  ;;  %v1717_v58 = vadd.f32 %v5327_v20, %v1716_v36  ;;  %v1718_v9 = vpop.f32.mrb[165].mxu1 }
 0x6a5   :  { %2437 = vrot.lane.b32.xlu1 %v3713_v54, %s3875_s0  ;;  %3245 = vmatmul.mubr.msk.f32.gmra.mrb[110].mxu0 %vm1821_vm2, %v3713_v54 }
 0x6a6   :  { %3718 = vtanh.f32 %v1717_v58 }
 0x6a7   :  { %v1721_v62 = vpop.f32.mrb[166].mxu1 }
 0x6a8   :  { %v3715_v3 = vpop.eup %3714  ;;  %v1722_v49 = vadd.f32 %v5327_v20, %v1721_v62  ;;  %v1723_v41 = vpop.f32.mrb[167].mxu1 }
 0x6a9   :  { %2439 = vrot.lane.b32.xlu0 %v3715_v3, %s3875_s0  ;;  %3247 = vmatprep.mubr.msk.f32.mxu0 %vm1821_vm2, %v3715_v3 }
 0x6aa   :  { %3720 = vtanh.f32 %v1722_v49 }
 0x6ab   :  { %v1726_v12 = vpop.f32.mrb[168].mxu1 }
 0x6ac   :  { %v3717_v21 = vpop.eup %3716  ;;  %v1727_v31 = vadd.f32 %v5327_v20, %v1726_v12  ;;  %v1728_v19 = vpop.f32.mrb[169].mxu1 }
 0x6ad   :  { %2441 = vrot.lane.b32.xlu1 %v3717_v21, %s3875_s0  ;;  %3248 = vmatmul.mubr.msk.f32.gmra.mrb[112].mxu0 %vm1821_vm2, %v3717_v21 }
 0x6ae   :  { %3722 = vtanh.f32 %v1727_v31 }
 0x6af   :  { %v1731_v45 = vpop.f32.mrb[170].mxu1 }
 0x6b0   :  { %v3719_v36 = vpop.eup %3718  ;;  %v1732_v54 = vadd.f32 %v5327_v20, %v1731_v45  ;;  %v1733_v58 = vpop.f32.mrb[171].mxu1 }
 0x6b1   :  { %2443 = vrot.lane.b32.xlu0 %v3719_v36, %s3875_s0  ;;  %3250 = vmatprep.mubr.msk.f32.mxu0 %vm1821_vm2, %v3719_v36 }
 0x6b2   :  { %3724 = vtanh.f32 %v1732_v54 }
 0x6b3   :  { %v1736_v9 = vpop.f32.mrb[172].mxu1 }
 0x6b4   :  { %v3721_v62 = vpop.eup %3720  ;;  %v1737_v3 = vadd.f32 %v5327_v20, %v1736_v9  ;;  %v1738_v49 = vpop.f32.mrb[173].mxu1 }
 0x6b5   :  { %2445 = vrot.lane.b32.xlu1 %v3721_v62, %s3875_s0  ;;  %3251 = vmatmul.mubr.msk.f32.gmra.mrb[114].mxu0 %vm1821_vm2, %v3721_v62 }
 0x6b6   :  { %3726 = vtanh.f32 %v1737_v3 }
 0x6b7   :  { %v1741_v41 = vpop.f32.mrb[174].mxu1 }
 0x6b8   :  { %v3723_v12 = vpop.eup %3722  ;;  %v1742_v21 = vadd.f32 %v5327_v20, %v1741_v41  ;;  %v1743_v31 = vpop.f32.mrb[175].mxu1 }
 0x6b9   :  { %2447 = vrot.lane.b32.xlu0 %v3723_v12, %s3875_s0  ;;  %3253 = vmatprep.mubr.msk.f32.mxu0 %vm1821_vm2, %v3723_v12 }
 0x6ba   :  { %3728 = vtanh.f32 %v1742_v21 }
 0x6bb   :  { %v1746_v19 = vpop.f32.mrb[176].mxu1 }
 0x6bc   :  { %v3725_v45 = vpop.eup %3724  ;;  %v1747_v36 = vadd.f32 %v5327_v20, %v1746_v19  ;;  %v1748_v54 = vpop.f32.mrb[177].mxu1 }
 0x6bd   :  { %2449 = vrot.lane.b32.xlu1 %v3725_v45, %s3875_s0  ;;  %3254 = vmatmul.mubr.msk.f32.gmra.mrb[116].mxu0 %vm1821_vm2, %v3725_v45 }
 0x6be   :  { %3730 = vtanh.f32 %v1747_v36 }
 0x6bf   :  { %v1751_v58 = vpop.f32.mrb[178].mxu1 }
 0x6c0   :  { %v3727_v9 = vpop.eup %3726  ;;  %v1752_v62 = vadd.f32 %v5327_v20, %v1751_v58  ;;  %v1753_v3 = vpop.f32.mrb[179].mxu1 }
 0x6c1   :  { %2451 = vrot.lane.b32.xlu0 %v3727_v9, %s3875_s0  ;;  %3256 = vmatprep.mubr.msk.f32.mxu0 %vm1821_vm2, %v3727_v9 }
 0x6c2   :  { %3732 = vtanh.f32 %v1752_v62 }
 0x6c3   :  { %v1756_v49 = vpop.f32.mrb[180].mxu1 }
 0x6c4   :  { %v3729_v41 = vpop.eup %3728  ;;  %v1757_v12 = vadd.f32 %v5327_v20, %v1756_v49  ;;  %v1758_v21 = vpop.f32.mrb[181].mxu1 }
 0x6c5   :  { %2453 = vrot.lane.b32.xlu1 %v3729_v41, %s3875_s0  ;;  %3257 = vmatmul.mubr.msk.f32.gmra.mrb[118].mxu0 %vm1821_vm2, %v3729_v41 }
 0x6c6   :  { %3734 = vtanh.f32 %v1757_v12 }
 0x6c7   :  { %v1761_v31 = vpop.f32.mrb[182].mxu1 }
 0x6c8   :  { %v3731_v19 = vpop.eup %3730  ;;  %v1762_v45 = vadd.f32 %v5327_v20, %v1761_v31  ;;  %v1763_v36 = vpop.f32.mrb[183].mxu1 }
 0x6c9   :  { %2455 = vrot.lane.b32.xlu0 %v3731_v19, %s3875_s0  ;;  %3259 = vmatprep.mubr.msk.f32.mxu0 %vm1821_vm2, %v3731_v19 }
 0x6ca   :  { %3736 = vtanh.f32 %v1762_v45 }
 0x6cb   :  { %v1766_v54 = vpop.f32.mrb[184].mxu1 }
 0x6cc   :  { %v3733_v58 = vpop.eup %3732  ;;  %v1767_v9 = vadd.f32 %v5327_v20, %v1766_v54  ;;  %v1768_v62 = vpop.f32.mrb[185].mxu1 }
 0x6cd   :  { %2457 = vrot.lane.b32.xlu1 %v3733_v58, %s3875_s0  ;;  %3260 = vmatmul.mubr.msk.f32.gmra.mrb[120].mxu0 %vm1821_vm2, %v3733_v58 }
 0x6ce   :  { %3738 = vtanh.f32 %v1767_v9 }
 0x6cf   :  { %v1771_v3 = vpop.f32.mrb[186].mxu1 }
 0x6d0   :  { %v3735_v49 = vpop.eup %3734  ;;  %v1772_v41 = vadd.f32 %v5327_v20, %v1771_v3  ;;  %v1773_v12 = vpop.f32.mrb[187].mxu1 }
 0x6d1   :  { %2459 = vrot.lane.b32.xlu0 %v3735_v49, %s3875_s0  ;;  %3262 = vmatprep.mubr.msk.f32.mxu0 %vm1821_vm2, %v3735_v49 }
 0x6d2   :  { %3740 = vtanh.f32 %v1772_v41 }
 0x6d3   :  { %v1776_v21 = vpop.f32.mrb[188].mxu1 }
 0x6d4   :  { %v3737_v31 = vpop.eup %3736  ;;  %v1777_v19 = vadd.f32 %v5327_v20, %v1776_v21  ;;  %v1778_v45 = vpop.f32.mrb[189].mxu1 }
 0x6d5   :  { %2461 = vrot.lane.b32.xlu1 %v3737_v31, %s3875_s0  ;;  %3263 = vmatmul.mubr.msk.f32.gmra.mrb[122].mxu0 %vm1821_vm2, %v3737_v31 }
 0x6d6   :  { %3742 = vtanh.f32 %v1777_v19 }
 0x6d7   :  { %v1781_v36 = vpop.f32.mrb[190].mxu1 }
 0x6d8   :  { %v3739_v54 = vpop.eup %3738  ;;  %v1782_v58 = vadd.f32 %v5327_v20, %v1781_v36  ;;  %v1783_v9 = vpop.f32.mrb[191].mxu1 }
 0x6d9   :  { %2463 = vrot.lane.b32.xlu0 %v3739_v54, %s3875_s0  ;;  %3265 = vmatprep.mubr.msk.f32.mxu0 %vm1821_vm2, %v3739_v54 }
 0x6da   :  { %3744 = vtanh.f32 %v1782_v58 }
 0x6dc   :  { %v3741_v62 = vpop.eup %3740 }
 0x6dd   :  { %2465 = vrot.lane.b32.xlu1 %v3741_v62, %s3875_s0  ;;  %3266 = vmatmul.mubr.msk.f32.gmra.mrb[124].mxu0 %vm1821_vm2, %v3741_v62 }
 0x6e0   :  { %v3743_v3 = vpop.eup %3742 }
 0x6e1   :  { %2467 = vrot.lane.b32.xlu0 %v3743_v3, %s3875_s0  ;;  %3268 = vmatprep.mubr.msk.f32.mxu0 %vm1821_vm2, %v3743_v3 }
 0x6e4   :  { %v3745_v49 = vpop.eup %3744 }
 0x6e5   :  { %2469 = vrot.lane.b32.xlu1 %v3745_v49, %s3875_s0  ;;  %3269 = vmatmul.mubr.msk.f32.gmra.mrb[126].mxu0 %vm1821_vm2, %v3745_v49 }
 0x6e6   :  { %2214 = vmatprep.mubr.f32.mxu0 %v4917_v53 }
 0x740   :  { %v3225_v20 = vpop.f32.mrb[96].mxu0 }
 0x741   :  { %v1984_v41 = vpop.f32.mrb[97].mxu0 }
 0x742   :  { %v3472_v12 = vpack.c.bf16 %v3225_v20, %v1984_v41 }
 0x744   :  { %3473 = vmatpush1.bf16.msra.mxu0 %v3472_v12  ;;  %3535 = vmatpush1.bf16.msra.mxu1 %v3472_v12 }
 0x745   :  { %3474 = vmatprep.subr.bf16.mxu0 %v5965_v25  ;;  %3520 = vmatprep.subr.bf16.mxu1 %v5965_v25 }
 0x748   :  { %v3228_v21 = vpop.f32.mrb[98].mxu0 }
 0x749   :  { %v1994_v31 = vpop.f32.mrb[99].mxu0 }
 0x74a   :  { %v3475_v19 = vpack.c.bf16 %v3228_v21, %v1994_v31 }
 0x74c   :  { %3476 = vmatpush1.bf16.msra.mxu0 %v3475_v19  ;;  %3536 = vmatpush1.bf16.msra.mxu1 %v3475_v19 }
 0x74d   :  { %3477 = vmatprep.subr.bf16.mxu0 %v5965_v25  ;;  %3521 = vmatprep.subr.bf16.mxu1 %v5965_v25 }
 0x750   :  { %v3231_v45 = vpop.f32.mrb[100].mxu0 }
 0x751   :  { %v2004_v53 = vpop.f32.mrb[101].mxu0 }
 0x752   :  { %v3478_v36 = vpack.c.bf16 %v3231_v45, %v2004_v53 }
 0x754   :  { %3479 = vmatpush1.bf16.msra.mxu0 %v3478_v36  ;;  %3537 = vmatpush1.bf16.msra.mxu1 %v3478_v36 }
 0x755   :  { %3480 = vmatprep.subr.bf16.mxu0 %v5965_v25  ;;  %3522 = vmatprep.subr.bf16.mxu1 %v5965_v25 }
 0x758   :  { %v3234_v54 = vpop.f32.mrb[102].mxu0 }
 0x759   :  { %v2014_v58 = vpop.f32.mrb[103].mxu0 }
 0x75a   :  { %v3481_v9 = vpack.c.bf16 %v3234_v54, %v2014_v58 }
 0x75c   :  { %3482 = vmatpush1.bf16.msra.mxu0 %v3481_v9  ;;  %3538 = vmatpush1.bf16.msra.mxu1 %v3481_v9 }
 0x75d   :  { %3483 = vmatprep.subr.bf16.mxu0 %v5965_v25  ;;  %3523 = vmatprep.subr.bf16.mxu1 %v5965_v25 }
 0x760   :  { %v3237_v62 = vpop.f32.mrb[104].mxu0 }
 0x761   :  { %v2024_v3 = vpop.f32.mrb[105].mxu0 }
 0x762   :  { %v3484_v49 = vpack.c.bf16 %v3237_v62, %v2024_v3 }
 0x764   :  { %3485 = vmatpush1.bf16.msra.mxu0 %v3484_v49  ;;  %3539 = vmatpush1.bf16.msra.mxu1 %v3484_v49 }
 0x765   :  { %3486 = vmatprep.subr.bf16.mxu0 %v5965_v25  ;;  %3524 = vmatprep.subr.bf16.mxu1 %v5965_v25 }
 0x768   :  { %v3240_v20 = vpop.f32.mrb[106].mxu0 }
 0x769   :  { %v2034_v41 = vpop.f32.mrb[107].mxu0 }
 0x76a   :  { %v3487_v12 = vpack.c.bf16 %v3240_v20, %v2034_v41 }
 0x76c   :  { %3488 = vmatpush1.bf16.msra.mxu0 %v3487_v12  ;;  %3540 = vmatpush1.bf16.msra.mxu1 %v3487_v12 }
 0x76d   :  { %3489 = vmatprep.subr.bf16.mxu0 %v5965_v25  ;;  %3525 = vmatprep.subr.bf16.mxu1 %v5965_v25 }
 0x770   :  { %v3243_v21 = vpop.f32.mrb[108].mxu0 }
 0x771   :  { %v2044_v31 = vpop.f32.mrb[109].mxu0 }
 0x772   :  { %v3490_v19 = vpack.c.bf16 %v3243_v21, %v2044_v31 }
 0x774   :  { %3491 = vmatpush1.bf16.msra.mxu0 %v3490_v19  ;;  %3541 = vmatpush1.bf16.msra.mxu1 %v3490_v19 }
 0x775   :  { %3492 = vmatprep.subr.bf16.mxu0 %v5965_v25  ;;  %3526 = vmatprep.subr.bf16.mxu1 %v5965_v25 }
 0x778   :  { %v3246_v45 = vpop.f32.mrb[110].mxu0 }
 0x779   :  { %v2054_v53 = vpop.f32.mrb[111].mxu0 }
 0x77a   :  { %v3493_v36 = vpack.c.bf16 %v3246_v45, %v2054_v53 }
 0x77c   :  { %3494 = vmatpush1.bf16.msra.mxu0 %v3493_v36  ;;  %3542 = vmatpush1.bf16.msra.mxu1 %v3493_v36 }
 0x77d   :  { %3495 = vmatprep.subr.bf16.mxu0 %v5965_v25  ;;  %3527 = vmatprep.subr.bf16.mxu1 %v5965_v25 }
 0x780   :  { %v3249_v54 = vpop.f32.mrb[112].mxu0 }
 0x781   :  { %v2064_v58 = vpop.f32.mrb[113].mxu0 }
 0x782   :  { %v3496_v9 = vpack.c.bf16 %v3249_v54, %v2064_v58 }
 0x784   :  { %3497 = vmatpush1.bf16.msra.mxu0 %v3496_v9  ;;  %3543 = vmatpush1.bf16.msra.mxu1 %v3496_v9 }
 0x785   :  { %3498 = vmatprep.subr.bf16.mxu0 %v5965_v25  ;;  %3528 = vmatprep.subr.bf16.mxu1 %v5965_v25 }
 0x788   :  { %v3252_v62 = vpop.f32.mrb[114].mxu0 }
 0x789   :  { %v2074_v3 = vpop.f32.mrb[115].mxu0 }
 0x78a   :  { %v3499_v49 = vpack.c.bf16 %v3252_v62, %v2074_v3 }
 0x78c   :  { %3500 = vmatpush1.bf16.msra.mxu0 %v3499_v49  ;;  %3544 = vmatpush1.bf16.msra.mxu1 %v3499_v49 }
 0x78d   :  { %3501 = vmatprep.subr.bf16.mxu0 %v5965_v25  ;;  %3529 = vmatprep.subr.bf16.mxu1 %v5965_v25 }
 0x790   :  { %v3255_v20 = vpop.f32.mrb[116].mxu0 }
 0x791   :  { %v2084_v41 = vpop.f32.mrb[117].mxu0 }
 0x792   :  { %v3502_v12 = vpack.c.bf16 %v3255_v20, %v2084_v41 }
 0x794   :  { %3503 = vmatpush1.bf16.msra.mxu0 %v3502_v12  ;;  %3545 = vmatpush1.bf16.msra.mxu1 %v3502_v12 }
 0x795   :  { %3504 = vmatprep.subr.bf16.mxu0 %v5965_v25  ;;  %3530 = vmatprep.subr.bf16.mxu1 %v5965_v25 }
 0x798   :  { %v3258_v21 = vpop.f32.mrb[118].mxu0 }
 0x799   :  { %v2094_v31 = vpop.f32.mrb[119].mxu0 }
 0x79a   :  { %v3505_v19 = vpack.c.bf16 %v3258_v21, %v2094_v31 }
 0x79c   :  { %3506 = vmatpush1.bf16.msra.mxu0 %v3505_v19  ;;  %3546 = vmatpush1.bf16.msra.mxu1 %v3505_v19 }
 0x79d   :  { %3507 = vmatprep.subr.bf16.mxu0 %v5965_v25  ;;  %3531 = vmatprep.subr.bf16.mxu1 %v5965_v25 }
 0x7a0   :  { %v3261_v45 = vpop.f32.mrb[120].mxu0 }
 0x7a1   :  { %v2104_v53 = vpop.f32.mrb[121].mxu0 }
 0x7a2   :  { %v3508_v36 = vpack.c.bf16 %v3261_v45, %v2104_v53 }
 0x7a4   :  { %3509 = vmatpush1.bf16.msra.mxu0 %v3508_v36  ;;  %3547 = vmatpush1.bf16.msra.mxu1 %v3508_v36 }
 0x7a5   :  { %3510 = vmatprep.subr.bf16.mxu0 %v5965_v25  ;;  %3532 = vmatprep.subr.bf16.mxu1 %v5965_v25 }
 0x7a8   :  { %v3264_v54 = vpop.f32.mrb[122].mxu0 }
 0x7a9   :  { %v2114_v58 = vpop.f32.mrb[123].mxu0 }
 0x7aa   :  { %v3511_v9 = vpack.c.bf16 %v3264_v54, %v2114_v58 }
 0x7ac   :  { %3512 = vmatpush1.bf16.msra.mxu0 %v3511_v9  ;;  %3548 = vmatpush1.bf16.msra.mxu1 %v3511_v9 }
 0x7ad   :  { %3513 = vmatprep.subr.bf16.mxu0 %v5965_v25  ;;  %3533 = vmatprep.subr.bf16.mxu1 %v5965_v25 }
 0x7b0   :  { %v3267_v62 = vpop.f32.mrb[124].mxu0 }
 0x7b1   :  { %v2124_v3 = vpop.f32.mrb[125].mxu0 }
 0x7b2   :  { %v3514_v49 = vpack.c.bf16 %v3267_v62, %v2124_v3 }
 0x7b4   :  { %3515 = vmatpush1.bf16.msra.mxu0 %v3514_v49  ;;  %3549 = vmatpush1.bf16.msra.mxu1 %v3514_v49 }
 0x7b5   :  { %3516 = vmatprep.subr.bf16.mxu0 %v5965_v25  ;;  %3534 = vmatprep.subr.bf16.mxu1 %v5965_v25  ;;  %v6026_v25 = vld [vmem:[#allocation34_spill] sm:$0xff] }
 0x7b8   :  { %v3270_v20 = vpop.f32.mrb[126].mxu0 }
 0x7b9   :  { %v2134_v41 = vpop.f32.mrb[127].mxu0 }
 0x7ba   :  { %v3517_v12 = vpack.c.bf16 %v3270_v20, %v2134_v41 }
 0x7bc   :  { %3518 = vmatpush1.bf16.msra.mxu0 %v3517_v12  ;;  %3550 = vmatpush1.bf16.msra.mxu1 %v3517_v12 }
 0x7bf   :  { %2215 = vmatmul.mubr.f32.vlgmr.msra.gmra.mrb[128].mxu0 %v4945_v57  ;;  %2360 = vmatmul.mubr.f32.vlgmr.msra.gmra.mrb[192].mxu1 %v5297_v8  ;;  %v6029_v8 = vld [vmem:[#allocation37_spill] sm:$0xff] }
 0x7c0   :  { %2219 = vmatprep.mubr.f32.mxu0 %v4951_v60  ;;  %2364 = vmatprep.mubr.f32.mxu1 %v5303_v4  ;;  %v6028_v4 = vld [vmem:[#allocation36_spill] sm:$0xff] }
 0x7c3   :  { %2220 = vmatmul.mubr.f32.gmra.mrb[130].mxu0 %v4957_v61  ;;  %2365 = vmatmul.mubr.f32.gmra.mrb[194].mxu1 %v5309_v16 }
 0x7c4   :  { %2224 = vmatprep.mubr.f32.mxu0 %v4963_v63  ;;  %2369 = vmatprep.mubr.f32.mxu1 %v5315_v0  ;;  %v6027_v0 = vld [vmem:[#allocation35_spill] sm:$0xff] }
 0x7c7   :  { %2225 = vmatmul.mubr.f32.gmra.mrb[132].mxu0 %v4969_v2  ;;  %2370 = vmatmul.mubr.f32.gmra.mrb[196].mxu1 %v5321_v24  ;;  %v6030_v24 = vld [vmem:[#allocation38_spill] sm:$0xff] }
 0x7c8   :  { %2229 = vmatprep.mubr.f32.mxu0 %v4975_v5 }
 0x7cb   :  { %2230 = vmatmul.mubr.f32.gmra.mrb[134].mxu0 %v4981_v6 }
 0x7cc   :  { %2234 = vmatprep.mubr.f32.mxu0 %v4987_v10 }
 0x7cf   :  { %2235 = vmatmul.mubr.f32.gmra.mrb[136].mxu0 %v4993_v11 }
 0x7d0   :  { %2239 = vmatprep.mubr.f32.mxu0 %v4999_v14 }
 0x7d3   :  { %2240 = vmatmul.mubr.f32.gmra.mrb[138].mxu0 %v5005_v35 }
 0x7d4   :  { %2244 = vmatprep.mubr.f32.mxu0 %v5011_v38 }
 0x7d7   :  { %2245 = vmatmul.mubr.f32.gmra.mrb[140].mxu0 %v5017_v26 }
 0x7d8   :  { %2249 = vmatprep.mubr.f32.mxu0 %v5023_v15 }
 0x7db   :  { %2250 = vmatmul.mubr.f32.gmra.mrb[142].mxu0 %v5029_v33 }
 0x7dc   :  { %2254 = vmatprep.mubr.f32.mxu0 %v5035_v18 }
 0x7df   :  { %2255 = vmatmul.mubr.f32.gmra.mrb[144].mxu0 %v5041_v13 }
 0x7e0   :  { %2259 = vmatprep.mubr.f32.mxu0 %v5047_v23 }
 0x7e3   :  { %2260 = vmatmul.mubr.f32.gmra.mrb[146].mxu0 %v5053_v29 }
 0x7e4   :  { %2264 = vmatprep.mubr.f32.mxu0 %v5059_v37 }
 0x7e7   :  { %2265 = vmatmul.mubr.f32.gmra.mrb[148].mxu0 %v5065_v39 }
 0x7e8   :  { %2269 = vmatprep.mubr.f32.mxu0 %v5071_v40 }
 0x7eb   :  { %2270 = vmatmul.mubr.f32.gmra.mrb[150].mxu0 %v5077_v43 }
 0x7ec   :  { %2274 = vmatprep.mubr.f32.mxu0 %v5083_v44 }
 0x7ef   :  { %2275 = vmatmul.mubr.f32.gmra.mrb[152].mxu0 %v5089_v46 }
 0x7f0   :  { %2279 = vmatprep.mubr.f32.mxu0 %v5095_v48 }
 0x7f3   :  { %2280 = vmatmul.mubr.f32.gmra.mrb[154].mxu0 %v5101_v50 }
 0x7f4   :  { %2284 = vmatprep.mubr.f32.mxu0 %v5107_v51 }
 0x7f7   :  { %2285 = vmatmul.mubr.f32.gmra.mrb[156].mxu0 %v5113_v55 }
 0x7f8   :  { %2289 = vmatprep.mubr.f32.mxu0 %v5119_v56 }
 0x7fb   :  { %2290 = vmatmul.mubr.f32.gmra.mrb[158].mxu0 %v5125_v22 }
 0x7fc   :  { %2294 = vmatprep.mubr.f32.mxu0 %v5131_v28 }
 0x7ff   :  { %2295 = vmatmul.mubr.f32.gmra.mrb[160].mxu0 %v5137_v7 }
 0x800   :  { %2299 = vmatprep.mubr.f32.mxu0 %v5143_v1  ;;  %v5521_v1 = vld [vmem:[%s5888_s9] ss:$0 sm:$0xff]  ;;  %s3876_s9 = smov 96  }
 0x803   :  { %2300 = vmatmul.mubr.f32.gmra.mrb[162].mxu0 %v5149_v59  ;;  %v6039_v59 = vld [vmem:[#allocation47_spill] sm:$0xff] }
 0x804   :  { %2304 = vmatprep.mubr.f32.mxu0 %v5155_v52  ;;  %v6038_v52 = vld [vmem:[#allocation46_spill] sm:$0xff] }
 0x807   :  { %2305 = vmatmul.mubr.f32.gmra.mrb[164].mxu0 %v5161_v47  ;;  %v6037_v47 = vld [vmem:[#allocation45_spill] sm:$0xff] }
 0x808   :  { %2309 = vmatprep.mubr.f32.mxu0 %v5167_v42  ;;  %v6031_v42 = vld [vmem:[#allocation39_spill] sm:$0xff] }
 0x80b   :  { %2310 = vmatmul.mubr.f32.gmra.mrb[166].mxu0 %v5173_v30  ;;  %v6032_v30 = vld [vmem:[#allocation40_spill] sm:$0xff] }
 0x80c   :  { %2314 = vmatprep.mubr.f32.mxu0 %v5179_v34  ;;  %v6033_v34 = vld [vmem:[#allocation41_spill] sm:$0xff] }
 0x80f   :  { %2315 = vmatmul.mubr.f32.gmra.mrb[168].mxu0 %v5185_v27  ;;  %v6034_v27 = vld [vmem:[#allocation42_spill] sm:$0xff] }
 0x810   :  { %2319 = vmatprep.mubr.f32.mxu0 %v5191_v32  ;;  %v6035_v32 = vld [vmem:[#allocation43_spill] sm:$0xff] }
 0x813   :  { %2320 = vmatmul.mubr.f32.gmra.mrb[170].mxu0 %v5197_v17  ;;  %v6036_v17 = vld [vmem:[#allocation44_spill] sm:$0xff] }
 0x814   :  { %2324 = vmatprep.mubr.f32.mxu0 %v6026_v25 }
 0x817   :  { %2325 = vmatmul.mubr.f32.gmra.mrb[172].mxu0 %v6027_v0 }
 0x818   :  { %2329 = vmatprep.mubr.f32.mxu0 %v6028_v4 }
 0x81b   :  { %2330 = vmatmul.mubr.f32.gmra.mrb[174].mxu0 %v6029_v8 }
 0x81c   :  { %2334 = vmatprep.mubr.f32.mxu0 %v6030_v24 }
 0x81f   :  { %2335 = vmatmul.mubr.f32.gmra.mrb[176].mxu0 %v6031_v42 }
 0x820   :  { %2339 = vmatprep.mubr.f32.mxu0 %v6032_v30 }
 0x823   :  { %2340 = vmatmul.mubr.f32.gmra.mrb[178].mxu0 %v6033_v34 }
 0x824   :  { %2344 = vmatprep.mubr.f32.mxu0 %v6034_v27 }
 0x827   :  { %2345 = vmatmul.mubr.f32.gmra.mrb[180].mxu0 %v6035_v32 }
 0x828   :  { %2349 = vmatprep.mubr.f32.mxu0 %v6036_v17 }
 0x82b   :  { %2350 = vmatmul.mubr.f32.gmra.mrb[182].mxu0 %v6037_v47 }
 0x82c   :  { %2354 = vmatprep.mubr.f32.mxu0 %v6038_v52 }
 0x82f   :  { %2355 = vmatmul.mubr.f32.gmra.mrb[184].mxu0 %v6039_v59 }
 0x892   :  { %v2216_v7 = vpop.f32.mrb[128].mxu0  ;;  %v2361_v16 = vpop.f32.mrb[192].mxu1 }
 0x893   :  { %v2217_v22 = vadd.f32 %v5521_v1, %v2216_v7  ;;  %v2362_v28 = vadd.f32 %v5521_v1, %v2361_v16  ;;  %v2218_v57 = vpop.f32.mrb[129].mxu0  ;;  %v2363_v60 = vpop.f32.mrb[193].mxu1 }
 0x895   :  { %3746 = vtanh.f32 %v2217_v22 }
 0x896   :  { %3748 = vtanh.f32 %v2362_v28  ;;  %v2221_v61 = vpop.f32.mrb[130].mxu0  ;;  %v5525_v63 = vpop.f32.mrb[194].mxu1 }
 0x897   :  { %v2222_v2 = vadd.f32 %v5521_v1, %v2221_v61  ;;  %v2223_v5 = vpop.f32.mrb[131].mxu0  ;;  %v2368_v6 = vpop.f32.mrb[195].mxu1 }
 0x898   :  { %v5557_v61 = vpop.permute.xlu0 %2407 }
 0x899   :  { %3750 = vtanh.f32 %v2222_v2  ;;  %v5560_v2 = vpop.permute.xlu1 %2411 }
 0x89a   :  { %v2226_v10 = vpop.f32.mrb[132].mxu0  ;;  %v5528_v11 = vpop.f32.mrb[196].mxu1 }
 0x89b   :  { %v2227_v14 = vadd.f32 %v5521_v1, %v2226_v10  ;;  %v2228_v35 = vpop.f32.mrb[133].mxu0  ;;  %v2373_v38 = vpop.f32.mrb[197].mxu1 }
 0x89c   :  { %v5564_v35 = vpop.permute.xlu0 %2409 }
 0x89d   :  { %3752 = vtanh.f32 %v2227_v14 }
 0x89e   :  { %v2231_v26 = vpop.f32.mrb[134].mxu0 }
 0x89f   :  { %v3747_v15 = vpop.eup %3746  ;;  %v2232_v33 = vadd.f32 %v5521_v1, %v2231_v26  ;;  %v2233_v18 = vpop.f32.mrb[135].mxu0 }
 0x8a0   :  { %v3749_v13 = vpop.eup %3748  ;;  %2535 = vrot.lane.b32.xlu0 %v3747_v15, %s3876_s9  ;;  %v5566_v15 = vpop.permute.xlu1 %2413 }
 0x8a1   :  { %3754 = vtanh.f32 %v2232_v33  ;;  %2593 = vrot.lane.b32.xlu1 %v3749_v13, %s3876_s9  ;;  %v5570_v13 = vpop.permute.xlu0 %2415 }
 0x8a2   :  { %v2236_v23 = vpop.f32.mrb[136].mxu0 }
 0x8a3   :  { %v3751_v29 = vpop.eup %3750  ;;  %v2237_v37 = vadd.f32 %v5521_v1, %v2236_v23  ;;  %v2238_v39 = vpop.f32.mrb[137].mxu0 }
 0x8a5   :  { %3756 = vtanh.f32 %v2237_v37  ;;  %2537 = vrot.lane.b32.xlu1 %v3751_v29, %s3876_s9  ;;  %v5572_v37 = vpop.permute.xlu1 %2417 }
 0x8a6   :  { %v2241_v40 = vpop.f32.mrb[138].mxu0 }
 0x8a7   :  { %v3753_v43 = vpop.eup %3752  ;;  %v2242_v44 = vadd.f32 %v5521_v1, %v2241_v40  ;;  %v2243_v46 = vpop.f32.mrb[139].mxu0 }
 0x8a8   :  { %2539 = vrot.lane.b32.xlu0 %v3753_v43, %s3876_s9  ;;  %v5576_v43 = vpop.permute.xlu0 %2419 }
 0x8a9   :  { %3758 = vtanh.f32 %v2242_v44 }
 0x8aa   :  { %v2246_v48 = vpop.f32.mrb[140].mxu0 }
 0x8ab   :  { %v3755_v50 = vpop.eup %3754  ;;  %v2247_v51 = vadd.f32 %v5521_v1, %v2246_v48  ;;  %v2248_v55 = vpop.f32.mrb[141].mxu0 }
 0x8ac   :  { %2541 = vrot.lane.b32.xlu1 %v3755_v50, %s3876_s9  ;;  %v5578_v48 = vpop.permute.xlu1 %2421  ;;  %v5582_v55 = vpop.permute.xlu0 %2423 }
 0x8ad   :  { %3760 = vtanh.f32 %v2247_v51 }
 0x8ae   :  { %v2251_v56 = vpop.f32.mrb[142].mxu0 }
 0x8af   :  { %v3757_v21 = vpop.eup %3756  ;;  %v2252_v31 = vadd.f32 %v5521_v1, %v2251_v56  ;;  %v2253_v19 = vpop.f32.mrb[143].mxu0 }
 0x8b0   :  { %2543 = vrot.lane.b32.xlu0 %v3757_v21, %s3876_s9 }
 0x8b1   :  { %3762 = vtanh.f32 %v2252_v31  ;;  %v5584_v31 = vpop.permute.xlu1 %2425 }
 0x8b2   :  { %v2256_v45 = vpop.f32.mrb[144].mxu0 }
 0x8b3   :  { %v3759_v53 = vpop.eup %3758  ;;  %v2257_v36 = vadd.f32 %v5521_v1, %v2256_v45  ;;  %v2258_v54 = vpop.f32.mrb[145].mxu0 }
 0x8b4   :  { %2545 = vrot.lane.b32.xlu1 %v3759_v53, %s3876_s9  ;;  %v5588_v53 = vpop.permute.xlu0 %2427 }
 0x8b5   :  { %3764 = vtanh.f32 %v2257_v36 }
 0x8b6   :  { %v2261_v58 = vpop.f32.mrb[146].mxu0 }
 0x8b7   :  { %v3761_v9 = vpop.eup %3760  ;;  %v2262_v62 = vadd.f32 %v5521_v1, %v2261_v58  ;;  %v2263_v3 = vpop.f32.mrb[147].mxu0 }
 0x8b8   :  { %2547 = vrot.lane.b32.xlu0 %v3761_v9, %s3876_s9  ;;  %v5590_v58 = vpop.permute.xlu1 %2429  ;;  %v5594_v3 = vpop.permute.xlu0 %2431 }
 0x8b9   :  { %3766 = vtanh.f32 %v2262_v62 }
 0x8ba   :  { %v2266_v49 = vpop.f32.mrb[148].mxu0 }
 0x8bb   :  { %v3763_v20 = vpop.eup %3762  ;;  %v2267_v41 = vadd.f32 %v5521_v1, %v2266_v49  ;;  %v2268_v12 = vpop.f32.mrb[149].mxu0 }
 0x8bc   :  { %2549 = vrot.lane.b32.xlu1 %v3763_v20, %s3876_s9 }
 0x8bd   :  { %3768 = vtanh.f32 %v2267_v41  ;;  %v5596_v41 = vpop.permute.xlu1 %2433 }
 0x8be   :  { %v2271_v25 = vpop.f32.mrb[150].mxu0 }
 0x8bf   :  { %v3765_v0 = vpop.eup %3764  ;;  %v2272_v4 = vadd.f32 %v5521_v1, %v2271_v25  ;;  %v2273_v8 = vpop.f32.mrb[151].mxu0 }
 0x8c0   :  { %2551 = vrot.lane.b32.xlu0 %v3765_v0, %s3876_s9  ;;  %v5600_v0 = vpop.permute.xlu0 %2435 }
 0x8c1   :  { %3770 = vtanh.f32 %v2272_v4 }
 0x8c2   :  { %v2276_v24 = vpop.f32.mrb[152].mxu0 }
 0x8c3   :  { %v3767_v42 = vpop.eup %3766  ;;  %v2277_v30 = vadd.f32 %v5521_v1, %v2276_v24  ;;  %v2278_v34 = vpop.f32.mrb[153].mxu0 }
 0x8c4   :  { %2553 = vrot.lane.b32.xlu1 %v3767_v42, %s3876_s9  ;;  %v5602_v24 = vpop.permute.xlu1 %2437  ;;  %v5606_v34 = vpop.permute.xlu0 %2439 }
 0x8c5   :  { %3772 = vtanh.f32 %v2277_v30 }
 0x8c6   :  { %v2281_v27 = vpop.f32.mrb[154].mxu0 }
 0x8c7   :  { %v3769_v32 = vpop.eup %3768  ;;  %v2282_v17 = vadd.f32 %v5521_v1, %v2281_v27  ;;  %v2283_v47 = vpop.f32.mrb[155].mxu0 }
 0x8c8   :  { %2555 = vrot.lane.b32.xlu0 %v3769_v32, %s3876_s9 }
 0x8c9   :  { %3774 = vtanh.f32 %v2282_v17  ;;  %v5608_v17 = vpop.permute.xlu1 %2441 }
 0x8ca   :  { %v2286_v52 = vpop.f32.mrb[156].mxu0 }
 0x8cb   :  { %v3771_v59 = vpop.eup %3770  ;;  %v2287_v7 = vadd.f32 %v5521_v1, %v2286_v52  ;;  %v2288_v16 = vpop.f32.mrb[157].mxu0 }
 0x8cc   :  { %2557 = vrot.lane.b32.xlu1 %v3771_v59, %s3876_s9  ;;  %v5612_v59 = vpop.permute.xlu0 %2443 }
 0x8cd   :  { %3776 = vtanh.f32 %v2287_v7 }
 0x8ce   :  { %v2291_v22 = vpop.f32.mrb[158].mxu0 }
 0x8cf   :  { %v3773_v28 = vpop.eup %3772  ;;  %v2292_v57 = vadd.f32 %v5521_v1, %v2291_v22  ;;  %v2293_v60 = vpop.f32.mrb[159].mxu0 }
 0x8d0   :  { %2559 = vrot.lane.b32.xlu0 %v3773_v28, %s3876_s9  ;;  %v5614_v22 = vpop.permute.xlu1 %2445  ;;  %v5618_v60 = vpop.permute.xlu0 %2447 }
 0x8d1   :  { %3778 = vtanh.f32 %v2292_v57 }
 0x8d2   :  { %v2296_v5 = vpop.f32.mrb[160].mxu0 }
 0x8d3   :  { %v3775_v6 = vpop.eup %3774  ;;  %v2297_v10 = vadd.f32 %v5521_v1, %v2296_v5  ;;  %v2298_v14 = vpop.f32.mrb[161].mxu0 }
 0x8d4   :  { %2561 = vrot.lane.b32.xlu1 %v3775_v6, %s3876_s9 }
 0x8d5   :  { %3780 = vtanh.f32 %v2297_v10  ;;  %v5620_v10 = vpop.permute.xlu1 %2449 }
 0x8d6   :  { %v2301_v38 = vpop.f32.mrb[162].mxu0 }
 0x8d7   :  { %v3777_v26 = vpop.eup %3776  ;;  %v2302_v33 = vadd.f32 %v5521_v1, %v2301_v38  ;;  %v2303_v18 = vpop.f32.mrb[163].mxu0 }
 0x8d8   :  { %2563 = vrot.lane.b32.xlu0 %v3777_v26, %s3876_s9  ;;  %v5624_v26 = vpop.permute.xlu0 %2451 }
 0x8d9   :  { %3782 = vtanh.f32 %v2302_v33 }
 0x8da   :  { %v2306_v23 = vpop.f32.mrb[164].mxu0 }
 0x8db   :  { %v3779_v29 = vpop.eup %3778  ;;  %v2307_v39 = vadd.f32 %v5521_v1, %v2306_v23  ;;  %v2308_v40 = vpop.f32.mrb[165].mxu0 }
 0x8dc   :  { %2565 = vrot.lane.b32.xlu1 %v3779_v29, %s3876_s9  ;;  %v5626_v23 = vpop.permute.xlu1 %2453  ;;  %v2372_v40 = vadd.f32 %v5521_v1, %v5528_v11 }
 0x8dd   :  { %3784 = vtanh.f32 %v2307_v39 }
 0x8de   :  { %v2311_v44 = vpop.f32.mrb[166].mxu0 }
 0x8df   :  { %v3781_v46 = vpop.eup %3780  ;;  %v2312_v50 = vadd.f32 %v5521_v1, %v2311_v44  ;;  %v2313_v51 = vpop.f32.mrb[167].mxu0 }
 0x8e0   :  { %2567 = vrot.lane.b32.xlu0 %v3781_v46, %s3876_s9  ;;  %v5632_v44 = vpop.permute.xlu0 %2455  ;;  %v5634_v51 = vpop.permute.xlu1 %2457 }
 0x8e1   :  { %3786 = vtanh.f32 %v2312_v50 }
 0x8e2   :  { %v2316_v56 = vpop.f32.mrb[168].mxu0 }
 0x8e3   :  { %v3783_v21 = vpop.eup %3782  ;;  %v2317_v19 = vadd.f32 %v5521_v1, %v2316_v56  ;;  %v2318_v45 = vpop.f32.mrb[169].mxu0 }
 0x8e4   :  { %2569 = vrot.lane.b32.xlu1 %v3783_v21, %s3876_s9  ;;  %v5640_v11 = vpop.permute.xlu0 %2459 }
 0x8e5   :  { %3788 = vtanh.f32 %v2317_v19  ;;  %v2367_v19 = vadd.f32 %v5521_v1, %v5525_v63  ;;  %v6040_v63 = vld [vmem:[#allocation2_spill] sm:$0xff] }
 0x8e6   :  { %v2321_v36 = vpop.f32.mrb[170].mxu0 }
 0x8e7   :  { %v3785_v54 = vpop.eup %3784  ;;  %v2322_v9 = vadd.f32 %v5521_v1, %v2321_v36  ;;  %v2323_v62 = vpop.f32.mrb[171].mxu0 }
 0x8e8   :  { %2571 = vrot.lane.b32.xlu0 %v3785_v54, %s3876_s9  ;;  %v5642_v36 = vpop.permute.xlu1 %2461  ;;  %v5645_v54 = vpop.permute.xlu0 %2463 }
 0x8e9   :  { %3790 = vtanh.f32 %v2322_v9 }
 0x8ea   :  { %v2326_v49 = vpop.f32.mrb[172].mxu0 }
 0x8eb   :  { %v3787_v20 = vpop.eup %3786  ;;  %v2327_v12 = vadd.f32 %v5521_v1, %v2326_v49  ;;  %v2328_v25 = vpop.f32.mrb[173].mxu0 }
 0x8ec   :  { %2573 = vrot.lane.b32.xlu1 %v3787_v20, %s3876_s9  ;;  %v2466_v62 = vpop.permute.xlu1 %2465  ;;  %v5648_v20 = vpop.permute.xlu0 %2467  ;;  %v2631_v25 = vsel %vm1231_vm1, %v6040_v63, %v5557_v61  ;;  %v6042_v61 = vld [vmem:[#allocation3_spill] sm:$0xff] }
 0x8ed   :  { %3792 = vtanh.f32 %v2327_v12 }
 0x8ee   :  { %v2331_v4 = vpop.f32.mrb[174].mxu0 }
 0x8ef   :  { %v3789_v8 = vpop.eup %3788  ;;  %v2332_v42 = vadd.f32 %v5521_v1, %v2331_v4  ;;  %v2333_v30 = vpop.f32.mrb[175].mxu0 }
 0x8f0   :  { %2575 = vrot.lane.b32.xlu0 %v3789_v8, %s3876_s9 }
 0x8f1   :  { %3794 = vtanh.f32 %v2332_v42  ;;  %v6041_v42 = vld [vmem:[#allocation31_spill] sm:$0xff] }
 0x8f2   :  { %v2336_v27 = vpop.f32.mrb[176].mxu0  ;;  %v2660_v30 = vsel %vm1231_vm1, %v6041_v42, %v2466_v62 }
 0x8f3   :  { %v3791_v32 = vpop.eup %3790  ;;  %v2337_v47 = vadd.f32 %v5521_v1, %v2336_v27  ;;  %v2338_v52 = vpop.f32.mrb[177].mxu0 }
 0x8f4   :  { %2577 = vrot.lane.b32.xlu1 %v3791_v32, %s3876_s9  ;;  %v2632_v52 = vsel %vm1231_vm1, %v6042_v61, %v5564_v35  ;;  %v6044_v35 = vld [vmem:[#allocation5_spill] sm:$0xff] }
 0x8f5   :  { %3796 = vtanh.f32 %v2337_v47 }
 0x8f6   :  { %v2341_v7 = vpop.f32.mrb[178].mxu0 }
 0x8f7   :  { %v3793_v16 = vpop.eup %3792  ;;  %v2342_v28 = vadd.f32 %v5521_v1, %v2341_v7  ;;  %v2343_v57 = vpop.f32.mrb[179].mxu0 }
 0x8f8   :  { %2579 = vrot.lane.b32.xlu0 %v3793_v16, %s3876_s9 }
 0x8f9   :  { %3798 = vtanh.f32 %v2342_v28  ;;  %v6043_v28 = vld [vmem:[#allocation4_spill] sm:$0xff] }
 0x8fa   :  { %v2346_v5 = vpop.f32.mrb[180].mxu0  ;;  %v2633_v57 = vsel %vm1231_vm1, %v6043_v28, %v5560_v2  ;;  %v6045_v2 = vld [vmem:[#allocation6_spill] sm:$0xff] }
 0x8fb   :  { %v3795_v6 = vpop.eup %3794  ;;  %v2347_v14 = vadd.f32 %v5521_v1, %v2346_v5  ;;  %v2348_v38 = vpop.f32.mrb[181].mxu0 }
 0x8fc   :  { %2581 = vrot.lane.b32.xlu1 %v3795_v6, %s3876_s9 }
 0x8fd   :  { %3800 = vtanh.f32 %v2347_v14  ;;  %v2634_v14 = vsel %vm1231_vm1, %v6044_v35, %v5566_v15  ;;  %v6046_v15 = vld [vmem:[#allocation7_spill] sm:$0xff] }
 0x8fe   :  { %v2351_v33 = vpop.f32.mrb[182].mxu0 }
 0x8ff   :  { %v3797_v18 = vpop.eup %3796  ;;  %v2352_v29 = vadd.f32 %v5521_v1, %v2351_v33  ;;  %v2353_v39 = vpop.f32.mrb[183].mxu0 }
 0x900   :  { %2583 = vrot.lane.b32.xlu0 %v3797_v18, %s3876_s9  ;;  %v2635_v18 = vsel %vm1231_vm1, %v6045_v2, %v5570_v13  ;;  %v6047_v13 = vld [vmem:[#allocation8_spill] sm:$0xff] }
 0x901   :  { %3802 = vtanh.f32 %v2352_v29 }
 0x902   :  { %v2356_v46 = vpop.f32.mrb[184].mxu0  ;;  %3804 = vtanh.f32 %v2372_v40  ;;  %v2636_v40 = vsel %vm1231_vm1, %v6046_v15, %v5572_v37  ;;  %v6048_v37 = vld [vmem:[#allocation9_spill] sm:$0xff] }
 0x903   :  { %v3799_v50 = vpop.eup %3798  ;;  %v2357_v56 = vadd.f32 %v5521_v1, %v2356_v46  ;;  %v2358_v21 = vpop.f32.mrb[185].mxu0 }
 0x904   :  { %2585 = vrot.lane.b32.xlu1 %v3799_v50, %s3876_s9  ;;  %v5650_v1 = vpop.permute.xlu1 %2469 }
 0x905   :  { %3806 = vtanh.f32 %v2357_v56  ;;  %v2637_v56 = vsel %vm1231_vm1, %v6047_v13, %v5576_v43  ;;  %v6049_v43 = vld [vmem:[#allocation10_spill] sm:$0xff] }
 0x906   :  { %3808 = vtanh.f32 %v2367_v19 }
 0x907   :  { %v3801_v45 = vpop.eup %3800 }
 0x908   :  { %2587 = vrot.lane.b32.xlu0 %v3801_v45, %s3876_s9  ;;  %v2638_v45 = vsel %vm1231_vm1, %v6048_v37, %v5578_v48  ;;  %v6050_v48 = vld [vmem:[#allocation11_spill] sm:$0xff] }
 0x90b   :  { %v3803_v9 = vpop.eup %3802 }
 0x90c   :  { %2589 = vrot.lane.b32.xlu1 %v3803_v9, %s3876_s9  ;;  %v3805_v49 = vpop.eup %3804 }
 0x90f   :  { %v3807_v12 = vpop.eup %3806 }
 0x910   :  { %2597 = vrot.lane.b32.xlu1 %v3805_v49, %s3876_s9  ;;  %2591 = vrot.lane.b32.xlu0 %v3807_v12, %s3876_s9  ;;  %v3809_v8 = vpop.eup %3808  ;;  %v2639_v49 = vsel %vm1231_vm1, %v6049_v43, %v5582_v55  ;;  %v6051_v55 = vld [vmem:[#allocation12_spill] sm:$0xff] }
 0x911   :  { %v2641_v42 = vsel %vm1231_vm1, %v6051_v55, %v5588_v53  ;;  %v6053_v53 = vld [vmem:[#allocation14_spill] sm:$0xff] }
 0x912   :  { %v2536_v4 = vpop.permute.xlu0 %2535 }
 0x913   :  { %v2594_v27 = vpop.permute.xlu1 %2593  ;;  %v2664_v32 = vsel %vm2663_vm3, %v2631_v25, %v2536_v4  ;;  %v2640_v25 = vsel %vm1231_vm1, %v6050_v48, %v5584_v31  ;;  %v6052_v31 = vld [vmem:[#allocation13_spill] sm:$0xff] }
 0x914   :  { %v2693_v47 = vsel %vm2663_vm3, %v2660_v30, %v2594_v27  ;;  %2697 = vst [vmem:[%s5883_s10 + $0x8] sm:$0xff] %v2664_v32  ;;  %2595 = vrot.lane.b32.xlu0 %v3809_v8, %s3876_s9  ;;  %v2642_v32 = vsel %vm1231_vm1, %v6052_v31, %v5590_v58  ;;  %v6054_v58 = vld [vmem:[#allocation15_spill] sm:$0xff] }
 0x915   :  { %2755 = vst [vmem:[%s5883_s10 + $0x1d8] sm:$0xff] %v2693_v47  ;;  %v2644_v28 = vsel %vm1231_vm1, %v6054_v58, %v5596_v41  ;;  %v6056_v41 = vld [vmem:[#allocation17_spill] sm:$0xff] }
 0x917   :  { %v2538_v7 = vpop.permute.xlu1 %2537 }
 0x918   :  { %v2665_v16 = vsel %vm2663_vm3, %v2632_v52, %v2538_v7  ;;  %v2643_v52 = vsel %vm1231_vm1, %v6053_v53, %v5594_v3  ;;  %v6055_v3 = vld [vmem:[#allocation16_spill] sm:$0xff] }
 0x919   :  { %2699 = vst [vmem:[%s5883_s10 + $0x18] sm:$0xff] %v2665_v16 }
 0x91a   :  { %v2540_v5 = vpop.permute.xlu0 %2539 }
 0x91b   :  { %v2666_v6 = vsel %vm2663_vm3, %v2633_v57, %v2540_v5 }
 0x91c   :  { %2701 = vst [vmem:[%s5883_s10 + $0x28] sm:$0xff] %v2666_v6  ;;  %v2645_v6 = vsel %vm1231_vm1, %v6055_v3, %v5600_v0  ;;  %v6057_v0 = vld [vmem:[#allocation18_spill] sm:$0xff] }
 0x91e   :  { %v2542_v38 = vpop.permute.xlu1 %2541 }
 0x91f   :  { %v2667_v33 = vsel %vm2663_vm3, %v2634_v14, %v2542_v38  ;;  %v2646_v38 = vsel %vm1231_vm1, %v6056_v41, %v5602_v24  ;;  %v6058_v24 = vld [vmem:[#allocation19_spill] sm:$0xff] }
 0x920   :  { %2703 = vst [vmem:[%s5883_s10 + $0x38] sm:$0xff] %v2667_v33  ;;  %v2648_v15 = vsel %vm1231_vm1, %v6058_v24, %v5608_v17  ;;  %v6060_v17 = vld [vmem:[#allocation21_spill] sm:$0xff] }
 0x922   :  { %v2544_v29 = vpop.permute.xlu0 %2543 }
 0x923   :  { %v2668_v39 = vsel %vm2663_vm3, %v2635_v18, %v2544_v29  ;;  %v2647_v18 = vsel %vm1231_vm1, %v6057_v0, %v5606_v34  ;;  %v6059_v34 = vld [vmem:[#allocation20_spill] sm:$0xff] }
 0x924   :  { %2705 = vst [vmem:[%s5883_s10 + $0x48] sm:$0xff] %v2668_v39 }
 0x926   :  { %v2546_v46 = vpop.permute.xlu1 %2545 }
 0x927   :  { %v2669_v50 = vsel %vm2663_vm3, %v2636_v40, %v2546_v46 }
 0x928   :  { %2707 = vst [vmem:[%s5883_s10 + $0x58] sm:$0xff] %v2669_v50  ;;  %v2649_v50 = vsel %vm1231_vm1, %v6059_v34, %v5612_v59  ;;  %v6061_v59 = vld [vmem:[#allocation22_spill] sm:$0xff] }
 0x92a   :  { %v2548_v21 = vpop.permute.xlu0 %2547 }
 0x92b   :  { %v2670_v19 = vsel %vm2663_vm3, %v2637_v56, %v2548_v21  ;;  %v2650_v21 = vsel %vm1231_vm1, %v6060_v17, %v5614_v22  ;;  %v6062_v22 = vld [vmem:[#allocation23_spill] sm:$0xff] }
 0x92c   :  { %2709 = vst [vmem:[%s5883_s10 + $0x68] sm:$0xff] %v2670_v19  ;;  %v2652_v43 = vsel %vm1231_vm1, %v6062_v22, %v5620_v10  ;;  %v6064_v10 = vld [vmem:[#allocation25_spill] sm:$0xff] }
 0x92e   :  { %v2550_v9 = vpop.permute.xlu1 %2549 }
 0x92f   :  { %v2671_v62 = vsel %vm2663_vm3, %v2638_v45, %v2550_v9  ;;  %v2651_v45 = vsel %vm1231_vm1, %v6061_v59, %v5618_v60  ;;  %v6063_v60 = vld [vmem:[#allocation24_spill] sm:$0xff] }
 0x930   :  { %2711 = vst [vmem:[%s5883_s10 + $0x78] sm:$0xff] %v2671_v62 }
 0x932   :  { %v2552_v12 = vpop.permute.xlu0 %2551 }
 0x933   :  { %v2672_v63 = vsel %vm2663_vm3, %v2639_v49, %v2552_v12 }
 0x934   :  { %2713 = vst [vmem:[%s5883_s10 + $0x88] sm:$0xff] %v2672_v63  ;;  %v2653_v63 = vsel %vm1231_vm1, %v6063_v60, %v5624_v26  ;;  %v6065_v26 = vld [vmem:[#allocation26_spill] sm:$0xff] }
 0x936   :  { %v2554_v4 = vpop.permute.xlu1 %2553 }
 0x937   :  { %v2673_v8 = vsel %vm2663_vm3, %v2640_v25, %v2554_v4  ;;  %v2654_v4 = vsel %vm1231_vm1, %v6064_v10, %v5626_v23  ;;  %v6066_v23 = vld [vmem:[#allocation27_spill] sm:$0xff] }
 0x938   :  { %2715 = vst [vmem:[%s5883_s10 + $0x98] sm:$0xff] %v2673_v8  ;;  %v2656_v31 = vsel %vm1231_vm1, %v6066_v23, %v5634_v51  ;;  %v6068_v51 = vld [vmem:[#allocation29_spill] sm:$0xff] }
 0x93a   :  { %v2556_v30 = vpop.permute.xlu0 %2555 }
 0x93b   :  { %v2674_v27 = vsel %vm2663_vm3, %v2641_v42, %v2556_v30  ;;  %v2655_v42 = vsel %vm1231_vm1, %v6065_v26, %v5632_v44  ;;  %v6067_v44 = vld [vmem:[#allocation28_spill] sm:$0xff] }
 0x93c   :  { %2717 = vst [vmem:[%s5883_s10 + $0xa8] sm:$0xff] %v2674_v27 }
 0x93e   :  { %v2558_v47 = vpop.permute.xlu1 %2557 }
 0x93f   :  { %v2675_v61 = vsel %vm2663_vm3, %v2642_v32, %v2558_v47 }
 0x940   :  { %2719 = vst [vmem:[%s5883_s10 + $0xb8] sm:$0xff] %v2675_v61  ;;  %v2657_v61 = vsel %vm1231_vm1, %v6067_v44, %v5640_v11  ;;  %v6069_v11 = vld [vmem:[#allocation30_spill] sm:$0xff] }
 0x942   :  { %v2560_v7 = vpop.permute.xlu0 %2559 }
 0x943   :  { %v2676_v16 = vsel %vm2663_vm3, %v2643_v52, %v2560_v7  ;;  %v2658_v7 = vsel %vm1231_vm1, %v6068_v51, %v5642_v36 }
 0x944   :  { %2721 = vst [vmem:[%s5883_s10 + $0xc8] sm:$0xff] %v2676_v16 }
 0x946   :  { %v2562_v57 = vpop.permute.xlu1 %2561 }
 0x947   :  { %v2677_v5 = vsel %vm2663_vm3, %v2644_v28, %v2562_v57  ;;  %v2659_v28 = vsel %vm1231_vm1, %v6069_v11, %v5645_v54  ;;  %v6070_v57 = vld [vmem:[#allocation33_spill] sm:$0xff]  ;;  %v6071_v54 = vld [vmem:[#allocation32_spill] sm:$0xff] }
 0x948   :  { %2723 = vst [vmem:[%s5883_s10 + $0xd8] sm:$0xff] %v2677_v5  ;;  %v2662_v5 = vsel %vm1231_vm1, %v6070_v57, %v5650_v1 }
 0x94a   :  { %v2564_v35 = vpop.permute.xlu0 %2563 }
 0x94b   :  { %v2678_v14 = vsel %vm2663_vm3, %v2645_v6, %v2564_v35 }
 0x94c   :  { %2725 = vst [vmem:[%s5883_s10 + $0xe8] sm:$0xff] %v2678_v14  ;;  %v2661_v14 = vsel %vm1231_vm1, %v6071_v54, %v5648_v20 }
 0x94e   :  { %v2566_v33 = vpop.permute.xlu1 %2565 }
 0x94f   :  { %v2679_v2 = vsel %vm2663_vm3, %v2646_v38, %v2566_v33 }
 0x950   :  { %2727 = vst [vmem:[%s5883_s10 + $0xf8] sm:$0xff] %v2679_v2 }
 0x952   :  { %v2568_v29 = vpop.permute.xlu0 %2567 }
 0x953   :  { %v2680_v39 = vsel %vm2663_vm3, %v2647_v18, %v2568_v29 }
 0x954   :  { %2729 = vst [vmem:[%s5883_s10 + $0x108] sm:$0xff] %v2680_v39 }
 0x956   :  { %v2570_v40 = vpop.permute.xlu1 %2569 }
 0x957   :  { %v2681_v46 = vsel %vm2663_vm3, %v2648_v15, %v2570_v40 }
 0x958   :  { %2731 = vst [vmem:[%s5883_s10 + $0x118] sm:$0xff] %v2681_v46 }
 0x95a   :  { %v2572_v13 = vpop.permute.xlu0 %2571 }
 0x95b   :  { %v2682_v56 = vsel %vm2663_vm3, %v2649_v50, %v2572_v13 }
 0x95c   :  { %2733 = vst [vmem:[%s5883_s10 + $0x128] sm:$0xff] %v2682_v56 }
 0x95e   :  { %v2574_v19 = vpop.permute.xlu1 %2573 }
 0x95f   :  { %v2683_v37 = vsel %vm2663_vm3, %v2650_v21, %v2574_v19 }
 0x960   :  { %2735 = vst [vmem:[%s5883_s10 + $0x138] sm:$0xff] %v2683_v37 }
 0x962   :  { %v2576_v9 = vpop.permute.xlu0 %2575 }
 0x963   :  { %v2684_v62 = vsel %vm2663_vm3, %v2651_v45, %v2576_v9 }
 0x964   :  { %2737 = vst [vmem:[%s5883_s10 + $0x148] sm:$0xff] %v2684_v62 }
 0x966   :  { %v2578_v49 = vpop.permute.xlu1 %2577 }
 0x967   :  { %v2685_v12 = vsel %vm2663_vm3, %v2652_v43, %v2578_v49 }
 0x968   :  { %2739 = vst [vmem:[%s5883_s10 + $0x158] sm:$0xff] %v2685_v12 }
 0x96a   :  { %v2580_v48 = vpop.permute.xlu0 %2579 }
 0x96b   :  { %v2686_v25 = vsel %vm2663_vm3, %v2653_v63, %v2580_v48 }
 0x96c   :  { %2741 = vst [vmem:[%s5883_s10 + $0x168] sm:$0xff] %v2686_v25 }
 0x96e   :  { %v2582_v8 = vpop.permute.xlu1 %2581 }
 0x96f   :  { %v2687_v55 = vsel %vm2663_vm3, %v2654_v4, %v2582_v8 }
 0x970   :  { %2743 = vst [vmem:[%s5883_s10 + $0x178] sm:$0xff] %v2687_v55 }
 0x972   :  { %v2584_v30 = vpop.permute.xlu0 %2583 }
 0x973   :  { %v2688_v27 = vsel %vm2663_vm3, %v2655_v42, %v2584_v30 }
 0x974   :  { %2745 = vst [vmem:[%s5883_s10 + $0x188] sm:$0xff] %v2688_v27 }
 0x976   :  { %v2586_v32 = vpop.permute.xlu1 %2585 }
 0x977   :  { %v2689_v47 = vsel %vm2663_vm3, %v2656_v31, %v2586_v32 }
 0x978   :  { %2747 = vst [vmem:[%s5883_s10 + $0x198] sm:$0xff] %v2689_v47 }
 0x97a   :  { %v2588_v53 = vpop.permute.xlu0 %2587 }
 0x97b   :  { %v2690_v52 = vsel %vm2663_vm3, %v2657_v61, %v2588_v53 }
 0x97c   :  { %2749 = vst [vmem:[%s5883_s10 + $0x1a8] sm:$0xff] %v2690_v52 }
 0x97e   :  { %v2590_v16 = vpop.permute.xlu1 %2589 }
 0x97f   :  { %v2691_v58 = vsel %vm2663_vm3, %v2658_v7, %v2590_v16 }
 0x980   :  { %2751 = vst [vmem:[%s5883_s10 + $0x1b8] sm:$0xff] %v2691_v58 }
 0x982   :  { %v2598_v3 = vpop.permute.xlu1 %2597  ;;  %v2592_v6 = vpop.permute.xlu0 %2591 }
 0x983   :  { %v2695_v35 = vsel %vm2663_vm3, %v2662_v5, %v2598_v3  ;;  %v2692_v36 = vsel %vm2663_vm3, %v2659_v28, %v2592_v6 }
 0x984   :  { %2759 = vst [vmem:[%s5883_s10 + $0x1f8] sm:$0xff] %v2695_v35  ;;  %2753 = vst [vmem:[%s5883_s10 + $0x1c8] sm:$0xff] %v2692_v36 }
 0x986   :  { %v2596_v41 = vpop.permute.xlu0 %2595 }
 0x987   :  { %v2694_v1 = vsel %vm2663_vm3, %v2661_v14, %v2596_v41 }
 0x988   :  { %2757 = vst [vmem:[%s5883_s10 + $0x1e8] sm:$0xff] %v2694_v1 }

// kernel: dgcnn_forward.3
= control target key start
LH: loop header
LB: loop body
LE: loop exit
PB: predicated region body
PF: predicated region fallthrough
CT: control target
= control target key end

     0   :  { %s5307_s0 = inlined_call_operand.vmem [shape: f32[128,256], index: 0, kind: input, shape index: {}]   ;;  %s5308_s1 = inlined_call_operand.vmem [shape: f32[256,16], index: 1, kind: input, shape index: {}]   ;;  %s5309_s2 = inlined_call_operand.vmem [shape: f32[1,16], index: 2, kind: input, shape index: {}]   ;;  %s5310_s3 = inlined_call_operand.vmem [shape: f32[80,32], index: 3, kind: input, shape index: {}]   ;;  %s5311_s4 = inlined_call_operand.vmem [shape: f32[1,32], index: 4, kind: input, shape index: {}]   ;;  %s5312_s5 = inlined_call_operand.vmem [shape: f32[896,128], index: 5, kind: input, shape index: {}]   ;;  %s5313_s6 = inlined_call_operand.vmem [shape: f32[1,128], index: 6, kind: input, shape index: {}]   ;;  %s5314_s7 = inlined_call_operand.vmem [shape: f32[128,8], index: 7, kind: input, shape index: {}]   ;;  %s5315_s8 = inlined_call_operand.vmem [shape: f32[1,8], index: 8, kind: input, shape index: {}]   ;;  %s5316_s9 = inlined_call_operand.hbm [shape: f32[2,8], index: 9, kind: output, shape index: {}]  }
   0x1   :  { %v81_v0 = vld [vmem:[%s5308_s1 + $0x80] sm:$0xff]  ;;  %v82_v1 = vld [vmem:[%s5308_s1 + $0x88] sm:$0xff]  ;;  %v83_v5 = vld [vmem:[%s5308_s1 + $0x90] sm:$0xff] }
   0x2   :  { %v65_v2 = vld [vmem:[%s5308_s1] sm:$0xff]  ;;  %v3231_v3 = vpack.c.bf16 %v82_v1, %v81_v0  ;;  %v66_v4 = vld [vmem:[%s5308_s1 + $0x8] sm:$0xff]  ;;  %v84_v6 = vld [vmem:[%s5308_s1 + $0x98] sm:$0xff] }
   0x3   :  { %v3233_v7 = vpack.c.bf16 %v66_v4, %v65_v2  ;;  %v3235_v8 = vpack.c.bf16 %v84_v6, %v83_v5  ;;  %v67_v9 = vld [vmem:[%s5308_s1 + $0x10] sm:$0xff]  ;;  %v68_v10 = vld [vmem:[%s5308_s1 + $0x18] sm:$0xff]  ;;  %v85_v11 = vld [vmem:[%s5308_s1 + $0xa0] sm:$0xff] }
   0x4   :  { %3232 = vmatprep.subr.bf16.mxu0 %v3231_v3  ;;  %v86_v12 = vld [vmem:[%s5308_s1 + $0xa8] sm:$0xff]  ;;  %v3237_v13 = vpack.c.bf16 %v68_v10, %v67_v9  ;;  %v69_v15 = vld [vmem:[%s5308_s1 + $0x20] sm:$0xff]  ;;  %v87_v17 = vld [vmem:[%s5308_s1 + $0xb0] sm:$0xff] }
   0x5   :  { %3234 = vmatpush3.bf16.msra.mxu0 %v3233_v7  ;;  %v3239_v14 = vpack.c.bf16 %v86_v12, %v85_v11  ;;  %v70_v16 = vld [vmem:[%s5308_s1 + $0x28] sm:$0xff]  ;;  %v88_v18 = vld [vmem:[%s5308_s1 + $0xb8] sm:$0xff]  ;;  %v71_v21 = vld [vmem:[%s5308_s1 + $0x30] sm:$0xff] }
   0x6   :  { %3236 = vmatprep.subr.bf16.mxu0 %v3235_v8  ;;  %v3241_v19 = vpack.c.bf16 %v70_v16, %v69_v15  ;;  %v3243_v20 = vpack.c.bf16 %v88_v18, %v87_v17  ;;  %v72_v22 = vld [vmem:[%s5308_s1 + $0x38] sm:$0xff]  ;;  %v89_v23 = vld [vmem:[%s5308_s1 + $0xc0] sm:$0xff]  ;;  %v90_v24 = vld [vmem:[%s5308_s1 + $0xc8] sm:$0xff] }
   0x7   :  { %v34_v25 = vld [vmem:[%s5307_s0 + $0x8] sm:$0xff]  ;;  %v3245_v26 = vpack.c.bf16 %v72_v22, %v71_v21  ;;  %v3247_v27 = vpack.c.bf16 %v90_v24, %v89_v23  ;;  %v73_v28 = vld [vmem:[%s5308_s1 + $0x40] sm:$0xff]  ;;  %v91_v30 = vld [vmem:[%s5308_s1 + $0xd0] sm:$0xff] }
   0x8   :  { %168 = vmatprep.mubr.f32.mxu0 %v34_v25  ;;  %v74_v29 = vld [vmem:[%s5308_s1 + $0x48] sm:$0xff]  ;;  %v92_v31 = vld [vmem:[%s5308_s1 + $0xd8] sm:$0xff]  ;;  %v75_v34 = vld [vmem:[%s5308_s1 + $0x50] sm:$0xff] }
   0x9   :  { %3238 = vmatpush3.bf16.msra.mxu0 %v3237_v13  ;;  %v3249_v32 = vpack.c.bf16 %v74_v29, %v73_v28  ;;  %v3251_v33 = vpack.c.bf16 %v92_v31, %v91_v30  ;;  %v76_v35 = vld [vmem:[%s5308_s1 + $0x58] sm:$0xff]  ;;  %v93_v36 = vld [vmem:[%s5308_s1 + $0xe0] sm:$0xff]  ;;  %v94_v37 = vld [vmem:[%s5308_s1 + $0xe8] sm:$0xff] }
   0xa   :  { %3240 = vmatprep.subr.bf16.mxu0 %v3239_v14  ;;  %v3253_v38 = vpack.c.bf16 %v76_v35, %v75_v34  ;;  %v3255_v39 = vpack.c.bf16 %v94_v37, %v93_v36  ;;  %v77_v40 = vld [vmem:[%s5308_s1 + $0x60] sm:$0xff]  ;;  %v78_v41 = vld [vmem:[%s5308_s1 + $0x68] sm:$0xff] }
   0xd   :  { %3242 = vmatpush3.bf16.msra.mxu0 %v3241_v19 }
   0xe   :  { %3244 = vmatprep.subr.bf16.mxu0 %v3243_v20 }
  0x11   :  { %3246 = vmatpush3.bf16.msra.mxu0 %v3245_v26 }
  0x12   :  { %3248 = vmatprep.subr.bf16.mxu0 %v3247_v27 }
  0x15   :  { %3250 = vmatpush3.bf16.msra.mxu0 %v3249_v32 }
  0x16   :  { %3252 = vmatprep.subr.bf16.mxu0 %v3251_v33 }
  0x17   :  { %14 = vsyncpa [#allocation4], 0  ;;  %v95_v42 = vld [vmem:[%s5308_s1 + $0xf0] sm:$0xff]  ;;  %v96_v43 = vld [vmem:[%s5308_s1 + $0xf8] sm:$0xff]  ;;  %v3257_v44 = vpack.c.bf16 %v78_v41, %v77_v40  ;;  %v3486_v16 = vmov 1983009808   ;;  %v285_v18 = vlaneseq }
  0x18   :  { %v3259_v45 = vpack.c.bf16 %v96_v43, %v95_v42  ;;  %v79_v46 = vld [vmem:[%s5308_s1 + $0x70] sm:$0xff]  ;;  %v80_v47 = vld [vmem:[%s5308_s1 + $0x78] sm:$0xff]  ;;  %v33_v49 = vld [vmem:[%s5307_s0] sm:$0xff]  ;;  %v283_v17 = vunpack.c.l.s4 %v3486_v16  ;;  %vm1013_vm0 = vcmask 1041409   ;;  %vm1015_vm1 = vcmask 1042434   ;;  %s3489_s10 = smov 48  }
  0x19   :  { %3254 = vmatpush3.bf16.msra.mxu0 %v3253_v38  ;;  %v3261_v48 = vpack.c.bf16 %v80_v47, %v79_v46  ;;  %v36_v50 = vld [vmem:[%s5307_s0 + $0x18] sm:$0xff]  ;;  %v35_v51 = vld [vmem:[%s5307_s0 + $0x10] sm:$0xff]  ;;  %v38_v52 = vld [vmem:[%s5307_s0 + $0x28] sm:$0xff]  ;;  %v286_v21 = vshrl.u32 %v285_v18, 7  ;;  %vm1017_vm2 = vcmask 1043459   ;;  %vm1019_vm3 = vcmask 1044484  }
  0x1a   :  { %3256 = vmatprep.subr.bf16.mxu0 %v3255_v39  ;;  %v37_v53 = vld [vmem:[%s5307_s0 + $0x20] sm:$0xff]  ;;  %v40_v54 = vld [vmem:[%s5307_s0 + $0x38] sm:$0xff]  ;;  %v39_v55 = vld [vmem:[%s5307_s0 + $0x30] sm:$0xff]  ;;  %v284_v20 = vunpack.c.0.s8 %v283_v17  ;;  %vm1021_vm4 = vcmask 1045509   ;;  %vm1023_vm5 = vcmask 1046534   ;;  %vm1025_vm6 = vcmask 1047559  }
  0x1b   :  { %v42_v56 = vld [vmem:[%s5307_s0 + $0x48] sm:$0xff]  ;;  %v41_v57 = vld [vmem:[%s5307_s0 + $0x40] sm:$0xff]  ;;  %v44_v58 = vld [vmem:[%s5307_s0 + $0x58] sm:$0xff]  ;;  %v3748_v35 = vsub.s32 0, %v286_v21  ;;  %s3490_s11 = smov 64   ;;  %vm1212_vm7 = vcmask 130048  }
  0x1c   :  { %v43_v59 = vld [vmem:[%s5307_s0 + $0x50] sm:$0xff]  ;;  %v46_v60 = vld [vmem:[%s5307_s0 + $0x68] sm:$0xff]  ;;  %v45_v61 = vld [vmem:[%s5307_s0 + $0x60] sm:$0xff]  ;;  %v3744_v26 = vsub.s32 %v284_v20, %v286_v21  ;;  %vm1217_vm8 = vcmask 261120   ;;  %vm1222_vm9 = vcmask 392192   ;;  %vm1227_vm10 = vcmask 523264  }
  0x1d   :  { %3258 = vmatpush3.bf16.msra.mxu0 %v3257_v44  ;;  %v48_v62 = vld [vmem:[%s5307_s0 + $0x78] sm:$0xff]  ;;  %v47_v63 = vld [vmem:[%s5307_s0 + $0x70] sm:$0xff]  ;;  %v50_v0 = vld [vmem:[%s5307_s0 + $0x88] sm:$0xff]  ;;  %vm1249_vm11 = vcmask 654336   ;;  %vm1351_vm12 = vcmask 253952   ;;  %s3491_s25 = smov 96  }
  0x1e   :  { %3260 = vmatprep.subr.bf16.mxu0 %v3259_v45  ;;  %v49_v1 = vld [vmem:[%s5307_s0 + $0x80] sm:$0xff]  ;;  %v52_v2 = vld [vmem:[%s5307_s0 + $0x98] sm:$0xff]  ;;  %v51_v3 = vld [vmem:[%s5307_s0 + $0x90] sm:$0xff]  ;;  %5330 = vst [vmem:[#allocation6_spill] sm:$0xff] %v3744_v26  ;;  %vm1366_vm13 = vcmask 516352   ;;  %vm1372_vm14 = vcmask 778752  }
  0x1f   :  { %v54_v4 = vld [vmem:[%s5307_s0 + $0xa8] sm:$0xff]  ;;  %v53_v5 = vld [vmem:[%s5307_s0 + $0xa0] sm:$0xff]  ;;  %v56_v6 = vld [vmem:[%s5307_s0 + $0xb8] sm:$0xff]  ;;  %vm1379_vm15 = vcmask 1041152  }
  0x20   :  { %v55_v7 = vld [vmem:[%s5307_s0 + $0xb0] sm:$0xff]  ;;  %v58_v8 = vld [vmem:[%s5307_s0 + $0xc8] sm:$0xff]  ;;  %v57_v9 = vld [vmem:[%s5307_s0 + $0xc0] sm:$0xff] }
  0x21   :  { %3262 = vmatpush3.bf16.msra.mxu0 %v3261_v48  ;;  %v60_v10 = vld [vmem:[%s5307_s0 + $0xd8] sm:$0xff]  ;;  %v59_v11 = vld [vmem:[%s5307_s0 + $0xd0] sm:$0xff]  ;;  %v62_v12 = vld [vmem:[%s5307_s0 + $0xe8] sm:$0xff] }
  0x22   :  { %v61_v13 = vld [vmem:[%s5307_s0 + $0xe0] sm:$0xff]  ;;  %v64_v14 = vld [vmem:[%s5307_s0 + $0xf8] sm:$0xff]  ;;  %v63_v15 = vld [vmem:[%s5307_s0 + $0xf0] sm:$0xff]  ;;  %s3487_s0 = smov 16  }
  0x23   :  { %v3741_v22 = vld [vmem:[%s5309_s2] ss:$0 sm:$0xff]  ;;  %s3488_s2 = smov 32  }
  0x24   :  { %169 = vmatmul.mubr.f32.vlgmr.msra.gmra.mrb[0].mxu0 %v33_v49 }
  0x25   :  { %173 = vmatprep.mubr.f32.mxu0 %v36_v50 }
  0x28   :  { %174 = vmatmul.mubr.f32.gmra.mrb[2].mxu0 %v35_v51 }
  0x29   :  { %178 = vmatprep.mubr.f32.mxu0 %v38_v52 }
  0x2c   :  { %179 = vmatmul.mubr.f32.gmra.mrb[4].mxu0 %v37_v53 }
  0x2d   :  { %183 = vmatprep.mubr.f32.mxu0 %v40_v54 }
  0x30   :  { %184 = vmatmul.mubr.f32.gmra.mrb[6].mxu0 %v39_v55 }
  0x31   :  { %188 = vmatprep.mubr.f32.mxu0 %v42_v56 }
  0x34   :  { %189 = vmatmul.mubr.f32.gmra.mrb[8].mxu0 %v41_v57 }
  0x35   :  { %193 = vmatprep.mubr.f32.mxu0 %v44_v58 }
  0x38   :  { %194 = vmatmul.mubr.f32.gmra.mrb[10].mxu0 %v43_v59 }
  0x39   :  { %198 = vmatprep.mubr.f32.mxu0 %v46_v60 }
  0x3c   :  { %199 = vmatmul.mubr.f32.gmra.mrb[12].mxu0 %v45_v61 }
  0x3d   :  { %203 = vmatprep.mubr.f32.mxu0 %v48_v62 }
  0x40   :  { %204 = vmatmul.mubr.f32.gmra.mrb[14].mxu0 %v47_v63 }
  0x41   :  { %208 = vmatprep.mubr.f32.mxu0 %v50_v0 }
  0x44   :  { %209 = vmatmul.mubr.f32.gmra.mrb[16].mxu0 %v49_v1 }
  0x45   :  { %213 = vmatprep.mubr.f32.mxu0 %v52_v2 }
  0x48   :  { %214 = vmatmul.mubr.f32.gmra.mrb[18].mxu0 %v51_v3 }
  0x49   :  { %218 = vmatprep.mubr.f32.mxu0 %v54_v4 }
  0x4c   :  { %219 = vmatmul.mubr.f32.gmra.mrb[20].mxu0 %v53_v5 }
  0x4d   :  { %223 = vmatprep.mubr.f32.mxu0 %v56_v6 }
  0x50   :  { %224 = vmatmul.mubr.f32.gmra.mrb[22].mxu0 %v55_v7 }
  0x51   :  { %228 = vmatprep.mubr.f32.mxu0 %v58_v8 }
  0x54   :  { %229 = vmatmul.mubr.f32.gmra.mrb[24].mxu0 %v57_v9 }
  0x55   :  { %233 = vmatprep.mubr.f32.mxu0 %v60_v10 }
  0x58   :  { %234 = vmatmul.mubr.f32.gmra.mrb[26].mxu0 %v59_v11 }
  0x59   :  { %238 = vmatprep.mubr.f32.mxu0 %v62_v12 }
  0x5c   :  { %239 = vmatmul.mubr.f32.gmra.mrb[28].mxu0 %v61_v13 }
  0x5d   :  { %243 = vmatprep.mubr.f32.mxu0 %v64_v14 }
  0x60   :  { %244 = vmatmul.mubr.f32.gmra.mrb[30].mxu0 %v63_v15 }
  0xf7   :  { %v2894_v19 = vpop.f32.mrb[0].mxu0 }
  0xf8   :  { %v2895_v23 = vpop.f32.mrb[1].mxu0 }
  0xf9   :  { %v2896_v24 = vadd.f32 %v2895_v23, %v2894_v19 }
  0xfb   :  { %v171_v25 = vadd.f32 %v2896_v24, %v3741_v22  ;;  %v2897_v27 = vpop.f32.mrb[2].mxu0 }
  0xfc   :  { %v2898_v28 = vpop.f32.mrb[3].mxu0 }
  0xfd   :  { %v249_v29 = vmax.f32 %v171_v25, 0.0  ;;  %v2899_v30 = vadd.f32 %v2898_v28, %v2897_v27 }
  0xff   :  { %v281_v31 = vcombine.high %v249_v29, %v249_v29  ;;  %v288_v32 = vrot.slane %v249_v29, %v3744_v26  ;;  %v176_v33 = vadd.f32 %v2899_v30, %v3741_v22  ;;  %v2900_v34 = vpop.f32.mrb[4].mxu0 }
 0x100   :  { %v2901_v36 = vpop.f32.mrb[5].mxu0 }
 0x101   :  { %v295_v37 = vrot.slane %v281_v31, %v3744_v26  ;;  %v296_v38 = vcombine.high %v288_v32, %v288_v32  ;;  %v2758_v39 = vrot.slane %v288_v32, 9  ;;  %v250_v40 = vmax.f32 %v176_v33, 0.0 }
 0x102   :  { %v2902_v41 = vadd.f32 %v2901_v36, %v2900_v34 }
 0x103   :  { %v297_v42 = vcombine.high %v295_v37, %v295_v37  ;;  %v2759_v43 = vrot.slane %v296_v38, 9  ;;  %v2760_v44 = vrot.slane %v295_v37, 9  ;;  %v809_v45 = vmax.f32 %v288_v32, %v2758_v39  ;;  %v2903_v46 = vpop.f32.mrb[6].mxu0 }
 0x104   :  { %v298_v47 = vcombine.high %v250_v40, %v250_v40  ;;  %v305_v48 = vrot.slane %v250_v40, %v3744_v26  ;;  %v181_v49 = vadd.f32 %v2902_v41, %v3741_v22  ;;  %v2904_v50 = vpop.f32.mrb[7].mxu0 }
 0x105   :  { %v2761_v51 = vrot.slane %v297_v42, 9  ;;  %v810_v52 = vmax.f32 %v296_v38, %v2759_v43  ;;  %v811_v53 = vmax.f32 %v295_v37, %v2760_v44  ;;  %v904_v54 = vrot.slane %v809_v45, %v3748_v35 }
 0x106   :  { %v312_v55 = vrot.slane %v298_v47, %v3744_v26  ;;  %v313_v56 = vcombine.high %v305_v48, %v305_v48  ;;  %v2762_v57 = vrot.slane %v305_v48, 9  ;;  %v251_v58 = vmax.f32 %v181_v49, 0.0 }
 0x107   :  { %v812_v59 = vmax.f32 %v297_v42, %v2761_v51  ;;  %v908_v60 = vrot.slane %v810_v52, %v3748_v35  ;;  %v3757_v61 = vrot.slane %v811_v53, %v3748_v35  ;;  %v2905_v62 = vadd.f32 %v2904_v50, %v2903_v46  ;;  %v2906_v63 = vpop.f32.mrb[8].mxu0 }
 0x108   :  { %v314_v0 = vcombine.high %v312_v55, %v312_v55  ;;  %v2763_v1 = vrot.slane %v313_v56, 9  ;;  %v2764_v2 = vrot.slane %v312_v55, 9  ;;  %v813_v3 = vmax.f32 %v305_v48, %v2762_v57  ;;  %v2907_v4 = vpop.f32.mrb[9].mxu0 }
 0x109   :  { %v3760_v5 = vrot.slane %v812_v59, %v3748_v35  ;;  %v3763_v6 = vsel %vm1013_vm0, %v908_v60, %v904_v54  ;;  %v315_v7 = vcombine.high %v251_v58, %v251_v58  ;;  %v322_v8 = vrot.slane %v251_v58, %v3744_v26 }
 0x10a   :  { %v2765_v9 = vrot.slane %v314_v0, 9  ;;  %v814_v10 = vmax.f32 %v313_v56, %v2763_v1  ;;  %v815_v11 = vmax.f32 %v312_v55, %v2764_v2  ;;  %v3767_v12 = vrot.slane %v813_v3, %v3748_v35 }
 0x10b   :  { %v329_v13 = vrot.slane %v315_v7, %v3744_v26  ;;  %v330_v14 = vcombine.high %v322_v8, %v322_v8  ;;  %v2766_v15 = vrot.slane %v322_v8, 9  ;;  %v186_v16 = vadd.f32 %v2905_v62, %v3741_v22  ;;  %v2909_v17 = vpop.f32.mrb[10].mxu0 }
 0x10c   :  { %v816_v18 = vmax.f32 %v314_v0, %v2765_v9  ;;  %v3772_v19 = vrot.slane %v814_v10, %v3748_v35  ;;  %v3775_v20 = vrot.slane %v815_v11, %v3748_v35  ;;  %v2908_v21 = vadd.f32 %v2907_v4, %v2906_v63  ;;  %v2910_v23 = vpop.f32.mrb[11].mxu0 }
 0x10d   :  { %v331_v24 = vcombine.high %v329_v13, %v329_v13  ;;  %v2767_v25 = vrot.slane %v330_v14, 9  ;;  %v2768_v27 = vrot.slane %v329_v13, 9  ;;  %v817_v28 = vmax.f32 %v322_v8, %v2766_v15 }
 0x10e   :  { %v252_v29 = vmax.f32 %v186_v16, 0.0  ;;  %v191_v30 = vadd.f32 %v2908_v21, %v3741_v22  ;;  %v2911_v31 = vadd.f32 %v2910_v23, %v2909_v17  ;;  %v3779_v32 = vrot.slane %v816_v18, %v3748_v35 }
 0x10f   :  { %v2769_v33 = vrot.slane %v331_v24, 9  ;;  %v3781_v34 = vmax.f32 %v330_v14, %v2767_v25  ;;  %v819_v36 = vmax.f32 %v329_v13, %v2768_v27  ;;  %v3784_v37 = vrot.slane %v817_v28, %v3748_v35  ;;  %v2912_v38 = vpop.f32.mrb[12].mxu0 }
 0x110   :  { %v332_v39 = vcombine.high %v252_v29, %v252_v29  ;;  %v339_v40 = vrot.slane %v252_v29, %v3744_v26  ;;  %v253_v41 = vmax.f32 %v191_v30, 0.0  ;;  %v196_v42 = vadd.f32 %v2911_v31, %v3741_v22  ;;  %v2913_v43 = vpop.f32.mrb[13].mxu0 }
 0x111   :  { %5331 = vst [vmem:[#allocation7_spill] sm:$0xff] %v3784_v37  ;;  %v3788_v44 = vmax.f32 %v331_v24, %v2769_v33  ;;  %v3791_v45 = vrot.slane %v819_v36, %v3748_v35  ;;  %v2914_v46 = vadd.f32 %v2913_v43, %v2912_v38  ;;  %v1053_v47 = vsel %vm1013_vm0, %v3757_v61, %v908_v60 }
 0x112   :  { %v346_v48 = vrot.slane %v332_v39, %v3744_v26  ;;  %v347_v49 = vcombine.high %v339_v40, %v339_v40  ;;  %v2770_v50 = vrot.slane %v339_v40, 9  ;;  %v349_v51 = vcombine.high %v253_v41, %v253_v41 }
 0x113   :  { %5332 = vst [vmem:[#allocation8_spill] sm:$0xff] %v3791_v45  ;;  %v356_v52 = vrot.slane %v253_v41, %v3744_v26  ;;  %v254_v53 = vmax.f32 %v196_v42, 0.0  ;;  %v201_v54 = vadd.f32 %v2914_v46, %v3741_v22  ;;  %v1054_v55 = vsel %vm1015_vm1, %v3760_v5, %v1053_v47  ;;  %v3800_v56 = vpop.f32.mrb[14].mxu0 }
 0x114   :  { %v348_v57 = vcombine.high %v346_v48, %v346_v48  ;;  %v2771_v58 = vrot.slane %v347_v49, 9  ;;  %v2772_v59 = vrot.slane %v346_v48, 9  ;;  %v821_v60 = vmax.f32 %v339_v40, %v2770_v50  ;;  %v3802_v62 = vpop.f32.mrb[15].mxu0 }
 0x115   :  { %v363_v63 = vrot.slane %v349_v51, %v3744_v26  ;;  %v364_v0 = vcombine.high %v356_v52, %v356_v52  ;;  %v2774_v1 = vrot.slane %v356_v52, 9  ;;  %v366_v2 = vcombine.high %v254_v53, %v254_v53 }
 0x116   :  { %v2773_v3 = vrot.slane %v348_v57, 9  ;;  %v822_v4 = vmax.f32 %v347_v49, %v2771_v58  ;;  %v823_v7 = vmax.f32 %v346_v48, %v2772_v59  ;;  %v3806_v8 = vrot.slane %v821_v60, %v3748_v35 }
 0x117   :  { %v365_v9 = vcombine.high %v363_v63, %v363_v63  ;;  %v2775_v10 = vrot.slane %v364_v0, 9  ;;  %v2776_v11 = vrot.slane %v363_v63, 9  ;;  %v825_v13 = vmax.f32 %v356_v52, %v2774_v1  ;;  %v3808_v14 = vpop.f32.mrb[16].mxu0 }
 0x118   :  { %v824_v15 = vmax.f32 %v348_v57, %v2773_v3  ;;  %v3811_v16 = vrot.slane %v822_v4, %v3748_v35  ;;  %v3814_v17 = vrot.slane %v823_v7, %v3748_v35  ;;  %v373_v18 = vrot.slane %v254_v53, %v3744_v26  ;;  %v3817_v21 = vpop.f32.mrb[17].mxu0 }
 0x119   :  { %v2777_v23 = vrot.slane %v365_v9, 9  ;;  %v826_v24 = vmax.f32 %v364_v0, %v2775_v10  ;;  %v827_v25 = vmax.f32 %v363_v63, %v2776_v11  ;;  %v3820_v27 = vrot.slane %v825_v13, %v3748_v35 }
 0x11a   :  { %5333 = vst [vmem:[#allocation9_spill] sm:$0xff] %v3811_v16  ;;  %v3823_v28 = vrot.slane %v824_v15, %v3748_v35  ;;  %v380_v29 = vrot.slane %v366_v2, %v3744_v26  ;;  %v381_v30 = vcombine.high %v373_v18, %v373_v18  ;;  %v2778_v31 = vrot.slane %v373_v18, 9 }
 0x11b   :  { %5334 = vst [vmem:[#allocation10_spill] sm:$0xff] %v3820_v27  ;;  %v828_v33 = vmax.f32 %v365_v9, %v2777_v23  ;;  %v3827_v36 = vrot.slane %v826_v24, %v3748_v35  ;;  %v3830_v38 = vrot.slane %v827_v25, %v3748_v35  ;;  %v255_v39 = vmax.f32 %v201_v54, 0.0  ;;  %v3832_v40 = vpop.f32.mrb[18].mxu0 }
 0x11c   :  { %v382_v41 = vcombine.high %v380_v29, %v380_v29  ;;  %v2779_v42 = vrot.slane %v381_v30, 9  ;;  %v2780_v43 = vrot.slane %v380_v29, 9  ;;  %v829_v46 = vmax.f32 %v373_v18, %v2778_v31  ;;  %v3834_v47 = vpop.f32.mrb[19].mxu0 }
 0x11d   :  { %5335 = vst [vmem:[#allocation11_spill] sm:$0xff] %v3827_v36  ;;  %5336 = vst [vmem:[#allocation12_spill] sm:$0xff] %v3830_v38  ;;  %v3837_v48 = vrot.slane %v828_v33, %v3748_v35  ;;  %v383_v49 = vcombine.high %v255_v39, %v255_v39  ;;  %v390_v50 = vrot.slane %v255_v39, %v3744_v26 }
 0x11e   :  { %v1055_v51 = vsel %vm1017_vm2, %v3767_v12, %v1054_v55  ;;  %v2781_v52 = vrot.slane %v382_v41, 9  ;;  %v830_v53 = vmax.f32 %v381_v30, %v2779_v42  ;;  %v831_v54 = vmax.f32 %v380_v29, %v2780_v43 }
 0x11f   :  { %5337 = vst [vmem:[#allocation13_spill] sm:$0xff] %v3837_v48  ;;  %v3843_v57 = vrot.slane %v829_v46, %v3748_v35  ;;  %v397_v58 = vrot.slane %v383_v49, %v3744_v26  ;;  %v398_v59 = vcombine.high %v390_v50, %v390_v50  ;;  %v2782_v60 = vrot.slane %v390_v50, 9  ;;  %v3848_v0 = vpop.f32.mrb[20].mxu0 }
 0x120   :  { %v1056_v63 = vsel %vm1019_vm3, %v3772_v19, %v1055_v51  ;;  %v832_v1 = vmax.f32 %v382_v41, %v2781_v52  ;;  %v3851_v2 = vrot.slane %v830_v53, %v3748_v35  ;;  %v3854_v55 = vrot.slane %v831_v54, %v3748_v35  ;;  %v3858_v4 = vpop.f32.mrb[21].mxu0 }
 0x121   :  { %5338 = vst [vmem:[#allocation14_spill] sm:$0xff] %v3843_v57  ;;  %v1057_v3 = vsel %vm1021_vm4, %v3775_v20, %v1056_v63  ;;  %v399_v7 = vcombine.high %v397_v58, %v397_v58  ;;  %v2783_v9 = vrot.slane %v398_v59, 9  ;;  %v2784_v10 = vrot.slane %v397_v58, 9 }
 0x122   :  { %5339 = vst [vmem:[#allocation15_spill] sm:$0xff] %v3851_v2  ;;  %v833_v11 = vmax.f32 %v390_v50, %v2782_v60  ;;  %v3861_v13 = vrot.slane %v832_v1, %v3748_v35  ;;  %v1058_v15 = vsel %vm1023_vm5, %v3779_v32, %v1057_v3  ;;  %v3867_v18 = vrot.slane %v3781_v34, %v3748_v35 }
 0x123   :  { %v1094_v23 = vsel %vm1013_vm0, %v3760_v5, %v3757_v61  ;;  %v2785_v24 = vrot.slane %v399_v7, 9  ;;  %v834_v25 = vmax.f32 %v398_v59, %v2783_v9  ;;  %v835_v29 = vmax.f32 %v397_v58, %v2784_v10  ;;  %v3875_v31 = vpop.f32.mrb[22].mxu0 }
 0x124   :  { %5340 = vst [vmem:[#allocation16_spill] sm:$0xff] %v3867_v18  ;;  %v3873_v30 = vrot.slane %v833_v11, %v3748_v35  ;;  %v1059_v33 = vsel %vm1025_vm6, %v3784_v37, %v1058_v15  ;;  %v1095_v39 = vsel %vm1015_vm1, %v3767_v12, %v1094_v23  ;;  %v2917_v34 = vadd.f32 %v3802_v62, %v3800_v56  ;;  %v3886_v42 = vpop.f32.mrb[23].mxu0 }
 0x125   :  { %v1135_v41 = vsel %vm1013_vm0, %v3767_v12, %v3760_v5  ;;  %v836_v43 = vmax.f32 %v399_v7, %v2785_v24  ;;  %v3889_v46 = vrot.slane %v834_v25, %v3748_v35  ;;  %v3892_v49 = vrot.slane %v835_v29, %v3748_v35  ;;  %1077 = vrot.lane.b32.xlu0 %v1059_v33, %s3487_s0 }
 0x126   :  { %v1096_v50 = vsel %vm1017_vm2, %v3772_v19, %v1095_v39  ;;  %v206_v62 = vadd.f32 %v2917_v34, %v3741_v22  ;;  %v1136_v51 = vsel %vm1015_vm1, %v3772_v19, %v1135_v41  ;;  %v2920_v52 = vadd.f32 %v3817_v21, %v3808_v14 }
 0x127   :  { %v1097_v56 = vsel %vm1019_vm3, %v3775_v20, %v1096_v50  ;;  %v3905_v53 = vrot.slane %v836_v43, %v3748_v35  ;;  %v1137_v58 = vsel %vm1017_vm2, %v3775_v20, %v1136_v51  ;;  %v3913_v59 = vrot.slane %v3788_v44, %v3748_v35  ;;  %v3915_v60 = vpop.f32.mrb[24].mxu0 }
 0x128   :  { %v1098_v54 = vsel %vm1021_vm4, %v3779_v32, %v1097_v56  ;;  %v256_v1 = vmax.f32 %v206_v62, 0.0  ;;  %v1138_v14 = vsel %vm1019_vm3, %v3779_v32, %v1137_v58  ;;  %v211_v21 = vadd.f32 %v2920_v52, %v3741_v22  ;;  %v3922_v3 = vpop.f32.mrb[25].mxu0 }
 0x129   :  { %5341 = vst [vmem:[#allocation17_spill] sm:$0xff] %v3913_v59  ;;  %v1099_v63 = vsel %vm1023_vm5, %v3784_v37, %v1098_v54  ;;  %v1139_v44 = vsel %vm1021_vm4, %v3784_v37, %v1138_v14  ;;  %v1176_v9 = vsel %vm1013_vm0, %v3772_v19, %v3767_v12  ;;  %v1101_v10 = vsel %vm1013_vm0, %v3913_v59, %v3791_v45 }
 0x12a   :  { %v1100_v7 = vsel %vm1025_vm6, %v3867_v18, %v1099_v63  ;;  %v400_v11 = vcombine.high %v256_v1, %v256_v1  ;;  %v407_v15 = vrot.slane %v256_v1, %v3744_v26  ;;  %v1140_v23 = vsel %vm1023_vm5, %v3867_v18, %v1139_v44 }
 0x12b   :  { %1118 = vrot.lane.b32.xlu1 %v1100_v7, %s3488_s2  ;;  %v257_v24 = vmax.f32 %v211_v21, 0.0  ;;  %v1141_v25 = vsel %vm1025_vm6, %v3791_v45, %v1140_v23  ;;  %v1177_v29 = vsel %vm1015_vm1, %v3775_v20, %v1176_v9  ;;  %v1102_v33 = vsel %vm1015_vm1, %v3806_v8, %v1101_v10  ;;  %v3946_v34 = vpop.f32.mrb[26].mxu0 }
 0x12c   :  { %v2923_v39 = vadd.f32 %v3834_v47, %v3832_v40  ;;  %v3949_v41 = vrot.slane %v400_v11, %v3744_v26  ;;  %v3951_v43 = vcombine.high %v407_v15, %v407_v15  ;;  %v2786_v50 = vrot.slane %v407_v15, 9  ;;  %1159 = vrot.lane.b32.xlu0 %v1141_v25, %s3489_s10  ;;  %v3954_v62 = vpop.f32.mrb[27].mxu0 }
 0x12d   :  { %v417_v56 = vcombine.high %v257_v24, %v257_v24  ;;  %v424_v51 = vrot.slane %v257_v24, %v3744_v26  ;;  %v1178_v52 = vsel %vm1017_vm2, %v3779_v32, %v1177_v29  ;;  %v1103_v40 = vsel %vm1017_vm2, %v3811_v16, %v1102_v33 }
 0x12e   :  { %v216_v47 = vadd.f32 %v2923_v39, %v3741_v22  ;;  %v3962_v54 = vmax.f32 %v407_v15, %v2786_v50  ;;  %v1179_v63 = vsel %vm1019_vm3, %v3784_v37, %v1178_v52  ;;  %v1104_v1 = vsel %vm1019_vm3, %v3814_v17, %v1103_v40 }
 0x12f   :  { %v431_v58 = vrot.slane %v417_v56, %v3744_v26  ;;  %v432_v14 = vcombine.high %v424_v51, %v424_v51  ;;  %v2790_v21 = vrot.slane %v424_v51, 9  ;;  %v1180_v7 = vsel %vm1021_vm4, %v3867_v18, %v1179_v63  ;;  %v3973_v9 = vpop.f32.mrb[28].mxu0 }
 0x130   :  { %v1105_v44 = vsel %vm1021_vm4, %v3823_v28, %v1104_v1  ;;  %v1181_v15 = vsel %vm1023_vm5, %v3791_v45, %v1180_v7  ;;  %v3979_v24 = vpop.f32.mrb[29].mxu0  ;;  %v258_v52 = vmax.f32 %v216_v47, 0.0  ;;  %v1060_v40 = vsel %vm1013_vm0, %v3791_v45, %v3867_v18 }
 0x131   :  { %v433_v10 = vcombine.high %v431_v58, %v431_v58  ;;  %v2792_v11 = vrot.slane %v431_v58, 9  ;;  %v1106_v23 = vsel %vm1023_vm5, %v3820_v27, %v1105_v44  ;;  %v2791_v25 = vrot.slane %v432_v14, 9 }
 0x132   :  { %v841_v29 = vmax.f32 %v424_v51, %v2790_v21  ;;  %v1182_v33 = vsel %vm1025_vm6, %v3913_v59, %v1181_v15  ;;  %v1107_v39 = vsel %vm1025_vm6, %v3827_v36, %v1106_v23  ;;  %v1061_v1 = vsel %vm1015_vm1, %v3913_v59, %v1060_v40 }
 0x133   :  { %v2793_v50 = vrot.slane %v433_v10, 9  ;;  %v843_v56 = vmax.f32 %v431_v58, %v2792_v11  ;;  %1200 = vrot.lane.b32.xlu0 %v1182_v33, %s3490_s11  ;;  %1120 = vrot.lane.b32.xlu1 %v1107_v39, %s3488_s2  ;;  %v842_v63 = vmax.f32 %v432_v14, %v2791_v25  ;;  %v1142_v58 = vsel %vm1013_vm0, %v3806_v8, %v3913_v59  ;;  %v3996_v21 = vpop.f32.mrb[30].mxu0 }
 0x134   :  { %v1571_v51 = vrot.slane %v841_v29, %v3748_v35  ;;  %v434_v47 = vcombine.high %v258_v52, %v258_v52  ;;  %v441_v11 = vrot.slane %v258_v52, %v3744_v26  ;;  %v4002_v15 = vpop.f32.mrb[31].mxu0  ;;  %v1062_v23 = vsel %vm1017_vm2, %v3806_v8, %v1061_v1 }
 0x135   :  { %v844_v7 = vmax.f32 %v433_v10, %v2793_v50  ;;  %v3999_v44 = vrot.slane %v843_v56, %v3748_v35  ;;  %v4005_v14 = vrot.slane %v842_v63, %v3748_v35  ;;  %v1143_v25 = vsel %vm1015_vm1, %v3811_v16, %v1142_v58 }
 0x136   :  { %v2926_v10 = vadd.f32 %v3858_v4, %v3848_v0  ;;  %v448_v33 = vrot.slane %v434_v47, %v3744_v26  ;;  %v449_v39 = vcombine.high %v441_v11, %v441_v11  ;;  %v2794_v50 = vrot.slane %v441_v11, 9 }
 0x137   :  { %v4014_v29 = vrot.slane %v844_v7, %v3748_v35  ;;  %v4019_v56 = vsel %vm1013_vm0, %v4005_v14, %v1571_v51  ;;  %v1063_v52 = vsel %vm1019_vm3, %v3811_v16, %v1062_v23  ;;  %v1144_v40 = vsel %vm1017_vm2, %v3814_v17, %v1143_v25 }
 0x138   :  { %v221_v63 = vadd.f32 %v2926_v10, %v3741_v22  ;;  %v450_v0 = vcombine.high %v448_v33, %v448_v33  ;;  %v2795_v4 = vrot.slane %v449_v39, 9  ;;  %v2796_v1 = vrot.slane %v448_v33, 9 }
 0x139   :  { %v845_v58 = vmax.f32 %v441_v11, %v2794_v50  ;;  %v1064_v7 = vsel %vm1021_vm4, %v3814_v17, %v1063_v52  ;;  %v1145_v47 = vsel %vm1019_vm3, %v3823_v28, %v1144_v40  ;;  %v1067_v23 = vsel %vm1013_vm0, %v3830_v38, %v3827_v36 }
 0x13a   :  { %v259_v51 = vmax.f32 %v221_v63, 0.0  ;;  %v2797_v59 = vrot.slane %v450_v0, 9  ;;  %v846_v45 = vmax.f32 %v449_v39, %v2795_v4  ;;  %v847_v25 = vmax.f32 %v448_v33, %v2796_v1 }
 0x13b   :  { %v4034_v10 = vrot.slane %v845_v58, %v3748_v35  ;;  %v1065_v11 = vsel %vm1023_vm5, %v3823_v28, %v1064_v7  ;;  %v1146_v50 = vsel %vm1021_vm4, %v3820_v27, %v1145_v47  ;;  %v1183_v7 = vsel %vm1013_vm0, %v3811_v16, %v3806_v8 }
 0x13c   :  { %v451_v52 = vcombine.high %v259_v51, %v259_v51  ;;  %v458_v40 = vrot.slane %v259_v51, %v3744_v26  ;;  %v848_v63 = vmax.f32 %v450_v0, %v2797_v59  ;;  %v4042_v18 = vrot.slane %v846_v45, %v3748_v35 }
 0x13d   :  { %v4045_v37 = vrot.slane %v847_v25, %v3748_v35  ;;  %v1066_v33 = vsel %vm1025_vm6, %v3820_v27, %v1065_v11  ;;  %v1147_v39 = vsel %vm1023_vm5, %v3827_v36, %v1146_v50  ;;  %v1068_v0 = vsel %vm1015_vm1, %v3837_v48, %v1067_v23 }
 0x13e   :  { %1079 = vrot.lane.b32.xlu0 %v1066_v33, %s3487_s0  ;;  %v465_v4 = vrot.slane %v451_v52, %v3744_v26  ;;  %v466_v1 = vcombine.high %v458_v40, %v458_v40  ;;  %v2798_v58 = vrot.slane %v458_v40, 9  ;;  %v4054_v59 = vrot.slane %v848_v63, %v3748_v35 }
 0x13f   :  { %v1148_v45 = vsel %vm1025_vm6, %v3830_v38, %v1147_v39  ;;  %v1069_v50 = vsel %vm1017_vm2, %v3843_v57, %v1068_v0  ;;  %v1184_v52 = vsel %vm1015_vm1, %v3814_v17, %v1183_v7  ;;  %v2929_v63 = vadd.f32 %v3886_v42, %v3875_v31 }
 0x140   :  { %1161 = vrot.lane.b32.xlu1 %v1148_v45, %s3489_s10  ;;  %v467_v47 = vcombine.high %v465_v4, %v465_v4  ;;  %v2799_v51 = vrot.slane %v466_v1, 9  ;;  %v2800_v25 = vrot.slane %v465_v4, 9  ;;  %v849_v11 = vmax.f32 %v458_v40, %v2798_v58 }
 0x141   :  { %v1108_v23 = vsel %vm1013_vm0, %v3837_v48, %v3830_v38  ;;  %v1070_v40 = vsel %vm1019_vm3, %v3851_v2, %v1069_v50  ;;  %v1185_v58 = vsel %vm1017_vm2, %v3823_v28, %v1184_v52  ;;  %v226_v0 = vadd.f32 %v2929_v63, %v3741_v22 }
 0x142   :  { %v2801_v33 = vrot.slane %v467_v47, 9  ;;  %v850_v39 = vmax.f32 %v466_v1, %v2799_v51  ;;  %v851_v45 = vmax.f32 %v465_v4, %v2800_v25  ;;  %v4074_v16 = vrot.slane %v849_v11, %v3748_v35 }
 0x143   :  { %v1109_v31 = vsel %vm1015_vm1, %v3843_v57, %v1108_v23  ;;  %v1071_v1 = vsel %vm1021_vm4, %v3854_v55, %v1070_v40  ;;  %v1186_v25 = vsel %vm1019_vm3, %v3820_v27, %v1185_v58  ;;  %v260_v11 = vmax.f32 %v226_v0, 0.0 }
 0x144   :  { %v852_v42 = vmax.f32 %v467_v47, %v2801_v33  ;;  %v4084_v7 = vrot.slane %v850_v39, %v3748_v35  ;;  %v4087_v4 = vrot.slane %v851_v45, %v3748_v35  ;;  %v1072_v51 = vsel %vm1023_vm5, %v3861_v13, %v1071_v1 }
 0x145   :  { %v1110_v50 = vsel %vm1017_vm2, %v3851_v2, %v1109_v31  ;;  %v1073_v52 = vsel %vm1025_vm6, %v3873_v30, %v1072_v51  ;;  %v1187_v63 = vsel %vm1021_vm4, %v3827_v36, %v1186_v25  ;;  %v468_v39 = vcombine.high %v260_v11, %v260_v11 }
 0x146   :  { %v4098_v47 = vrot.slane %v852_v42, %v3748_v35  ;;  %v1111_v23 = vsel %vm1019_vm3, %v3854_v55, %v1110_v50  ;;  %1081 = vrot.lane.b32.xlu0 %v1073_v52, %s3487_s0  ;;  %v1188_v33 = vsel %vm1023_vm5, %v3830_v38, %v1187_v63  ;;  %v475_v45 = vrot.slane %v260_v11, %v3744_v26 }
 0x147   :  { %v1112_v40 = vsel %vm1021_vm4, %v3861_v13, %v1111_v23  ;;  %v1189_v58 = vsel %vm1025_vm6, %v3837_v48, %v1188_v33  ;;  %v4118_v31 = vrot.slane %v3962_v54, %v3748_v35  ;;  %v1074_v42 = vsel %vm1013_vm0, %v3892_v49, %v3889_v46 }
 0x148   :  { %v1113_v0 = vsel %vm1023_vm5, %v3873_v30, %v1112_v40  ;;  %1202 = vrot.lane.b32.xlu1 %v1189_v58, %s3490_s11  ;;  %v482_v1 = vrot.slane %v468_v39, %v3744_v26  ;;  %v483_v51 = vcombine.high %v475_v45, %v475_v45  ;;  %v2802_v25 = vrot.slane %v475_v45, 9 }
 0x149   :  { %v1114_v11 = vsel %vm1025_vm6, %v3889_v46, %v1113_v0  ;;  %v1075_v50 = vsel %vm1015_vm1, %v3905_v53, %v1074_v42  ;;  %v2932_v54 = vadd.f32 %v3922_v3, %v3915_v60  ;;  %v1149_v52 = vsel %vm1013_vm0, %v3843_v57, %v3837_v48 }
 0x14a   :  { %v2787_v63 = vrot.slane %v3951_v43, 9  ;;  %v484_v23 = vcombine.high %v482_v1, %v482_v1  ;;  %v2803_v33 = vrot.slane %v483_v51, 9  ;;  %v2804_v39 = vrot.slane %v482_v1, 9  ;;  %1122 = vrot.lane.b32.xlu0 %v1114_v11, %s3488_s2 }
 0x14b   :  { %v853_v40 = vmax.f32 %v475_v45, %v2802_v25  ;;  %v1076_v58 = vsel %vm1017_vm2, %v4118_v31, %v1075_v50  ;;  %v231_v0 = vadd.f32 %v2932_v54, %v3741_v22  ;;  %v1150_v60 = vsel %vm1015_vm1, %v3851_v2, %v1149_v52 }
 0x14c   :  { %v838_v3 = vmax.f32 %v3951_v43, %v2787_v63  ;;  %v2805_v42 = vrot.slane %v484_v23, 9  ;;  %v854_v48 = vmax.f32 %v483_v51, %v2803_v33  ;;  %v855_v38 = vmax.f32 %v482_v1, %v2804_v39  ;;  %1083 = vrot.lane.b32.xlu1 %v1076_v58, %s3487_s0 }
 0x14d   :  { %v4143_v36 = vrot.slane %v853_v40, %v3748_v35  ;;  %v261_v45 = vmax.f32 %v231_v0, 0.0  ;;  %v1151_v25 = vsel %vm1017_vm2, %v3854_v55, %v1150_v60  ;;  %v1115_v50 = vsel %vm1013_vm0, %v3905_v53, %v3892_v49 }
 0x14e   :  { %v4149_v11 = vrot.slane %v838_v3, %v3748_v35  ;;  %v856_v43 = vmax.f32 %v484_v23, %v2805_v42  ;;  %v4155_v51 = vrot.slane %v854_v48, %v3748_v35  ;;  %v4158_v1 = vrot.slane %v855_v38, %v3748_v35 }
 0x14f   :  { %v1152_v54 = vsel %vm1019_vm3, %v3861_v13, %v1151_v25  ;;  %v485_v52 = vcombine.high %v261_v45, %v261_v45  ;;  %v492_v63 = vrot.slane %v261_v45, %v3744_v26  ;;  %v1116_v39 = vsel %vm1015_vm1, %v4118_v31, %v1115_v50 }
 0x150   :  { %v1153_v33 = vsel %vm1021_vm4, %v3873_v30, %v1152_v54  ;;  %v4168_v23 = vrot.slane %v856_v43, %v3748_v35  ;;  %v1117_v38 = vsel %vm1017_vm2, %v4149_v11, %v1116_v39  ;;  %v2935_v40 = vadd.f32 %v3954_v62, %v3946_v34 }
 0x151   :  { %v1154_v48 = vsel %vm1023_vm5, %v3889_v46, %v1153_v33  ;;  %v499_v58 = vrot.slane %v485_v52, %v3744_v26  ;;  %v500_v0 = vcombine.high %v492_v63, %v492_v63  ;;  %v2806_v60 = vrot.slane %v492_v63, 9  ;;  %1124 = vrot.lane.b32.xlu1 %v1117_v38, %s3488_s2 }
 0x152   :  { %v1155_v3 = vsel %vm1025_vm6, %v3892_v49, %v1154_v48  ;;  %v236_v42 = vadd.f32 %v2935_v40, %v3741_v22  ;;  %v1190_v45 = vsel %vm1013_vm0, %v3851_v2, %v3843_v57  ;;  %v2788_v25 = vrot.slane %v3949_v41, 9 }
 0x153   :  { %1163 = vrot.lane.b32.xlu0 %v1155_v3, %s3489_s10  ;;  %v1156_v34 = vsel %vm1013_vm0, %v4118_v31, %v3905_v53  ;;  %v501_v62 = vcombine.high %v499_v58, %v499_v58  ;;  %v2807_v50 = vrot.slane %v500_v0, 9  ;;  %v2808_v43 = vrot.slane %v499_v58, 9 }
 0x154   :  { %v857_v54 = vmax.f32 %v492_v63, %v2806_v60  ;;  %v262_v52 = vmax.f32 %v236_v42, 0.0  ;;  %v1191_v33 = vsel %vm1015_vm1, %v3854_v55, %v1190_v45  ;;  %v839_v39 = vmax.f32 %v3949_v41, %v2788_v25 }
 0x155   :  { %v1157_v48 = vsel %vm1015_vm1, %v4149_v11, %v1156_v34  ;;  %v2809_v38 = vrot.slane %v501_v62, 9  ;;  %v858_v40 = vmax.f32 %v500_v0, %v2807_v50  ;;  %v859_v3 = vmax.f32 %v499_v58, %v2808_v43 }
 0x156   :  { %v4195_v2 = vrot.slane %v857_v54, %v3748_v35  ;;  %v502_v57 = vcombine.high %v262_v52, %v262_v52  ;;  %v509_v27 = vrot.slane %v262_v52, %v3744_v26  ;;  %v1192_v63 = vsel %vm1017_vm2, %v3861_v13, %v1191_v33 }
 0x157   :  { %v1134_v60 = vrot.slane %v839_v39, %v3748_v35  ;;  %v860_v42 = vmax.f32 %v501_v62, %v2809_v38  ;;  %v4202_v45 = vrot.slane %v858_v40, %v3748_v35  ;;  %v4205_v25 = vrot.slane %v859_v3, %v3748_v35 }
 0x158   :  { %v1193_v58 = vsel %vm1019_vm3, %v3873_v30, %v1192_v63  ;;  %v516_v0 = vrot.slane %v502_v57, %v3744_v26  ;;  %v517_v34 = vcombine.high %v509_v27, %v509_v27  ;;  %v2810_v50 = vrot.slane %v509_v27, 9 }
 0x159   :  { %v1194_v43 = vsel %vm1021_vm4, %v3889_v46, %v1193_v58  ;;  %v4213_v54 = vrot.slane %v860_v42, %v3748_v35  ;;  %v1158_v52 = vsel %vm1017_vm2, %v1134_v60, %v1157_v48  ;;  %v2938_v33 = vadd.f32 %v3979_v24, %v3973_v9 }
 0x15a   :  { %v1195_v62 = vsel %vm1023_vm5, %v3892_v49, %v1194_v43  ;;  %v518_v39 = vcombine.high %v516_v0, %v516_v0  ;;  %v2811_v38 = vrot.slane %v517_v34, 9  ;;  %v2812_v40 = vrot.slane %v516_v0, 9  ;;  %1165 = vrot.lane.b32.xlu1 %v1158_v52, %s3489_s10 }
 0x15b   :  { %v861_v57 = vmax.f32 %v509_v27, %v2810_v50  ;;  %v1196_v3 = vsel %vm1025_vm6, %v3905_v53, %v1195_v62  ;;  %v241_v63 = vadd.f32 %v2938_v33, %v3741_v22  ;;  %v1713_v42 = vsel %vm1013_vm0, %v3999_v44, %v4005_v14 }
 0x15c   :  { %v416_v48 = vcombine.high %v3949_v41, %v3949_v41  ;;  %v2813_v58 = vrot.slane %v518_v39, 9  ;;  %v862_v9 = vmax.f32 %v517_v34, %v2811_v38  ;;  %v863_v24 = vmax.f32 %v516_v0, %v2812_v40  ;;  %1204 = vrot.lane.b32.xlu0 %v1196_v3, %s3490_s11 }
 0x15d   :  { %v4230_v43 = vrot.slane %v861_v57, %v3748_v35  ;;  %v263_v27 = vmax.f32 %v241_v63, 0.0  ;;  %v1714_v50 = vsel %vm1015_vm1, %v4014_v29, %v1713_v42  ;;  %v1197_v14 = vsel %vm1013_vm0, %v4149_v11, %v4118_v31 }
 0x15e   :  { %v2789_v62 = vrot.slane %v416_v48, 9  ;;  %v864_v52 = vmax.f32 %v518_v39, %v2813_v58  ;;  %v4239_v41 = vrot.slane %v862_v9, %v3748_v35  ;;  %v4242_v0 = vrot.slane %v863_v24, %v3748_v35 }
 0x15f   :  { %v1715_v34 = vsel %vm1017_vm2, %v4034_v10, %v1714_v50  ;;  %v519_v33 = vcombine.high %v263_v27, %v263_v27  ;;  %v526_v38 = vrot.slane %v263_v27, %v3744_v26  ;;  %v1198_v11 = vsel %vm1015_vm1, %v1134_v60, %v1197_v14 }
 0x160   :  { %v1716_v40 = vsel %vm1019_vm3, %v4042_v18, %v1715_v34  ;;  %v840_v57 = vmax.f32 %v416_v48, %v2789_v62  ;;  %v4250_v3 = vrot.slane %v864_v52, %v3748_v35  ;;  %v1754_v39 = vsel %vm1013_vm0, %v4014_v29, %v3999_v44 }
 0x161   :  { %v1717_v31 = vsel %vm1021_vm4, %v4045_v37, %v1716_v40  ;;  %v533_v63 = vrot.slane %v519_v33, %v3744_v26  ;;  %v534_v42 = vcombine.high %v526_v38, %v526_v38  ;;  %v2814_v58 = vrot.slane %v526_v38, 9 }
 0x162   :  { %v1718_v9 = vsel %vm1023_vm5, %v4054_v59, %v1717_v31  ;;  %v1175_v24 = vrot.slane %v840_v57, %v3748_v35  ;;  %v1755_v27 = vsel %vm1015_vm1, %v4034_v10, %v1754_v39  ;;  %v2941_v60 = vadd.f32 %v4002_v15, %v3996_v21 }
 0x163   :  { %v1719_v48 = vsel %vm1025_vm6, %v4074_v16, %v1718_v9  ;;  %v535_v50 = vcombine.high %v533_v63, %v533_v63  ;;  %v2815_v62 = vrot.slane %v534_v42, 9  ;;  %v2816_v14 = vrot.slane %v533_v63, 9 }
 0x164   :  { %v865_v52 = vmax.f32 %v526_v38, %v2814_v58  ;;  %1737 = vrot.lane.b32.xlu0 %v1719_v48, %s3487_s0  ;;  %v1199_v34 = vsel %vm1017_vm2, %v1175_v24, %v1198_v11  ;;  %v1756_v33 = vsel %vm1017_vm2, %v4042_v18, %v1755_v27  ;;  %v246_v40 = vadd.f32 %v2941_v60, %v3741_v22 }
 0x165   :  { %v1720_v57 = vsel %vm1013_vm0, %v4087_v4, %v4084_v7  ;;  %v2817_v31 = vrot.slane %v535_v50, 9  ;;  %v866_v39 = vmax.f32 %v534_v42, %v2815_v62  ;;  %v867_v21 = vmax.f32 %v533_v63, %v2816_v14  ;;  %1206 = vrot.lane.b32.xlu1 %v1199_v34, %s3490_s11 }
 0x166   :  { %v4277_v15 = vrot.slane %v865_v52, %v3748_v35  ;;  %v1757_v38 = vsel %vm1019_vm3, %v4045_v37, %v1756_v33  ;;  %v264_v11 = vmax.f32 %v246_v40, 0.0  ;;  %v1721_v58 = vsel %vm1015_vm1, %v4098_v47, %v1720_v57 }
 0x167   :  { %v1795_v22 = vsel %vm1013_vm0, %v4034_v10, %v4014_v29  ;;  %v868_v9 = vmax.f32 %v535_v50, %v2817_v31  ;;  %v4288_v42 = vrot.slane %v866_v39, %v3748_v35  ;;  %v4291_v63 = vrot.slane %v867_v21, %v3748_v35 }
 0x168   :  { %v1758_v48 = vsel %vm1021_vm4, %v4054_v59, %v1757_v38  ;;  %v536_v27 = vcombine.high %v264_v11, %v264_v11  ;;  %v543_v60 = vrot.slane %v264_v11, %v3744_v26  ;;  %v1722_v62 = vsel %vm1017_vm2, %v4143_v36, %v1721_v58 }
 0x169   :  { %v1759_v24 = vsel %vm1023_vm5, %v4074_v16, %v1758_v48  ;;  %v4301_v50 = vrot.slane %v868_v9, %v3748_v35  ;;  %v1723_v52 = vsel %vm1019_vm3, %v4155_v51, %v1722_v62  ;;  %v1796_v34 = vsel %vm1015_vm1, %v4042_v18, %v1795_v22 }
 0x16a   :  { %v1760_v14 = vsel %vm1025_vm6, %v4084_v7, %v1759_v24  ;;  %v4311_v33 = vrot.slane %v536_v27, %v3744_v26  ;;  %v4313_v40 = vcombine.high %v543_v60, %v543_v60  ;;  %v2818_v57 = vrot.slane %v543_v60, 9 }
 0x16b   :  { %1778 = vrot.lane.b32.xlu0 %v1760_v14, %s3488_s2  ;;  %v1724_v31 = vsel %vm1021_vm4, %v4158_v1, %v1723_v52  ;;  %v1797_v21 = vsel %vm1017_vm2, %v4045_v37, %v1796_v34  ;;  %v1761_v38 = vsel %vm1013_vm0, %v4098_v47, %v4087_v4  ;;  %v1836_v11 = vsel %vm1013_vm0, %v4042_v18, %v4034_v10 }
 0x16c   :  { %v1725_v39 = vsel %vm1023_vm5, %v4168_v23, %v1724_v31  ;;  %v869_v58 = vmax.f32 %v543_v60, %v2818_v57  ;;  %v1798_v9 = vsel %vm1019_vm3, %v4054_v59, %v1797_v21  ;;  %v1762_v48 = vsel %vm1015_vm1, %v4143_v36, %v1761_v38 }
 0x16d   :  { %v1726_v22 = vsel %vm1025_vm6, %v4195_v2, %v1725_v39  ;;  %v1799_v24 = vsel %vm1021_vm4, %v4074_v16, %v1798_v9  ;;  %v1763_v27 = vsel %vm1017_vm2, %v4155_v51, %v1762_v48  ;;  %v1837_v60 = vsel %vm1015_vm1, %v4045_v37, %v1836_v11 }
 0x16e   :  { %1739 = vrot.lane.b32.xlu1 %v1726_v22, %s3487_s0  ;;  %v1802_v62 = vsel %vm1013_vm0, %v4143_v36, %v4098_v47  ;;  %v1800_v14 = vsel %vm1023_vm5, %v4084_v7, %v1799_v24  ;;  %v1764_v52 = vsel %vm1019_vm3, %v4158_v1, %v1763_v27  ;;  %v1838_v34 = vsel %vm1017_vm2, %v4054_v59, %v1837_v60 }
 0x16f   :  { %v1803_v57 = vsel %vm1015_vm1, %v4155_v51, %v1802_v62  ;;  %v1801_v31 = vsel %vm1025_vm6, %v4087_v4, %v1800_v14  ;;  %v1765_v39 = vsel %vm1021_vm4, %v4168_v23, %v1764_v52  ;;  %v1839_v21 = vsel %vm1019_vm3, %v4074_v16, %v1838_v34 }
 0x170   :  { %v1804_v38 = vsel %vm1017_vm2, %v4158_v1, %v1803_v57  ;;  %1819 = vrot.lane.b32.xlu0 %v1801_v31, %s3489_s10  ;;  %v1766_v11 = vsel %vm1023_vm5, %v4195_v2, %v1765_v39  ;;  %v1840_v22 = vsel %vm1021_vm4, %v4084_v7, %v1839_v21  ;;  %v1727_v48 = vsel %vm1013_vm0, %v4205_v25, %v4202_v45 }
 0x171   :  { %v1805_v9 = vsel %vm1019_vm3, %v4168_v23, %v1804_v38  ;;  %v1767_v24 = vsel %vm1025_vm6, %v4202_v45, %v1766_v11  ;;  %v1841_v27 = vsel %vm1023_vm5, %v4087_v4, %v1840_v22  ;;  %v1728_v62 = vsel %vm1015_vm1, %v4213_v54, %v1727_v48 }
 0x172   :  { %v1806_v60 = vsel %vm1021_vm4, %v4195_v2, %v1805_v9  ;;  %1780 = vrot.lane.b32.xlu1 %v1767_v24, %s3488_s2  ;;  %v1842_v14 = vsel %vm1025_vm6, %v4098_v47, %v1841_v27  ;;  %v1729_v34 = vsel %vm1017_vm2, %v4230_v43, %v1728_v62  ;;  %v1843_v57 = vsel %vm1013_vm0, %v4155_v51, %v4143_v36 }
 0x173   :  { %v1807_v52 = vsel %vm1023_vm5, %v4202_v45, %v1806_v60  ;;  %v1730_v39 = vsel %vm1019_vm3, %v4239_v41, %v1729_v34  ;;  %v1844_v21 = vsel %vm1015_vm1, %v4158_v1, %v1843_v57  ;;  %v1768_v38 = vsel %vm1013_vm0, %v4213_v54, %v4205_v25 }
 0x174   :  { %v1808_v31 = vsel %vm1025_vm6, %v4205_v25, %v1807_v52  ;;  %1860 = vrot.lane.b32.xlu0 %v1842_v14, %s3490_s11  ;;  %v1731_v11 = vsel %vm1021_vm4, %v4242_v0, %v1730_v39  ;;  %v1845_v22 = vsel %vm1017_vm2, %v4168_v23, %v1844_v21  ;;  %v1769_v9 = vsel %vm1015_vm1, %v4230_v43, %v1768_v38 }
 0x175   :  { %v1712_v48 = vrot.slane %v869_v58, %v3748_v35  ;;  %v1732_v24 = vsel %vm1023_vm5, %v4250_v3, %v1731_v11  ;;  %v1846_v27 = vsel %vm1019_vm3, %v4195_v2, %v1845_v22  ;;  %v1770_v60 = vsel %vm1017_vm2, %v4239_v41, %v1769_v9 }
 0x176   :  { %v1734_v62 = vsel %vm1013_vm0, %v4291_v63, %v4288_v42  ;;  %1821 = vrot.lane.b32.xlu1 %v1808_v31, %s3489_s10  ;;  %v1733_v14 = vsel %vm1025_vm6, %v4277_v15, %v1732_v24  ;;  %v1847_v58 = vsel %vm1021_vm4, %v4202_v45, %v1846_v27  ;;  %v1771_v52 = vsel %vm1019_vm3, %v4242_v0, %v1770_v60 }
 0x177   :  { %v1735_v34 = vsel %vm1015_vm1, %v4301_v50, %v1734_v62  ;;  %v1848_v57 = vsel %vm1023_vm5, %v4205_v25, %v1847_v58  ;;  %v1772_v39 = vsel %vm1021_vm4, %v4250_v3, %v1771_v52  ;;  %v1809_v21 = vsel %vm1013_vm0, %v4230_v43, %v4213_v54 }
 0x178   :  { %v1736_v31 = vsel %vm1017_vm2, %v1712_v48, %v1735_v34  ;;  %1741 = vrot.lane.b32.xlu0 %v1733_v14, %s3487_s0  ;;  %v1849_v38 = vsel %vm1025_vm6, %v4213_v54, %v1848_v57  ;;  %v1773_v11 = vsel %vm1023_vm5, %v4277_v15, %v1772_v39  ;;  %v1810_v22 = vsel %vm1015_vm1, %v4239_v41, %v1809_v21  ;;  %v1232_v57 = vld [vmem:[%s5310_s3] sm:$0xff]  ;;  %v1233_v39 = vld [vmem:[%s5310_s3 + $0x8] sm:$0xff] }
 0x179   :  { %v2819_v9 = vrot.slane %v4313_v40, 9  ;;  %v1774_v24 = vsel %vm1025_vm6, %v4288_v42, %v1773_v11  ;;  %v1811_v27 = vsel %vm1017_vm2, %v4242_v0, %v1810_v22  ;;  %v1775_v60 = vsel %vm1013_vm0, %v4301_v50, %v4291_v63 }
 0x17a   :  { %v1850_v62 = vsel %vm1013_vm0, %v4239_v41, %v4230_v43  ;;  %1862 = vrot.lane.b32.xlu1 %v1849_v38, %s3490_s11  ;;  %v1812_v14 = vsel %vm1019_vm3, %v4250_v3, %v1811_v27  ;;  %v1776_v52 = vsel %vm1015_vm1, %v1712_v48, %v1775_v60  ;;  %v1816_v11 = vsel %vm1013_vm0, %v1712_v48, %v4301_v50 }
 0x17b   :  { %v870_v58 = vmax.f32 %v4313_v40, %v2819_v9  ;;  %v1851_v34 = vsel %vm1015_vm1, %v4242_v0, %v1850_v62  ;;  %v1813_v21 = vsel %vm1021_vm4, %v4277_v15, %v1812_v14  ;;  %v2820_v40 = vrot.slane %v4311_v33, 9 }
 0x17c   :  { %v1852_v38 = vsel %vm1017_vm2, %v4250_v3, %v1851_v34  ;;  %1782 = vrot.lane.b32.xlu0 %v1774_v24, %s3488_s2  ;;  %v1814_v22 = vsel %vm1023_vm5, %v4288_v42, %v1813_v21  ;;  %v552_v60 = vcombine.high %v4311_v33, %v4311_v33  ;;  %v4481_v24 = vpack.c.bf16 %v1233_v39, %v1232_v57  ;;  %v1237_v39 = vld [vmem:[%s5310_s3 + $0x28] sm:$0xff] }
 0x17d   :  { %v1753_v9 = vrot.slane %v870_v58, %v3748_v35  ;;  %v1853_v27 = vsel %vm1019_vm3, %v4277_v15, %v1852_v38  ;;  %v1815_v62 = vsel %vm1025_vm6, %v4291_v63, %v1814_v22  ;;  %v871_v34 = vmax.f32 %v4311_v33, %v2820_v40  ;;  %v1234_v22 = vld [vmem:[%s5310_s3 + $0x10] sm:$0xff]  ;;  %v1235_v33 = vld [vmem:[%s5310_s3 + $0x18] sm:$0xff] }
 0x17e   :  { %v1854_v14 = vsel %vm1021_vm4, %v4288_v42, %v1853_v27  ;;  %1743 = vrot.lane.b32.xlu1 %v1736_v31, %s3487_s0  ;;  %v2821_v26 = vrot.slane %v552_v60, 9  ;;  %3264 = vmatprep.subr.bf16.mxu1 %v4481_v24 }
 0x17f   :  { %v1777_v58 = vsel %vm1017_vm2, %v1753_v9, %v1776_v52  ;;  %v1855_v21 = vsel %vm1023_vm5, %v4291_v63, %v1854_v14  ;;  %v1817_v38 = vsel %vm1015_vm1, %v1753_v9, %v1816_v11  ;;  %v1794_v31 = vrot.slane %v871_v34, %v3748_v35  ;;  %v1236_v52 = vld [vmem:[%s5310_s3 + $0x20] sm:$0xff]  ;;  %3266 = vmatpush3.bf16.msra.mxu1 %v4481_v24 }
 0x180   :  { %v1856_v57 = vsel %vm1025_vm6, %v4301_v50, %v1855_v21  ;;  %1823 = vrot.lane.b32.xlu0 %v1815_v62, %s3489_s10  ;;  %v872_v40 = vmax.f32 %v552_v60, %v2821_v26  ;;  %v1857_v27 = vsel %vm1013_vm0, %v1753_v9, %v1712_v48  ;;  %v4508_v14 = vpack.c.bf16 %v1235_v33, %v1234_v22  ;;  %v1238_v21 = vld [vmem:[%s5310_s3 + $0x30] sm:$0xff]  ;;  %v1239_v26 = vld [vmem:[%s5310_s3 + $0x38] sm:$0xff] }
 0x181   :  { %v1818_v11 = vsel %vm1017_vm2, %v1794_v31, %v1817_v38  ;;  %v4511_v34 = vpack.c.bf16 %v1237_v39, %v1236_v52  ;;  %v1858_v48 = vsel %vm1015_vm1, %v1794_v31, %v1857_v27  ;;  %v4525_v9 = vpack.c.bf16 %v1239_v26, %v1238_v21  ;;  %v5343_v31 = vld [vmem:[#allocation16_spill] sm:$0xff]  ;;  %v5346_v26 = vld [vmem:[#allocation9_spill] sm:$0xff] }
 0x182   :  { %1784 = vrot.lane.b32.xlu1 %v1777_v58, %s3488_s2  ;;  %v1835_v60 = vrot.slane %v872_v40, %v3748_v35  ;;  %3268 = vmatprep.subr.bf16.mxu1 %v4508_v14  ;;  %v1041_v62 = vsel %vm1013_vm0, %v3889_v46, %v3873_v30  ;;  %v1240_v35 = vld [vmem:[%s5310_s3 + $0x40] sm:$0xff]  ;;  %v1241_v58 = vld [vmem:[%s5310_s3 + $0x48] sm:$0xff]  ;;  %v1681_v22 = vsel %vm1015_vm1, %v3999_v44, %v4019_v56 }
 0x183   :  { %3270 = vmatpush3.bf16.msra.mxu1 %v4508_v14  ;;  %v1042_v38 = vsel %vm1015_vm1, %v3892_v49, %v1041_v62  ;;  %v1682_v46 = vsel %vm1017_vm2, %v4014_v29, %v1681_v22  ;;  %v1687_v49 = vsel %vm1013_vm0, %v4084_v7, %v4074_v16  ;;  %v4556_v44 = vpack.c.bf16 %v1241_v58, %v1240_v35  ;;  %v5344_v39 = vld [vmem:[#allocation8_spill] sm:$0xff] }
 0x184   :  { %1864 = vrot.lane.b32.xlu0 %v1856_v57, %s3490_s11  ;;  %3272 = vmatprep.subr.bf16.mxu1 %v4511_v34  ;;  %v1859_v33 = vsel %vm1017_vm2, %v1835_v60, %v1858_v48  ;;  %v4545_v30 = vsel %vm1017_vm2, %v3905_v53, %v1042_v38  ;;  %v1683_v57 = vsel %vm1019_vm3, %v4034_v10, %v1682_v46  ;;  %v5347_v46 = vld [vmem:[#allocation10_spill] sm:$0xff] }
 0x185   :  { %v1684_v53 = vsel %vm1021_vm4, %v4042_v18, %v1683_v57  ;;  %v1688_v56 = vsel %vm1015_vm1, %v4087_v4, %v1687_v49  ;;  %v1694_v18 = vsel %vm1013_vm0, %v4202_v45, %v4195_v2  ;;  %v5348_v57 = vld [vmem:[#allocation11_spill] sm:$0xff] }
 0x186   :  { %1825 = vrot.lane.b32.xlu1 %v1818_v11, %s3489_s10  ;;  %v1685_v29 = vsel %vm1023_vm5, %v4045_v37, %v1684_v53  ;;  %v1689_v10 = vsel %vm1017_vm2, %v4098_v47, %v1688_v56  ;;  %v1695_v37 = vsel %vm1015_vm1, %v4205_v25, %v1694_v18  ;;  %v5345_v11 = vld [vmem:[#allocation17_spill] sm:$0xff]  ;;  %v5351_v18 = vld [vmem:[#allocation14_spill] sm:$0xff] }
 0x187   :  { %3274 = vmatpush3.bf16.msra.mxu1 %v4511_v34  ;;  %v4569_v16 = vsel %vm1025_vm6, %v4054_v59, %v1685_v29  ;;  %v1690_v7 = vsel %vm1019_vm3, %v4143_v36, %v1689_v10  ;;  %v1701_v59 = vsel %vm1013_vm0, %v4288_v42, %v4277_v15  ;;  %v1696_v2 = vsel %vm1017_vm2, %v4213_v54, %v1695_v37  ;;  %v5349_v29 = vld [vmem:[#allocation12_spill] sm:$0xff] }
 0x188   :  { %3276 = vmatprep.subr.bf16.mxu1 %v4525_v9  ;;  %v1691_v4 = vsel %vm1021_vm4, %v4155_v51, %v1690_v7  ;;  %v1702_v47 = vsel %vm1015_vm1, %v4291_v63, %v1701_v59  ;;  %v1697_v45 = vsel %vm1019_vm3, %v4230_v43, %v1696_v2  ;;  %v1016_v54 = vsel %vm1015_vm1, %v3757_v61, %v3763_v6  ;;  %v5352_v59 = vld [vmem:[#allocation15_spill] sm:$0xff] }
 0x189   :  { %v1692_v36 = vsel %vm1023_vm5, %v4158_v1, %v1691_v4  ;;  %v4599_v25 = vsel %vm1017_vm2, %v4301_v50, %v1702_v47  ;;  %v1698_v1 = vsel %vm1021_vm4, %v4239_v41, %v1697_v45  ;;  %v1018_v15 = vsel %vm1017_vm2, %v3760_v5, %v1016_v54  ;;  %v5342_v5 = vld [vmem:[#allocation7_spill] sm:$0xff] }
 0x18a   :  { %1866 = vrot.lane.b32.xlu1 %v1859_v33, %s3490_s11  ;;  %v4593_v51 = vsel %vm1025_vm6, %v4168_v23, %v1692_v36  ;;  %v1699_v23 = vsel %vm1023_vm5, %v4242_v0, %v1698_v1  ;;  %v1020_v41 = vsel %vm1019_vm3, %v3767_v12, %v1018_v15  ;;  %v1027_v12 = vsel %vm1013_vm0, %v5343_v31, %v5342_v5 }
 0x18b   :  { %3278 = vmatpush3.bf16.msra.mxu1 %v4525_v9  ;;  %v4612_v43 = vsel %vm1025_vm6, %v4250_v3, %v1699_v23  ;;  %v1022_v61 = vsel %vm1021_vm4, %v3772_v19, %v1020_v41  ;;  %v1028_v40 = vsel %vm1015_vm1, %v5344_v39, %v1027_v12 }
 0x18c   :  { %3280 = vmatprep.subr.bf16.mxu1 %v4556_v44  ;;  %v1024_v6 = vsel %vm1023_vm5, %v3775_v20, %v1022_v61  ;;  %v1029_v27 = vsel %vm1017_vm2, %v5345_v11, %v1028_v40 }
 0x18d   :  { %v1026_v63 = vsel %vm1025_vm6, %v3779_v32, %v1024_v6  ;;  %v1030_v21 = vsel %vm1019_vm3, %v3806_v8, %v1029_v27  ;;  %v1034_v8 = vsel %vm1013_vm0, %v5348_v57, %v5347_v46  ;;  %v4711_v57 = vld [vmem:[%s5311_s4] ss:$0 sm:$0xff]  ;;  %vm3493_vm0 = vmmov 0  }
 0x18e   :  { %v1031_v60 = vsel %vm1021_vm4, %v5346_v26, %v1030_v21 }
 0x18f   :  { %3282 = vmatpush3.bf16.msra.mxu1 %v4556_v44  ;;  %v1032_v62 = vsel %vm1023_vm5, %v3814_v17, %v1031_v60  ;;  %v1035_v17 = vsel %vm1015_vm1, %v5349_v29, %v1034_v8  ;;  %vm2728_vm1 = vcmask 58368  }
 0x190   :  { %3284 = vmatprep.subr.bf16.mxu1 %v4481_v24  ;;  %v1033_v58 = vsel %vm1025_vm6, %v3823_v28, %v1032_v62  ;;  %v5350_v28 = vld [vmem:[#allocation13_spill] sm:$0xff] }
 0x191   :  { %v1036_v7 = vsel %vm1017_vm2, %v5350_v28, %v1035_v17  ;;  %v5353_v17 = vld [vmem:[#allocation6_spill] sm:$0xff] }
 0x192   :  { %v1037_v4 = vsel %vm1019_vm3, %v5351_v18, %v1036_v7  ;;  %v2241_v18 = vld [vmem:[%s5312_s5 + $0x180] sm:$0xff] }
 0x193   :  { %v1038_v36 = vsel %vm1021_vm4, %v5352_v59, %v1037_v4  ;;  %v2242_v4 = vld [vmem:[%s5312_s5 + $0x188] sm:$0xff] }
 0x197   :  { %v1078_v42 = vpop.permute.xlu0 %1077 }
 0x198   :  { %v1213_v3 = vsel %vm1212_vm7, %v1026_v63, %v1078_v42 }
 0x19d   :  { %v1119_v50 = vpop.permute.xlu1 %1118 }
 0x19e   :  { %v1160_v0 = vpop.permute.xlu0 %1159  ;;  %v1218_v19 = vsel %vm1217_vm8, %v1213_v3, %v1119_v50 }
 0x19f   :  { %v1223_v20 = vsel %vm1222_vm9, %v1218_v19, %v1160_v0 }
 0x1a5   :  { %v1201_v52 = vpop.permute.xlu0 %1200  ;;  %v1121_v48 = vpop.permute.xlu1 %1120 }
 0x1a6   :  { %v1228_v32 = vsel %vm1227_vm10, %v1223_v20, %v1201_v52 }
 0x1a7   :  { %3129 = vmatprep.mubr.msk.f32.mxu1 %vm1249_vm11, %v1228_v32 }
 0x1b0   :  { %v1080_v35 = vpop.permute.xlu0 %1079 }
 0x1b1   :  { %v1214_v38 = vsel %vm1212_vm7, %v1033_v58, %v1080_v35 }
 0x1b2   :  { %v1162_v22 = vpop.permute.xlu1 %1161  ;;  %v1219_v33 = vsel %vm1217_vm8, %v1214_v38, %v1121_v48 }
 0x1b3   :  { %v1224_v49 = vsel %vm1222_vm9, %v1219_v33, %v1162_v22 }
 0x1b8   :  { %v1082_v10 = vpop.permute.xlu0 %1081 }
 0x1ba   :  { %v1203_v53 = vpop.permute.xlu1 %1202 }
 0x1bb   :  { %v1229_v56 = vsel %vm1227_vm10, %v1224_v49, %v1203_v53 }
 0x1bc   :  { %3130 = vmatmul.mubr.msk.f32.vlgmr.msra.gmra.mrb[0].mxu1 %vm1249_vm11, %v1229_v56  ;;  %v1123_v37 = vpop.permute.xlu0 %1122 }
 0x1bd   :  { %3286 = vmatpush3.bf16.msra.mxu1 %v4481_v24  ;;  %v1039_v24 = vsel %vm1023_vm5, %v3854_v55, %v1038_v36  ;;  %v3335_v36 = vpack.c.bf16 %v2242_v4, %v2241_v18 }
 0x1be   :  { %3288 = vmatprep.subr.bf16.mxu1 %v4508_v14  ;;  %v1084_v2 = vpop.permute.xlu1 %1083 }
 0x1bf   :  { %v1216_v15 = vsel %vm1212_vm7, %v4545_v30, %v1084_v2  ;;  %3336 = vmatprep.subr.bf16.mxu0 %v3335_v36  ;;  %v2196_v36 = vld [vmem:[%s5312_s5 + $0x18] sm:$0xff] }
 0x1c1   :  { %3290 = vmatpush3.bf16.msra.mxu1 %v4508_v14  ;;  %v1040_v14 = vsel %vm1025_vm6, %v3861_v13, %v1039_v24  ;;  %v2225_v24 = vld [vmem:[%s5312_s5 + $0x100] sm:$0xff] }
 0x1c2   :  { %3292 = vmatprep.subr.bf16.mxu1 %v4511_v34  ;;  %v1215_v1 = vsel %vm1212_vm7, %v1040_v14, %v1082_v10 }
 0x1c3   :  { %v1125_v45 = vpop.permute.xlu1 %1124  ;;  %v1220_v54 = vsel %vm1217_vm8, %v1215_v1, %v1123_v37 }
 0x1c4   :  { %v1221_v13 = vsel %vm1217_vm8, %v1216_v15, %v1125_v45 }
 0x1c5   :  { %3294 = vmatpush3.bf16.msra.mxu1 %v4511_v34  ;;  %v1164_v47 = vpop.permute.xlu0 %1163 }
 0x1c6   :  { %3296 = vmatprep.subr.bf16.mxu1 %v4525_v9  ;;  %v1225_v34 = vsel %vm1222_vm9, %v1220_v54, %v1164_v47  ;;  %v2226_v47 = vld [vmem:[%s5312_s5 + $0x108] sm:$0xff] }
 0x1c7   :  { %v3337_v45 = vpack.c.bf16 %v2226_v47, %v2225_v24 }
 0x1c9   :  { %3298 = vmatpush3.bf16.msra.mxu1 %v4525_v9  ;;  %3338 = vmatpush3.bf16.msra.mxu0 %v3337_v45  ;;  %v2250_v45 = vld [vmem:[%s5312_s5 + $0x1c8] sm:$0xff] }
 0x1ca   :  { %3300 = vmatprep.subr.bf16.mxu1 %v4556_v44 }
 0x1cc   :  { %v1166_v9 = vpop.permute.xlu1 %1165 }
 0x1cd   :  { %3302 = vmatpush3.bf16.msra.mxu1 %v4556_v44  ;;  %v1226_v42 = vsel %vm1222_vm9, %v1221_v13, %v1166_v9  ;;  %v2227_v13 = vld [vmem:[%s5312_s5 + $0x110] sm:$0xff] }
 0x1ce   :  { %v1205_v23 = vpop.permute.xlu0 %1204 }
 0x1cf   :  { %v1230_v55 = vsel %vm1227_vm10, %v1225_v34, %v1205_v23  ;;  %v2243_v23 = vld [vmem:[%s5312_s5 + $0x190] sm:$0xff] }
 0x1d0   :  { %3132 = vmatprep.mubr.msk.f32.mxu1 %vm1249_vm11, %v1230_v55  ;;  %v2244_v55 = vld [vmem:[%s5312_s5 + $0x198] sm:$0xff] }
 0x1d1   :  { %v3339_v15 = vpack.c.bf16 %v2244_v55, %v2243_v23 }
 0x1d3   :  { %3340 = vmatprep.subr.bf16.mxu0 %v3339_v15  ;;  %v2214_v15 = vld [vmem:[%s5312_s5 + $0xa8] sm:$0xff] }
 0x1d6   :  { %v1738_v41 = vpop.permute.xlu0 %1737 }
 0x1d7   :  { %v1207_v61 = vpop.permute.xlu1 %1206  ;;  %v1872_v3 = vsel %vm1212_vm7, %v4569_v16, %v1738_v41  ;;  %v2228_v41 = vld [vmem:[%s5312_s5 + $0x118] sm:$0xff] }
 0x1d8   :  { %v1231_v6 = vsel %vm1227_vm10, %v1226_v42, %v1207_v61  ;;  %v3341_v61 = vpack.c.bf16 %v2228_v41, %v2227_v13 }
 0x1d9   :  { %3133 = vmatmul.mubr.msk.f32.gmra.mrb[2].mxu1 %vm1249_vm11, %v1231_v6 }
 0x1da   :  { %3342 = vmatpush3.bf16.msra.mxu0 %v3341_v61 }
 0x1dd   :  { %v1779_v44 = vpop.permute.xlu0 %1778 }
 0x1de   :  { %v1876_v5 = vsel %vm1217_vm8, %v1872_v3, %v1779_v44 }
 0x1e0   :  { %v1740_v0 = vpop.permute.xlu1 %1739 }
 0x1e1   :  { %v1873_v20 = vsel %vm1212_vm7, %v4593_v51, %v1740_v0 }
 0x1e2   :  { %v1820_v63 = vpop.permute.xlu0 %1819 }
 0x1e3   :  { %v1880_v30 = vsel %vm1222_vm9, %v1876_v5, %v1820_v63  ;;  %v2246_v5 = vld [vmem:[%s5312_s5 + $0x1a8] sm:$0xff] }
 0x1e4   :  { %v1781_v50 = vpop.permute.xlu1 %1780 }
 0x1e5   :  { %v1877_v39 = vsel %vm1217_vm8, %v1873_v20, %v1781_v50  ;;  %v2245_v50 = vld [vmem:[%s5312_s5 + $0x1a0] sm:$0xff]  ;;  %v2230_v20 = vld [vmem:[%s5312_s5 + $0x128] sm:$0xff] }
 0x1e6   :  { %v1861_v31 = vpop.permute.xlu0 %1860 }
 0x1e7   :  { %v1884_v12 = vsel %vm1227_vm10, %v1880_v30, %v1861_v31  ;;  %v2229_v30 = vld [vmem:[%s5312_s5 + $0x120] sm:$0xff] }
 0x1e8   :  { %3155 = vmatprep.mubr.msk.f32.mxu1 %vm1249_vm11, %v1884_v12  ;;  %v1822_v19 = vpop.permute.xlu1 %1821 }
 0x1e9   :  { %v1881_v40 = vsel %vm1222_vm9, %v1877_v39, %v1822_v19  ;;  %v3343_v19 = vpack.c.bf16 %v2246_v5, %v2245_v50  ;;  %v2216_v50 = vld [vmem:[%s5312_s5 + $0xb8] sm:$0xff] }
 0x1ea   :  { %v1742_v52 = vpop.permute.xlu0 %1741 }
 0x1eb   :  { %v1874_v26 = vsel %vm1212_vm7, %v4612_v43, %v1742_v52  ;;  %3344 = vmatprep.subr.bf16.mxu0 %v3343_v19  ;;  %v2200_v19 = vld [vmem:[%s5312_s5 + $0x38] sm:$0xff] }
 0x1ec   :  { %v1863_v16 = vpop.permute.xlu1 %1862 }
 0x1ed   :  { %v1885_v32 = vsel %vm1227_vm10, %v1881_v40, %v1863_v16  ;;  %v3345_v40 = vpack.c.bf16 %v2230_v20, %v2229_v30  ;;  %v2251_v20 = vld [vmem:[%s5312_s5 + $0x1d0] sm:$0xff] }
 0x1ee   :  { %v1783_v11 = vpop.permute.xlu0 %1782  ;;  %3156 = vmatmul.mubr.msk.f32.vlgmr.msra.gmra.mrb[4].mxu1 %vm1249_vm11, %v1885_v32 }
 0x1ef   :  { %v1878_v48 = vsel %vm1217_vm8, %v1874_v26, %v1783_v11  ;;  %3346 = vmatpush3.bf16.msra.mxu0 %v3345_v40 }
 0x1f0   :  { %v1744_v27 = vpop.permute.xlu1 %1743 }
 0x1f1   :  { %v1875_v38 = vsel %vm1212_vm7, %v4599_v25, %v1744_v27 }
 0x1f2   :  { %v1824_v21 = vpop.permute.xlu0 %1823 }
 0x1f3   :  { %v1882_v51 = vsel %vm1222_vm9, %v1878_v48, %v1824_v21 }
 0x1f4   :  { %v1785_v60 = vpop.permute.xlu1 %1784 }
 0x1f5   :  { %v1879_v22 = vsel %vm1217_vm8, %v1875_v38, %v1785_v60  ;;  %v2232_v38 = vld [vmem:[%s5312_s5 + $0x138] sm:$0xff] }
 0x1f6   :  { %v1865_v62 = vpop.permute.xlu0 %1864 }
 0x1f7   :  { %v1886_v35 = vsel %vm1227_vm10, %v1882_v51, %v1865_v62  ;;  %v2247_v51 = vld [vmem:[%s5312_s5 + $0x1b0] sm:$0xff]  ;;  %v2248_v62 = vld [vmem:[%s5312_s5 + $0x1b8] sm:$0xff] }
 0x1f8   :  { %3158 = vmatprep.mubr.msk.f32.mxu1 %vm1249_vm11, %v1886_v35  ;;  %v1826_v58 = vpop.permute.xlu1 %1825  ;;  %v2231_v35 = vld [vmem:[%s5312_s5 + $0x130] sm:$0xff] }
 0x1f9   :  { %v1883_v33 = vsel %vm1222_vm9, %v1879_v22, %v1826_v58  ;;  %v3347_v58 = vpack.c.bf16 %v2248_v62, %v2247_v51  ;;  %v3349_v22 = vpack.c.bf16 %v2232_v38, %v2231_v35  ;;  %v2217_v51 = vld [vmem:[%s5312_s5 + $0xc0] sm:$0xff]  ;;  %v2218_v62 = vld [vmem:[%s5312_s5 + $0xc8] sm:$0xff] }
 0x1fb   :  { %3348 = vmatprep.subr.bf16.mxu0 %v3347_v58  ;;  %v3319_v58 = vpack.c.bf16 %v2218_v62, %v2217_v51 }
 0x1fc   :  { %v1867_v46 = vpop.permute.xlu1 %1866  ;;  %3350 = vmatpush3.bf16.msra.mxu0 %v3349_v22  ;;  %v2201_v22 = vld [vmem:[%s5312_s5 + $0x40] sm:$0xff] }
 0x1fd   :  { %v1887_v43 = vsel %vm1227_vm10, %v1883_v33, %v1867_v46  ;;  %v2209_v33 = vld [vmem:[%s5312_s5 + $0x80] sm:$0xff]  ;;  %v2210_v46 = vld [vmem:[%s5312_s5 + $0x88] sm:$0xff] }
 0x1fe   :  { %3159 = vmatmul.mubr.msk.f32.gmra.mrb[6].mxu1 %vm1249_vm11, %v1887_v43  ;;  %v3303_v43 = vpack.c.bf16 %v2210_v46, %v2209_v33  ;;  %v2202_v33 = vld [vmem:[%s5312_s5 + $0x48] sm:$0xff] }
 0x200   :  { %3304 = vmatprep.subr.bf16.mxu1 %v3303_v43 }
 0x28f   :  { %v3131_v8 = vpop.f32.mrb[0].mxu1 }
 0x290   :  { %v1334_v49 = vadd.f32 %v3131_v8, %v4711_v57  ;;  %v1328_v53 = vpop.f32.mrb[1].mxu1 }
 0x291   :  { %v1329_v25 = vadd.f32 %v4711_v57, %v1328_v53  ;;  %v2194_v53 = vld [vmem:[%s5312_s5 + $0x8] sm:$0xff] }
 0x292   :  { %v1348_v56 = vmax.f32 %v1334_v49, 0.0  ;;  %v2193_v49 = vld [vmem:[%s5312_s5] sm:$0xff] }
 0x293   :  { %v1347_v29 = vmax.f32 %v1329_v25, 0.0 }
 0x294   :  { %v1416_v10 = vrot.slane %v1348_v56, %v5353_v17  ;;  %v1434_v28 = vcombine.high %v1348_v56, %v1348_v56  ;;  %1408 = vst.msk [vmem:[#allocation2 + $0x4] sm:$0x1] %vm1351_vm12, %v1348_v56 }
 0x295   :  { %v1381_v7 = vcombine.high %v1347_v29, %v1347_v29  ;;  %1352 = vst.msk [vmem:[#allocation2] sm:$0x1] %vm1351_vm12, %v1347_v29  ;;  %v1360_v1 = vrot.slane %v1347_v29, %v5353_v17  ;;  %v3305_v29 = vpack.c.bf16 %v2194_v53, %v2193_v49  ;;  %v3321_v49 = vpack.c.bf16 %v2202_v33, %v2201_v22 }
 0x296   :  { %v1441_v37 = vrot.slane %v1434_v28, %v5353_v17  ;;  %v2831_v59 = vrot.slane %v1416_v10, 9  ;;  %v1423_v54 = vcombine.high %v1416_v10, %v1416_v10  ;;  %v2211_v28 = vld [vmem:[%s5312_s5 + $0x90] sm:$0xff] }
 0x297   :  { %v1388_v2 = vrot.slane %v1381_v7, %v5353_v17  ;;  %v2827_v9 = vrot.slane %v1360_v1, 9  ;;  %v1368_v6 = vcombine.high %v1360_v1, %v1360_v1  ;;  %v2212_v7 = vld [vmem:[%s5312_s5 + $0x98] sm:$0xff]  ;;  %3306 = vmatpush3.bf16.msra.mxu1 %v3305_v29  ;;  %v2233_v1 = vld [vmem:[%s5312_s5 + $0x140] sm:$0xff] }
 0x298   :  { %1419 = vrot.lane.b32.xlu0 %v2831_v59, %s3488_s2  ;;  %v2833_v14 = vrot.slane %v1441_v37, 9  ;;  %1443 = vst.msk [vmem:[#allocation2 + $0x6] sm:$0x1] %vm1351_vm12, %v1441_v37  ;;  %v1450_v34 = vcombine.high %v1441_v37, %v1441_v37  ;;  %v2832_v0 = vrot.slane %v1423_v54, 9  ;;  %v3307_v4 = vpack.c.bf16 %v2212_v7, %v2211_v28  ;;  %v2195_v59 = vld [vmem:[%s5312_s5 + $0x10] sm:$0xff] }
 0x299   :  { %1390 = vst.msk [vmem:[#allocation2 + $0x2] sm:$0x1] %vm1351_vm12, %v1388_v2  ;;  %v2829_v42 = vrot.slane %v1388_v2, 9  ;;  %v1397_v44 = vcombine.high %v1388_v2, %v1388_v2  ;;  %v2828_v3 = vrot.slane %v1368_v6, 9  ;;  %v2249_v2 = vld [vmem:[%s5312_s5 + $0x1c0] sm:$0xff] }
 0x29a   :  { %1446 = vrot.lane.b32.xlu1 %v2833_v14, %s3488_s2  ;;  %v2834_v63 = vrot.slane %v1450_v34, 9  ;;  %3308 = vmatprep.subr.bf16.mxu1 %v3307_v4  ;;  %v3309_v14 = vpack.c.bf16 %v2196_v36, %v2195_v59  ;;  %v3351_v23 = vpack.c.bf16 %v2250_v45, %v2249_v2  ;;  %v2253_v4 = vld [vmem:[%s5312_s5 + $0x1e0] sm:$0xff]  ;;  %v2254_v36 = vld [vmem:[%s5312_s5 + $0x1e8] sm:$0xff] }
 0x29b   :  { %v2830_v12 = vrot.slane %v1397_v44, 9  ;;  %v2237_v2 = vld [vmem:[%s5312_s5 + $0x160] sm:$0xff] }
 0x29c   :  { %1424 = vrot.lane.b32.xlu0 %v1423_v54, %s3490_s11  ;;  %v2234_v54 = vld [vmem:[%s5312_s5 + $0x148] sm:$0xff]  ;;  %3310 = vmatpush3.bf16.msra.mxu1 %v3309_v14  ;;  %v3359_v14 = vpack.c.bf16 %v2254_v36, %v2253_v4 }
 0x29d   :  { %v3353_v55 = vpack.c.bf16 %v2234_v54, %v2233_v1  ;;  %3352 = vmatprep.subr.bf16.mxu0 %v3351_v23  ;;  %v2221_v1 = vld [vmem:[%s5312_s5 + $0xe0] sm:$0xff]  ;;  %v2222_v54 = vld [vmem:[%s5312_s5 + $0xe8] sm:$0xff] }
 0x29e   :  { %1451 = vrot.lane.b32.xlu1 %v1450_v34, %s3490_s11  ;;  %v3327_v23 = vpack.c.bf16 %v2222_v54, %v2221_v1 }
 0x29f   :  { %3354 = vmatpush3.bf16.msra.mxu0 %v3353_v55 }
 0x2a0   :  { %1363 = vrot.lane.b32.xlu0 %v2827_v9, %s3488_s2  ;;  %v2213_v9 = vld [vmem:[%s5312_s5 + $0xa0] sm:$0xff] }
 0x2a2   :  { %1393 = vrot.lane.b32.xlu1 %v2829_v42, %s3488_s2  ;;  %v3311_v42 = vpack.c.bf16 %v2214_v15, %v2213_v9  ;;  %v2205_v9 = vld [vmem:[%s5312_s5 + $0x60] sm:$0xff]  ;;  %v2206_v15 = vld [vmem:[%s5312_s5 + $0x68] sm:$0xff] }
 0x2a4   :  { %1369 = vrot.lane.b32.xlu0 %v1368_v6, %s3490_s11  ;;  %v2197_v6 = vld [vmem:[%s5312_s5 + $0x20] sm:$0xff]  ;;  %3312 = vmatprep.subr.bf16.mxu1 %v3311_v42  ;;  %v2223_v42 = vld [vmem:[%s5312_s5 + $0xf0] sm:$0xff] }
 0x2a6   :  { %1398 = vrot.lane.b32.xlu1 %v1397_v44, %s3490_s11  ;;  %v2198_v44 = vld [vmem:[%s5312_s5 + $0x28] sm:$0xff] }
 0x2a8   :  { %1430 = vrot.lane.b32.xlu0 %v2832_v0, %s3491_s25 }
 0x2aa   :  { %1457 = vrot.lane.b32.xlu1 %v2834_v63, %s3491_s25  ;;  %v3313_v63 = vpack.c.bf16 %v2198_v44, %v2197_v6 }
 0x2ac   :  { %v3134_v31 = vpop.f32.mrb[2].mxu1  ;;  %1376 = vrot.lane.b32.xlu0 %v2828_v3, %s3491_s25  ;;  %v2215_v3 = vld [vmem:[%s5312_s5 + $0xb0] sm:$0xff]  ;;  %3314 = vmatpush3.bf16.msra.mxu1 %v3313_v63 }
 0x2ad   :  { %v4771_v52 = vadd.f32 %v3134_v31, %v4711_v57  ;;  %v1338_v39 = vpop.f32.mrb[3].mxu1  ;;  %v3315_v31 = vpack.c.bf16 %v2216_v50, %v2215_v3  ;;  %v2207_v63 = vld [vmem:[%s5312_s5 + $0x70] sm:$0xff]  ;;  %v2208_v3 = vld [vmem:[%s5312_s5 + $0x78] sm:$0xff] }
 0x2ae   :  { %v1339_v16 = vadd.f32 %v4711_v57, %v1338_v39  ;;  %1404 = vrot.lane.b32.xlu1 %v2830_v12, %s3491_s25  ;;  %v2199_v12 = vld [vmem:[%s5312_s5 + $0x30] sm:$0xff] }
 0x2af   :  { %v1350_v32 = vmax.f32 %v4771_v52, 0.0  ;;  %3316 = vmatprep.subr.bf16.mxu1 %v3315_v31  ;;  %v3317_v40 = vpack.c.bf16 %v2200_v19, %v2199_v12  ;;  %v2255_v50 = vld [vmem:[%s5312_s5 + $0x1f0] sm:$0xff]  ;;  %v2240_v31 = vld [vmem:[%s5312_s5 + $0x178] sm:$0xff] }
 0x2b0   :  { %v1349_v11 = vmax.f32 %v1339_v16, 0.0  ;;  %v2252_v16 = vld [vmem:[%s5312_s5 + $0x1d8] sm:$0xff] }
 0x2b1   :  { %1514 = vst.msk [vmem:[#allocation2 + $0xc] sm:$0x1] %vm1351_vm12, %v1350_v32  ;;  %3318 = vmatpush3.bf16.msra.mxu1 %v3317_v40  ;;  %v1522_v6 = vrot.slane %v1350_v32, %v5353_v17  ;;  %v3333_v32 = vpack.c.bf16 %v2208_v3, %v2207_v63  ;;  %v2257_v63 = vld [vmem:[%s5312_s5 + $0x200] sm:$0xff]  ;;  %v2258_v3 = vld [vmem:[%s5312_s5 + $0x208] sm:$0xff] }
 0x2b2   :  { %v4780_v27 = vrot.slane %v1349_v11, %v5353_v17  ;;  %v1487_v21 = vcombine.high %v1349_v11, %v1349_v11  ;;  %1461 = vst.msk [vmem:[#allocation2 + $0x8] sm:$0x1] %vm1351_vm12, %v1349_v11  ;;  %v2235_v11 = vld [vmem:[%s5312_s5 + $0x150] sm:$0xff]  ;;  %3320 = vmatprep.subr.bf16.mxu1 %v3319_v58 }
 0x2b3   :  { %v2839_v40 = vrot.slane %v1522_v6, 9 }
 0x2b4   :  { %v4784_v26 = vrot.slane %v1487_v21, %v5353_v17  ;;  %v2835_v60 = vrot.slane %v4780_v27, 9  ;;  %v2236_v21 = vld [vmem:[%s5312_s5 + $0x158] sm:$0xff] }
 0x2b5   :  { %3322 = vmatpush3.bf16.msra.mxu1 %v3321_v49 }
 0x2b6   :  { %1496 = vst.msk [vmem:[#allocation2 + $0xa] sm:$0x1] %vm1351_vm12, %v4784_v26  ;;  %1472 = vrot.lane.b32.xlu0 %v2835_v60, %s3488_s2  ;;  %v2837_v48 = vrot.slane %v4784_v26, 9  ;;  %v3355_v60 = vpack.c.bf16 %v2252_v16, %v2251_v20  ;;  %v2273_v20 = vld [vmem:[%s5312_s5 + $0x280] sm:$0xff] }
 0x2b8   :  { %1499 = vrot.lane.b32.xlu1 %v2837_v48, %s3488_s2  ;;  %v3357_v48 = vpack.c.bf16 %v2236_v21, %v2235_v11  ;;  %3356 = vmatprep.subr.bf16.mxu0 %v3355_v60  ;;  %v1503_v11 = vcombine.high %v4784_v26, %v4784_v26  ;;  %v3492_v21 = vmov 0.0|0.0   ;;  %v1476_v60 = vcombine.high %v4780_v27, %v4780_v27 }
 0x2b9   :  { %v1529_v26 = vcombine.high %v1522_v6, %v1522_v6 }
 0x2ba   :  { %3358 = vmatpush3.bf16.msra.mxu0 %v3357_v48  ;;  %v2838_v51 = vrot.slane %v1503_v11, 9 }
 0x2bb   :  { %3360 = vmatprep.subr.bf16.mxu0 %v3359_v14 }
 0x2c1   :  { %v3157_v8 = vpop.f32.mrb[4].mxu1 }
 0x2c2   :  { %v1989_v25 = vadd.f32 %v3157_v8, %v4711_v57  ;;  %v1983_v56 = vpop.f32.mrb[5].mxu1 }
 0x2c3   :  { %v1984_v10 = vadd.f32 %v4711_v57, %v1983_v56  ;;  %v2220_v56 = vld [vmem:[%s5312_s5 + $0xd8] sm:$0xff] }
 0x2c4   :  { %v2003_v18 = vmax.f32 %v1989_v25, 0.0  ;;  %v2219_v25 = vld [vmem:[%s5312_s5 + $0xd0] sm:$0xff] }
 0x2c5   :  { %v2002_v37 = vmax.f32 %v1984_v10, 0.0  ;;  %v3323_v28 = vpack.c.bf16 %v2220_v56, %v2219_v25 }
 0x2c6   :  { %v2067_v24 = vrot.slane %v2003_v18, %v5353_v17  ;;  %v2085_v47 = vcombine.high %v2003_v18, %v2003_v18  ;;  %2059 = vst.msk [vmem:[#allocation2 + $0x5] sm:$0x1] %vm1351_vm12, %v2003_v18  ;;  %v2204_v18 = vld [vmem:[%s5312_s5 + $0x58] sm:$0xff] }
 0x2c7   :  { %v2032_v34 = vcombine.high %v2002_v37, %v2002_v37  ;;  %2006 = vst.msk [vmem:[#allocation2 + $0x1] sm:$0x1] %vm1351_vm12, %v2002_v37  ;;  %v2014_v5 = vrot.slane %v2002_v37, %v5353_v17  ;;  %3324 = vmatprep.subr.bf16.mxu1 %v3323_v28 }
 0x2c8   :  { %v2092_v13 = vrot.slane %v2085_v47, %v5353_v17  ;;  %v2850_v41 = vrot.slane %v2067_v24, 9  ;;  %v4870_v30 = vcombine.high %v2067_v24, %v2067_v24  ;;  %v2238_v24 = vld [vmem:[%s5312_s5 + $0x168] sm:$0xff] }
 0x2c9   :  { %v2039_v61 = vrot.slane %v2032_v34, %v5353_v17  ;;  %v2846_v35 = vrot.slane %v2014_v5, 9  ;;  %v2021_v10 = vcombine.high %v2014_v5, %v2014_v5  ;;  %v3361_v45 = vpack.c.bf16 %v2238_v24, %v2237_v2  ;;  %v2256_v5 = vld [vmem:[%s5312_s5 + $0x1f8] sm:$0xff] }
 0x2ca   :  { %2094 = vst.msk [vmem:[#allocation2 + $0x7] sm:$0x1] %vm1351_vm12, %v2092_v13  ;;  %2070 = vrot.lane.b32.xlu0 %v2850_v41, %s3488_s2  ;;  %v2852_v0 = vrot.slane %v2092_v13, 9  ;;  %v4883_v39 = vcombine.high %v2092_v13, %v2092_v13  ;;  %v2851_v34 = vrot.slane %v4870_v30, 9  ;;  %v3329_v41 = vpack.c.bf16 %v2206_v15, %v2205_v9 }
 0x2cb   :  { %2041 = vst.msk [vmem:[#allocation2 + $0x3] sm:$0x1] %vm1351_vm12, %v2039_v61  ;;  %v2848_v8 = vrot.slane %v2039_v61, 9  ;;  %v2048_v37 = vcombine.high %v2039_v61, %v2039_v61  ;;  %3362 = vmatpush3.bf16.msra.mxu0 %v3361_v45  ;;  %v2224_v61 = vld [vmem:[%s5312_s5 + $0xf8] sm:$0xff]  ;;  %v2847_v44 = vrot.slane %v2021_v10, 9  ;;  %v3363_v12 = vpack.c.bf16 %v2256_v5, %v2255_v50 }
 0x2cc   :  { %2097 = vrot.lane.b32.xlu1 %v2852_v0, %s3488_s2  ;;  %v2853_v13 = vrot.slane %v4883_v39, 9  ;;  %v3331_v0 = vpack.c.bf16 %v2224_v61, %v2223_v42  ;;  %v2276_v5 = vld [vmem:[%s5312_s5 + $0x298] sm:$0xff] }
 0x2cd   :  { %v2849_v52 = vrot.slane %v2048_v37, 9  ;;  %3364 = vmatprep.subr.bf16.mxu0 %v3363_v12  ;;  %v2290_v12 = vld [vmem:[%s5312_s5 + $0x308] sm:$0xff] }
 0x2ce   :  { %2075 = vrot.lane.b32.xlu0 %v4870_v30, %s3490_s11  ;;  %v2239_v30 = vld [vmem:[%s5312_s5 + $0x170] sm:$0xff] }
 0x2cf   :  { %v3365_v19 = vpack.c.bf16 %v2240_v31, %v2239_v30  ;;  %v2289_v31 = vld [vmem:[%s5312_s5 + $0x300] sm:$0xff] }
 0x2d0   :  { %2102 = vrot.lane.b32.xlu1 %v4883_v39, %s3490_s11  ;;  %v2274_v39 = vld [vmem:[%s5312_s5 + $0x288] sm:$0xff] }
 0x2d1   :  { %v3160_v38 = vpop.f32.mrb[6].mxu1  ;;  %v3367_v16 = vpack.c.bf16 %v2274_v39, %v2273_v20  ;;  %3366 = vmatpush3.bf16.msra.mxu0 %v3365_v19  ;;  %v3369_v39 = vpack.c.bf16 %v2258_v3, %v2257_v63  ;;  %v2285_v3 = vld [vmem:[%s5312_s5 + $0x2e0] sm:$0xff] }
 0x2d2   :  { %v4909_v46 = vadd.f32 %v3160_v38, %v4711_v57  ;;  %v1993_v43 = vpop.f32.mrb[7].mxu1  ;;  %2017 = vrot.lane.b32.xlu0 %v2846_v35, %s3488_s2  ;;  %3399 = vmatprep.subr.bf16.mxu0 %v3492_v21  ;;  %v2836_v35 = vrot.slane %v1476_v60, 9  ;;  %v2840_v38 = vrot.slane %v1529_v26, 9 }
 0x2d3   :  { %v1994_v53 = vadd.f32 %v4711_v57, %v1993_v43  ;;  %v2203_v57 = vld [vmem:[%s5312_s5 + $0x50] sm:$0xff] }
 0x2d4   :  { %v2005_v29 = vmax.f32 %v4909_v46, 0.0  ;;  %2044 = vrot.lane.b32.xlu1 %v2848_v8, %s3488_s2  ;;  %v3325_v59 = vpack.c.bf16 %v2204_v18, %v2203_v57 }
 0x2d5   :  { %v4921_v7 = vmax.f32 %v1994_v53, 0.0 }
 0x2d6   :  { %2165 = vst.msk [vmem:[#allocation2 + $0xd] sm:$0x1] %vm1351_vm12, %v2005_v29  ;;  %2022 = vrot.lane.b32.xlu0 %v2021_v10, %s3490_s11  ;;  %3326 = vmatpush3.bf16.msra.mxu1 %v3325_v59  ;;  %v2173_v48 = vrot.slane %v2005_v29, %v5353_v17 }
 0x2d7   :  { %v2138_v47 = vcombine.high %v4921_v7, %v4921_v7  ;;  %2112 = vst.msk [vmem:[#allocation2 + $0x9] sm:$0x1] %vm1351_vm12, %v4921_v7  ;;  %3328 = vmatprep.subr.bf16.mxu1 %v3327_v23  ;;  %v2120_v58 = vrot.slane %v4921_v7, %v5353_v17 }
 0x2d8   :  { %2049 = vrot.lane.b32.xlu1 %v2048_v37, %s3490_s11  ;;  %v2858_v62 = vrot.slane %v2173_v48, 9  ;;  %v2180_v27 = vcombine.high %v2173_v48, %v2173_v48 }
 0x2d9   :  { %v4958_v55 = vrot.slane %v2138_v47, %v5353_v17  ;;  %v2854_v22 = vrot.slane %v2120_v58, 9  ;;  %v2127_v46 = vcombine.high %v2120_v58, %v2120_v58  ;;  %v2291_v58 = vld [vmem:[%s5312_s5 + $0x310] sm:$0xff] }
 0x2da   :  { %2081 = vrot.lane.b32.xlu0 %v2851_v34, %s3491_s25  ;;  %3330 = vmatpush3.bf16.msra.mxu1 %v3329_v41  ;;  %v2859_v53 = vrot.slane %v2180_v27, 9 }
 0x2db   :  { %2147 = vst.msk [vmem:[#allocation2 + $0xb] sm:$0x1] %vm1351_vm12, %v4958_v55  ;;  %3332 = vmatprep.subr.bf16.mxu1 %v3331_v0  ;;  %v2856_v33 = vrot.slane %v4958_v55, 9  ;;  %v2154_v43 = vcombine.high %v4958_v55, %v4958_v55  ;;  %v2855_v8 = vrot.slane %v2127_v46, 9 }
 0x2dc   :  { %2108 = vrot.lane.b32.xlu1 %v2853_v13, %s3491_s25 }
 0x2dd   :  { %v2857_v49 = vrot.slane %v2154_v43, 9 }
 0x2de   :  { %2028 = vrot.lane.b32.xlu0 %v2847_v44, %s3491_s25  ;;  %3334 = vmatpush3.bf16.msra.mxu1 %v3333_v32  ;;  %v2275_v32 = vld [vmem:[%s5312_s5 + $0x290] sm:$0xff] }
 0x2df   :  { %3368 = vmatprep.subr.bf16.mxu1 %v3367_v16  ;;  %v3371_v16 = vpack.c.bf16 %v2276_v5, %v2275_v32  ;;  %v2299_v32 = vld [vmem:[%s5312_s5 + $0x350] sm:$0xff]  ;;  %v2300_v5 = vld [vmem:[%s5312_s5 + $0x358] sm:$0xff] }
 0x2e0   :  { %2055 = vrot.lane.b32.xlu1 %v2849_v52, %s3491_s25 }
 0x2e2   :  { %1525 = vrot.lane.b32.xlu0 %v2839_v40, %s3488_s2 }
 0x2e4   :  { %1504 = vrot.lane.b32.xlu1 %v1503_v11, %s3490_s11  ;;  %v2259_v11 = vld [vmem:[%s5312_s5 + $0x210] sm:$0xff] }
 0x2e6   :  { %1477 = vrot.lane.b32.xlu0 %v1476_v60, %s3490_s11  ;;  %v2260_v60 = vld [vmem:[%s5312_s5 + $0x218] sm:$0xff] }
 0x2e8   :  { %1510 = vrot.lane.b32.xlu1 %v2838_v51, %s3491_s25  ;;  %v3400_v51 = vpack.c.bf16 %v2290_v12, %v2289_v31 }
 0x2ea   :  { %1530 = vrot.lane.b32.xlu0 %v1529_v26, %s3490_s11  ;;  %v2277_v26 = vld [vmem:[%s5312_s5 + $0x2a0] sm:$0xff] }
 0x2ec   :  { %2176 = vrot.lane.b32.xlu1 %v2858_v62, %s3488_s2  ;;  %v2278_v62 = vld [vmem:[%s5312_s5 + $0x2a8] sm:$0xff] }
 0x2ee   :  { %1483 = vrot.lane.b32.xlu0 %v2836_v35, %s3491_s25 }
 0x2f0   :  { %2181 = vrot.lane.b32.xlu1 %v2180_v27, %s3490_s11  ;;  %v2292_v27 = vld [vmem:[%s5312_s5 + $0x318] sm:$0xff] }
 0x2f2   :  { %1536 = vrot.lane.b32.xlu0 %v2840_v38, %s3491_s25  ;;  %v3373_v38 = vpack.c.bf16 %v2260_v60, %v2259_v11  ;;  %v2301_v11 = vld [vmem:[%s5312_s5 + $0x360] sm:$0xff]  ;;  %v2302_v60 = vld [vmem:[%s5312_s5 + $0x368] sm:$0xff] }
 0x2f4   :  { %2123 = vrot.lane.b32.xlu1 %v2854_v22, %s3488_s2 }
 0x2f6   :  { %2150 = vrot.lane.b32.xlu0 %v2856_v33, %s3488_s2  ;;  %v3375_v33 = vpack.c.bf16 %v2278_v62, %v2277_v26  ;;  %v2271_v26 = vld [vmem:[%s5312_s5 + $0x270] sm:$0xff]  ;;  %v2272_v62 = vld [vmem:[%s5312_s5 + $0x278] sm:$0xff] }
 0x2f8   :  { %2128 = vrot.lane.b32.xlu1 %v2127_v46, %s3490_s11  ;;  %v2261_v46 = vld [vmem:[%s5312_s5 + $0x220] sm:$0xff] }
 0x2fa   :  { %2155 = vrot.lane.b32.xlu0 %v2154_v43, %s3490_s11  ;;  %v2262_v43 = vld [vmem:[%s5312_s5 + $0x228] sm:$0xff] }
 0x2fc   :  { %2134 = vrot.lane.b32.xlu1 %v2855_v8, %s3491_s25  ;;  %v3403_v8 = vpack.c.bf16 %v2292_v27, %v2291_v58  ;;  %v2303_v58 = vld [vmem:[%s5312_s5 + $0x370] sm:$0xff]  ;;  %v2304_v27 = vld [vmem:[%s5312_s5 + $0x378] sm:$0xff] }
 0x2fe   :  { %2161 = vrot.lane.b32.xlu0 %v2857_v49, %s3491_s25  ;;  %v2279_v49 = vld [vmem:[%s5312_s5 + $0x2b0] sm:$0xff] }
 0x300   :  { %2187 = vrot.lane.b32.xlu1 %v2859_v53, %s3491_s25  ;;  %v2280_v53 = vld [vmem:[%s5312_s5 + $0x2b8] sm:$0xff] }
 0x30a   :  { %v1420_v25 = vpop.permute.xlu0 %1419 }
 0x30b   :  { %1422 = vst.msk [vmem:[#allocation2 + $0x4] sm:$0x1] %vm1366_vm13, %v1420_v25  ;;  %v3494_v25 = vmov 0.0  }
 0x30c   :  { %v1447_v56 = vpop.permute.xlu1 %1446 }
 0x30d   :  { %1449 = vst.msk [vmem:[#allocation2 + $0x6] sm:$0x1] %vm1366_vm13, %v1447_v56 }
 0x30e   :  { %v1425_v29 = vpop.permute.xlu0 %1424 }
 0x30f   :  { %1427 = vst.msk [vmem:[#allocation2 + $0x4] sm:$0x1] %vm1372_vm14, %v1425_v29  ;;  %v2293_v29 = vld [vmem:[%s5312_s5 + $0x320] sm:$0xff] }
 0x310   :  { %v1452_v10 = vpop.permute.xlu1 %1451 }
 0x311   :  { %1454 = vst.msk [vmem:[#allocation2 + $0x6] sm:$0x1] %vm1372_vm14, %v1452_v10  ;;  %v2294_v10 = vld [vmem:[%s5312_s5 + $0x328] sm:$0xff] }
 0x312   :  { %v1364_v28 = vpop.permute.xlu0 %1363 }
 0x313   :  { %1367 = vst.msk [vmem:[#allocation2] sm:$0x1] %vm1366_vm13, %v1364_v28  ;;  %v3377_v28 = vpack.c.bf16 %v2262_v43, %v2261_v46 }
 0x314   :  { %v1394_v7 = vpop.permute.xlu1 %1393 }
 0x315   :  { %1396 = vst.msk [vmem:[#allocation2 + $0x2] sm:$0x1] %vm1366_vm13, %v1394_v7 }
 0x316   :  { %v1370_v57 = vpop.permute.xlu0 %1369 }
 0x317   :  { %1373 = vst.msk [vmem:[#allocation2] sm:$0x1] %vm1372_vm14, %v1370_v57  ;;  %v3379_v57 = vpack.c.bf16 %v2280_v53, %v2279_v49  ;;  %v2635_v53 = vld [vmem:[%s5314_s7] sm:$0xff] }
 0x318   :  { %v1399_v18 = vpop.permute.xlu1 %1398 }
 0x319   :  { %1401 = vst.msk [vmem:[#allocation2 + $0x2] sm:$0x1] %vm1372_vm14, %v1399_v18  ;;  %v2263_v18 = vld [vmem:[%s5312_s5 + $0x230] sm:$0xff] }
 0x31a   :  { %v1431_v4 = vpop.permute.xlu0 %1430 }
 0x31b   :  { %1433 = vst.msk [vmem:[#allocation2 + $0x4] sm:$0x1] %vm1379_vm15, %v1431_v4  ;;  %v2264_v4 = vld [vmem:[%s5312_s5 + $0x238] sm:$0xff] }
 0x31c   :  { %v1458_v37 = vpop.permute.xlu1 %1457 }
 0x31d   :  { %1460 = vst.msk [vmem:[#allocation2 + $0x6] sm:$0x1] %vm1379_vm15, %v1458_v37  ;;  %v3406_v37 = vpack.c.bf16 %v2294_v10, %v2293_v29  ;;  %v2637_v29 = vld [vmem:[%s5314_s7 + $0x10] sm:$0xff] }
 0x31e   :  { %v1377_v59 = vpop.permute.xlu0 %1376 }
 0x31f   :  { %1380 = vst.msk [vmem:[#allocation2] sm:$0x1] %vm1379_vm15, %v1377_v59  ;;  %v2281_v59 = vld [vmem:[%s5312_s5 + $0x2c0] sm:$0xff] }
 0x320   :  { %v1405_v36 = vpop.permute.xlu1 %1404 }
 0x321   :  { %1407 = vst.msk [vmem:[#allocation2 + $0x2] sm:$0x1] %vm1379_vm15, %v1405_v36  ;;  %v2282_v36 = vld [vmem:[%s5312_s5 + $0x2c8] sm:$0xff] }
 0x328   :  { %v1473_v2 = vpop.permute.xlu0 %1472 }
 0x329   :  { %1475 = vst.msk [vmem:[#allocation2 + $0x8] sm:$0x1] %vm1366_vm13, %v1473_v2 }
 0x32a   :  { %v1500_v24 = vpop.permute.xlu1 %1499 }
 0x32b   :  { %1502 = vst.msk [vmem:[#allocation2 + $0xa] sm:$0x1] %vm1366_vm13, %v1500_v24  ;;  %v2295_v24 = vld [vmem:[%s5312_s5 + $0x330] sm:$0xff] }
 0x33c   :  { %v2071_v47 = vpop.permute.xlu0 %2070 }
 0x33d   :  { %2073 = vst.msk [vmem:[#allocation2 + $0x5] sm:$0x1] %vm1366_vm13, %v2071_v47  ;;  %v2296_v47 = vld [vmem:[%s5312_s5 + $0x338] sm:$0xff] }
 0x33e   :  { %v2098_v14 = vpop.permute.xlu1 %2097 }
 0x33f   :  { %2100 = vst.msk [vmem:[#allocation2 + $0x7] sm:$0x1] %vm1366_vm13, %v2098_v14  ;;  %v3381_v14 = vpack.c.bf16 %v2264_v4, %v2263_v18  ;;  %v2641_v18 = vld [vmem:[%s5314_s7 + $0x30] sm:$0xff]  ;;  %v2642_v4 = vld [vmem:[%s5314_s7 + $0x38] sm:$0xff] }
 0x340   :  { %v2076_v45 = vpop.permute.xlu0 %2075 }
 0x341   :  { %2078 = vst.msk [vmem:[#allocation2 + $0x5] sm:$0x1] %vm1372_vm14, %v2076_v45 }
 0x342   :  { %v2103_v1 = vpop.permute.xlu1 %2102 }
 0x343   :  { %2105 = vst.msk [vmem:[#allocation2 + $0x7] sm:$0x1] %vm1372_vm14, %v2103_v1  ;;  %v3383_v1 = vpack.c.bf16 %v2282_v36, %v2281_v59  ;;  %v2643_v59 = vld [vmem:[%s5314_s7 + $0x40] sm:$0xff]  ;;  %v2644_v36 = vld [vmem:[%s5314_s7 + $0x48] sm:$0xff] }
 0x344   :  { %v2018_v54 = vpop.permute.xlu0 %2017 }
 0x345   :  { %2020 = vst.msk [vmem:[#allocation2 + $0x1] sm:$0x1] %vm1366_vm13, %v2018_v54  ;;  %v2265_v54 = vld [vmem:[%s5312_s5 + $0x240] sm:$0xff] }
 0x346   :  { %v2045_v34 = vpop.permute.xlu1 %2044 }
 0x347   :  { %2047 = vst.msk [vmem:[#allocation2 + $0x3] sm:$0x1] %vm1366_vm13, %v2045_v34  ;;  %v2266_v34 = vld [vmem:[%s5312_s5 + $0x248] sm:$0xff] }
 0x348   :  { %v2023_v23 = vpop.permute.xlu0 %2022 }
 0x349   :  { %2025 = vst.msk [vmem:[#allocation2 + $0x1] sm:$0x1] %vm1372_vm14, %v2023_v23  ;;  %v3409_v23 = vpack.c.bf16 %v2296_v47, %v2295_v24  ;;  %v2645_v24 = vld [vmem:[%s5314_s7 + $0x50] sm:$0xff]  ;;  %v2646_v47 = vld [vmem:[%s5314_s7 + $0x58] sm:$0xff] }
 0x34a   :  { %v2050_v55 = vpop.permute.xlu1 %2049 }
 0x34b   :  { %2052 = vst.msk [vmem:[#allocation2 + $0x3] sm:$0x1] %vm1372_vm14, %v2050_v55  ;;  %v2283_v55 = vld [vmem:[%s5312_s5 + $0x2d0] sm:$0xff] }
 0x34c   :  { %v2082_v9 = vpop.permute.xlu0 %2081 }
 0x34d   :  { %2084 = vst.msk [vmem:[#allocation2 + $0x5] sm:$0x1] %vm1379_vm15, %v2082_v9  ;;  %v2284_v9 = vld [vmem:[%s5312_s5 + $0x2d8] sm:$0xff] }
 0x34e   :  { %v2109_v15 = vpop.permute.xlu1 %2108 }
 0x34f   :  { %2111 = vst.msk [vmem:[#allocation2 + $0x7] sm:$0x1] %vm1379_vm15, %v2109_v15 }
 0x350   :  { %v2029_v13 = vpop.permute.xlu0 %2028 }
 0x351   :  { %2031 = vst.msk [vmem:[#allocation2 + $0x1] sm:$0x1] %vm1379_vm15, %v2029_v13  ;;  %v2297_v13 = vld [vmem:[%s5312_s5 + $0x340] sm:$0xff] }
 0x352   :  { %v2056_v41 = vpop.permute.xlu1 %2055 }
 0x353   :  { %2058 = vst.msk [vmem:[#allocation2 + $0x3] sm:$0x1] %vm1379_vm15, %v2056_v41  ;;  %v2298_v41 = vld [vmem:[%s5312_s5 + $0x348] sm:$0xff] }
 0x354   :  { %v1526_v42 = vpop.permute.xlu0 %1525  ;;  %v3412_v63 = vpack.c.bf16 %v2298_v41, %v2297_v13 }
 0x355   :  { %1528 = vst.msk [vmem:[#allocation2 + $0xc] sm:$0x1] %vm1366_vm13, %v1526_v42  ;;  %v3385_v42 = vpack.c.bf16 %v2266_v34, %v2265_v54  ;;  %v2649_v54 = vld [vmem:[%s5314_s7 + $0x70] sm:$0xff] }
 0x356   :  { %v1505_v61 = vpop.permute.xlu1 %1504 }
 0x357   :  { %1507 = vst.msk [vmem:[#allocation2 + $0xa] sm:$0x1] %vm1372_vm14, %v1505_v61 }
 0x358   :  { %v1478_v6 = vpop.permute.xlu0 %1477 }
 0x359   :  { %1480 = vst.msk [vmem:[#allocation2 + $0x8] sm:$0x1] %vm1372_vm14, %v1478_v6  ;;  %v3387_v6 = vpack.c.bf16 %v2284_v9, %v2283_v55 }
 0x35a   :  { %v1511_v44 = vpop.permute.xlu1 %1510  ;;  %v2191_v0 = vld [vmem:[#allocation2] sm:$0xff] }
 0x35b   :  { %1513 = vst.msk [vmem:[#allocation2 + $0xa] sm:$0x1] %vm1379_vm15, %v1511_v44  ;;  %v2321_v50 = vrot.slane %v2191_v0, %v5353_v17  ;;  %v2314_v52 = vcombine.high %v2191_v0, %v2191_v0  ;;  %v2267_v44 = vld [vmem:[%s5312_s5 + $0x250] sm:$0xff]  ;;  %v2268_v0 = vld [vmem:[%s5312_s5 + $0x258] sm:$0xff] }
 0x35c   :  { %v1531_v30 = vpop.permute.xlu0 %1530 }
 0x35d   :  { %1533 = vst.msk [vmem:[#allocation2 + $0xc] sm:$0x1] %vm1372_vm14, %v1531_v30  ;;  %v2329_v19 = vcombine.high %v2321_v50, %v2321_v50  ;;  %v2328_v20 = vrot.slane %v2314_v52, %v5353_v17  ;;  %v3389_v30 = vpack.c.bf16 %v2268_v0, %v2267_v44 }
 0x35e   :  { %v2177_v40 = vpop.permute.xlu1 %2176 }
 0x35f   :  { %2179 = vst.msk [vmem:[#allocation2 + $0xd] sm:$0x1] %vm1366_vm13, %v2177_v40  ;;  %2418 = vmatprep.mubr.f32.mxu1 %v2329_v19  ;;  %v2330_v48 = vcombine.high %v2328_v20, %v2328_v20  ;;  %v2269_v19 = vld [vmem:[%s5312_s5 + $0x260] sm:$0xff]  ;;  %v2287_v40 = vld [vmem:[%s5312_s5 + $0x2f0] sm:$0xff] }
 0x360   :  { %v1484_v35 = vpop.permute.xlu0 %1483  ;;  %2419 = vmatmul.mubr.f32.vlgmr.msra.gmra.mrb[8].mxu1 %v2321_v50  ;;  %v2286_v50 = vld [vmem:[%s5312_s5 + $0x2e8] sm:$0xff] }
 0x361   :  { %1486 = vst.msk [vmem:[#allocation2 + $0x8] sm:$0x1] %vm1379_vm15, %v1484_v35  ;;  %2488 = vmatprep.mubr.f32.mxu0 %v2330_v48  ;;  %3370 = vmatpush3.bf16.msra.mxu1 %v3369_v39  ;;  %v3391_v12 = vpack.c.bf16 %v2286_v50, %v2285_v3  ;;  %v3415_v39 = vpack.c.bf16 %v2300_v5, %v2299_v32 }
 0x362   :  { %v2182_v22 = vpop.permute.xlu1 %2181  ;;  %2489 = vmatmul.mubr.f32.vlgmr.msra.gmra.mrb[32].mxu0 %v2328_v20  ;;  %3372 = vmatprep.subr.bf16.mxu1 %v3371_v16  ;;  %v2270_v20 = vld [vmem:[%s5312_s5 + $0x268] sm:$0xff]  ;;  %v2288_v16 = vld [vmem:[%s5312_s5 + $0x2f8] sm:$0xff]  ;;  %v3418_v35 = vpack.c.bf16 %v2302_v60, %v2301_v11 }
 0x363   :  { %2184 = vst.msk [vmem:[#allocation2 + $0xd] sm:$0x1] %vm1372_vm14, %v2182_v22  ;;  %3401 = vmatpush3.bf16.msra.mxu0 %v3400_v51  ;;  %3193 = vmatprep.mubr.msk.f32.mxu0 %vm3493_vm0, %v3494_v25  ;;  %v3393_v48 = vpack.c.bf16 %v2270_v20, %v2269_v19  ;;  %v3395_v51 = vpack.c.bf16 %v2288_v16, %v2287_v40 }
 0x364   :  { %v1537_v56 = vpop.permute.xlu0 %1536  ;;  %3402 = vmatprep.subr.bf16.mxu0 %v3492_v21 }
 0x365   :  { %1539 = vst.msk [vmem:[#allocation2 + $0xc] sm:$0x1] %vm1379_vm15, %v1537_v56  ;;  %3374 = vmatpush3.bf16.msra.mxu1 %v3373_v38  ;;  %v3397_v38 = vpack.c.bf16 %v2272_v62, %v2271_v26  ;;  %v2636_v56 = vld [vmem:[%s5314_s7 + $0x8] sm:$0xff] }
 0x366   :  { %v2124_v7 = vpop.permute.xlu1 %2123  ;;  %3376 = vmatprep.subr.bf16.mxu1 %v3375_v33  ;;  %v3421_v33 = vpack.c.bf16 %v2304_v27, %v2303_v58  ;;  %v3424_v10 = vpack.c.bf16 %v2636_v56, %v2635_v53 }
 0x367   :  { %2126 = vst.msk [vmem:[#allocation2 + $0x9] sm:$0x1] %vm1366_vm13, %v2124_v7  ;;  %3404 = vmatpush3.bf16.msra.mxu0 %v3403_v8  ;;  %v2640_v7 = vld [vmem:[%s5314_s7 + $0x28] sm:$0xff] }
 0x368   :  { %v2151_v2 = vpop.permute.xlu0 %2150  ;;  %3405 = vmatprep.subr.bf16.mxu0 %v3492_v21 }
 0x369   :  { %2153 = vst.msk [vmem:[#allocation2 + $0xb] sm:$0x1] %vm1366_vm13, %v2151_v2  ;;  %3378 = vmatpush3.bf16.msra.mxu1 %v3377_v28  ;;  %v2639_v28 = vld [vmem:[%s5314_s7 + $0x20] sm:$0xff]  ;;  %v3436_v2 = vpack.c.bf16 %v2644_v36, %v2643_v59 }
 0x36a   :  { %v2129_v45 = vpop.permute.xlu1 %2128  ;;  %3380 = vmatprep.subr.bf16.mxu1 %v3379_v57  ;;  %v3430_v57 = vpack.c.bf16 %v2640_v7, %v2639_v28 }
 0x36b   :  { %2131 = vst.msk [vmem:[#allocation2 + $0x9] sm:$0x1] %vm1372_vm14, %v2129_v45  ;;  %3407 = vmatpush3.bf16.msra.mxu0 %v3406_v37  ;;  %v3433_v37 = vpack.c.bf16 %v2642_v4, %v2641_v18  ;;  %v2647_v45 = vld [vmem:[%s5314_s7 + $0x60] sm:$0xff] }
 0x36c   :  { %v2156_v15 = vpop.permute.xlu0 %2155  ;;  %3408 = vmatprep.subr.bf16.mxu0 %v3492_v21 }
 0x36d   :  { %2158 = vst.msk [vmem:[#allocation2 + $0xb] sm:$0x1] %vm1372_vm14, %v2156_v15  ;;  %3382 = vmatpush3.bf16.msra.mxu1 %v3381_v14  ;;  %v3439_v14 = vpack.c.bf16 %v2646_v47, %v2645_v24  ;;  %v2860_v15 = vld [vmem:[%s5313_s6] ss:$0 sm:$0xff]  ;;  %s3495_s6 = smov [#allocation3]  }
 0x36e   :  { %v2135_v61 = vpop.permute.xlu1 %2134  ;;  %3384 = vmatprep.subr.bf16.mxu1 %v3383_v1  ;;  %v2648_v1 = vld [vmem:[%s5314_s7 + $0x68] sm:$0xff] }
 0x36f   :  { %2137 = vst.msk [vmem:[#allocation2 + $0x9] sm:$0x1] %vm1379_vm15, %v2135_v61  ;;  %3410 = vmatpush3.bf16.msra.mxu0 %v3409_v23  ;;  %v3442_v34 = vpack.c.bf16 %v2648_v1, %v2647_v45  ;;  %v2650_v23 = vld [vmem:[%s5314_s7 + $0x78] sm:$0xff] }
 0x370   :  { %v2162_v52 = vpop.permute.xlu0 %2161  ;;  %3411 = vmatprep.subr.bf16.mxu0 %v3492_v21  ;;  %v3445_v55 = vpack.c.bf16 %v2650_v23, %v2649_v54 }
 0x371   :  { %2164 = vst.msk [vmem:[#allocation2 + $0xb] sm:$0x1] %vm1379_vm15, %v2162_v52  ;;  %3386 = vmatpush3.bf16.msra.mxu1 %v3385_v42 }
 0x372   :  { %v2188_v31 = vpop.permute.xlu1 %2187  ;;  %3388 = vmatprep.subr.bf16.mxu1 %v3387_v6 }
 0x373   :  { %2190 = vst.msk [vmem:[#allocation2 + $0xd] sm:$0x1] %vm1379_vm15, %v2188_v31  ;;  %3413 = vmatpush3.bf16.msra.mxu0 %v3412_v63  ;;  %v2861_v31 = vld [vmem:[%s5315_s8] ss:$0 sm:$0xff]  ;;  %s2749_s8 = sshll.u32 %s3495_s6, 4  ;;  %s2750_s8 = int_to_ptr.vmem [resolvable:$true] %s2749_s8 }
 0x374   :  { %3414 = vmatprep.subr.bf16.mxu0 %v3492_v21  ;;  %s3462_s21 = scalar_lea.vmem %s2750_s8, 32  ;;  %p3467_p1 = scmp.lt.s32.totalorder %s2750_s8, %s2750_s8 }
 0x375   :  { %3390 = vmatpush3.bf16.msra.mxu1 %v3389_v30  ;;  %p3463_p0 = scmp.ne.s32.totalorder %s2750_s8, %s3462_s21  ;;  %p3468_p2 = scmp.lt.s32.totalorder %s3462_s21, %s3462_s21 }
 0x376   :  { %3392 = vmatprep.subr.bf16.mxu1 %v3391_v12 }
 0x377   :  { %3416 = vmatpush3.bf16.msra.mxu0 %v3415_v39  ;;  %p3469_p3 = por %p3468_p2, %p3467_p1 }
 0x378   :  { %3417 = vmatprep.subr.bf16.mxu0 %v3492_v21 }
 0x379   :  { %3394 = vmatpush3.bf16.msra.mxu1 %v3393_v48  ;;  %p3470_p4 = pnand %p3469_p3, %p3463_p0 }
 0x37a   :  { %3396 = vmatprep.subr.bf16.mxu1 %v3395_v51  ;;  %v2192_v22 = vld [vmem:[#allocation2 + $0x8] sm:$0x3f] }
 0x37b   :  { %3419 = vmatpush3.bf16.msra.mxu0 %v3418_v35  ;;  %v2338_v46 = vrot.slane %v2192_v22, %v5353_v17  ;;  %v2331_v43 = vcombine.high %v2192_v22, %v2192_v22 }
 0x37c   :  { %3420 = vmatprep.subr.bf16.mxu0 %v3492_v21 }
 0x37d   :  { %3398 = vmatpush3.bf16.msra.mxu1 %v3397_v38  ;;  %v2346_v8 = vcombine.high %v2338_v46, %v2338_v46  ;;  %v2345_v49 = vrot.slane %v2331_v43, %v5353_v17  ;;  %v2638_v17 = vld [vmem:[%s5314_s7 + $0x18] sm:$0xff] }
 0x37e   :  { %3423 = vmatprep.subr.bf16.mxu1 %v3492_v21 }
 0x37f   :  { %3422 = vmatpush3.bf16.msra.mxu0 %v3421_v33  ;;  %2558 = vmatprep.mubr.f32.mxu1 %v2346_v8 }
 0x380   :  { %2559 = vmatmul.mubr.f32.vlgmr.msra.gmra.mrb[10].mxu1 %v2338_v46 }
 0x381   :  { %3228 = vmatprep.mubr.msk.f32.mxu1 %vm3493_vm0, %v3494_v25  ;;  %3425 = vmatpush3.bf16.msra.mxu1 %v3424_v10  ;;  %v3427_v25 = vpack.c.bf16 %v2638_v17, %v2637_v29 }
 0x382   :  { %3194 = vmatmul.mubr.f32.vlgmr.msra.gmra.mrb[34].mxu0 %v2345_v49  ;;  %3426 = vmatprep.subr.bf16.mxu1 %v3492_v21 }
 0x385   :  { %3428 = vmatpush3.bf16.msra.mxu1 %v3427_v25 }
 0x386   :  { %3429 = vmatprep.subr.bf16.mxu1 %v3492_v21 }
 0x389   :  { %3431 = vmatpush3.bf16.msra.mxu1 %v3430_v57 }
 0x38a   :  { %3432 = vmatprep.subr.bf16.mxu1 %v3492_v21 }
 0x38d   :  { %3434 = vmatpush3.bf16.msra.mxu1 %v3433_v37 }
 0x38e   :  { %3435 = vmatprep.subr.bf16.mxu1 %v3492_v21 }
 0x391   :  { %3437 = vmatpush3.bf16.msra.mxu1 %v3436_v2 }
 0x392   :  { %3438 = vmatprep.subr.bf16.mxu1 %v3492_v21 }
 0x395   :  { %3440 = vmatpush3.bf16.msra.mxu1 %v3439_v14 }
 0x396   :  { %3441 = vmatprep.subr.bf16.mxu1 %v3492_v21 }
 0x399   :  { %3443 = vmatpush3.bf16.msra.mxu1 %v3442_v34 }
 0x39a   :  { %3444 = vmatprep.subr.bf16.mxu1 %v3492_v21 }
 0x39d   :  { %3446 = vmatpush3.bf16.msra.mxu1 %v3445_v55 }
 0x433   :  { %v3002_v9 = vpop.f32.mrb[8].mxu1 }
 0x434   :  { %v3003_v13 = vpop.f32.mrb[9].mxu1 }
 0x435   :  { %v3004_v41 = vadd.f32 %v3003_v13, %v3002_v9  ;;  %v3037_v42 = vpop.f32.mrb[32].mxu0 }
 0x436   :  { %v3038_v61 = vpop.f32.mrb[33].mxu0 }
 0x437   :  { %v2421_v6 = vadd.f32 %v3004_v41, %v2860_v15  ;;  %v3039_v44 = vadd.f32 %v3038_v61, %v3037_v42 }
 0x439   :  { %v2491_v0 = vadd.f32 %v3039_v44, %v2421_v6 }
 0x453   :  { %v3072_v63 = vpop.f32.mrb[10].mxu1 }
 0x454   :  { %v3073_v3 = vpop.f32.mrb[11].mxu1 }
 0x455   :  { %v3074_v50 = vadd.f32 %v3073_v3, %v3072_v63  ;;  %v2630_v52 = vpop.f32.mrb[34].mxu0 }
 0x456   :  { %v3195_v32 = vpop.f32.mrb[35].mxu0 }
 0x457   :  { %v2561_v5 = vadd.f32 %v3074_v50, %v2491_v0 }
 0x459   :  { %v2631_v21 = vadd.f32 %v2630_v52, %v2561_v5 }
 0x45b   :  { %v2634_v30 = vmax.f32 %v2631_v21, 0.0 }
 0x45d   :  { %3229 = vmatmul.mubr.f32.vlgmr.msra.gmra.mrb[12].mxu1 %v2634_v30 }
 0x530   :  { %v2724_v12 = vpop.f32.mrb[12].mxu1 }
 0x531   :  { %v2725_v19 = vadd.f32 %v2861_v31, %v2724_v12  ;;  %v3230_v20 = vpop.f32.mrb[13].mxu1 }
 0x533   :  { %v2729_v39 = vsel %vm2728_vm1, %v2725_v19, -inf }
 0x534   :  { %2730 = vmax.xlane.f32.xlu0 %v2729_v39 }
 0x5c1   :  { %v2731_v40 = vpop.xlane.xlu0 %2730 }
 0x5c2   :  { %v2732_v16 = vsub.f32 %v2725_v19, %v2731_v40 }
 0x5c4   :  { %v2733_v11 = vmul.f32 1.442695, %v2732_v16 }
 0x5c6   :  { %3458 = vpow2.f32 %v2733_v11 }
 0x5d0   :  { %v3459_v60 = vpop.eup %3458 }
 0x5d1   :  { %v2735_v48 = vsel %vm2728_vm1, %v3459_v60, 0.0 }
 0x5d2   :  { %2736 = vadd.xlane.f32.xlu1 %v2735_v48 }
 0x65f   :  { %v2737_v51 = vpop.xlane.xlu1 %2736 }
 0x660   :  { %3460 = vlog2.f32 %v2737_v51 }
 0x66a   :  { %v3461_v26 = vpop.eup %3460 }
 0x66b   :  { %v2739_v62 = vmul.f32 0.6931472, %v3461_v26 }
 0x66d   :  { %v2740_v35 = vadd.f32 %v2739_v62, %v2731_v40 }
 0x66f   :  { %v2741_v58 = vsub.f32 %v2725_v19, %v2740_v35 }
 0x671   :  { %2742 = vst.msk [vmem:[#allocation3] sm:$0x3] %vm2728_vm1, %v2741_v58 }
 0x672   :  { %3473 = shalt.err (!%p3470_p4)
}
 0x673   :  { %s3474_s24 = scalar_lea.hbm %s5316_s9, 32 }
 0x674   :  { %p3475_p5 = scmp.ne.s32.totalorder %s5316_s9, %s3474_s24  ;;  %p3478_p6 = scmp.lt.u32.totalorder %s3474_s24, %s5316_s9 }
 0x676   :  { %p3480_p7 = pnand %p3478_p6, %p3475_p5 }
 0x678   :  { %3483 = shalt.err (!%p3480_p7)
}
 0x679   :  { %2752 = dma.vmem_to_hbm [thread:$0]  %s2750_s8, 32, %s5316_s9, [#allocation4]  }
 0x67a   :  { %3484 = dma.done.wait [#allocation4], 32  }
 0x67b   :  { %3485 = vsyncadd [#allocation4], 4294967264 }
 0x67c   :  { %2756 = vsyncpa [#allocation4], 1 }

</bundles_post_ra>
